<compile_context>
chip_gen: v7x
topology: tpu7x:2x2x1
jax: 0.10.0
libtpu: 0.0.40
codegen_flags: <defaults>
</compile_context>

<pallas_src>
import functools

import jax
import jax.numpy as jnp
from jax.experimental import pallas as pl
from jax.experimental.pallas import tpu as pltpu


_VMEM_LIMIT = 32 * 1024 * 1024   # tiny tiles everywhere; safe on v5e/v6e/v7x


def _round_up(x, m):
    return ((x + m - 1) // m) * m


def _cdiv(a, b):
    return (a + b - 1) // b


def _tile_m(M):
    """Row tile so there are >=2 parallel grid steps when possible (v7x 2 TCs)."""
    nm = max(2, _cdiv(M, 256)) if M >= 16 else 1
    return _round_up(_cdiv(M, nm), 8)


def _cparams(*sem):
    return pltpu.CompilerParams(dimension_semantics=sem,
                                vmem_limit_bytes=_VMEM_LIMIT)


# ------------------- fused matmul + bias + (ReLU), full-K tiles ----------------

def _matmul_kernel(a_ref, w_ref, b_ref, o_ref, *, relu):
    y = jnp.dot(a_ref[...], w_ref[...],
                preferred_element_type=jnp.float32) + b_ref[...]
    if relu:
        y = jnp.maximum(y, 0.0)
    o_ref[...] = y.astype(o_ref.dtype)


def matmul_bias_act(a, w, bias, relu, out_dtype=jnp.bfloat16):
    """a: (M, K) bf16, w: (K, N) bf16, bias: (N,) f32 -> (M, N) out_dtype.

    K <= 512 everywhere in this model, so one full-K tile per step: the grid is
    only (M tiles, N tiles) -- no K axis, no accumulator scratch.
    """
    M, K = a.shape
    N = w.shape[1]
    tm = _tile_m(M)
    tn = min(512, _round_up(N, 128))
    Mp, Np = _round_up(M, tm), _round_up(N, tn)
    a = jnp.pad(a.astype(jnp.bfloat16), ((0, Mp - M), (0, 0)))
    w = jnp.pad(w, ((0, 0), (0, Np - N)))
    b = jnp.pad(bias.reshape(1, N).astype(jnp.float32), ((0, 0), (0, Np - N)))
    out = pl.pallas_call(
        functools.partial(_matmul_kernel, relu=relu),
        out_shape=jax.ShapeDtypeStruct((Mp, Np), out_dtype),
        grid=(Mp // tm, Np // tn),
        in_specs=[
            pl.BlockSpec((tm, K), lambda i, j: (i, 0)),
            pl.BlockSpec((K, tn), lambda i, j: (0, j)),
            pl.BlockSpec((1, tn), lambda i, j: (0, j)),
        ],
        out_specs=pl.BlockSpec((tm, tn), lambda i, j: (i, j)),
        compiler_params=_cparams("parallel", "parallel"),
    )(a, w, b)
    return out[:M, :N]


# ---------------- block head: conv1x1(+ReLU) fused with downsample conv --------

def _head_kernel(x_ref, w1_ref, b1_ref, wd_ref, bd_ref, o1_ref, od_ref):
    a = x_ref[...]                                             # (tm, Cin) bf16
    o1 = jnp.dot(a, w1_ref[...], preferred_element_type=jnp.float32) + b1_ref[...]
    o1_ref[...] = jnp.maximum(o1, 0.0).astype(o1_ref.dtype)    # conv1 + BN + ReLU
    od = jnp.dot(a, wd_ref[...], preferred_element_type=jnp.float32) + bd_ref[...]
    od_ref[...] = od.astype(od_ref.dtype)                      # downsample + BN


def block_head(x2d, w1, b1, wd, bd):
    """Fused conv1x1(+ReLU) and 1x1 downsample conv (same strided input A read
    once, one pallas_call instead of two).  x2d: (M, Cin) bf16."""
    M, Cin = x2d.shape
    P, C4 = w1.shape[1], wd.shape[1]
    tm = _tile_m(M)
    Mp = _round_up(M, tm)
    a = jnp.pad(x2d, ((0, Mp - M), (0, 0)))
    o1, od = pl.pallas_call(
        _head_kernel,
        out_shape=(jax.ShapeDtypeStruct((Mp, P), jnp.bfloat16),
                   jax.ShapeDtypeStruct((Mp, C4), jnp.bfloat16)),
        grid=(Mp // tm,),
        in_specs=[
            pl.BlockSpec((tm, Cin), lambda m: (m, 0)),
            pl.BlockSpec((Cin, P), lambda m: (0, 0)),
            pl.BlockSpec((1, P), lambda m: (0, 0)),
            pl.BlockSpec((Cin, C4), lambda m: (0, 0)),
            pl.BlockSpec((1, C4), lambda m: (0, 0)),
        ],
        out_specs=(pl.BlockSpec((tm, P), lambda m: (m, 0)),
                   pl.BlockSpec((tm, C4), lambda m: (m, 0))),
        compiler_params=_cparams("parallel"),
    )(a, w1, b1.reshape(1, P).astype(jnp.float32),
      wd, bd.reshape(1, C4).astype(jnp.float32))
    return o1[:M], od[:M]


# -------------------- 3x3 stride-1 conv with in-kernel taps --------------------

def _conv3x3_kernel(x_ref, w_ref, b_ref, o_ref, *, H, Wp):
    # x_ref: ((H+3)*Wp, Cin) flattened row-halo of one zero-padded image.
    # Tap (i, j) is the same flat window shifted by i*Wp + j; output columns
    # ow >= W are garbage and discarded by the caller.
    L = H * Wp
    acc = jnp.zeros((L, o_ref.shape[-1]), jnp.float32)
    for i in range(3):
        for j in range(3):
            off = i * Wp + j
            acc = acc + jnp.dot(x_ref[off:off + L, :], w_ref[3 * i + j],
                                preferred_element_type=jnp.float32)
    o_ref[...] = jnp.maximum(acc + b_ref[...], 0.0).astype(o_ref.dtype)


def conv3x3_bn_relu(x, w, bias):
    """3x3 / stride 1 / pad 1 conv + folded BN + ReLU.  w: (9, Cin, Cout) bf16.

    One grid step per image (the whole image fits in VMEM at these spatial
    sizes), so there is no halo duplication: the only XLA glue is a small
    zero-pad.  Wp is rounded up to a multiple of 8 so the row-tap offsets
    (i*Wp) stay sublane aligned.
    """
    N, H, W, C = x.shape
    OC = w.shape[-1]
    Wp = _round_up(W + 2, 8)
    # 1 top / 2 bottom pad rows (the extra bottom row only feeds the discarded
    # overshoot of the flattened-tap trick), 1 left / Wp-W-1 right pad columns.
    xp = jnp.pad(x, ((0, 0), (1, 2), (1, Wp - W - 1), (0, 0)))
    halo = xp.reshape(N, (H + 3) * Wp, C)
    out = pl.pallas_call(
        functools.partial(_conv3x3_kernel, H=H, Wp=Wp),
        out_shape=jax.ShapeDtypeStruct((N, H * Wp, OC), jnp.bfloat16),
        grid=(N,),
        in_specs=[
            pl.BlockSpec((None, (H + 3) * Wp, C), lambda n: (n, 0, 0)),
            pl.BlockSpec((9, C, OC), lambda n: (0, 0, 0)),
            pl.BlockSpec((1, OC), lambda n: (0, 0)),
        ],
        out_specs=pl.BlockSpec((None, H * Wp, OC), lambda n: (n, 0, 0)),
        compiler_params=_cparams("parallel"),
    )(halo, w, bias.reshape(1, OC).astype(jnp.float32))
    # TODO(synk): store only the W valid columns in-kernel instead of this slice.
    return out.reshape(N, H, Wp, OC)[:, :, :W, :]


# -------- block tail: conv1x1(w3)+BN -> SE gate -> scale + residual + ReLU -----

def _se_tail_kernel(x2_ref, res_ref, w3_ref, b3_ref, sw1_ref, sb1_ref,
                    sw2_ref, sb2_ref, *out_refs, inv_hw, emit_gmax):
    # conv1x1 (w3) + folded BN (no ReLU)
    out3 = jnp.dot(x2_ref[...], w3_ref[...],
                   preferred_element_type=jnp.float32) + b3_ref[...]
    # SE gate: global average pool over the valid HW rows, fc1+ReLU, fc2+sigmoid
    s = (jnp.sum(out3, axis=0, keepdims=True) * inv_hw).astype(jnp.bfloat16)
    h = jnp.dot(s, sw1_ref[...], preferred_element_type=jnp.float32) + sb1_ref[...]
    h = jnp.maximum(h, 0.0).astype(jnp.bfloat16)
    g = jax.nn.sigmoid(jnp.dot(h, sw2_ref[...],
                               preferred_element_type=jnp.float32) + sb2_ref[...])
    # scale + residual add + ReLU
    y = jnp.maximum(out3 * g + res_ref[...].astype(jnp.float32), 0.0)
    out_refs[0][...] = y.astype(out_refs[0].dtype)
    if emit_gmax:
        # fused extractor: global spatial max (only requested in the last block)
        out_refs[1][...] = jnp.max(y, axis=0, keepdims=True)


def se_tail(out2, residual, w3, b3, sw1, sb1, sw2, sb2, emit_gmax):
    """out2: (N, HW, P) bf16, residual: (N, HW, C4) bf16.  One image per grid step.
    Returns (y (N,HW,C4) bf16, gmax (N,C4) f32 or None)."""
    N, HW, P = out2.shape
    C4 = w3.shape[1]
    R = sw1.shape[1]
    y_shape = jax.ShapeDtypeStruct((N, HW, C4), jnp.bfloat16)
    y_spec = pl.BlockSpec((None, HW, C4), lambda n: (n, 0, 0))
    if emit_gmax:
        out_shape = (y_shape, jax.ShapeDtypeStruct((N, 1, C4), jnp.float32))
        out_specs = (y_spec, pl.BlockSpec((None, 1, C4), lambda n: (n, 0, 0)))
    else:
        out_shape, out_specs = y_shape, y_spec
    res = pl.pallas_call(
        functools.partial(_se_tail_kernel, inv_hw=1.0 / HW, emit_gmax=emit_gmax),
        out_shape=out_shape,
        grid=(N,),
        in_specs=[
            pl.BlockSpec((None, HW, P), lambda n: (n, 0, 0)),
            pl.BlockSpec((None, HW, C4), lambda n: (n, 0, 0)),
            pl.BlockSpec((P, C4), lambda n: (0, 0)),
            pl.BlockSpec((1, C4), lambda n: (0, 0)),
            pl.BlockSpec((C4, R), lambda n: (0, 0)),
            pl.BlockSpec((1, R), lambda n: (0, 0)),
            pl.BlockSpec((R, C4), lambda n: (0, 0)),
            pl.BlockSpec((1, C4), lambda n: (0, 0)),
        ],
        out_specs=out_specs,
        compiler_params=_cparams("parallel"),
    )(out2, residual, w3, b3.reshape(1, C4).astype(jnp.float32),
      sw1, sb1.reshape(1, R).astype(jnp.float32),
      sw2, sb2.reshape(1, C4).astype(jnp.float32))
    if emit_gmax:
        return res[0], res[1].reshape(N, C4)
    return res, None


# -------------------------- stem max pool (3x3 / 2) ----------------------------

def _max9_kernel(w_ref, o_ref):
    o_ref[...] = jnp.max(w_ref[...], axis=0)


def maxpool3x3_s2_ceil(x):
    """PyTorch MaxPool2d(3, stride=2, ceil_mode=True, padding=0) on NHWC bf16.

    Input is post-ReLU (>= 0) and every ceil-mode window contains at least one
    valid pixel, so zero padding is a safe identity for the max.
    """
    # TODO(synk): fuse this pool into the stem-conv epilogue to drop the 9x
    # window duplication (negligible at 32x32 inputs).
    N, H, W, C = x.shape
    OH = -((H - 3) // -2) + 1
    OW = -((W - 3) // -2) + 1
    need_h = (OH - 1) * 2 + 3
    need_w = (OW - 1) * 2 + 3
    xp = jnp.pad(x, ((0, 0), (0, need_h - H), (0, need_w - W), (0, 0)))
    slices = [xp[:, i:i + 2 * OH - 1:2, j:j + 2 * OW - 1:2, :]
              for i in range(3) for j in range(3)]
    wins = jnp.stack(slices, axis=0).reshape(9, N * OH * OW, C)
    M = N * OH * OW
    tm = _tile_m(M)
    Mp = _round_up(M, tm)
    wins = jnp.pad(wins, ((0, 0), (0, Mp - M), (0, 0)))
    out = pl.pallas_call(
        _max9_kernel,
        out_shape=jax.ShapeDtypeStruct((Mp, C), jnp.bfloat16),
        grid=(Mp // tm,),
        in_specs=[pl.BlockSpec((9, tm, C), lambda i: (0, i, 0))],
        out_specs=pl.BlockSpec((tm, C), lambda i: (i, 0)),
        compiler_params=_cparams("parallel"),
    )(wins)
    return out[:M].reshape(N, OH, OW, C)


# ------------------------------- glue (JAX) ------------------------------------

def conv7x7_s2_bn_relu(x, w, bias):
    """Stem 7x7 / stride 2 / pad 3 conv + folded BN + ReLU.  w: (147, 64) bf16."""
    # TODO(synk): fold the 49 taps into the kernel (like the 3x3 conv) instead of
    # this im2col; it is only acceptable here because Cin == 3.
    N, H, W, C = x.shape
    k, s, p = 7, 2, 3
    xp = jnp.pad(x, ((0, 0), (p, p), (p, p), (0, 0)))
    OH = (H + 2 * p - k) // s + 1
    OW = (W + 2 * p - k) // s + 1
    cols = [xp[:, i:i + (OH - 1) * s + 1:s, j:j + (OW - 1) * s + 1:s, :]
            for i in range(k) for j in range(k)]
    patches = jnp.concatenate(cols, axis=-1).reshape(N * OH * OW, k * k * C)
    y = matmul_bias_act(patches, w, bias, relu=True)
    return y.reshape(N, OH, OW, -1)


def se_bottleneck(x, p, emit_gmax):
    """SEResNetBottleneck: 1x1(stride)-BN-ReLU, 3x3-BN-ReLU, 1x1-BN, SE, +res, ReLU."""
    stride = p['stride']
    xs = x[:, ::stride, ::stride, :] if stride > 1 else x      # stride on conv1/downsample
    N, H, W, Cin = xs.shape
    x2d = xs.reshape(N * H * W, Cin)
    P = p['w1'].shape[1]
    C4 = p['w3'].shape[1]
    if 'wd' in p:
        out1, res2d = block_head(x2d, p['w1'], p['b1'], p['wd'], p['bd'])
    else:
        out1 = matmul_bias_act(x2d, p['w1'], p['b1'], relu=True)
        res2d = x2d                                            # identity residual
    out2 = conv3x3_bn_relu(out1.reshape(N, H, W, P), p['w2'], p['b2'])
    y, gmax = se_tail(out2.reshape(N, H * W, P), res2d.reshape(N, H * W, C4),
                      p['w3'], p['b3'],
                      p['se_w1'], p['se_b1'], p['se_w2'], p['se_b2'], emit_gmax)
    return y.reshape(N, H, W, C4), gmax


# ------------------------- deterministic parameters ----------------------------

def _conv_w(key, kh, kw, cin, cout):
    fan_in = kh * kw * cin
    return jax.random.normal(key, (kh, kw, cin, cout), jnp.float32) / jnp.sqrt(float(fan_in))


def _fold_bn(key, c, eps=1e-5):
    kg, kb = jax.random.split(key)
    gamma = 1.0 + 0.1 * jax.random.normal(kg, (c,), jnp.float32)
    beta = 0.1 * jax.random.normal(kb, (c,), jnp.float32)
    running_mean = jnp.zeros((c,), jnp.float32)
    running_var = jnp.ones((c,), jnp.float32)
    scale = gamma / jnp.sqrt(running_var + eps)
    bias = beta - running_mean * scale
    return scale, bias


def _conv_bn(kw_key, bn_key, kh, kw, cin, cout):
    """Conv weight with the BN scale folded in (bf16) + f32 bias."""
    w = _conv_w(kw_key, kh, kw, cin, cout)
    scale, bias = _fold_bn(bn_key, cout)
    wf = (w * scale[None, None, None, :]).astype(jnp.bfloat16)
    return wf, bias


def _se_params(key, c, reduction=16):
    cr = c // reduction
    k1, k2 = jax.random.split(key)
    w1 = (jax.random.normal(k1, (c, cr), jnp.float32) / jnp.sqrt(float(c))).astype(jnp.bfloat16)
    b1 = jnp.zeros((cr,), jnp.float32)
    w2 = (jax.random.normal(k2, (cr, c), jnp.float32) / jnp.sqrt(float(cr))).astype(jnp.bfloat16)
    b2 = jnp.zeros((c,), jnp.float32)
    return w1, b1, w2, b2


def _init_block(key, inplanes, planes, stride, has_downsample):
    keys = jax.random.split(key, 8)
    p = {'stride': stride}
    w, b = _conv_bn(keys[0], keys[1], 1, 1, inplanes, planes)
    p['w1'], p['b1'] = w.reshape(inplanes, planes), b
    w, b = _conv_bn(keys[2], keys[3], 3, 3, planes, planes)
    p['w2'], p['b2'] = w.reshape(9, planes, planes), b
    w, b = _conv_bn(keys[4], keys[5], 1, 1, planes, planes * 4)
    p['w3'], p['b3'] = w.reshape(planes, planes * 4), b
    p['se_w1'], p['se_b1'], p['se_w2'], p['se_b2'] = _se_params(keys[6], planes * 4)
    if has_downsample:
        kd1, kd2 = jax.random.split(keys[7])
        w, b = _conv_bn(kd1, kd2, 1, 1, inplanes, planes * 4)
        p['wd'], p['bd'] = w.reshape(inplanes, planes * 4), b
    return p


def init_model(key, blocks=(1, 1, 1)):
    # TODO(synk): real se_resnet101 uses (3, 4, 23) bottleneck blocks in layers 1-3
    # (and ImageNet-pretrained weights); block counts are reduced here for runtime.
    # Per-block structure, channel widths (256/512/1024), strides and the final
    # output shape (N, 1024, 1, 1) are unchanged.
    k_stem, k_bn, k1, k2, k3 = jax.random.split(key, 5)
    w, b = _conv_bn(k_stem, k_bn, 7, 7, 3, 64)
    params = {'stem_w': w.reshape(7 * 7 * 3, 64), 'stem_b': b}
    layer_cfg = [(64, 64, 1, blocks[0]),     # layer1
                 (256, 128, 2, blocks[1]),   # layer2
                 (512, 256, 2, blocks[2])]   # layer3 -> 1024 channels
    layers = []
    for (inp, planes, stride, nblk), kl in zip(layer_cfg, [k1, k2, k3]):
        bkeys = jax.random.split(kl, nblk)
        layer = []
        for bi in range(nblk):
            s = stride if bi == 0 else 1
            cin = inp if bi == 0 else planes * 4
            layer.append(_init_block(bkeys[bi], cin, planes, s, has_downsample=(bi == 0)))
        layers.append(layer)
    params['layers'] = layers
    return params


# --------------------------------- forward -------------------------------------

def feature_extract_forward(params, x_nchw, input_size):
    # PyTorch NCHW f32 -> NHWC bf16 for the kernels (f32 accumulation inside).
    x = jnp.transpose(x_nchw, (0, 2, 3, 1)).astype(jnp.bfloat16)
    # layer0: conv7x7/2 + BN + ReLU + MaxPool3x3/2 (ceil_mode=True)
    x = conv7x7_s2_bn_relu(x, params['stem_w'], params['stem_b'])
    x = maxpool3x3_s2_ceil(x)
    # layer1 .. layer3; only the last block's tail kernel also emits the global
    # spatial max, which implements the extractor (MaxPool2d(input_size // 16)).
    layers = params['layers']
    gmax = None
    for li, layer in enumerate(layers):
        for bi, blk in enumerate(layer):
            is_last = (li == len(layers) - 1) and (bi == len(layer) - 1)
            x, gmax = se_bottleneck(x, blk, emit_gmax=is_last)
    assert x.shape[1] == input_size // 16 and x.shape[2] == input_size // 16
    # back to NCHW: (N, 1024, 1, 1), matching the PyTorch module output
    return gmax.reshape(gmax.shape[0], gmax.shape[1], 1, 1).astype(jnp.float32)


if __name__ == "__main__":
    key = jax.random.PRNGKey(0)
    kp, kx = jax.random.split(key)

    num_classes = 10        # unused by the forward pass (mirrors the module signature)
    input_size = 32         # small, divisible by 16
    batch = 2

    params = init_model(kp)
    x = jax.random.normal(kx, (batch, 3, input_size, input_size), jnp.float32)  # NCHW

    fwd = jax.jit(lambda inp: feature_extract_forward(params, inp, input_size))
    out = jax.block_until_ready(fwd(x))

    assert out.shape == (batch, 1024, 1, 1), out.shape
    assert bool(jnp.isfinite(out).all())
    print("KERNEL_OK")
</pallas_src>

<mosaic_0001>
module attributes {stable_mosaic.version = 11 : i64} {
  func.func @_matmul_kernel(%arg0: i32, %arg1: i32, %arg2: memref<256x147xbf16, #tpu.memory_space<vmem>>, %arg3: memref<147x128xbf16, #tpu.memory_space<vmem>>, %arg4: memref<1x128xf32, #tpu.memory_space<vmem>>, %arg5: memref<256x128xbf16, #tpu.memory_space<vmem>>) attributes {dimension_semantics = [#tpu.dimension_semantics<parallel>, #tpu.dimension_semantics<parallel>], iteration_bounds = array<i64: 2, 1>, scalar_prefetch = 0 : i64, scratch_operands = 0 : i64, tpu.core_type = #tpu.core_type<tc>, window_params = [{transform_indices = @transform_0, window_bounds = array<i64: 256, 147>}, {transform_indices = @transform_1, window_bounds = array<i64: 147, 128>}, {transform_indices = @transform_2, window_bounds = array<i64: 1, 128>}, {transform_indices = @transform_3, window_bounds = array<i64: 256, 128>}]} {
    %c0 = arith.constant 0 : index
    %c0_0 = arith.constant 0 : index
    %0 = vector.load %arg2[%c0, %c0_0] : memref<256x147xbf16, #tpu.memory_space<vmem>>, vector<256x147xbf16>
    %c0_1 = arith.constant 0 : index
    %c0_2 = arith.constant 0 : index
    %1 = vector.load %arg3[%c0_1, %c0_2] : memref<147x128xbf16, #tpu.memory_space<vmem>>, vector<147x128xbf16>
    %cst = arith.constant dense<0.000000e+00> : vector<256x128xf32>
    %2 = tpu.matmul %0, %1, %cst {dimension_numbers = #tpu.dot_dimension_numbers<[1], [0], [0], [1], [0, 0, 1, 1], [], []>} : vector<256x147xbf16>, vector<147x128xbf16>, vector<256x128xf32> -> vector<256x128xf32>
    %c0_3 = arith.constant 0 : index
    %c0_4 = arith.constant 0 : index
    %3 = vector.load %arg4[%c0_3, %c0_4] : memref<1x128xf32, #tpu.memory_space<vmem>>, vector<1x128xf32>
    %4 = vector.broadcast %3 : vector<1x128xf32> to vector<256x128xf32>
    %5 = arith.addf %2, %4 : vector<256x128xf32>
    %cst_5 = arith.constant 0.000000e+00 : f32
    %6 = vector.broadcast %cst_5 : f32 to vector<256x128xf32>
    %7 = arith.maximumf %5, %6 : vector<256x128xf32>
    %8 = arith.truncf %7 : vector<256x128xf32> to vector<256x128xbf16>
    %c0_6 = arith.constant 0 : index
    %c0_7 = arith.constant 0 : index
    %9 = vector.load %arg5[%c0_6, %c0_7] : memref<256x128xbf16, #tpu.memory_space<vmem>>, vector<256x128xbf16>
    tpu.vector_store %arg5[%c0_6, %c0_7], %8 {strides = array<i32>} : memref<256x128xbf16, #tpu.memory_space<vmem>>, vector<256x128xbf16>,
    return
  }
  func.func @transform_0(%arg0: i32, %arg1: i32) -> (i32, i32) {
    %c0_i32 = arith.constant 0 : i32
    %c0_i32_0 = arith.constant 0 : i32
    return %arg0, %c0_i32 : i32, i32
  }
  func.func @transform_1(%arg0: i32, %arg1: i32) -> (i32, i32) {
    %c0_i32 = arith.constant 0 : i32
    %c0_i32_0 = arith.constant 0 : i32
    return %c0_i32, %arg1 : i32, i32
  }
  func.func @transform_2(%arg0: i32, %arg1: i32) -> (i32, i32) {
    %c0_i32 = arith.constant 0 : i32
    %c0_i32_0 = arith.constant 0 : i32
    return %c0_i32, %arg1 : i32, i32
  }
  func.func @transform_3(%arg0: i32, %arg1: i32) -> (i32, i32) {
    %c0_i32 = arith.constant 0 : i32
    return %arg0, %arg1 : i32, i32
  }
}

module attributes {stable_mosaic.version = 11 : i64} {
  func.func @_max9_kernel(%arg0: i32, %arg1: memref<9x64x64xbf16, #tpu.memory_space<vmem>>, %arg2: memref<64x64xbf16, #tpu.memory_space<vmem>>) attributes {dimension_semantics = [#tpu.dimension_semantics<parallel>], iteration_bounds = array<i64: 2>, scalar_prefetch = 0 : i64, scratch_operands = 0 : i64, tpu.core_type = #tpu.core_type<tc>, window_params = [{transform_indices = @transform_0, window_bounds = array<i64: 9, 64, 64>}, {transform_indices = @transform_1, window_bounds = array<i64: 64, 64>}]} {
    %c0 = arith.constant 0 : index
    %c0_0 = arith.constant 0 : index
    %c0_1 = arith.constant 0 : index
    %0 = vector.load %arg1[%c0, %c0_0, %c0_1] : memref<9x64x64xbf16, #tpu.memory_space<vmem>>, vector<9x64x64xbf16>
    %cst = arith.constant dense<0xFF80> : vector<64x64xbf16>
    %1 = vector.multi_reduction <maximumf>, %0, %cst [0] : vector<9x64x64xbf16> to vector<64x64xbf16>
    %c0_2 = arith.constant 0 : index
    %c0_3 = arith.constant 0 : index
    %2 = vector.load %arg2[%c0_2, %c0_3] : memref<64x64xbf16, #tpu.memory_space<vmem>>, vector<64x64xbf16>
    tpu.vector_store %arg2[%c0_2, %c0_3], %1 {strides = array<i32>} : memref<64x64xbf16, #tpu.memory_space<vmem>>, vector<64x64xbf16>,
    return
  }
  func.func @transform_0(%arg0: i32) -> (i32, i32, i32) {
    %c0_i32 = arith.constant 0 : i32
    %c0_i32_0 = arith.constant 0 : i32
    %c0_i32_1 = arith.constant 0 : i32
    return %c0_i32, %arg0, %c0_i32_0 : i32, i32, i32
  }
  func.func @transform_1(%arg0: i32) -> (i32, i32) {
    %c0_i32 = arith.constant 0 : i32
    %c0_i32_0 = arith.constant 0 : i32
    return %arg0, %c0_i32 : i32, i32
  }
}

module attributes {stable_mosaic.version = 11 : i64} {
  func.func @_head_kernel(%arg0: i32, %arg1: memref<64x64xbf16, #tpu.memory_space<vmem>>, %arg2: memref<64x64xbf16, #tpu.memory_space<vmem>>, %arg3: memref<1x64xf32, #tpu.memory_space<vmem>>, %arg4: memref<64x256xbf16, #tpu.memory_space<vmem>>, %arg5: memref<1x256xf32, #tpu.memory_space<vmem>>, %arg6: memref<64x64xbf16, #tpu.memory_space<vmem>>, %arg7: memref<64x256xbf16, #tpu.memory_space<vmem>>) attributes {dimension_semantics = [#tpu.dimension_semantics<parallel>], iteration_bounds = array<i64: 2>, scalar_prefetch = 0 : i64, scratch_operands = 0 : i64, tpu.core_type = #tpu.core_type<tc>, window_params = [{transform_indices = @transform_0, window_bounds = array<i64: 64, 64>}, {pipeline_mode = #tpu.pipeline_mode<synchronous>, transform_indices = @transform_1, window_bounds = array<i64: 64, 64>}, {pipeline_mode = #tpu.pipeline_mode<synchronous>, transform_indices = @transform_2, window_bounds = array<i64: 1, 64>}, {pipeline_mode = #tpu.pipeline_mode<synchronous>, transform_indices = @transform_3, window_bounds = array<i64: 64, 256>}, {pipeline_mode = #tpu.pipeline_mode<synchronous>, transform_indices = @transform_4, window_bounds = array<i64: 1, 256>}, {transform_indices = @transform_5, window_bounds = array<i64: 64, 64>}, {transform_indices = @transform_6, window_bounds = array<i64: 64, 256>}]} {
    %c0 = arith.constant 0 : index
    %c0_0 = arith.constant 0 : index
    %0 = vector.load %arg1[%c0, %c0_0] : memref<64x64xbf16, #tpu.memory_space<vmem>>, vector<64x64xbf16>
    %c0_1 = arith.constant 0 : index
    %c0_2 = arith.constant 0 : index
    %1 = vector.load %arg2[%c0_1, %c0_2] : memref<64x64xbf16, #tpu.memory_space<vmem>>, vector<64x64xbf16>
    %cst = arith.constant dense<0.000000e+00> : vector<64x64xf32>
    %2 = tpu.matmul %0, %1, %cst {dimension_numbers = #tpu.dot_dimension_numbers<[1], [0], [0], [1], [0, 0, 1, 1], [], []>} : vector<64x64xbf16>, vector<64x64xbf16>, vector<64x64xf32> -> vector<64x64xf32>
    %c0_3 = arith.constant 0 : index
    %c0_4 = arith.constant 0 : index
    %3 = vector.load %arg3[%c0_3, %c0_4] : memref<1x64xf32, #tpu.memory_space<vmem>>, vector<1x64xf32>
    %4 = vector.broadcast %3 : vector<1x64xf32> to vector<64x64xf32>
    %5 = arith.addf %2, %4 : vector<64x64xf32>
    %cst_5 = arith.constant 0.000000e+00 : f32
    %6 = vector.broadcast %cst_5 : f32 to vector<64x64xf32>
    %7 = arith.maximumf %5, %6 : vector<64x64xf32>
    %8 = arith.truncf %7 : vector<64x64xf32> to vector<64x64xbf16>
    %c0_6 = arith.constant 0 : index
    %c0_7 = arith.constant 0 : index
    %9 = vector.load %arg6[%c0_6, %c0_7] : memref<64x64xbf16, #tpu.memory_space<vmem>>, vector<64x64xbf16>
    tpu.vector_store %arg6[%c0_6, %c0_7], %8 {strides = array<i32>} : memref<64x64xbf16, #tpu.memory_space<vmem>>, vector<64x64xbf16>,
    %c0_8 = arith.constant 0 : index
    %c0_9 = arith.constant 0 : index
    %10 = vector.load %arg4[%c0_8, %c0_9] : memref<64x256xbf16, #tpu.memory_space<vmem>>, vector<64x256xbf16>
    %cst_10 = arith.constant dense<0.000000e+00> : vector<64x256xf32>
    %11 = tpu.matmul %0, %10, %cst_10 {dimension_numbers = #tpu.dot_dimension_numbers<[1], [0], [0], [1], [0, 0, 1, 1], [], []>} : vector<64x64xbf16>, vector<64x256xbf16>, vector<64x256xf32> -> vector<64x256xf32>
    %c0_11 = arith.constant 0 : index
    %c0_12 = arith.constant 0 : index
    %12 = vector.load %arg5[%c0_11, %c0_12] : memref<1x256xf32, #tpu.memory_space<vmem>>, vector<1x256xf32>
    %13 = vector.broadcast %12 : vector<1x256xf32> to vector<64x256xf32>
    %14 = arith.addf %11, %13 : vector<64x256xf32>
    %15 = arith.truncf %14 : vector<64x256xf32> to vector<64x256xbf16>
    %c0_13 = arith.constant 0 : index
    %c0_14 = arith.constant 0 : index
    %16 = vector.load %arg7[%c0_13, %c0_14] : memref<64x256xbf16, #tpu.memory_space<vmem>>, vector<64x256xbf16>
    tpu.vector_store %arg7[%c0_13, %c0_14], %15 {strides = array<i32>} : memref<64x256xbf16, #tpu.memory_space<vmem>>, vector<64x256xbf16>,
    return
  }
  func.func @transform_0(%arg0: i32) -> (i32, i32) {
    %c0_i32 = arith.constant 0 : i32
    %c0_i32_0 = arith.constant 0 : i32
    return %arg0, %c0_i32 : i32, i32
  }
  func.func @transform_1(%arg0: i32) -> (i32, i32) {
    %c0_i32 = arith.constant 0 : i32
    %c0_i32_0 = arith.constant 0 : i32
    %c0_i32_1 = arith.constant 0 : i32
    return %c0_i32, %c0_i32_0 : i32, i32
  }
  func.func @transform_2(%arg0: i32) -> (i32, i32) {
    %c0_i32 = arith.constant 0 : i32
    %c0_i32_0 = arith.constant 0 : i32
    %c0_i32_1 = arith.constant 0 : i32
    return %c0_i32, %c0_i32_0 : i32, i32
  }
  func.func @transform_3(%arg0: i32) -> (i32, i32) {
    %c0_i32 = arith.constant 0 : i32
    %c0_i32_0 = arith.constant 0 : i32
    %c0_i32_1 = arith.constant 0 : i32
    return %c0_i32, %c0_i32_0 : i32, i32
  }
  func.func @transform_4(%arg0: i32) -> (i32, i32) {
    %c0_i32 = arith.constant 0 : i32
    %c0_i32_0 = arith.constant 0 : i32
    %c0_i32_1 = arith.constant 0 : i32
    return %c0_i32, %c0_i32_0 : i32, i32
  }
  func.func @transform_5(%arg0: i32) -> (i32, i32) {
    %c0_i32 = arith.constant 0 : i32
    %c0_i32_0 = arith.constant 0 : i32
    return %arg0, %c0_i32 : i32, i32
  }
  func.func @transform_6(%arg0: i32) -> (i32, i32) {
    %c0_i32 = arith.constant 0 : i32
    %c0_i32_0 = arith.constant 0 : i32
    return %arg0, %c0_i32 : i32, i32
  }
}

module attributes {stable_mosaic.version = 11 : i64} {
  func.func @_conv3x3_kernel(%arg0: i32, %arg1: memref<1x176x64xbf16, #tpu.memory_space<vmem>>, %arg2: memref<9x64x64xbf16, #tpu.memory_space<vmem>>, %arg3: memref<1x64xf32, #tpu.memory_space<vmem>>, %arg4: memref<1x128x64xbf16, #tpu.memory_space<vmem>>) attributes {dimension_semantics = [#tpu.dimension_semantics<parallel>], iteration_bounds = array<i64: 2>, scalar_prefetch = 0 : i64, scratch_operands = 0 : i64, tpu.core_type = #tpu.core_type<tc>, window_params = [{transform_indices = @transform_0, window_bounds = array<i64: 1, 176, 64>}, {pipeline_mode = #tpu.pipeline_mode<synchronous>, transform_indices = @transform_1, window_bounds = array<i64: 9, 64, 64>}, {pipeline_mode = #tpu.pipeline_mode<synchronous>, transform_indices = @transform_2, window_bounds = array<i64: 1, 64>}, {transform_indices = @transform_3, window_bounds = array<i64: 1, 128, 64>}]} {
    %cst = arith.constant 0.000000e+00 : f32
    %0 = vector.broadcast %cst : f32 to vector<128x64xf32>
    %c0 = arith.constant 0 : index
    %c0_0 = arith.constant 0 : index
    %c0_1 = arith.constant 0 : index
    %1 = vector.load %arg1[%c0, %c0_0, %c0_1] : memref<1x176x64xbf16, #tpu.memory_space<vmem>>, vector<1x128x64xbf16>
    %2 = vector.shape_cast %1 : vector<1x128x64xbf16> to vector<128x64xbf16>
    %c0_2 = arith.constant 0 : index
    %c0_3 = arith.constant 0 : index
    %c0_4 = arith.constant 0 : index
    %3 = vector.load %arg2[%c0_2, %c0_3, %c0_4] : memref<9x64x64xbf16, #tpu.memory_space<vmem>>, vector<1x64x64xbf16>
    %4 = vector.shape_cast %3 : vector<1x64x64xbf16> to vector<64x64xbf16>
    %cst_5 = arith.constant dense<0.000000e+00> : vector<128x64xf32>
    %5 = tpu.matmul %2, %4, %cst_5 {dimension_numbers = #tpu.dot_dimension_numbers<[1], [0], [0], [1], [0, 0, 1, 1], [], []>} : vector<128x64xbf16>, vector<64x64xbf16>, vector<128x64xf32> -> vector<128x64xf32>
    %6 = arith.addf %0, %5 : vector<128x64xf32>
    %c0_6 = arith.constant 0 : index
    %c1 = arith.constant 1 : index
    %c0_7 = arith.constant 0 : index
    %7 = vector.load %arg1[%c0_6, %c1, %c0_7] : memref<1x176x64xbf16, #tpu.memory_space<vmem>>, vector<1x128x64xbf16>
    %8 = vector.shape_cast %7 : vector<1x128x64xbf16> to vector<128x64xbf16>
    %c1_8 = arith.constant 1 : index
    %c0_9 = arith.constant 0 : index
    %c0_10 = arith.constant 0 : index
    %9 = vector.load %arg2[%c1_8, %c0_9, %c0_10] : memref<9x64x64xbf16, #tpu.memory_space<vmem>>, vector<1x64x64xbf16>
    %10 = vector.shape_cast %9 : vector<1x64x64xbf16> to vector<64x64xbf16>
    %cst_11 = arith.constant dense<0.000000e+00> : vector<128x64xf32>
    %11 = tpu.matmul %8, %10, %cst_11 {dimension_numbers = #tpu.dot_dimension_numbers<[1], [0], [0], [1], [0, 0, 1, 1], [], []>} : vector<128x64xbf16>, vector<64x64xbf16>, vector<128x64xf32> -> vector<128x64xf32>
    %12 = arith.addf %6, %11 : vector<128x64xf32>
    %c0_12 = arith.constant 0 : index
    %c2 = arith.constant 2 : index
    %c0_13 = arith.constant 0 : index
    %13 = vector.load %arg1[%c0_12, %c2, %c0_13] : memref<1x176x64xbf16, #tpu.memory_space<vmem>>, vector<1x128x64xbf16>
    %14 = vector.shape_cast %13 : vector<1x128x64xbf16> to vector<128x64xbf16>
    %c2_14 = arith.constant 2 : index
    %c0_15 = arith.constant 0 : index
    %c0_16 = arith.constant 0 : index
    %15 = vector.load %arg2[%c2_14, %c0_15, %c0_16] : memref<9x64x64xbf16, #tpu.memory_space<vmem>>, vector<1x64x64xbf16>
    %16 = vector.shape_cast %15 : vector<1x64x64xbf16> to vector<64x64xbf16>
    %cst_17 = arith.constant dense<0.000000e+00> : vector<128x64xf32>
    %17 = tpu.matmul %14, %16, %cst_17 {dimension_numbers = #tpu.dot_dimension_numbers<[1], [0], [0], [1], [0, 0, 1, 1], [], []>} : vector<128x64xbf16>, vector<64x64xbf16>, vector<128x64xf32> -> vector<128x64xf32>
    %18 = arith.addf %12, %17 : vector<128x64xf32>
    %c0_18 = arith.constant 0 : index
    %c16 = arith.constant 16 : index
    %c0_19 = arith.constant 0 : index
    %19 = vector.load %arg1[%c0_18, %c16, %c0_19] : memref<1x176x64xbf16, #tpu.memory_space<vmem>>, vector<1x128x64xbf16>
    %20 = vector.shape_cast %19 : vector<1x128x64xbf16> to vector<128x64xbf16>
    %c3 = arith.constant 3 : index
    %c0_20 = arith.constant 0 : index
    %c0_21 = arith.constant 0 : index
    %21 = vector.load %arg2[%c3, %c0_20, %c0_21] : memref<9x64x64xbf16, #tpu.memory_space<vmem>>, vector<1x64x64xbf16>
    %22 = vector.shape_cast %21 : vector<1x64x64xbf16> to vector<64x64xbf16>
    %cst_22 = arith.constant dense<0.000000e+00> : vector<128x64xf32>
    %23 = tpu.matmul %20, %22, %cst_22 {dimension_numbers = #tpu.dot_dimension_numbers<[1], [0], [0], [1], [0, 0, 1, 1], [], []>} : vector<128x64xbf16>, vector<64x64xbf16>, vector<128x64xf32> -> vector<128x64xf32>
    %24 = arith.addf %18, %23 : vector<128x64xf32>
    %c0_23 = arith.constant 0 : index
    %c17 = arith.constant 17 : index
    %c0_24 = arith.constant 0 : index
    %25 = vector.load %arg1[%c0_23, %c17, %c0_24] : memref<1x176x64xbf16, #tpu.memory_space<vmem>>, vector<1x128x64xbf16>
    %26 = vector.shape_cast %25 : vector<1x128x64xbf16> to vector<128x64xbf16>
    %c4 = arith.constant 4 : index
    %c0_25 = arith.constant 0 : index
    %c0_26 = arith.constant 0 : index
    %27 = vector.load %arg2[%c4, %c0_25, %c0_26] : memref<9x64x64xbf16, #tpu.memory_space<vmem>>, vector<1x64x64xbf16>
    %28 = vector.shape_cast %27 : vector<1x64x64xbf16> to vector<64x64xbf16>
    %cst_27 = arith.constant dense<0.000000e+00> : vector<128x64xf32>
    %29 = tpu.matmul %26, %28, %cst_27 {dimension_numbers = #tpu.dot_dimension_numbers<[1], [0], [0], [1], [0, 0, 1, 1], [], []>} : vector<128x64xbf16>, vector<64x64xbf16>, vector<128x64xf32> -> vector<128x64xf32>
    %30 = arith.addf %24, %29 : vector<128x64xf32>
    %c0_28 = arith.constant 0 : index
    %c18 = arith.constant 18 : index
    %c0_29 = arith.constant 0 : index
    %31 = vector.load %arg1[%c0_28, %c18, %c0_29] : memref<1x176x64xbf16, #tpu.memory_space<vmem>>, vector<1x128x64xbf16>
    %32 = vector.shape_cast %31 : vector<1x128x64xbf16> to vector<128x64xbf16>
    %c5 = arith.constant 5 : index
    %c0_30 = arith.constant 0 : index
    %c0_31 = arith.constant 0 : index
    %33 = vector.load %arg2[%c5, %c0_30, %c0_31] : memref<9x64x64xbf16, #tpu.memory_space<vmem>>, vector<1x64x64xbf16>
    %34 = vector.shape_cast %33 : vector<1x64x64xbf16> to vector<64x64xbf16>
    %cst_32 = arith.constant dense<0.000000e+00> : vector<128x64xf32>
    %35 = tpu.matmul %32, %34, %cst_32 {dimension_numbers = #tpu.dot_dimension_numbers<[1], [0], [0], [1], [0, 0, 1, 1], [], []>} : vector<128x64xbf16>, vector<64x64xbf16>, vector<128x64xf32> -> vector<128x64xf32>
    %36 = arith.addf %30, %35 : vector<128x64xf32>
    %c0_33 = arith.constant 0 : index
    %c32 = arith.constant 32 : index
    %c0_34 = arith.constant 0 : index
    %37 = vector.load %arg1[%c0_33, %c32, %c0_34] : memref<1x176x64xbf16, #tpu.memory_space<vmem>>, vector<1x128x64xbf16>
    %38 = vector.shape_cast %37 : vector<1x128x64xbf16> to vector<128x64xbf16>
    %c6 = arith.constant 6 : index
    %c0_35 = arith.constant 0 : index
    %c0_36 = arith.constant 0 : index
    %39 = vector.load %arg2[%c6, %c0_35, %c0_36] : memref<9x64x64xbf16, #tpu.memory_space<vmem>>, vector<1x64x64xbf16>
    %40 = vector.shape_cast %39 : vector<1x64x64xbf16> to vector<64x64xbf16>
    %cst_37 = arith.constant dense<0.000000e+00> : vector<128x64xf32>
    %41 = tpu.matmul %38, %40, %cst_37 {dimension_numbers = #tpu.dot_dimension_numbers<[1], [0], [0], [1], [0, 0, 1, 1], [], []>} : vector<128x64xbf16>, vector<64x64xbf16>, vector<128x64xf32> -> vector<128x64xf32>
    %42 = arith.addf %36, %41 : vector<128x64xf32>
    %c0_38 = arith.constant 0 : index
    %c33 = arith.constant 33 : index
    %c0_39 = arith.constant 0 : index
    %43 = vector.load %arg1[%c0_38, %c33, %c0_39] : memref<1x176x64xbf16, #tpu.memory_space<vmem>>, vector<1x128x64xbf16>
    %44 = vector.shape_cast %43 : vector<1x128x64xbf16> to vector<128x64xbf16>
    %c7 = arith.constant 7 : index
    %c0_40 = arith.constant 0 : index
    %c0_41 = arith.constant 0 : index
    %45 = vector.load %arg2[%c7, %c0_40, %c0_41] : memref<9x64x64xbf16, #tpu.memory_space<vmem>>, vector<1x64x64xbf16>
    %46 = vector.shape_cast %45 : vector<1x64x64xbf16> to vector<64x64xbf16>
    %cst_42 = arith.constant dense<0.000000e+00> : vector<128x64xf32>
    %47 = tpu.matmul %44, %46, %cst_42 {dimension_numbers = #tpu.dot_dimension_numbers<[1], [0], [0], [1], [0, 0, 1, 1], [], []>} : vector<128x64xbf16>, vector<64x64xbf16>, vector<128x64xf32> -> vector<128x64xf32>
    %48 = arith.addf %42, %47 : vector<128x64xf32>
    %c0_43 = arith.constant 0 : index
    %c34 = arith.constant 34 : index
    %c0_44 = arith.constant 0 : index
    %49 = vector.load %arg1[%c0_43, %c34, %c0_44] : memref<1x176x64xbf16, #tpu.memory_space<vmem>>, vector<1x128x64xbf16>
    %50 = vector.shape_cast %49 : vector<1x128x64xbf16> to vector<128x64xbf16>
    %c8 = arith.constant 8 : index
    %c0_45 = arith.constant 0 : index
    %c0_46 = arith.constant 0 : index
    %51 = vector.load %arg2[%c8, %c0_45, %c0_46] : memref<9x64x64xbf16, #tpu.memory_space<vmem>>, vector<1x64x64xbf16>
    %52 = vector.shape_cast %51 : vector<1x64x64xbf16> to vector<64x64xbf16>
    %cst_47 = arith.constant dense<0.000000e+00> : vector<128x64xf32>
    %53 = tpu.matmul %50, %52, %cst_47 {dimension_numbers = #tpu.dot_dimension_numbers<[1], [0], [0], [1], [0, 0, 1, 1], [], []>} : vector<128x64xbf16>, vector<64x64xbf16>, vector<128x64xf32> -> vector<128x64xf32>
    %54 = arith.addf %48, %53 : vector<128x64xf32>
    %c0_48 = arith.constant 0 : index
    %c0_49 = arith.constant 0 : index
    %55 = vector.load %arg3[%c0_48, %c0_49] : memref<1x64xf32, #tpu.memory_space<vmem>>, vector<1x64xf32>
    %56 = vector.broadcast %55 : vector<1x64xf32> to vector<128x64xf32>
    %57 = arith.addf %54, %56 : vector<128x64xf32>
    %cst_50 = arith.constant 0.000000e+00 : f32
    %58 = vector.broadcast %cst_50 : f32 to vector<128x64xf32>
    %59 = arith.maximumf %57, %58 : vector<128x64xf32>
    %60 = arith.truncf %59 : vector<128x64xf32> to vector<128x64xbf16>
    %c0_51 = arith.constant 0 : index
    %c0_52 = arith.constant 0 : index
    %c0_53 = arith.constant 0 : index
    %61 = vector.load %arg4[%c0_51, %c0_52, %c0_53] : memref<1x128x64xbf16, #tpu.memory_space<vmem>>, vector<1x128x64xbf16>
    %62 = vector.shape_cast %61 : vector<1x128x64xbf16> to vector<128x64xbf16>
    %63 = vector.shape_cast %60 : vector<128x64xbf16> to vector<1x128x64xbf16>
    tpu.vector_store %arg4[%c0_51, %c0_52, %c0_53], %63 {strides = array<i32>} : memref<1x128x64xbf16, #tpu.memory_space<vmem>>, vector<1x128x64xbf16>,
    return
  }
  func.func @transform_0(%arg0: i32) -> (i32, i32, i32) {
    %c0_i32 = arith.constant 0 : i32
    %c0_i32_0 = arith.constant 0 : i32
    %c0_i32_1 = arith.constant 0 : i32
    return %arg0, %c0_i32, %c0_i32_0 : i32, i32, i32
  }
  func.func @transform_1(%arg0: i32) -> (i32, i32, i32) {
    %c0_i32 = arith.constant 0 : i32
    %c0_i32_0 = arith.constant 0 : i32
    %c0_i32_1 = arith.constant 0 : i32
    %c0_i32_2 = arith.constant 0 : i32
    return %c0_i32, %c0_i32_0, %c0_i32_1 : i32, i32, i32
  }
  func.func @transform_2(%arg0: i32) -> (i32, i32) {
    %c0_i32 = arith.constant 0 : i32
    %c0_i32_0 = arith.constant 0 : i32
    %c0_i32_1 = arith.constant 0 : i32
    return %c0_i32, %c0_i32_0 : i32, i32
  }
  func.func @transform_3(%arg0: i32) -> (i32, i32, i32) {
    %c0_i32 = arith.constant 0 : i32
    %c0_i32_0 = arith.constant 0 : i32
    %c0_i32_1 = arith.constant 0 : i32
    return %arg0, %c0_i32, %c0_i32_0 : i32, i32, i32
  }
}

module attributes {stable_mosaic.version = 11 : i64} {
  func.func @_head_kernel(%arg0: i32, %arg1: memref<16x256xbf16, #tpu.memory_space<vmem>>, %arg2: memref<256x128xbf16, #tpu.memory_space<vmem>>, %arg3: memref<1x128xf32, #tpu.memory_space<vmem>>, %arg4: memref<256x512xbf16, #tpu.memory_space<vmem>>, %arg5: memref<1x512xf32, #tpu.memory_space<vmem>>, %arg6: memref<16x128xbf16, #tpu.memory_space<vmem>>, %arg7: memref<16x512xbf16, #tpu.memory_space<vmem>>) attributes {dimension_semantics = [#tpu.dimension_semantics<parallel>], iteration_bounds = array<i64: 2>, scalar_prefetch = 0 : i64, scratch_operands = 0 : i64, tpu.core_type = #tpu.core_type<tc>, window_params = [{transform_indices = @transform_0, window_bounds = array<i64: 16, 256>}, {pipeline_mode = #tpu.pipeline_mode<synchronous>, transform_indices = @transform_1, window_bounds = array<i64: 256, 128>}, {pipeline_mode = #tpu.pipeline_mode<synchronous>, transform_indices = @transform_2, window_bounds = array<i64: 1, 128>}, {pipeline_mode = #tpu.pipeline_mode<synchronous>, transform_indices = @transform_3, window_bounds = array<i64: 256, 512>}, {pipeline_mode = #tpu.pipeline_mode<synchronous>, transform_indices = @transform_4, window_bounds = array<i64: 1, 512>}, {transform_indices = @transform_5, window_bounds = array<i64: 16, 128>}, {transform_indices = @transform_6, window_bounds = array<i64: 16, 512>}]} {
    %c0 = arith.constant 0 : index
    %c0_0 = arith.constant 0 : index
    %0 = vector.load %arg1[%c0, %c0_0] : memref<16x256xbf16, #tpu.memory_space<vmem>>, vector<16x256xbf16>
    %c0_1 = arith.constant 0 : index
    %c0_2 = arith.constant 0 : index
    %1 = vector.load %arg2[%c0_1, %c0_2] : memref<256x128xbf16, #tpu.memory_space<vmem>>, vector<256x128xbf16>
    %cst = arith.constant dense<0.000000e+00> : vector<16x128xf32>
    %2 = tpu.matmul %0, %1, %cst {dimension_numbers = #tpu.dot_dimension_numbers<[1], [0], [0], [1], [0, 0, 1, 1], [], []>} : vector<16x256xbf16>, vector<256x128xbf16>, vector<16x128xf32> -> vector<16x128xf32>
    %c0_3 = arith.constant 0 : index
    %c0_4 = arith.constant 0 : index
    %3 = vector.load %arg3[%c0_3, %c0_4] : memref<1x128xf32, #tpu.memory_space<vmem>>, vector<1x128xf32>
    %4 = vector.broadcast %3 : vector<1x128xf32> to vector<16x128xf32>
    %5 = arith.addf %2, %4 : vector<16x128xf32>
    %cst_5 = arith.constant 0.000000e+00 : f32
    %6 = vector.broadcast %cst_5 : f32 to vector<16x128xf32>
    %7 = arith.maximumf %5, %6 : vector<16x128xf32>
    %8 = arith.truncf %7 : vector<16x128xf32> to vector<16x128xbf16>
    %c0_6 = arith.constant 0 : index
    %c0_7 = arith.constant 0 : index
    %9 = vector.load %arg6[%c0_6, %c0_7] : memref<16x128xbf16, #tpu.memory_space<vmem>>, vector<16x128xbf16>
    tpu.vector_store %arg6[%c0_6, %c0_7], %8 {strides = array<i32>} : memref<16x128xbf16, #tpu.memory_space<vmem>>, vector<16x128xbf16>,
    %c0_8 = arith.constant 0 : index
    %c0_9 = arith.constant 0 : index
    %10 = vector.load %arg4[%c0_8, %c0_9] : memref<256x512xbf16, #tpu.memory_space<vmem>>, vector<256x512xbf16>
    %cst_10 = arith.constant dense<0.000000e+00> : vector<16x512xf32>
    %11 = tpu.matmul %0, %10, %cst_10 {dimension_numbers = #tpu.dot_dimension_numbers<[1], [0], [0], [1], [0, 0, 1, 1], [], []>} : vector<16x256xbf16>, vector<256x512xbf16>, vector<16x512xf32> -> vector<16x512xf32>
    %c0_11 = arith.constant 0 : index
    %c0_12 = arith.constant 0 : index
    %12 = vector.load %arg5[%c0_11, %c0_12] : memref<1x512xf32, #tpu.memory_space<vmem>>, vector<1x512xf32>
    %13 = vector.broadcast %12 : vector<1x512xf32> to vector<16x512xf32>
    %14 = arith.addf %11, %13 : vector<16x512xf32>
    %15 = arith.truncf %14 : vector<16x512xf32> to vector<16x512xbf16>
    %c0_13 = arith.constant 0 : index
    %c0_14 = arith.constant 0 : index
    %16 = vector.load %arg7[%c0_13, %c0_14] : memref<16x512xbf16, #tpu.memory_space<vmem>>, vector<16x512xbf16>
    tpu.vector_store %arg7[%c0_13, %c0_14], %15 {strides = array<i32>} : memref<16x512xbf16, #tpu.memory_space<vmem>>, vector<16x512xbf16>,
    return
  }
  func.func @transform_0(%arg0: i32) -> (i32, i32) {
    %c0_i32 = arith.constant 0 : i32
    %c0_i32_0 = arith.constant 0 : i32
    return %arg0, %c0_i32 : i32, i32
  }
  func.func @transform_1(%arg0: i32) -> (i32, i32) {
    %c0_i32 = arith.constant 0 : i32
    %c0_i32_0 = arith.constant 0 : i32
    %c0_i32_1 = arith.constant 0 : i32
    return %c0_i32, %c0_i32_0 : i32, i32
  }
  func.func @transform_2(%arg0: i32) -> (i32, i32) {
    %c0_i32 = arith.constant 0 : i32
    %c0_i32_0 = arith.constant 0 : i32
    %c0_i32_1 = arith.constant 0 : i32
    return %c0_i32, %c0_i32_0 : i32, i32
  }
  func.func @transform_3(%arg0: i32) -> (i32, i32) {
    %c0_i32 = arith.constant 0 : i32
    %c0_i32_0 = arith.constant 0 : i32
    %c0_i32_1 = arith.constant 0 : i32
    return %c0_i32, %c0_i32_0 : i32, i32
  }
  func.func @transform_4(%arg0: i32) -> (i32, i32) {
    %c0_i32 = arith.constant 0 : i32
    %c0_i32_0 = arith.constant 0 : i32
    %c0_i32_1 = arith.constant 0 : i32
    return %c0_i32, %c0_i32_0 : i32, i32
  }
  func.func @transform_5(%arg0: i32) -> (i32, i32) {
    %c0_i32 = arith.constant 0 : i32
    %c0_i32_0 = arith.constant 0 : i32
    return %arg0, %c0_i32 : i32, i32
  }
  func.func @transform_6(%arg0: i32) -> (i32, i32) {
    %c0_i32 = arith.constant 0 : i32
    %c0_i32_0 = arith.constant 0 : i32
    return %arg0, %c0_i32 : i32, i32
  }
}

module attributes {stable_mosaic.version = 11 : i64} {
  func.func @_se_tail_kernel(%arg0: i32, %arg1: memref<1x64x64xbf16, #tpu.memory_space<vmem>>, %arg2: memref<1x64x256xbf16, #tpu.memory_space<vmem>>, %arg3: memref<64x256xbf16, #tpu.memory_space<vmem>>, %arg4: memref<1x256xf32, #tpu.memory_space<vmem>>, %arg5: memref<256x16xbf16, #tpu.memory_space<vmem>>, %arg6: memref<1x16xf32, #tpu.memory_space<vmem>>, %arg7: memref<16x256xbf16, #tpu.memory_space<vmem>>, %arg8: memref<1x256xf32, #tpu.memory_space<vmem>>, %arg9: memref<1x64x256xbf16, #tpu.memory_space<vmem>>) attributes {dimension_semantics = [#tpu.dimension_semantics<parallel>], iteration_bounds = array<i64: 2>, scalar_prefetch = 0 : i64, scratch_operands = 0 : i64, tpu.core_type = #tpu.core_type<tc>, window_params = [{transform_indices = @transform_0, window_bounds = array<i64: 1, 64, 64>}, {transform_indices = @transform_1, window_bounds = array<i64: 1, 64, 256>}, {pipeline_mode = #tpu.pipeline_mode<synchronous>, transform_indices = @transform_2, window_bounds = array<i64: 64, 256>}, {pipeline_mode = #tpu.pipeline_mode<synchronous>, transform_indices = @transform_3, window_bounds = array<i64: 1, 256>}, {pipeline_mode = #tpu.pipeline_mode<synchronous>, transform_indices = @transform_4, window_bounds = array<i64: 256, 16>}, {pipeline_mode = #tpu.pipeline_mode<synchronous>, transform_indices = @transform_5, window_bounds = array<i64: 1, 16>}, {pipeline_mode = #tpu.pipeline_mode<synchronous>, transform_indices = @transform_6, window_bounds = array<i64: 16, 256>}, {pipeline_mode = #tpu.pipeline_mode<synchronous>, transform_indices = @transform_7, window_bounds = array<i64: 1, 256>}, {transform_indices = @transform_8, window_bounds = array<i64: 1, 64, 256>}]} {
    %c0 = arith.constant 0 : index
    %c0_0 = arith.constant 0 : index
    %c0_1 = arith.constant 0 : index
    %0 = vector.load %arg1[%c0, %c0_0, %c0_1] : memref<1x64x64xbf16, #tpu.memory_space<vmem>>, vector<1x64x64xbf16>
    %1 = vector.shape_cast %0 : vector<1x64x64xbf16> to vector<64x64xbf16>
    %c0_2 = arith.constant 0 : index
    %c0_3 = arith.constant 0 : index
    %2 = vector.load %arg3[%c0_2, %c0_3] : memref<64x256xbf16, #tpu.memory_space<vmem>>, vector<64x256xbf16>
    %cst = arith.constant dense<0.000000e+00> : vector<64x256xf32>
    %3 = tpu.matmul %1, %2, %cst {dimension_numbers = #tpu.dot_dimension_numbers<[1], [0], [0], [1], [0, 0, 1, 1], [], []>} : vector<64x64xbf16>, vector<64x256xbf16>, vector<64x256xf32> -> vector<64x256xf32>
    %c0_4 = arith.constant 0 : index
    %c0_5 = arith.constant 0 : index
    %4 = vector.load %arg4[%c0_4, %c0_5] : memref<1x256xf32, #tpu.memory_space<vmem>>, vector<1x256xf32>
    %5 = vector.broadcast %4 : vector<1x256xf32> to vector<64x256xf32>
    %6 = arith.addf %3, %5 : vector<64x256xf32>
    %cst_6 = arith.constant dense<0.000000e+00> : vector<256xf32>
    %7 = vector.multi_reduction <add>, %6, %cst_6 [0] : vector<64x256xf32> to vector<256xf32>
    %8 = vector.shape_cast %7 : vector<256xf32> to vector<1x256xf32>
    %cst_7 = arith.constant 1.562500e-02 : f32
    %9 = vector.broadcast %cst_7 : f32 to vector<1x256xf32>
    %10 = arith.mulf %8, %9 : vector<1x256xf32>
    %11 = arith.truncf %10 : vector<1x256xf32> to vector<1x256xbf16>
    %c0_8 = arith.constant 0 : index
    %c0_9 = arith.constant 0 : index
    %12 = vector.load %arg5[%c0_8, %c0_9] : memref<256x16xbf16, #tpu.memory_space<vmem>>, vector<256x16xbf16>
    %cst_10 = arith.constant dense<0.000000e+00> : vector<1x16xf32>
    %13 = tpu.matmul %11, %12, %cst_10 {dimension_numbers = #tpu.dot_dimension_numbers<[1], [0], [0], [1], [0, 0, 1, 1], [], []>} : vector<1x256xbf16>, vector<256x16xbf16>, vector<1x16xf32> -> vector<1x16xf32>
    %c0_11 = arith.constant 0 : index
    %c0_12 = arith.constant 0 : index
    %14 = vector.load %arg6[%c0_11, %c0_12] : memref<1x16xf32, #tpu.memory_space<vmem>>, vector<1x16xf32>
    %15 = arith.addf %13, %14 : vector<1x16xf32>
    %cst_13 = arith.constant 0.000000e+00 : f32
    %16 = vector.broadcast %cst_13 : f32 to vector<1x16xf32>
    %17 = arith.maximumf %15, %16 : vector<1x16xf32>
    %18 = arith.truncf %17 : vector<1x16xf32> to vector<1x16xbf16>
    %c0_14 = arith.constant 0 : index
    %c0_15 = arith.constant 0 : index
    %19 = vector.load %arg7[%c0_14, %c0_15] : memref<16x256xbf16, #tpu.memory_space<vmem>>, vector<16x256xbf16>
    %cst_16 = arith.constant dense<0.000000e+00> : vector<1x256xf32>
    %20 = tpu.matmul %18, %19, %cst_16 {dimension_numbers = #tpu.dot_dimension_numbers<[1], [0], [0], [1], [0, 0, 1, 1], [], []>} : vector<1x16xbf16>, vector<16x256xbf16>, vector<1x256xf32> -> vector<1x256xf32>
    %c0_17 = arith.constant 0 : index
    %c0_18 = arith.constant 0 : index
    %21 = vector.load %arg8[%c0_17, %c0_18] : memref<1x256xf32, #tpu.memory_space<vmem>>, vector<1x256xf32>
    %22 = arith.addf %20, %21 : vector<1x256xf32>
    %23 = arith.negf %22 : vector<1x256xf32>
    %24 = math.exp %23 : vector<1x256xf32>
    %cst_19 = arith.constant 1.000000e+00 : f32
    %25 = vector.broadcast %cst_19 : f32 to vector<1x256xf32>
    %26 = arith.addf %25, %24 : vector<1x256xf32>
    %27 = arith.divf %25, %26 : vector<1x256xf32>
    %28 = vector.broadcast %27 : vector<1x256xf32> to vector<64x256xf32>
    %29 = arith.mulf %6, %28 : vector<64x256xf32>
    %c0_20 = arith.constant 0 : index
    %c0_21 = arith.constant 0 : index
    %c0_22 = arith.constant 0 : index
    %30 = vector.load %arg2[%c0_20, %c0_21, %c0_22] : memref<1x64x256xbf16, #tpu.memory_space<vmem>>, vector<1x64x256xbf16>
    %31 = vector.shape_cast %30 : vector<1x64x256xbf16> to vector<64x256xbf16>
    %32 = arith.extf %31 : vector<64x256xbf16> to vector<64x256xf32>
    %33 = arith.addf %29, %32 : vector<64x256xf32>
    %cst_23 = arith.constant 0.000000e+00 : f32
    %34 = vector.broadcast %cst_23 : f32 to vector<64x256xf32>
    %35 = arith.maximumf %33, %34 : vector<64x256xf32>
    %36 = arith.truncf %35 : vector<64x256xf32> to vector<64x256xbf16>
    %c0_24 = arith.constant 0 : index
    %c0_25 = arith.constant 0 : index
    %c0_26 = arith.constant 0 : index
    %37 = vector.load %arg9[%c0_24, %c0_25, %c0_26] : memref<1x64x256xbf16, #tpu.memory_space<vmem>>, vector<1x64x256xbf16>
    %38 = vector.shape_cast %37 : vector<1x64x256xbf16> to vector<64x256xbf16>
    %39 = vector.shape_cast %36 : vector<64x256xbf16> to vector<1x64x256xbf16>
    tpu.vector_store %arg9[%c0_24, %c0_25, %c0_26], %39 {strides = array<i32>} : memref<1x64x256xbf16, #tpu.memory_space<vmem>>, vector<1x64x256xbf16>,
    return
  }
  func.func @transform_0(%arg0: i32) -> (i32, i32, i32) {
    %c0_i32 = arith.constant 0 : i32
    %c0_i32_0 = arith.constant 0 : i32
    %c0_i32_1 = arith.constant 0 : i32
    return %arg0, %c0_i32, %c0_i32_0 : i32, i32, i32
  }
  func.func @transform_1(%arg0: i32) -> (i32, i32, i32) {
    %c0_i32 = arith.constant 0 : i32
    %c0_i32_0 = arith.constant 0 : i32
    %c0_i32_1 = arith.constant 0 : i32
    return %arg0, %c0_i32, %c0_i32_0 : i32, i32, i32
  }
  func.func @transform_2(%arg0: i32) -> (i32, i32) {
    %c0_i32 = arith.constant 0 : i32
    %c0_i32_0 = arith.constant 0 : i32
    %c0_i32_1 = arith.constant 0 : i32
    return %c0_i32, %c0_i32_0 : i32, i32
  }
  func.func @transform_3(%arg0: i32) -> (i32, i32) {
    %c0_i32 = arith.constant 0 : i32
    %c0_i32_0 = arith.constant 0 : i32
    %c0_i32_1 = arith.constant 0 : i32
    return %c0_i32, %c0_i32_0 : i32, i32
  }
  func.func @transform_4(%arg0: i32) -> (i32, i32) {
    %c0_i32 = arith.constant 0 : i32
    %c0_i32_0 = arith.constant 0 : i32
    %c0_i32_1 = arith.constant 0 : i32
    return %c0_i32, %c0_i32_0 : i32, i32
  }
  func.func @transform_5(%arg0: i32) -> (i32, i32) {
    %c0_i32 = arith.constant 0 : i32
    %c0_i32_0 = arith.constant 0 : i32
    %c0_i32_1 = arith.constant 0 : i32
    return %c0_i32, %c0_i32_0 : i32, i32
  }
  func.func @transform_6(%arg0: i32) -> (i32, i32) {
    %c0_i32 = arith.constant 0 : i32
    %c0_i32_0 = arith.constant 0 : i32
    %c0_i32_1 = arith.constant 0 : i32
    return %c0_i32, %c0_i32_0 : i32, i32
  }
  func.func @transform_7(%arg0: i32) -> (i32, i32) {
    %c0_i32 = arith.constant 0 : i32
    %c0_i32_0 = arith.constant 0 : i32
    %c0_i32_1 = arith.constant 0 : i32
    return %c0_i32, %c0_i32_0 : i32, i32
  }
  func.func @transform_8(%arg0: i32) -> (i32, i32, i32) {
    %c0_i32 = arith.constant 0 : i32
    %c0_i32_0 = arith.constant 0 : i32
    %c0_i32_1 = arith.constant 0 : i32
    return %arg0, %c0_i32, %c0_i32_0 : i32, i32, i32
  }
}

module attributes {stable_mosaic.version = 11 : i64} {
  func.func @_conv3x3_kernel(%arg0: i32, %arg1: memref<1x56x128xbf16, #tpu.memory_space<vmem>>, %arg2: memref<9x128x128xbf16, #tpu.memory_space<vmem>>, %arg3: memref<1x128xf32, #tpu.memory_space<vmem>>, %arg4: memref<1x32x128xbf16, #tpu.memory_space<vmem>>) attributes {dimension_semantics = [#tpu.dimension_semantics<parallel>], iteration_bounds = array<i64: 2>, scalar_prefetch = 0 : i64, scratch_operands = 0 : i64, tpu.core_type = #tpu.core_type<tc>, window_params = [{transform_indices = @transform_0, window_bounds = array<i64: 1, 56, 128>}, {pipeline_mode = #tpu.pipeline_mode<synchronous>, transform_indices = @transform_1, window_bounds = array<i64: 9, 128, 128>}, {pipeline_mode = #tpu.pipeline_mode<synchronous>, transform_indices = @transform_2, window_bounds = array<i64: 1, 128>}, {transform_indices = @transform_3, window_bounds = array<i64: 1, 32, 128>}]} {
    %cst = arith.constant 0.000000e+00 : f32
    %0 = vector.broadcast %cst : f32 to vector<32x128xf32>
    %c0 = arith.constant 0 : index
    %c0_0 = arith.constant 0 : index
    %c0_1 = arith.constant 0 : index
    %1 = vector.load %arg1[%c0, %c0_0, %c0_1] : memref<1x56x128xbf16, #tpu.memory_space<vmem>>, vector<1x32x128xbf16>
    %2 = vector.shape_cast %1 : vector<1x32x128xbf16> to vector<32x128xbf16>
    %c0_2 = arith.constant 0 : index
    %c0_3 = arith.constant 0 : index
    %c0_4 = arith.constant 0 : index
    %3 = vector.load %arg2[%c0_2, %c0_3, %c0_4] : memref<9x128x128xbf16, #tpu.memory_space<vmem>>, vector<1x128x128xbf16>
    %4 = vector.shape_cast %3 : vector<1x128x128xbf16> to vector<128x128xbf16>
    %cst_5 = arith.constant dense<0.000000e+00> : vector<32x128xf32>
    %5 = tpu.matmul %2, %4, %cst_5 {dimension_numbers = #tpu.dot_dimension_numbers<[1], [0], [0], [1], [0, 0, 1, 1], [], []>} : vector<32x128xbf16>, vector<128x128xbf16>, vector<32x128xf32> -> vector<32x128xf32>
    %6 = arith.addf %0, %5 : vector<32x128xf32>
    %c0_6 = arith.constant 0 : index
    %c1 = arith.constant 1 : index
    %c0_7 = arith.constant 0 : index
    %7 = vector.load %arg1[%c0_6, %c1, %c0_7] : memref<1x56x128xbf16, #tpu.memory_space<vmem>>, vector<1x32x128xbf16>
    %8 = vector.shape_cast %7 : vector<1x32x128xbf16> to vector<32x128xbf16>
    %c1_8 = arith.constant 1 : index
    %c0_9 = arith.constant 0 : index
    %c0_10 = arith.constant 0 : index
    %9 = vector.load %arg2[%c1_8, %c0_9, %c0_10] : memref<9x128x128xbf16, #tpu.memory_space<vmem>>, vector<1x128x128xbf16>
    %10 = vector.shape_cast %9 : vector<1x128x128xbf16> to vector<128x128xbf16>
    %cst_11 = arith.constant dense<0.000000e+00> : vector<32x128xf32>
    %11 = tpu.matmul %8, %10, %cst_11 {dimension_numbers = #tpu.dot_dimension_numbers<[1], [0], [0], [1], [0, 0, 1, 1], [], []>} : vector<32x128xbf16>, vector<128x128xbf16>, vector<32x128xf32> -> vector<32x128xf32>
    %12 = arith.addf %6, %11 : vector<32x128xf32>
    %c0_12 = arith.constant 0 : index
    %c2 = arith.constant 2 : index
    %c0_13 = arith.constant 0 : index
    %13 = vector.load %arg1[%c0_12, %c2, %c0_13] : memref<1x56x128xbf16, #tpu.memory_space<vmem>>, vector<1x32x128xbf16>
    %14 = vector.shape_cast %13 : vector<1x32x128xbf16> to vector<32x128xbf16>
    %c2_14 = arith.constant 2 : index
    %c0_15 = arith.constant 0 : index
    %c0_16 = arith.constant 0 : index
    %15 = vector.load %arg2[%c2_14, %c0_15, %c0_16] : memref<9x128x128xbf16, #tpu.memory_space<vmem>>, vector<1x128x128xbf16>
    %16 = vector.shape_cast %15 : vector<1x128x128xbf16> to vector<128x128xbf16>
    %cst_17 = arith.constant dense<0.000000e+00> : vector<32x128xf32>
    %17 = tpu.matmul %14, %16, %cst_17 {dimension_numbers = #tpu.dot_dimension_numbers<[1], [0], [0], [1], [0, 0, 1, 1], [], []>} : vector<32x128xbf16>, vector<128x128xbf16>, vector<32x128xf32> -> vector<32x128xf32>
    %18 = arith.addf %12, %17 : vector<32x128xf32>
    %c0_18 = arith.constant 0 : index
    %c8 = arith.constant 8 : index
    %c0_19 = arith.constant 0 : index
    %19 = vector.load %arg1[%c0_18, %c8, %c0_19] : memref<1x56x128xbf16, #tpu.memory_space<vmem>>, vector<1x32x128xbf16>
    %20 = vector.shape_cast %19 : vector<1x32x128xbf16> to vector<32x128xbf16>
    %c3 = arith.constant 3 : index
    %c0_20 = arith.constant 0 : index
    %c0_21 = arith.constant 0 : index
    %21 = vector.load %arg2[%c3, %c0_20, %c0_21] : memref<9x128x128xbf16, #tpu.memory_space<vmem>>, vector<1x128x128xbf16>
    %22 = vector.shape_cast %21 : vector<1x128x128xbf16> to vector<128x128xbf16>
    %cst_22 = arith.constant dense<0.000000e+00> : vector<32x128xf32>
    %23 = tpu.matmul %20, %22, %cst_22 {dimension_numbers = #tpu.dot_dimension_numbers<[1], [0], [0], [1], [0, 0, 1, 1], [], []>} : vector<32x128xbf16>, vector<128x128xbf16>, vector<32x128xf32> -> vector<32x128xf32>
    %24 = arith.addf %18, %23 : vector<32x128xf32>
    %c0_23 = arith.constant 0 : index
    %c9 = arith.constant 9 : index
    %c0_24 = arith.constant 0 : index
    %25 = vector.load %arg1[%c0_23, %c9, %c0_24] : memref<1x56x128xbf16, #tpu.memory_space<vmem>>, vector<1x32x128xbf16>
    %26 = vector.shape_cast %25 : vector<1x32x128xbf16> to vector<32x128xbf16>
    %c4 = arith.constant 4 : index
    %c0_25 = arith.constant 0 : index
    %c0_26 = arith.constant 0 : index
    %27 = vector.load %arg2[%c4, %c0_25, %c0_26] : memref<9x128x128xbf16, #tpu.memory_space<vmem>>, vector<1x128x128xbf16>
    %28 = vector.shape_cast %27 : vector<1x128x128xbf16> to vector<128x128xbf16>
    %cst_27 = arith.constant dense<0.000000e+00> : vector<32x128xf32>
    %29 = tpu.matmul %26, %28, %cst_27 {dimension_numbers = #tpu.dot_dimension_numbers<[1], [0], [0], [1], [0, 0, 1, 1], [], []>} : vector<32x128xbf16>, vector<128x128xbf16>, vector<32x128xf32> -> vector<32x128xf32>
    %30 = arith.addf %24, %29 : vector<32x128xf32>
    %c0_28 = arith.constant 0 : index
    %c10 = arith.constant 10 : index
    %c0_29 = arith.constant 0 : index
    %31 = vector.load %arg1[%c0_28, %c10, %c0_29] : memref<1x56x128xbf16, #tpu.memory_space<vmem>>, vector<1x32x128xbf16>
    %32 = vector.shape_cast %31 : vector<1x32x128xbf16> to vector<32x128xbf16>
    %c5 = arith.constant 5 : index
    %c0_30 = arith.constant 0 : index
    %c0_31 = arith.constant 0 : index
    %33 = vector.load %arg2[%c5, %c0_30, %c0_31] : memref<9x128x128xbf16, #tpu.memory_space<vmem>>, vector<1x128x128xbf16>
    %34 = vector.shape_cast %33 : vector<1x128x128xbf16> to vector<128x128xbf16>
    %cst_32 = arith.constant dense<0.000000e+00> : vector<32x128xf32>
    %35 = tpu.matmul %32, %34, %cst_32 {dimension_numbers = #tpu.dot_dimension_numbers<[1], [0], [0], [1], [0, 0, 1, 1], [], []>} : vector<32x128xbf16>, vector<128x128xbf16>, vector<32x128xf32> -> vector<32x128xf32>
    %36 = arith.addf %30, %35 : vector<32x128xf32>
    %c0_33 = arith.constant 0 : index
    %c16 = arith.constant 16 : index
    %c0_34 = arith.constant 0 : index
    %37 = vector.load %arg1[%c0_33, %c16, %c0_34] : memref<1x56x128xbf16, #tpu.memory_space<vmem>>, vector<1x32x128xbf16>
    %38 = vector.shape_cast %37 : vector<1x32x128xbf16> to vector<32x128xbf16>
    %c6 = arith.constant 6 : index
    %c0_35 = arith.constant 0 : index
    %c0_36 = arith.constant 0 : index
    %39 = vector.load %arg2[%c6, %c0_35, %c0_36] : memref<9x128x128xbf16, #tpu.memory_space<vmem>>, vector<1x128x128xbf16>
    %40 = vector.shape_cast %39 : vector<1x128x128xbf16> to vector<128x128xbf16>
    %cst_37 = arith.constant dense<0.000000e+00> : vector<32x128xf32>
    %41 = tpu.matmul %38, %40, %cst_37 {dimension_numbers = #tpu.dot_dimension_numbers<[1], [0], [0], [1], [0, 0, 1, 1], [], []>} : vector<32x128xbf16>, vector<128x128xbf16>, vector<32x128xf32> -> vector<32x128xf32>
    %42 = arith.addf %36, %41 : vector<32x128xf32>
    %c0_38 = arith.constant 0 : index
    %c17 = arith.constant 17 : index
    %c0_39 = arith.constant 0 : index
    %43 = vector.load %arg1[%c0_38, %c17, %c0_39] : memref<1x56x128xbf16, #tpu.memory_space<vmem>>, vector<1x32x128xbf16>
    %44 = vector.shape_cast %43 : vector<1x32x128xbf16> to vector<32x128xbf16>
    %c7 = arith.constant 7 : index
    %c0_40 = arith.constant 0 : index
    %c0_41 = arith.constant 0 : index
    %45 = vector.load %arg2[%c7, %c0_40, %c0_41] : memref<9x128x128xbf16, #tpu.memory_space<vmem>>, vector<1x128x128xbf16>
    %46 = vector.shape_cast %45 : vector<1x128x128xbf16> to vector<128x128xbf16>
    %cst_42 = arith.constant dense<0.000000e+00> : vector<32x128xf32>
    %47 = tpu.matmul %44, %46, %cst_42 {dimension_numbers = #tpu.dot_dimension_numbers<[1], [0], [0], [1], [0, 0, 1, 1], [], []>} : vector<32x128xbf16>, vector<128x128xbf16>, vector<32x128xf32> -> vector<32x128xf32>
    %48 = arith.addf %42, %47 : vector<32x128xf32>
    %c0_43 = arith.constant 0 : index
    %c18 = arith.constant 18 : index
    %c0_44 = arith.constant 0 : index
    %49 = vector.load %arg1[%c0_43, %c18, %c0_44] : memref<1x56x128xbf16, #tpu.memory_space<vmem>>, vector<1x32x128xbf16>
    %50 = vector.shape_cast %49 : vector<1x32x128xbf16> to vector<32x128xbf16>
    %c8_45 = arith.constant 8 : index
    %c0_46 = arith.constant 0 : index
    %c0_47 = arith.constant 0 : index
    %51 = vector.load %arg2[%c8_45, %c0_46, %c0_47] : memref<9x128x128xbf16, #tpu.memory_space<vmem>>, vector<1x128x128xbf16>
    %52 = vector.shape_cast %51 : vector<1x128x128xbf16> to vector<128x128xbf16>
    %cst_48 = arith.constant dense<0.000000e+00> : vector<32x128xf32>
    %53 = tpu.matmul %50, %52, %cst_48 {dimension_numbers = #tpu.dot_dimension_numbers<[1], [0], [0], [1], [0, 0, 1, 1], [], []>} : vector<32x128xbf16>, vector<128x128xbf16>, vector<32x128xf32> -> vector<32x128xf32>
    %54 = arith.addf %48, %53 : vector<32x128xf32>
    %c0_49 = arith.constant 0 : index
    %c0_50 = arith.constant 0 : index
    %55 = vector.load %arg3[%c0_49, %c0_50] : memref<1x128xf32, #tpu.memory_space<vmem>>, vector<1x128xf32>
    %56 = vector.broadcast %55 : vector<1x128xf32> to vector<32x128xf32>
    %57 = arith.addf %54, %56 : vector<32x128xf32>
    %cst_51 = arith.constant 0.000000e+00 : f32
    %58 = vector.broadcast %cst_51 : f32 to vector<32x128xf32>
    %59 = arith.maximumf %57, %58 : vector<32x128xf32>
    %60 = arith.truncf %59 : vector<32x128xf32> to vector<32x128xbf16>
    %c0_52 = arith.constant 0 : index
    %c0_53 = arith.constant 0 : index
    %c0_54 = arith.constant 0 : index
    %61 = vector.load %arg4[%c0_52, %c0_53, %c0_54] : memref<1x32x128xbf16, #tpu.memory_space<vmem>>, vector<1x32x128xbf16>
    %62 = vector.shape_cast %61 : vector<1x32x128xbf16> to vector<32x128xbf16>
    %63 = vector.shape_cast %60 : vector<32x128xbf16> to vector<1x32x128xbf16>
    tpu.vector_store %arg4[%c0_52, %c0_53, %c0_54], %63 {strides = array<i32>} : memref<1x32x128xbf16, #tpu.memory_space<vmem>>, vector<1x32x128xbf16>,
    return
  }
  func.func @transform_0(%arg0: i32) -> (i32, i32, i32) {
    %c0_i32 = arith.constant 0 : i32
    %c0_i32_0 = arith.constant 0 : i32
    %c0_i32_1 = arith.constant 0 : i32
    return %arg0, %c0_i32, %c0_i32_0 : i32, i32, i32
  }
  func.func @transform_1(%arg0: i32) -> (i32, i32, i32) {
    %c0_i32 = arith.constant 0 : i32
    %c0_i32_0 = arith.constant 0 : i32
    %c0_i32_1 = arith.constant 0 : i32
    %c0_i32_2 = arith.constant 0 : i32
    return %c0_i32, %c0_i32_0, %c0_i32_1 : i32, i32, i32
  }
  func.func @transform_2(%arg0: i32) -> (i32, i32) {
    %c0_i32 = arith.constant 0 : i32
    %c0_i32_0 = arith.constant 0 : i32
    %c0_i32_1 = arith.constant 0 : i32
    return %c0_i32, %c0_i32_0 : i32, i32
  }
  func.func @transform_3(%arg0: i32) -> (i32, i32, i32) {
    %c0_i32 = arith.constant 0 : i32
    %c0_i32_0 = arith.constant 0 : i32
    %c0_i32_1 = arith.constant 0 : i32
    return %arg0, %c0_i32, %c0_i32_0 : i32, i32, i32
  }
}

module attributes {stable_mosaic.version = 11 : i64} {
  func.func @_se_tail_kernel(%arg0: i32, %arg1: memref<1x16x128xbf16, #tpu.memory_space<vmem>>, %arg2: memref<1x16x512xbf16, #tpu.memory_space<vmem>>, %arg3: memref<128x512xbf16, #tpu.memory_space<vmem>>, %arg4: memref<1x512xf32, #tpu.memory_space<vmem>>, %arg5: memref<512x32xbf16, #tpu.memory_space<vmem>>, %arg6: memref<1x32xf32, #tpu.memory_space<vmem>>, %arg7: memref<32x512xbf16, #tpu.memory_space<vmem>>, %arg8: memref<1x512xf32, #tpu.memory_space<vmem>>, %arg9: memref<1x16x512xbf16, #tpu.memory_space<vmem>>) attributes {dimension_semantics = [#tpu.dimension_semantics<parallel>], iteration_bounds = array<i64: 2>, scalar_prefetch = 0 : i64, scratch_operands = 0 : i64, tpu.core_type = #tpu.core_type<tc>, window_params = [{transform_indices = @transform_0, window_bounds = array<i64: 1, 16, 128>}, {transform_indices = @transform_1, window_bounds = array<i64: 1, 16, 512>}, {pipeline_mode = #tpu.pipeline_mode<synchronous>, transform_indices = @transform_2, window_bounds = array<i64: 128, 512>}, {pipeline_mode = #tpu.pipeline_mode<synchronous>, transform_indices = @transform_3, window_bounds = array<i64: 1, 512>}, {pipeline_mode = #tpu.pipeline_mode<synchronous>, transform_indices = @transform_4, window_bounds = array<i64: 512, 32>}, {pipeline_mode = #tpu.pipeline_mode<synchronous>, transform_indices = @transform_5, window_bounds = array<i64: 1, 32>}, {pipeline_mode = #tpu.pipeline_mode<synchronous>, transform_indices = @transform_6, window_bounds = array<i64: 32, 512>}, {pipeline_mode = #tpu.pipeline_mode<synchronous>, transform_indices = @transform_7, window_bounds = array<i64: 1, 512>}, {transform_indices = @transform_8, window_bounds = array<i64: 1, 16, 512>}]} {
    %c0 = arith.constant 0 : index
    %c0_0 = arith.constant 0 : index
    %c0_1 = arith.constant 0 : index
    %0 = vector.load %arg1[%c0, %c0_0, %c0_1] : memref<1x16x128xbf16, #tpu.memory_space<vmem>>, vector<1x16x128xbf16>
    %1 = vector.shape_cast %0 : vector<1x16x128xbf16> to vector<16x128xbf16>
    %c0_2 = arith.constant 0 : index
    %c0_3 = arith.constant 0 : index
    %2 = vector.load %arg3[%c0_2, %c0_3] : memref<128x512xbf16, #tpu.memory_space<vmem>>, vector<128x512xbf16>
    %cst = arith.constant dense<0.000000e+00> : vector<16x512xf32>
    %3 = tpu.matmul %1, %2, %cst {dimension_numbers = #tpu.dot_dimension_numbers<[1], [0], [0], [1], [0, 0, 1, 1], [], []>} : vector<16x128xbf16>, vector<128x512xbf16>, vector<16x512xf32> -> vector<16x512xf32>
    %c0_4 = arith.constant 0 : index
    %c0_5 = arith.constant 0 : index
    %4 = vector.load %arg4[%c0_4, %c0_5] : memref<1x512xf32, #tpu.memory_space<vmem>>, vector<1x512xf32>
    %5 = vector.broadcast %4 : vector<1x512xf32> to vector<16x512xf32>
    %6 = arith.addf %3, %5 : vector<16x512xf32>
    %cst_6 = arith.constant dense<0.000000e+00> : vector<512xf32>
    %7 = vector.multi_reduction <add>, %6, %cst_6 [0] : vector<16x512xf32> to vector<512xf32>
    %8 = vector.shape_cast %7 : vector<512xf32> to vector<1x512xf32>
    %cst_7 = arith.constant 6.250000e-02 : f32
    %9 = vector.broadcast %cst_7 : f32 to vector<1x512xf32>
    %10 = arith.mulf %8, %9 : vector<1x512xf32>
    %11 = arith.truncf %10 : vector<1x512xf32> to vector<1x512xbf16>
    %c0_8 = arith.constant 0 : index
    %c0_9 = arith.constant 0 : index
    %12 = vector.load %arg5[%c0_8, %c0_9] : memref<512x32xbf16, #tpu.memory_space<vmem>>, vector<512x32xbf16>
    %cst_10 = arith.constant dense<0.000000e+00> : vector<1x32xf32>
    %13 = tpu.matmul %11, %12, %cst_10 {dimension_numbers = #tpu.dot_dimension_numbers<[1], [0], [0], [1], [0, 0, 1, 1], [], []>} : vector<1x512xbf16>, vector<512x32xbf16>, vector<1x32xf32> -> vector<1x32xf32>
    %c0_11 = arith.constant 0 : index
    %c0_12 = arith.constant 0 : index
    %14 = vector.load %arg6[%c0_11, %c0_12] : memref<1x32xf32, #tpu.memory_space<vmem>>, vector<1x32xf32>
    %15 = arith.addf %13, %14 : vector<1x32xf32>
    %cst_13 = arith.constant 0.000000e+00 : f32
    %16 = vector.broadcast %cst_13 : f32 to vector<1x32xf32>
    %17 = arith.maximumf %15, %16 : vector<1x32xf32>
    %18 = arith.truncf %17 : vector<1x32xf32> to vector<1x32xbf16>
    %c0_14 = arith.constant 0 : index
    %c0_15 = arith.constant 0 : index
    %19 = vector.load %arg7[%c0_14, %c0_15] : memref<32x512xbf16, #tpu.memory_space<vmem>>, vector<32x512xbf16>
    %cst_16 = arith.constant dense<0.000000e+00> : vector<1x512xf32>
    %20 = tpu.matmul %18, %19, %cst_16 {dimension_numbers = #tpu.dot_dimension_numbers<[1], [0], [0], [1], [0, 0, 1, 1], [], []>} : vector<1x32xbf16>, vector<32x512xbf16>, vector<1x512xf32> -> vector<1x512xf32>
    %c0_17 = arith.constant 0 : index
    %c0_18 = arith.constant 0 : index
    %21 = vector.load %arg8[%c0_17, %c0_18] : memref<1x512xf32, #tpu.memory_space<vmem>>, vector<1x512xf32>
    %22 = arith.addf %20, %21 : vector<1x512xf32>
    %23 = arith.negf %22 : vector<1x512xf32>
    %24 = math.exp %23 : vector<1x512xf32>
    %cst_19 = arith.constant 1.000000e+00 : f32
    %25 = vector.broadcast %cst_19 : f32 to vector<1x512xf32>
    %26 = arith.addf %25, %24 : vector<1x512xf32>
    %27 = arith.divf %25, %26 : vector<1x512xf32>
    %28 = vector.broadcast %27 : vector<1x512xf32> to vector<16x512xf32>
    %29 = arith.mulf %6, %28 : vector<16x512xf32>
    %c0_20 = arith.constant 0 : index
    %c0_21 = arith.constant 0 : index
    %c0_22 = arith.constant 0 : index
    %30 = vector.load %arg2[%c0_20, %c0_21, %c0_22] : memref<1x16x512xbf16, #tpu.memory_space<vmem>>, vector<1x16x512xbf16>
    %31 = vector.shape_cast %30 : vector<1x16x512xbf16> to vector<16x512xbf16>
    %32 = arith.extf %31 : vector<16x512xbf16> to vector<16x512xf32>
    %33 = arith.addf %29, %32 : vector<16x512xf32>
    %cst_23 = arith.constant 0.000000e+00 : f32
    %34 = vector.broadcast %cst_23 : f32 to vector<16x512xf32>
    %35 = arith.maximumf %33, %34 : vector<16x512xf32>
    %36 = arith.truncf %35 : vector<16x512xf32> to vector<16x512xbf16>
    %c0_24 = arith.constant 0 : index
    %c0_25 = arith.constant 0 : index
    %c0_26 = arith.constant 0 : index
    %37 = vector.load %arg9[%c0_24, %c0_25, %c0_26] : memref<1x16x512xbf16, #tpu.memory_space<vmem>>, vector<1x16x512xbf16>
    %38 = vector.shape_cast %37 : vector<1x16x512xbf16> to vector<16x512xbf16>
    %39 = vector.shape_cast %36 : vector<16x512xbf16> to vector<1x16x512xbf16>
    tpu.vector_store %arg9[%c0_24, %c0_25, %c0_26], %39 {strides = array<i32>} : memref<1x16x512xbf16, #tpu.memory_space<vmem>>, vector<1x16x512xbf16>,
    return
  }
  func.func @transform_0(%arg0: i32) -> (i32, i32, i32) {
    %c0_i32 = arith.constant 0 : i32
    %c0_i32_0 = arith.constant 0 : i32
    %c0_i32_1 = arith.constant 0 : i32
    return %arg0, %c0_i32, %c0_i32_0 : i32, i32, i32
  }
  func.func @transform_1(%arg0: i32) -> (i32, i32, i32) {
    %c0_i32 = arith.constant 0 : i32
    %c0_i32_0 = arith.constant 0 : i32
    %c0_i32_1 = arith.constant 0 : i32
    return %arg0, %c0_i32, %c0_i32_0 : i32, i32, i32
  }
  func.func @transform_2(%arg0: i32) -> (i32, i32) {
    %c0_i32 = arith.constant 0 : i32
    %c0_i32_0 = arith.constant 0 : i32
    %c0_i32_1 = arith.constant 0 : i32
    return %c0_i32, %c0_i32_0 : i32, i32
  }
  func.func @transform_3(%arg0: i32) -> (i32, i32) {
    %c0_i32 = arith.constant 0 : i32
    %c0_i32_0 = arith.constant 0 : i32
    %c0_i32_1 = arith.constant 0 : i32
    return %c0_i32, %c0_i32_0 : i32, i32
  }
  func.func @transform_4(%arg0: i32) -> (i32, i32) {
    %c0_i32 = arith.constant 0 : i32
    %c0_i32_0 = arith.constant 0 : i32
    %c0_i32_1 = arith.constant 0 : i32
    return %c0_i32, %c0_i32_0 : i32, i32
  }
  func.func @transform_5(%arg0: i32) -> (i32, i32) {
    %c0_i32 = arith.constant 0 : i32
    %c0_i32_0 = arith.constant 0 : i32
    %c0_i32_1 = arith.constant 0 : i32
    return %c0_i32, %c0_i32_0 : i32, i32
  }
  func.func @transform_6(%arg0: i32) -> (i32, i32) {
    %c0_i32 = arith.constant 0 : i32
    %c0_i32_0 = arith.constant 0 : i32
    %c0_i32_1 = arith.constant 0 : i32
    return %c0_i32, %c0_i32_0 : i32, i32
  }
  func.func @transform_7(%arg0: i32) -> (i32, i32) {
    %c0_i32 = arith.constant 0 : i32
    %c0_i32_0 = arith.constant 0 : i32
    %c0_i32_1 = arith.constant 0 : i32
    return %c0_i32, %c0_i32_0 : i32, i32
  }
  func.func @transform_8(%arg0: i32) -> (i32, i32, i32) {
    %c0_i32 = arith.constant 0 : i32
    %c0_i32_0 = arith.constant 0 : i32
    %c0_i32_1 = arith.constant 0 : i32
    return %arg0, %c0_i32, %c0_i32_0 : i32, i32, i32
  }
}

module attributes {stable_mosaic.version = 11 : i64} {
  func.func @_head_kernel(%arg0: i32, %arg1: memref<8x512xbf16, #tpu.memory_space<vmem>>, %arg2: memref<512x256xbf16, #tpu.memory_space<vmem>>, %arg3: memref<1x256xf32, #tpu.memory_space<vmem>>, %arg4: memref<512x1024xbf16, #tpu.memory_space<vmem>>, %arg5: memref<1x1024xf32, #tpu.memory_space<vmem>>, %arg6: memref<8x256xbf16, #tpu.memory_space<vmem>>, %arg7: memref<8x1024xbf16, #tpu.memory_space<vmem>>) attributes {dimension_semantics = [#tpu.dimension_semantics<parallel>], iteration_bounds = array<i64: 1>, scalar_prefetch = 0 : i64, scratch_operands = 0 : i64, tpu.core_type = #tpu.core_type<tc>, window_params = [{transform_indices = @transform_0, window_bounds = array<i64: 8, 512>}, {pipeline_mode = #tpu.pipeline_mode<synchronous>, transform_indices = @transform_1, window_bounds = array<i64: 512, 256>}, {pipeline_mode = #tpu.pipeline_mode<synchronous>, transform_indices = @transform_2, window_bounds = array<i64: 1, 256>}, {pipeline_mode = #tpu.pipeline_mode<synchronous>, transform_indices = @transform_3, window_bounds = array<i64: 512, 1024>}, {pipeline_mode = #tpu.pipeline_mode<synchronous>, transform_indices = @transform_4, window_bounds = array<i64: 1, 1024>}, {transform_indices = @transform_5, window_bounds = array<i64: 8, 256>}, {transform_indices = @transform_6, window_bounds = array<i64: 8, 1024>}]} {
    %c0 = arith.constant 0 : index
    %c0_0 = arith.constant 0 : index
    %0 = vector.load %arg1[%c0, %c0_0] : memref<8x512xbf16, #tpu.memory_space<vmem>>, vector<8x512xbf16>
    %c0_1 = arith.constant 0 : index
    %c0_2 = arith.constant 0 : index
    %1 = vector.load %arg2[%c0_1, %c0_2] : memref<512x256xbf16, #tpu.memory_space<vmem>>, vector<512x256xbf16>
    %cst = arith.constant dense<0.000000e+00> : vector<8x256xf32>
    %2 = tpu.matmul %0, %1, %cst {dimension_numbers = #tpu.dot_dimension_numbers<[1], [0], [0], [1], [0, 0, 1, 1], [], []>} : vector<8x512xbf16>, vector<512x256xbf16>, vector<8x256xf32> -> vector<8x256xf32>
    %c0_3 = arith.constant 0 : index
    %c0_4 = arith.constant 0 : index
    %3 = vector.load %arg3[%c0_3, %c0_4] : memref<1x256xf32, #tpu.memory_space<vmem>>, vector<1x256xf32>
    %4 = vector.broadcast %3 : vector<1x256xf32> to vector<8x256xf32>
    %5 = arith.addf %2, %4 : vector<8x256xf32>
    %cst_5 = arith.constant 0.000000e+00 : f32
    %6 = vector.broadcast %cst_5 : f32 to vector<8x256xf32>
    %7 = arith.maximumf %5, %6 : vector<8x256xf32>
    %8 = arith.truncf %7 : vector<8x256xf32> to vector<8x256xbf16>
    %c0_6 = arith.constant 0 : index
    %c0_7 = arith.constant 0 : index
    %9 = vector.load %arg6[%c0_6, %c0_7] : memref<8x256xbf16, #tpu.memory_space<vmem>>, vector<8x256xbf16>
    tpu.vector_store %arg6[%c0_6, %c0_7], %8 {strides = array<i32>} : memref<8x256xbf16, #tpu.memory_space<vmem>>, vector<8x256xbf16>,
    %c0_8 = arith.constant 0 : index
    %c0_9 = arith.constant 0 : index
    %10 = vector.load %arg4[%c0_8, %c0_9] : memref<512x1024xbf16, #tpu.memory_space<vmem>>, vector<512x1024xbf16>
    %cst_10 = arith.constant dense<0.000000e+00> : vector<8x1024xf32>
    %11 = tpu.matmul %0, %10, %cst_10 {dimension_numbers = #tpu.dot_dimension_numbers<[1], [0], [0], [1], [0, 0, 1, 1], [], []>} : vector<8x512xbf16>, vector<512x1024xbf16>, vector<8x1024xf32> -> vector<8x1024xf32>
    %c0_11 = arith.constant 0 : index
    %c0_12 = arith.constant 0 : index
    %12 = vector.load %arg5[%c0_11, %c0_12] : memref<1x1024xf32, #tpu.memory_space<vmem>>, vector<1x1024xf32>
    %13 = vector.broadcast %12 : vector<1x1024xf32> to vector<8x1024xf32>
    %14 = arith.addf %11, %13 : vector<8x1024xf32>
    %15 = arith.truncf %14 : vector<8x1024xf32> to vector<8x1024xbf16>
    %c0_13 = arith.constant 0 : index
    %c0_14 = arith.constant 0 : index
    %16 = vector.load %arg7[%c0_13, %c0_14] : memref<8x1024xbf16, #tpu.memory_space<vmem>>, vector<8x1024xbf16>
    tpu.vector_store %arg7[%c0_13, %c0_14], %15 {strides = array<i32>} : memref<8x1024xbf16, #tpu.memory_space<vmem>>, vector<8x1024xbf16>,
    return
  }
  func.func @transform_0(%arg0: i32) -> (i32, i32) {
    %c0_i32 = arith.constant 0 : i32
    %c0_i32_0 = arith.constant 0 : i32
    return %arg0, %c0_i32 : i32, i32
  }
  func.func @transform_1(%arg0: i32) -> (i32, i32) {
    %c0_i32 = arith.constant 0 : i32
    %c0_i32_0 = arith.constant 0 : i32
    %c0_i32_1 = arith.constant 0 : i32
    return %c0_i32, %c0_i32_0 : i32, i32
  }
  func.func @transform_2(%arg0: i32) -> (i32, i32) {
    %c0_i32 = arith.constant 0 : i32
    %c0_i32_0 = arith.constant 0 : i32
    %c0_i32_1 = arith.constant 0 : i32
    return %c0_i32, %c0_i32_0 : i32, i32
  }
  func.func @transform_3(%arg0: i32) -> (i32, i32) {
    %c0_i32 = arith.constant 0 : i32
    %c0_i32_0 = arith.constant 0 : i32
    %c0_i32_1 = arith.constant 0 : i32
    return %c0_i32, %c0_i32_0 : i32, i32
  }
  func.func @transform_4(%arg0: i32) -> (i32, i32) {
    %c0_i32 = arith.constant 0 : i32
    %c0_i32_0 = arith.constant 0 : i32
    %c0_i32_1 = arith.constant 0 : i32
    return %c0_i32, %c0_i32_0 : i32, i32
  }
  func.func @transform_5(%arg0: i32) -> (i32, i32) {
    %c0_i32 = arith.constant 0 : i32
    %c0_i32_0 = arith.constant 0 : i32
    return %arg0, %c0_i32 : i32, i32
  }
  func.func @transform_6(%arg0: i32) -> (i32, i32) {
    %c0_i32 = arith.constant 0 : i32
    %c0_i32_0 = arith.constant 0 : i32
    return %arg0, %c0_i32 : i32, i32
  }
}

module attributes {stable_mosaic.version = 11 : i64} {
  func.func @_conv3x3_kernel(%arg0: i32, %arg1: memref<1x40x256xbf16, #tpu.memory_space<vmem>>, %arg2: memref<9x256x256xbf16, #tpu.memory_space<vmem>>, %arg3: memref<1x256xf32, #tpu.memory_space<vmem>>, %arg4: memref<1x16x256xbf16, #tpu.memory_space<vmem>>) attributes {dimension_semantics = [#tpu.dimension_semantics<parallel>], iteration_bounds = array<i64: 2>, scalar_prefetch = 0 : i64, scratch_operands = 0 : i64, tpu.core_type = #tpu.core_type<tc>, window_params = [{transform_indices = @transform_0, window_bounds = array<i64: 1, 40, 256>}, {pipeline_mode = #tpu.pipeline_mode<synchronous>, transform_indices = @transform_1, window_bounds = array<i64: 9, 256, 256>}, {pipeline_mode = #tpu.pipeline_mode<synchronous>, transform_indices = @transform_2, window_bounds = array<i64: 1, 256>}, {transform_indices = @transform_3, window_bounds = array<i64: 1, 16, 256>}]} {
    %cst = arith.constant 0.000000e+00 : f32
    %0 = vector.broadcast %cst : f32 to vector<16x256xf32>
    %c0 = arith.constant 0 : index
    %c0_0 = arith.constant 0 : index
    %c0_1 = arith.constant 0 : index
    %1 = vector.load %arg1[%c0, %c0_0, %c0_1] : memref<1x40x256xbf16, #tpu.memory_space<vmem>>, vector<1x16x256xbf16>
    %2 = vector.shape_cast %1 : vector<1x16x256xbf16> to vector<16x256xbf16>
    %c0_2 = arith.constant 0 : index
    %c0_3 = arith.constant 0 : index
    %c0_4 = arith.constant 0 : index
    %3 = vector.load %arg2[%c0_2, %c0_3, %c0_4] : memref<9x256x256xbf16, #tpu.memory_space<vmem>>, vector<1x256x256xbf16>
    %4 = vector.shape_cast %3 : vector<1x256x256xbf16> to vector<256x256xbf16>
    %cst_5 = arith.constant dense<0.000000e+00> : vector<16x256xf32>
    %5 = tpu.matmul %2, %4, %cst_5 {dimension_numbers = #tpu.dot_dimension_numbers<[1], [0], [0], [1], [0, 0, 1, 1], [], []>} : vector<16x256xbf16>, vector<256x256xbf16>, vector<16x256xf32> -> vector<16x256xf32>
    %6 = arith.addf %0, %5 : vector<16x256xf32>
    %c0_6 = arith.constant 0 : index
    %c1 = arith.constant 1 : index
    %c0_7 = arith.constant 0 : index
    %7 = vector.load %arg1[%c0_6, %c1, %c0_7] : memref<1x40x256xbf16, #tpu.memory_space<vmem>>, vector<1x16x256xbf16>
    %8 = vector.shape_cast %7 : vector<1x16x256xbf16> to vector<16x256xbf16>
    %c1_8 = arith.constant 1 : index
    %c0_9 = arith.constant 0 : index
    %c0_10 = arith.constant 0 : index
    %9 = vector.load %arg2[%c1_8, %c0_9, %c0_10] : memref<9x256x256xbf16, #tpu.memory_space<vmem>>, vector<1x256x256xbf16>
    %10 = vector.shape_cast %9 : vector<1x256x256xbf16> to vector<256x256xbf16>
    %cst_11 = arith.constant dense<0.000000e+00> : vector<16x256xf32>
    %11 = tpu.matmul %8, %10, %cst_11 {dimension_numbers = #tpu.dot_dimension_numbers<[1], [0], [0], [1], [0, 0, 1, 1], [], []>} : vector<16x256xbf16>, vector<256x256xbf16>, vector<16x256xf32> -> vector<16x256xf32>
    %12 = arith.addf %6, %11 : vector<16x256xf32>
    %c0_12 = arith.constant 0 : index
    %c2 = arith.constant 2 : index
    %c0_13 = arith.constant 0 : index
    %13 = vector.load %arg1[%c0_12, %c2, %c0_13] : memref<1x40x256xbf16, #tpu.memory_space<vmem>>, vector<1x16x256xbf16>
    %14 = vector.shape_cast %13 : vector<1x16x256xbf16> to vector<16x256xbf16>
    %c2_14 = arith.constant 2 : index
    %c0_15 = arith.constant 0 : index
    %c0_16 = arith.constant 0 : index
    %15 = vector.load %arg2[%c2_14, %c0_15, %c0_16] : memref<9x256x256xbf16, #tpu.memory_space<vmem>>, vector<1x256x256xbf16>
    %16 = vector.shape_cast %15 : vector<1x256x256xbf16> to vector<256x256xbf16>
    %cst_17 = arith.constant dense<0.000000e+00> : vector<16x256xf32>
    %17 = tpu.matmul %14, %16, %cst_17 {dimension_numbers = #tpu.dot_dimension_numbers<[1], [0], [0], [1], [0, 0, 1, 1], [], []>} : vector<16x256xbf16>, vector<256x256xbf16>, vector<16x256xf32> -> vector<16x256xf32>
    %18 = arith.addf %12, %17 : vector<16x256xf32>
    %c0_18 = arith.constant 0 : index
    %c8 = arith.constant 8 : index
    %c0_19 = arith.constant 0 : index
    %19 = vector.load %arg1[%c0_18, %c8, %c0_19] : memref<1x40x256xbf16, #tpu.memory_space<vmem>>, vector<1x16x256xbf16>
    %20 = vector.shape_cast %19 : vector<1x16x256xbf16> to vector<16x256xbf16>
    %c3 = arith.constant 3 : index
    %c0_20 = arith.constant 0 : index
    %c0_21 = arith.constant 0 : index
    %21 = vector.load %arg2[%c3, %c0_20, %c0_21] : memref<9x256x256xbf16, #tpu.memory_space<vmem>>, vector<1x256x256xbf16>
    %22 = vector.shape_cast %21 : vector<1x256x256xbf16> to vector<256x256xbf16>
    %cst_22 = arith.constant dense<0.000000e+00> : vector<16x256xf32>
    %23 = tpu.matmul %20, %22, %cst_22 {dimension_numbers = #tpu.dot_dimension_numbers<[1], [0], [0], [1], [0, 0, 1, 1], [], []>} : vector<16x256xbf16>, vector<256x256xbf16>, vector<16x256xf32> -> vector<16x256xf32>
    %24 = arith.addf %18, %23 : vector<16x256xf32>
    %c0_23 = arith.constant 0 : index
    %c9 = arith.constant 9 : index
    %c0_24 = arith.constant 0 : index
    %25 = vector.load %arg1[%c0_23, %c9, %c0_24] : memref<1x40x256xbf16, #tpu.memory_space<vmem>>, vector<1x16x256xbf16>
    %26 = vector.shape_cast %25 : vector<1x16x256xbf16> to vector<16x256xbf16>
    %c4 = arith.constant 4 : index
    %c0_25 = arith.constant 0 : index
    %c0_26 = arith.constant 0 : index
    %27 = vector.load %arg2[%c4, %c0_25, %c0_26] : memref<9x256x256xbf16, #tpu.memory_space<vmem>>, vector<1x256x256xbf16>
    %28 = vector.shape_cast %27 : vector<1x256x256xbf16> to vector<256x256xbf16>
    %cst_27 = arith.constant dense<0.000000e+00> : vector<16x256xf32>
    %29 = tpu.matmul %26, %28, %cst_27 {dimension_numbers = #tpu.dot_dimension_numbers<[1], [0], [0], [1], [0, 0, 1, 1], [], []>} : vector<16x256xbf16>, vector<256x256xbf16>, vector<16x256xf32> -> vector<16x256xf32>
    %30 = arith.addf %24, %29 : vector<16x256xf32>
    %c0_28 = arith.constant 0 : index
    %c10 = arith.constant 10 : index
    %c0_29 = arith.constant 0 : index
    %31 = vector.load %arg1[%c0_28, %c10, %c0_29] : memref<1x40x256xbf16, #tpu.memory_space<vmem>>, vector<1x16x256xbf16>
    %32 = vector.shape_cast %31 : vector<1x16x256xbf16> to vector<16x256xbf16>
    %c5 = arith.constant 5 : index
    %c0_30 = arith.constant 0 : index
    %c0_31 = arith.constant 0 : index
    %33 = vector.load %arg2[%c5, %c0_30, %c0_31] : memref<9x256x256xbf16, #tpu.memory_space<vmem>>, vector<1x256x256xbf16>
    %34 = vector.shape_cast %33 : vector<1x256x256xbf16> to vector<256x256xbf16>
    %cst_32 = arith.constant dense<0.000000e+00> : vector<16x256xf32>
    %35 = tpu.matmul %32, %34, %cst_32 {dimension_numbers = #tpu.dot_dimension_numbers<[1], [0], [0], [1], [0, 0, 1, 1], [], []>} : vector<16x256xbf16>, vector<256x256xbf16>, vector<16x256xf32> -> vector<16x256xf32>
    %36 = arith.addf %30, %35 : vector<16x256xf32>
    %c0_33 = arith.constant 0 : index
    %c16 = arith.constant 16 : index
    %c0_34 = arith.constant 0 : index
    %37 = vector.load %arg1[%c0_33, %c16, %c0_34] : memref<1x40x256xbf16, #tpu.memory_space<vmem>>, vector<1x16x256xbf16>
    %38 = vector.shape_cast %37 : vector<1x16x256xbf16> to vector<16x256xbf16>
    %c6 = arith.constant 6 : index
    %c0_35 = arith.constant 0 : index
    %c0_36 = arith.constant 0 : index
    %39 = vector.load %arg2[%c6, %c0_35, %c0_36] : memref<9x256x256xbf16, #tpu.memory_space<vmem>>, vector<1x256x256xbf16>
    %40 = vector.shape_cast %39 : vector<1x256x256xbf16> to vector<256x256xbf16>
    %cst_37 = arith.constant dense<0.000000e+00> : vector<16x256xf32>
    %41 = tpu.matmul %38, %40, %cst_37 {dimension_numbers = #tpu.dot_dimension_numbers<[1], [0], [0], [1], [0, 0, 1, 1], [], []>} : vector<16x256xbf16>, vector<256x256xbf16>, vector<16x256xf32> -> vector<16x256xf32>
    %42 = arith.addf %36, %41 : vector<16x256xf32>
    %c0_38 = arith.constant 0 : index
    %c17 = arith.constant 17 : index
    %c0_39 = arith.constant 0 : index
    %43 = vector.load %arg1[%c0_38, %c17, %c0_39] : memref<1x40x256xbf16, #tpu.memory_space<vmem>>, vector<1x16x256xbf16>
    %44 = vector.shape_cast %43 : vector<1x16x256xbf16> to vector<16x256xbf16>
    %c7 = arith.constant 7 : index
    %c0_40 = arith.constant 0 : index
    %c0_41 = arith.constant 0 : index
    %45 = vector.load %arg2[%c7, %c0_40, %c0_41] : memref<9x256x256xbf16, #tpu.memory_space<vmem>>, vector<1x256x256xbf16>
    %46 = vector.shape_cast %45 : vector<1x256x256xbf16> to vector<256x256xbf16>
    %cst_42 = arith.constant dense<0.000000e+00> : vector<16x256xf32>
    %47 = tpu.matmul %44, %46, %cst_42 {dimension_numbers = #tpu.dot_dimension_numbers<[1], [0], [0], [1], [0, 0, 1, 1], [], []>} : vector<16x256xbf16>, vector<256x256xbf16>, vector<16x256xf32> -> vector<16x256xf32>
    %48 = arith.addf %42, %47 : vector<16x256xf32>
    %c0_43 = arith.constant 0 : index
    %c18 = arith.constant 18 : index
    %c0_44 = arith.constant 0 : index
    %49 = vector.load %arg1[%c0_43, %c18, %c0_44] : memref<1x40x256xbf16, #tpu.memory_space<vmem>>, vector<1x16x256xbf16>
    %50 = vector.shape_cast %49 : vector<1x16x256xbf16> to vector<16x256xbf16>
    %c8_45 = arith.constant 8 : index
    %c0_46 = arith.constant 0 : index
    %c0_47 = arith.constant 0 : index
    %51 = vector.load %arg2[%c8_45, %c0_46, %c0_47] : memref<9x256x256xbf16, #tpu.memory_space<vmem>>, vector<1x256x256xbf16>
    %52 = vector.shape_cast %51 : vector<1x256x256xbf16> to vector<256x256xbf16>
    %cst_48 = arith.constant dense<0.000000e+00> : vector<16x256xf32>
    %53 = tpu.matmul %50, %52, %cst_48 {dimension_numbers = #tpu.dot_dimension_numbers<[1], [0], [0], [1], [0, 0, 1, 1], [], []>} : vector<16x256xbf16>, vector<256x256xbf16>, vector<16x256xf32> -> vector<16x256xf32>
    %54 = arith.addf %48, %53 : vector<16x256xf32>
    %c0_49 = arith.constant 0 : index
    %c0_50 = arith.constant 0 : index
    %55 = vector.load %arg3[%c0_49, %c0_50] : memref<1x256xf32, #tpu.memory_space<vmem>>, vector<1x256xf32>
    %56 = vector.broadcast %55 : vector<1x256xf32> to vector<16x256xf32>
    %57 = arith.addf %54, %56 : vector<16x256xf32>
    %cst_51 = arith.constant 0.000000e+00 : f32
    %58 = vector.broadcast %cst_51 : f32 to vector<16x256xf32>
    %59 = arith.maximumf %57, %58 : vector<16x256xf32>
    %60 = arith.truncf %59 : vector<16x256xf32> to vector<16x256xbf16>
    %c0_52 = arith.constant 0 : index
    %c0_53 = arith.constant 0 : index
    %c0_54 = arith.constant 0 : index
    %61 = vector.load %arg4[%c0_52, %c0_53, %c0_54] : memref<1x16x256xbf16, #tpu.memory_space<vmem>>, vector<1x16x256xbf16>
    %62 = vector.shape_cast %61 : vector<1x16x256xbf16> to vector<16x256xbf16>
    %63 = vector.shape_cast %60 : vector<16x256xbf16> to vector<1x16x256xbf16>
    tpu.vector_store %arg4[%c0_52, %c0_53, %c0_54], %63 {strides = array<i32>} : memref<1x16x256xbf16, #tpu.memory_space<vmem>>, vector<1x16x256xbf16>,
    return
  }
  func.func @transform_0(%arg0: i32) -> (i32, i32, i32) {
    %c0_i32 = arith.constant 0 : i32
    %c0_i32_0 = arith.constant 0 : i32
    %c0_i32_1 = arith.constant 0 : i32
    return %arg0, %c0_i32, %c0_i32_0 : i32, i32, i32
  }
  func.func @transform_1(%arg0: i32) -> (i32, i32, i32) {
    %c0_i32 = arith.constant 0 : i32
    %c0_i32_0 = arith.constant 0 : i32
    %c0_i32_1 = arith.constant 0 : i32
    %c0_i32_2 = arith.constant 0 : i32
    return %c0_i32, %c0_i32_0, %c0_i32_1 : i32, i32, i32
  }
  func.func @transform_2(%arg0: i32) -> (i32, i32) {
    %c0_i32 = arith.constant 0 : i32
    %c0_i32_0 = arith.constant 0 : i32
    %c0_i32_1 = arith.constant 0 : i32
    return %c0_i32, %c0_i32_0 : i32, i32
  }
  func.func @transform_3(%arg0: i32) -> (i32, i32, i32) {
    %c0_i32 = arith.constant 0 : i32
    %c0_i32_0 = arith.constant 0 : i32
    %c0_i32_1 = arith.constant 0 : i32
    return %arg0, %c0_i32, %c0_i32_0 : i32, i32, i32
  }
}

module attributes {stable_mosaic.version = 11 : i64} {
  func.func @_se_tail_kernel(%arg0: i32, %arg1: memref<1x4x256xbf16, #tpu.memory_space<vmem>>, %arg2: memref<1x4x1024xbf16, #tpu.memory_space<vmem>>, %arg3: memref<256x1024xbf16, #tpu.memory_space<vmem>>, %arg4: memref<1x1024xf32, #tpu.memory_space<vmem>>, %arg5: memref<1024x64xbf16, #tpu.memory_space<vmem>>, %arg6: memref<1x64xf32, #tpu.memory_space<vmem>>, %arg7: memref<64x1024xbf16, #tpu.memory_space<vmem>>, %arg8: memref<1x1024xf32, #tpu.memory_space<vmem>>, %arg9: memref<1x4x1024xbf16, #tpu.memory_space<vmem>>, %arg10: memref<1x1x1024xf32, #tpu.memory_space<vmem>>) attributes {dimension_semantics = [#tpu.dimension_semantics<parallel>], iteration_bounds = array<i64: 2>, scalar_prefetch = 0 : i64, scratch_operands = 0 : i64, tpu.core_type = #tpu.core_type<tc>, window_params = [{transform_indices = @transform_0, window_bounds = array<i64: 1, 4, 256>}, {transform_indices = @transform_1, window_bounds = array<i64: 1, 4, 1024>}, {pipeline_mode = #tpu.pipeline_mode<synchronous>, transform_indices = @transform_2, window_bounds = array<i64: 256, 1024>}, {pipeline_mode = #tpu.pipeline_mode<synchronous>, transform_indices = @transform_3, window_bounds = array<i64: 1, 1024>}, {pipeline_mode = #tpu.pipeline_mode<synchronous>, transform_indices = @transform_4, window_bounds = array<i64: 1024, 64>}, {pipeline_mode = #tpu.pipeline_mode<synchronous>, transform_indices = @transform_5, window_bounds = array<i64: 1, 64>}, {pipeline_mode = #tpu.pipeline_mode<synchronous>, transform_indices = @transform_6, window_bounds = array<i64: 64, 1024>}, {pipeline_mode = #tpu.pipeline_mode<synchronous>, transform_indices = @transform_7, window_bounds = array<i64: 1, 1024>}, {transform_indices = @transform_8, window_bounds = array<i64: 1, 4, 1024>}, {transform_indices = @transform_9, window_bounds = array<i64: 1, 1, 1024>}]} {
    %c0 = arith.constant 0 : index
    %c0_0 = arith.constant 0 : index
    %c0_1 = arith.constant 0 : index
    %0 = vector.load %arg1[%c0, %c0_0, %c0_1] : memref<1x4x256xbf16, #tpu.memory_space<vmem>>, vector<1x4x256xbf16>
    %1 = vector.shape_cast %0 : vector<1x4x256xbf16> to vector<4x256xbf16>
    %c0_2 = arith.constant 0 : index
    %c0_3 = arith.constant 0 : index
    %2 = vector.load %arg3[%c0_2, %c0_3] : memref<256x1024xbf16, #tpu.memory_space<vmem>>, vector<256x1024xbf16>
    %cst = arith.constant dense<0.000000e+00> : vector<4x1024xf32>
    %3 = tpu.matmul %1, %2, %cst {dimension_numbers = #tpu.dot_dimension_numbers<[1], [0], [0], [1], [0, 0, 1, 1], [], []>} : vector<4x256xbf16>, vector<256x1024xbf16>, vector<4x1024xf32> -> vector<4x1024xf32>
    %c0_4 = arith.constant 0 : index
    %c0_5 = arith.constant 0 : index
    %4 = vector.load %arg4[%c0_4, %c0_5] : memref<1x1024xf32, #tpu.memory_space<vmem>>, vector<1x1024xf32>
    %5 = vector.broadcast %4 : vector<1x1024xf32> to vector<4x1024xf32>
    %6 = arith.addf %3, %5 : vector<4x1024xf32>
    %cst_6 = arith.constant dense<0.000000e+00> : vector<1024xf32>
    %7 = vector.multi_reduction <add>, %6, %cst_6 [0] : vector<4x1024xf32> to vector<1024xf32>
    %8 = vector.shape_cast %7 : vector<1024xf32> to vector<1x1024xf32>
    %cst_7 = arith.constant 2.500000e-01 : f32
    %9 = vector.broadcast %cst_7 : f32 to vector<1x1024xf32>
    %10 = arith.mulf %8, %9 : vector<1x1024xf32>
    %11 = arith.truncf %10 : vector<1x1024xf32> to vector<1x1024xbf16>
    %c0_8 = arith.constant 0 : index
    %c0_9 = arith.constant 0 : index
    %12 = vector.load %arg5[%c0_8, %c0_9] : memref<1024x64xbf16, #tpu.memory_space<vmem>>, vector<1024x64xbf16>
    %cst_10 = arith.constant dense<0.000000e+00> : vector<1x64xf32>
    %13 = tpu.matmul %11, %12, %cst_10 {dimension_numbers = #tpu.dot_dimension_numbers<[1], [0], [0], [1], [0, 0, 1, 1], [], []>} : vector<1x1024xbf16>, vector<1024x64xbf16>, vector<1x64xf32> -> vector<1x64xf32>
    %c0_11 = arith.constant 0 : index
    %c0_12 = arith.constant 0 : index
    %14 = vector.load %arg6[%c0_11, %c0_12] : memref<1x64xf32, #tpu.memory_space<vmem>>, vector<1x64xf32>
    %15 = arith.addf %13, %14 : vector<1x64xf32>
    %cst_13 = arith.constant 0.000000e+00 : f32
    %16 = vector.broadcast %cst_13 : f32 to vector<1x64xf32>
    %17 = arith.maximumf %15, %16 : vector<1x64xf32>
    %18 = arith.truncf %17 : vector<1x64xf32> to vector<1x64xbf16>
    %c0_14 = arith.constant 0 : index
    %c0_15 = arith.constant 0 : index
    %19 = vector.load %arg7[%c0_14, %c0_15] : memref<64x1024xbf16, #tpu.memory_space<vmem>>, vector<64x1024xbf16>
    %cst_16 = arith.constant dense<0.000000e+00> : vector<1x1024xf32>
    %20 = tpu.matmul %18, %19, %cst_16 {dimension_numbers = #tpu.dot_dimension_numbers<[1], [0], [0], [1], [0, 0, 1, 1], [], []>} : vector<1x64xbf16>, vector<64x1024xbf16>, vector<1x1024xf32> -> vector<1x1024xf32>
    %c0_17 = arith.constant 0 : index
    %c0_18 = arith.constant 0 : index
    %21 = vector.load %arg8[%c0_17, %c0_18] : memref<1x1024xf32, #tpu.memory_space<vmem>>, vector<1x1024xf32>
    %22 = arith.addf %20, %21 : vector<1x1024xf32>
    %23 = arith.negf %22 : vector<1x1024xf32>
    %24 = math.exp %23 : vector<1x1024xf32>
    %cst_19 = arith.constant 1.000000e+00 : f32
    %25 = vector.broadcast %cst_19 : f32 to vector<1x1024xf32>
    %26 = arith.addf %25, %24 : vector<1x1024xf32>
    %27 = arith.divf %25, %26 : vector<1x1024xf32>
    %28 = vector.broadcast %27 : vector<1x1024xf32> to vector<4x1024xf32>
    %29 = arith.mulf %6, %28 : vector<4x1024xf32>
    %c0_20 = arith.constant 0 : index
    %c0_21 = arith.constant 0 : index
    %c0_22 = arith.constant 0 : index
    %30 = vector.load %arg2[%c0_20, %c0_21, %c0_22] : memref<1x4x1024xbf16, #tpu.memory_space<vmem>>, vector<1x4x1024xbf16>
    %31 = vector.shape_cast %30 : vector<1x4x1024xbf16> to vector<4x1024xbf16>
    %32 = arith.extf %31 : vector<4x1024xbf16> to vector<4x1024xf32>
    %33 = arith.addf %29, %32 : vector<4x1024xf32>
    %cst_23 = arith.constant 0.000000e+00 : f32
    %34 = vector.broadcast %cst_23 : f32 to vector<4x1024xf32>
    %35 = arith.maximumf %33, %34 : vector<4x1024xf32>
    %36 = arith.truncf %35 : vector<4x1024xf32> to vector<4x1024xbf16>
    %c0_24 = arith.constant 0 : index
    %c0_25 = arith.constant 0 : index
    %c0_26 = arith.constant 0 : index
    %37 = vector.load %arg9[%c0_24, %c0_25, %c0_26] : memref<1x4x1024xbf16, #tpu.memory_space<vmem>>, vector<1x4x1024xbf16>
    %38 = vector.shape_cast %37 : vector<1x4x1024xbf16> to vector<4x1024xbf16>
    %39 = vector.shape_cast %36 : vector<4x1024xbf16> to vector<1x4x1024xbf16>
    tpu.vector_store %arg9[%c0_24, %c0_25, %c0_26], %39 {strides = array<i32>} : memref<1x4x1024xbf16, #tpu.memory_space<vmem>>, vector<1x4x1024xbf16>,
    %cst_27 = arith.constant dense<0xFF800000> : vector<1024xf32>
    %40 = vector.multi_reduction <maximumf>, %35, %cst_27 [0] : vector<4x1024xf32> to vector<1024xf32>
    %41 = vector.shape_cast %40 : vector<1024xf32> to vector<1x1024xf32>
    %c0_28 = arith.constant 0 : index
    %c0_29 = arith.constant 0 : index
    %c0_30 = arith.constant 0 : index
    %42 = vector.load %arg10[%c0_28, %c0_29, %c0_30] : memref<1x1x1024xf32, #tpu.memory_space<vmem>>, vector<1x1x1024xf32>
    %43 = vector.shape_cast %42 : vector<1x1x1024xf32> to vector<1x1024xf32>
    %44 = vector.shape_cast %41 : vector<1x1024xf32> to vector<1x1x1024xf32>
    tpu.vector_store %arg10[%c0_28, %c0_29, %c0_30], %44 {strides = array<i32>} : memref<1x1x1024xf32, #tpu.memory_space<vmem>>, vector<1x1x1024xf32>,
    return
  }
  func.func @transform_0(%arg0: i32) -> (i32, i32, i32) {
    %c0_i32 = arith.constant 0 : i32
    %c0_i32_0 = arith.constant 0 : i32
    %c0_i32_1 = arith.constant 0 : i32
    return %arg0, %c0_i32, %c0_i32_0 : i32, i32, i32
  }
  func.func @transform_1(%arg0: i32) -> (i32, i32, i32) {
    %c0_i32 = arith.constant 0 : i32
    %c0_i32_0 = arith.constant 0 : i32
    %c0_i32_1 = arith.constant 0 : i32
    return %arg0, %c0_i32, %c0_i32_0 : i32, i32, i32
  }
  func.func @transform_2(%arg0: i32) -> (i32, i32) {
    %c0_i32 = arith.constant 0 : i32
    %c0_i32_0 = arith.constant 0 : i32
    %c0_i32_1 = arith.constant 0 : i32
    return %c0_i32, %c0_i32_0 : i32, i32
  }
  func.func @transform_3(%arg0: i32) -> (i32, i32) {
    %c0_i32 = arith.constant 0 : i32
    %c0_i32_0 = arith.constant 0 : i32
    %c0_i32_1 = arith.constant 0 : i32
    return %c0_i32, %c0_i32_0 : i32, i32
  }
  func.func @transform_4(%arg0: i32) -> (i32, i32) {
    %c0_i32 = arith.constant 0 : i32
    %c0_i32_0 = arith.constant 0 : i32
    %c0_i32_1 = arith.constant 0 : i32
    return %c0_i32, %c0_i32_0 : i32, i32
  }
  func.func @transform_5(%arg0: i32) -> (i32, i32) {
    %c0_i32 = arith.constant 0 : i32
    %c0_i32_0 = arith.constant 0 : i32
    %c0_i32_1 = arith.constant 0 : i32
    return %c0_i32, %c0_i32_0 : i32, i32
  }
  func.func @transform_6(%arg0: i32) -> (i32, i32) {
    %c0_i32 = arith.constant 0 : i32
    %c0_i32_0 = arith.constant 0 : i32
    %c0_i32_1 = arith.constant 0 : i32
    return %c0_i32, %c0_i32_0 : i32, i32
  }
  func.func @transform_7(%arg0: i32) -> (i32, i32) {
    %c0_i32 = arith.constant 0 : i32
    %c0_i32_0 = arith.constant 0 : i32
    %c0_i32_1 = arith.constant 0 : i32
    return %c0_i32, %c0_i32_0 : i32, i32
  }
  func.func @transform_8(%arg0: i32) -> (i32, i32, i32) {
    %c0_i32 = arith.constant 0 : i32
    %c0_i32_0 = arith.constant 0 : i32
    %c0_i32_1 = arith.constant 0 : i32
    return %arg0, %c0_i32, %c0_i32_0 : i32, i32, i32
  }
  func.func @transform_9(%arg0: i32) -> (i32, i32, i32) {
    %c0_i32 = arith.constant 0 : i32
    %c0_i32_0 = arith.constant 0 : i32
    %c0_i32_1 = arith.constant 0 : i32
    return %arg0, %c0_i32, %c0_i32_0 : i32, i32, i32
  }
}

</mosaic_0001>

<bundles_post_ra>
// kernel: _lambda_.13
= control target key start
LH: loop header
LB: loop body
LE: loop exit
PB: predicated region body
PF: predicated region fallthrough
CT: control target
= control target key end

     0   :  { %s924_s21 = smov 0   ;;  %s1050_s0 = inlined_call_operand.vmem [shape: bf16[128,64], index: 0, kind: input, shape index: {}]   ;;  %s1051_s1 = inlined_call_operand.vmem [shape: bf16[64,64], index: 1, kind: input, shape index: {}]   ;;  %s1052_s2 = inlined_call_operand.vmem [shape: f32[1,64], index: 2, kind: input, shape index: {}]   ;;  %s1053_s3 = inlined_call_operand.vmem [shape: bf16[64,256], index: 3, kind: input, shape index: {}]   ;;  %s1054_s4 = inlined_call_operand.vmem [shape: f32[1,256], index: 4, kind: input, shape index: {}]   ;;  %s1055_s5 = inlined_call_operand.vmem [shape: bf16[128,64], index: 5, kind: output, shape index: {0}]   ;;  %s1056_s6 = inlined_call_operand.vmem [shape: bf16[128,256], index: 6, kind: output, shape index: {1}]  }
   0x1 LB: > { %s747_s22 = sadd.s32 4294967295, %s886_s21   ;;  %p751_p0 = scmp.ge.s32.totalorder %s886_s21, 1  ;;  %s886_s21 = sphi %s924_s21, %s17_s21  }
   0x2   : > { %p216_p1 = scmp.lt.s32.totalorder %s886_s21, 3 }
   0x4   : > { %p217_p2 = pnand %p751_p0, %p216_p1 }
   0x5   : > { %v860_v0 = vld [vmem:[%s1051_s1] sm:$0xff] (!%p217_p2)   ;;  %s752_s25 = sshll.u32 (!%p217_p2), %s747_s22, 3  ;;  %v864_v3 = vld [vmem:[%s1051_s1 + $0x8] sm:$0xff] (!%p217_p2)   ;;  %v865_v4 = vld [vmem:[%s1053_s3 + $0x14] ss:$8 sps:$4 sm:$0xff] (!%p217_p2)   ;;  %v888_v6 = vmov (!%p217_p2), 0   ;;  %v476_v17 = vlaneseq (!%p217_p2) }
   0x6   : > { %220 = sbr.rel (%p217_p2) target bundleno = 259 (0x103), region = 40  ;;  %v861_v1 = vld [vmem:[%s1053_s3 + $0x4] ss:$8 sps:$4 sm:$0xff] (!%p217_p2)   ;;  %p253_p3 = scmp.lt.s32.totalorder (!%p217_p2), %s752_s25, 15  ;;  %827 = vmatprep.subr.bf16.mxu0 (!%p217_p2), %v860_v0  ;;  %v863_v2 = vld [vmem:[%s1053_s3] ss:$8 sps:$4 sm:$0xff] (!%p217_p2)   ;;  %568 = vmatprep.mubr.bf16.mxu1 (!%p217_p2), %v888_v6 }
   0x7   : > { %843 = vmatprep.subr.bf16.mxu1 (!%p217_p2), %v861_v1  ;;  %828 = vmatpush3.bf16.msra.mxu0 (!%p217_p2), %v860_v0  ;;  %v867_v5 = vld [vmem:[%s1053_s3 + $0x10] ss:$8 sps:$4 sm:$0xff] (!%p217_p2)   ;;  %v869_v8 = vld [vmem:[%s1053_s3 + $0x24] ss:$8 sps:$4 sm:$0xff] (!%p217_p2)   ;;  %v871_v9 = vld [vmem:[%s1053_s3 + $0x20] ss:$8 sps:$4 sm:$0xff] (!%p217_p2)  }
   0x8   : > { %847 = vmatpush1.bf16.msra.mxu1 (!%p217_p2), %v863_v2  ;;  %829 = vmatprep.subr.bf16.mxu0 (!%p217_p2), %v864_v3  ;;  %v868_v7 = vld [vmem:[%s1051_s1 + $0x10] sm:$0xff] (!%p217_p2)   ;;  %v872_v10 = vld [vmem:[%s1051_s1 + $0x18] sm:$0xff] (!%p217_p2)   ;;  %vm339_vm0 = vcmask (!%p217_p2), 523264   ;;  %v477_v18 = vshrl.u32 (!%p217_p2), %v476_v17, 7  ;;  %v474_v20 = vld [vmem:[%s1054_s4] sm:$0x3] (!%p217_p2) }
   0x9   : > { %844 = vmatprep.subr.bf16.mxu1 (!%p217_p2), %v865_v4  ;;  %v873_v11 = vld [vmem:[%s1053_s3 + $0x34] ss:$8 sps:$4 sm:$0xff] (!%p217_p2)   ;;  %v875_v13 = vld [vmem:[%s1053_s3 + $0x30] ss:$8 sps:$4 sm:$0xff] (!%p217_p2)   ;;  %v759_v22 = vld [vmem:[%s1052_s2] ss:$0 sm:$0xff] (!%p217_p2) }
   0xa   : > { %v478_v19 = vsub.s32 (!%p217_p2), 0, %v477_v18  ;;  %v482_v21 = vsub.s32 (!%p217_p2), 1, %v477_v18  ;;  %vm457_vm1 = vcmask (!%p217_p2), 519168  }
   0xb   : > { %830 = vmatpush3.bf16.msra.mxu0 (!%p217_p2), %v864_v3 }
   0xc   : > { %848 = vmatpush1.bf16.msra.mxu1 (!%p217_p2), %v867_v5  ;;  %831 = vmatprep.subr.bf16.mxu0 (!%p217_p2), %v868_v7  ;;  %v990_v23 = vrot.slane (!%p217_p2), %v474_v20, %v478_v19  ;;  %v992_v24 = vrot.slane (!%p217_p2), %v474_v20, %v482_v21 }
   0xd   : > { %s1058_s25 = smov (!%p253_p3, %s752_s25), 15  ;;  %845 = vmatprep.subr.bf16.mxu1 %v869_v8 }
   0xe   : > { %s753_s14 = sshll.u32 %s1058_s25, 2  ;;  %s802_s10 = sshll.u32 %s1058_s25, 3 }
   0xf   : > { %s256_s22 = scalar_lea.vmem %s1050_s0, %s753_s14  ;;  %832 = vmatpush3.bf16.msra.mxu0 %v868_v7  ;;  %s1002_s13 = scalar_lea.vmem %s1055_s5, %s753_s14 }
  0x10   : > { %v876_v12 = vld [vmem:[%s256_s22] sm:$0xff]   ;;  %849 = vmatpush1.bf16.msra.mxu1 %v871_v9  ;;  %833 = vmatprep.subr.bf16.mxu0 %v872_v10  ;;  %v877_v14 = vld [vmem:[%s256_s22 + $0x8] sm:$0xff]   ;;  %v878_v15 = vld [vmem:[%s256_s22 + $0x10] sm:$0xff]   ;;  %s1007_s17 = scalar_lea.vmem %s1056_s6, %s802_s10 }
  0x11   : > { %846 = vmatprep.subr.bf16.mxu1 %v873_v11  ;;  %835 = vmatprep.mubr.msk.bf16.mxu0 %vm339_vm0, %v876_v12  ;;  %v879_v16 = vld [vmem:[%s256_s22 + $0x18] sm:$0xff]  }
  0x13   : > { %834 = vmatpush3.bf16.msra.mxu0 %v872_v10 }
  0x14   : > { %850 = vmatpush1.bf16.msra.mxu1 %v875_v13  ;;  %526 = vmatprep.subr.bf16.mxu0 %v861_v1 }
  0x16   : > { %836 = vmatmul.mubr.msk.bf16.vlgmr.msra.gmra.mrb[0].mxu0 %vm339_vm0, %v877_v14 }
  0x17   : > { %789 = vmatmul.mubr.msk.bf16.vlgmr.msra.gmra.mrb[0].mxu1 %vm339_vm0, %v877_v14  ;;  %527 = vmatpush1.bf16.msra.mxu0 %v863_v2 }
  0x18   : > { %528 = vmatprep.subr.bf16.mxu0 %v865_v4  ;;  %839 = vmatprep.mubr.msk.bf16.mxu0 %vm339_vm0, %v878_v15 }
  0x19   : > { %578 = vmatprep.mubr.bf16.mxu1 %v888_v6 }
  0x1b   : > { %529 = vmatpush1.bf16.msra.mxu0 %v867_v5 }
  0x1c   : > { %530 = vmatprep.subr.bf16.mxu0 %v869_v8 }
  0x1e   : > { %840 = vmatmul.mubr.msk.bf16.gmra.mrb[4].mxu0 %vm339_vm0, %v879_v16 }
  0x1f   : > { %790 = vmatmul.mubr.msk.bf16.gmra.mrb[4].mxu1 %vm339_vm0, %v878_v15  ;;  %531 = vmatpush1.bf16.msra.mxu0 %v871_v9 }
  0x20   : > { %532 = vmatprep.subr.bf16.mxu0 %v873_v11  ;;  %558 = vmatprep.mubr.bf16.mxu0 %v888_v6 }
  0x21   : > { %588 = vmatprep.mubr.bf16.mxu1 %v888_v6 }
  0x23   : > { %533 = vmatpush1.bf16.msra.mxu0 %v875_v13 }
  0x26   : > { %788 = vmatmul.mubr.msk.bf16.vlgmr.msra.gmra.mrb[8].mxu0 %vm339_vm0, %v876_v12 }
  0x27   : > { %791 = vmatmul.mubr.msk.bf16.gmra.mrb[8].mxu1 %vm339_vm0, %v879_v16 }
  0xe9   : > { %v837_v25 = vpop.f32.mrb[0].mxu0 }
  0xea   : > { %v395_v26 = vadd.f32 %v837_v25, %v759_v22  ;;  %v570_v27 = vpop.f32.mrb[0].mxu1  ;;  %v386_v28 = vpop.f32.mrb[1].mxu0 }
  0xeb   : > { %v571_v29 = vadd.f32 %v570_v27, %v990_v23  ;;  %v387_v30 = vadd.f32 %v759_v22, %v386_v28  ;;  %v572_v31 = vpop.f32.mrb[1].mxu1  ;;  %v838_v32 = vpop.f32.mrb[2].mxu0 }
  0xec   : > { %v419_v33 = vmax.f32 %v395_v26, 0.0  ;;  %v573_v34 = vadd.f32 %v572_v31, %v992_v24  ;;  %v398_v35 = vadd.f32 %v838_v32, %v759_v22  ;;  %v574_v36 = vpop.f32.mrb[2].mxu1  ;;  %v389_v37 = vpop.f32.mrb[3].mxu0 }
  0xed   : > { %v417_v38 = vmax.f32 %v387_v30, 0.0  ;;  %v575_v39 = vadd.f32 %v574_v36, %v990_v23  ;;  %v390_v40 = vadd.f32 %v759_v22, %v389_v37  ;;  %v576_v41 = vpop.f32.mrb[3].mxu1 }
  0xee   : > { %v805_v42 = vpack.c.bf16 %v419_v33, %v419_v33  ;;  %v813_v43 = vpack.c.bf16 %v573_v34, %v571_v29  ;;  %v420_v44 = vmax.f32 %v398_v35, 0.0  ;;  %v577_v45 = vadd.f32 %v576_v41, %v992_v24 }
  0xef   : > { %v803_v46 = vpack.c.bf16 %v417_v38, %v417_v38  ;;  %v418_v47 = vmax.f32 %v390_v40, 0.0 }
  0xf0   : > { %460 = vst.msk [vmem:[%s1002_s13 + $0x8] sm:$0xf] %vm457_vm1, %v805_v42  ;;  %649 = vst [vmem:[%s1007_s17 + $0x10] sm:$0xff] %v813_v43  ;;  %v806_v48 = vpack.c.bf16 %v420_v44, %v420_v44  ;;  %v814_v49 = vpack.c.bf16 %v577_v45, %v575_v39 }
  0xf1   : > { %458 = vst.msk [vmem:[%s1002_s13] sm:$0xf] %vm457_vm1, %v803_v46  ;;  %v804_v50 = vpack.c.bf16 %v418_v47, %v418_v47  ;;  %v841_v51 = vpop.f32.mrb[4].mxu0 }
  0xf2   : > { %461 = vst.msk [vmem:[%s1002_s13 + $0xc] sm:$0xf] %vm457_vm1, %v806_v48  ;;  %650 = vst [vmem:[%s1007_s17 + $0x18] sm:$0xff] %v814_v49  ;;  %v411_v52 = vadd.f32 %v841_v51, %v759_v22  ;;  %v580_v53 = vpop.f32.mrb[4].mxu1  ;;  %v402_v54 = vpop.f32.mrb[5].mxu0 }
  0xf3   : > { %459 = vst.msk [vmem:[%s1002_s13 + $0x4] sm:$0xf] %vm457_vm1, %v804_v50  ;;  %v581_v55 = vadd.f32 %v580_v53, %v990_v23  ;;  %v403_v56 = vadd.f32 %v759_v22, %v402_v54  ;;  %v582_v57 = vpop.f32.mrb[5].mxu1  ;;  %v842_v58 = vpop.f32.mrb[6].mxu0 }
  0xf4   : > { %v423_v59 = vmax.f32 %v411_v52, 0.0  ;;  %v583_v60 = vadd.f32 %v582_v57, %v992_v24  ;;  %v414_v61 = vadd.f32 %v842_v58, %v759_v22  ;;  %v584_v62 = vpop.f32.mrb[6].mxu1  ;;  %v405_v63 = vpop.f32.mrb[7].mxu0 }
  0xf5   : > { %v421_v0 = vmax.f32 %v403_v56, 0.0  ;;  %v585_v1 = vadd.f32 %v584_v62, %v990_v23  ;;  %v406_v2 = vadd.f32 %v759_v22, %v405_v63  ;;  %v586_v3 = vpop.f32.mrb[7].mxu1 }
  0xf6   : > { %v809_v4 = vpack.c.bf16 %v423_v59, %v423_v59  ;;  %v815_v5 = vpack.c.bf16 %v583_v60, %v581_v55  ;;  %v424_v6 = vmax.f32 %v414_v61, 0.0  ;;  %v587_v7 = vadd.f32 %v586_v3, %v992_v24 }
  0xf7   : > { %v807_v8 = vpack.c.bf16 %v421_v0, %v421_v0  ;;  %v422_v9 = vmax.f32 %v406_v2, 0.0 }
  0xf8   : > { %464 = vst.msk [vmem:[%s1002_s13 + $0x18] sm:$0xf] %vm457_vm1, %v809_v4  ;;  %651 = vst [vmem:[%s1007_s17 + $0x20] sm:$0xff] %v815_v5  ;;  %v810_v10 = vpack.c.bf16 %v424_v6, %v424_v6  ;;  %v816_v11 = vpack.c.bf16 %v587_v7, %v585_v1 }
  0xf9   : > { %462 = vst.msk [vmem:[%s1002_s13 + $0x10] sm:$0xf] %vm457_vm1, %v807_v8  ;;  %v808_v12 = vpack.c.bf16 %v422_v9, %v422_v9  ;;  %v560_v13 = vpop.f32.mrb[8].mxu0 }
  0xfa   : > { %465 = vst.msk [vmem:[%s1002_s13 + $0x1c] sm:$0xf] %vm457_vm1, %v810_v10  ;;  %652 = vst [vmem:[%s1007_s17 + $0x28] sm:$0xff] %v816_v11  ;;  %v561_v14 = vadd.f32 %v560_v13, %v990_v23  ;;  %v590_v15 = vpop.f32.mrb[8].mxu1  ;;  %v562_v16 = vpop.f32.mrb[9].mxu0 }
  0xfb   : > { %463 = vst.msk [vmem:[%s1002_s13 + $0x14] sm:$0xf] %vm457_vm1, %v808_v12  ;;  %v591_v17 = vadd.f32 %v590_v15, %v990_v23  ;;  %v563_v18 = vadd.f32 %v562_v16, %v992_v24  ;;  %v592_v19 = vpop.f32.mrb[9].mxu1  ;;  %v564_v20 = vpop.f32.mrb[10].mxu0 }
  0xfc   : > { %v593_v21 = vadd.f32 %v592_v19, %v992_v24  ;;  %v565_v22 = vadd.f32 %v564_v20, %v990_v23  ;;  %v594_v25 = vpop.f32.mrb[10].mxu1  ;;  %v566_v26 = vpop.f32.mrb[11].mxu0 }
  0xfd   : > { %v811_v27 = vpack.c.bf16 %v563_v18, %v561_v14  ;;  %v595_v28 = vadd.f32 %v594_v25, %v990_v23  ;;  %v567_v29 = vadd.f32 %v566_v26, %v992_v24  ;;  %v596_v30 = vpop.f32.mrb[11].mxu1 }
  0xfe   : > { %v817_v31 = vpack.c.bf16 %v593_v21, %v591_v17  ;;  %v597_v32 = vadd.f32 %v596_v30, %v992_v24 }
  0xff   : > { %647 = vst [vmem:[%s1007_s17] sm:$0xff] %v811_v27  ;;  %v812_v33 = vpack.c.bf16 %v567_v29, %v565_v22 }
 0x100   : > { %653 = vst [vmem:[%s1007_s17 + $0x30] sm:$0xff] %v817_v31  ;;  %v818_v34 = vpack.c.bf16 %v597_v32, %v595_v28 }
 0x101   : > { %648 = vst [vmem:[%s1007_s17 + $0x8] sm:$0xff] %v812_v33 }
 0x102   : > { %654 = vst [vmem:[%s1007_s17 + $0x38] sm:$0xff] %v818_v34 }
 0x103 PF: > { %s17_s21 = sadd.s32 1, %s886_s21  }
 0x104   : > { %p14_p4 = scmp.ge.s32.totalorder %s17_s21, 4  }
 0x106   :  { %16 = sbr.rel (!%p14_p4) target bundleno = 1 (0x1), region = 82 }

// kernel: _lambda_.12
= control target key start
LH: loop header
LB: loop body
LE: loop exit
PB: predicated region body
PF: predicated region fallthrough
CT: control target
= control target key end

     0   :  { %s942_s6 = smov 0   ;;  %s944_s7 = smov 0   ;;  %s1239_s0 = inlined_call_operand.vmem [shape: bf16[9,128,64], index: 0, kind: input, shape index: {}]   ;;  %s1240_s1 = inlined_call_operand.vmem [shape: bf16[128,64], index: 1, kind: output, shape index: {}]  }
   0x1   :  { %s946_s8 = smov 0  }
   0x2 LB: > { %s870_s9 = sadd.s32 4294967295, %s930_s8   ;;  %s959_s10 = sadd.s32 1, %s930_s8   ;;  %s930_s8 = sphi %s946_s8, %s1243_s8   ;;  %s926_s7 = sphi %s944_s7, %s1242_s7   ;;  %s922_s6 = sphi %s942_s6, %s1241_s6  }
   0x3   : > { %s15_s11 = ssub.s32 %s930_s8, %s959_s10  ;;  %s18_s12 = sadd.s32 1, %s926_s7 }
   0x4   : > { %p16_p0 = scmp.eq.s32.totalorder %s15_s11, 0  ;;  %p25_p1 = scmp.ne.s32.totalorder %s926_s7, %s922_s6 }
   0x5   : > { %p26_p2 = scmp.eq.s32.totalorder %s930_s8, 0  ;;  %p873_p4 = scmp.ge.s32.totalorder %s930_s8, 2 }
   0x6   : > { %s968_s13 = scalar_select %p16_p0, %s926_s7, %s18_s12  }
   0x7   : > { %p27_p3 = por %p26_p2, %p25_p1  ;;  %77 = sbr.rel (%p873_p4) target bundleno = 37 (0x25), region = 16 }
   0xe   : > { %80 = sbr.rel (!%p27_p3) target bundleno = 37 (0x25), region = 20  ;;  %s82_s14 = sand.u32 (%p27_p3), 1, %s926_s7  }
   0xf   : > { %s881_s15 = sshll.u32 (%p27_p3), %s930_s8, 5  ;;  %s882_s16 = smul.u32 (%p27_p3), 288, %s82_s14 }
  0x10   : > { %s976_s19 = scalar_lea.vmem (%p27_p3), %s1239_s0, %s881_s15 }
  0x11   : > { %v103_v0 = vld [vmem:[%s976_s19] sm:$0xff] (%p27_p3)   ;;  %v107_v1 = vld [vmem:[%s976_s19 + $0x8] sm:$0xff] (%p27_p3)   ;;  %v111_v2 = vld [vmem:[%s976_s19 + $0x10] sm:$0xff] (%p27_p3)   ;;  %s984_s20 = scalar_lea.vmem (%p27_p3), [#allocation2], %s882_s16 }
  0x12   : > { %v115_v3 = vld [vmem:[%s976_s19 + $0x18] sm:$0xff] (%p27_p3)   ;;  %v119_v4 = vld [vmem:[%s976_s19 + $0x40] sm:$0xff] (%p27_p3)   ;;  %v123_v5 = vld [vmem:[%s976_s19 + $0x48] sm:$0xff] (%p27_p3)   ;;  %104 = vst [vmem:[%s984_s20] sm:$0xff] (%p27_p3), %v103_v0  }
  0x13   : > { %108 = vst [vmem:[%s984_s20 + $0x8] sm:$0xff] (%p27_p3), %v107_v1   ;;  %112 = vst [vmem:[%s984_s20 + $0x10] sm:$0xff] (%p27_p3), %v111_v2   ;;  %v127_v6 = vld [vmem:[%s976_s19 + $0x50] sm:$0xff] (%p27_p3)   ;;  %v131_v7 = vld [vmem:[%s976_s19 + $0x58] sm:$0xff] (%p27_p3)  }
  0x14   : > { %116 = vst [vmem:[%s984_s20 + $0x18] sm:$0xff] (%p27_p3), %v115_v3   ;;  %120 = vst [vmem:[%s984_s20 + $0x20] sm:$0xff] (%p27_p3), %v119_v4   ;;  %v135_v8 = vld [vmem:[%s976_s19 + $0x80] sm:$0xff] (%p27_p3)   ;;  %v139_v9 = vld [vmem:[%s976_s19 + $0x88] sm:$0xff] (%p27_p3)  }
  0x15   : > { %124 = vst [vmem:[%s984_s20 + $0x28] sm:$0xff] %v123_v5   ;;  %128 = vst [vmem:[%s984_s20 + $0x30] sm:$0xff] %v127_v6   ;;  %v143_v10 = vld [vmem:[%s976_s19 + $0x90] sm:$0xff]   ;;  %v147_v11 = vld [vmem:[%s976_s19 + $0x98] sm:$0xff]  }
  0x16   : > { %132 = vst [vmem:[%s984_s20 + $0x38] sm:$0xff] %v131_v7   ;;  %136 = vst [vmem:[%s984_s20 + $0x40] sm:$0xff] %v135_v8   ;;  %v151_v12 = vld [vmem:[%s976_s19 + $0xc0] sm:$0xff]   ;;  %v155_v13 = vld [vmem:[%s976_s19 + $0xc8] sm:$0xff]  }
  0x17   : > { %140 = vst [vmem:[%s984_s20 + $0x48] sm:$0xff] %v139_v9   ;;  %144 = vst [vmem:[%s984_s20 + $0x50] sm:$0xff] %v143_v10   ;;  %v159_v14 = vld [vmem:[%s976_s19 + $0xd0] sm:$0xff]   ;;  %v163_v15 = vld [vmem:[%s976_s19 + $0xd8] sm:$0xff]  }
  0x18   : > { %148 = vst [vmem:[%s984_s20 + $0x58] sm:$0xff] %v147_v11   ;;  %152 = vst [vmem:[%s984_s20 + $0x60] sm:$0xff] %v151_v12   ;;  %v167_v16 = vld [vmem:[%s976_s19 + $0x100] sm:$0xff]   ;;  %v171_v17 = vld [vmem:[%s976_s19 + $0x108] sm:$0xff]  }
  0x19   : > { %156 = vst [vmem:[%s984_s20 + $0x68] sm:$0xff] %v155_v13   ;;  %160 = vst [vmem:[%s984_s20 + $0x70] sm:$0xff] %v159_v14   ;;  %v175_v18 = vld [vmem:[%s976_s19 + $0x110] sm:$0xff]   ;;  %v179_v19 = vld [vmem:[%s976_s19 + $0x118] sm:$0xff]  }
  0x1a   : > { %164 = vst [vmem:[%s984_s20 + $0x78] sm:$0xff] %v163_v15   ;;  %168 = vst [vmem:[%s984_s20 + $0x80] sm:$0xff] %v167_v16   ;;  %v183_v20 = vld [vmem:[%s976_s19 + $0x140] sm:$0xff]   ;;  %v187_v21 = vld [vmem:[%s976_s19 + $0x148] sm:$0xff]  }
  0x1b   : > { %172 = vst [vmem:[%s984_s20 + $0x88] sm:$0xff] %v171_v17   ;;  %176 = vst [vmem:[%s984_s20 + $0x90] sm:$0xff] %v175_v18   ;;  %v191_v22 = vld [vmem:[%s976_s19 + $0x150] sm:$0xff]   ;;  %v195_v23 = vld [vmem:[%s976_s19 + $0x158] sm:$0xff]  }
  0x1c   : > { %180 = vst [vmem:[%s984_s20 + $0x98] sm:$0xff] %v179_v19   ;;  %184 = vst [vmem:[%s984_s20 + $0xa0] sm:$0xff] %v183_v20   ;;  %v199_v24 = vld [vmem:[%s976_s19 + $0x180] sm:$0xff]   ;;  %v203_v25 = vld [vmem:[%s976_s19 + $0x188] sm:$0xff]  }
  0x1d   : > { %188 = vst [vmem:[%s984_s20 + $0xa8] sm:$0xff] %v187_v21   ;;  %192 = vst [vmem:[%s984_s20 + $0xb0] sm:$0xff] %v191_v22   ;;  %v207_v26 = vld [vmem:[%s976_s19 + $0x190] sm:$0xff]   ;;  %v211_v27 = vld [vmem:[%s976_s19 + $0x198] sm:$0xff]  }
  0x1e   : > { %196 = vst [vmem:[%s984_s20 + $0xb8] sm:$0xff] %v195_v23   ;;  %200 = vst [vmem:[%s984_s20 + $0xc0] sm:$0xff] %v199_v24   ;;  %v215_v28 = vld [vmem:[%s976_s19 + $0x1c0] sm:$0xff]   ;;  %v219_v29 = vld [vmem:[%s976_s19 + $0x1c8] sm:$0xff]  }
  0x1f   : > { %204 = vst [vmem:[%s984_s20 + $0xc8] sm:$0xff] %v203_v25   ;;  %208 = vst [vmem:[%s984_s20 + $0xd0] sm:$0xff] %v207_v26   ;;  %v223_v30 = vld [vmem:[%s976_s19 + $0x1d0] sm:$0xff]   ;;  %v227_v31 = vld [vmem:[%s976_s19 + $0x1d8] sm:$0xff]  }
  0x20   : > { %212 = vst [vmem:[%s984_s20 + $0xd8] sm:$0xff] %v211_v27   ;;  %216 = vst [vmem:[%s984_s20 + $0xe0] sm:$0xff] %v215_v28   ;;  %v231_v32 = vld [vmem:[%s976_s19 + $0x200] sm:$0xff]   ;;  %v235_v33 = vld [vmem:[%s976_s19 + $0x208] sm:$0xff]  }
  0x21   : > { %220 = vst [vmem:[%s984_s20 + $0xe8] sm:$0xff] %v219_v29   ;;  %224 = vst [vmem:[%s984_s20 + $0xf0] sm:$0xff] %v223_v30   ;;  %v239_v34 = vld [vmem:[%s976_s19 + $0x210] sm:$0xff]   ;;  %v243_v35 = vld [vmem:[%s976_s19 + $0x218] sm:$0xff]  }
  0x22   : > { %228 = vst [vmem:[%s984_s20 + $0xf8] sm:$0xff] %v227_v31   ;;  %232 = vst [vmem:[%s984_s20 + $0x100] sm:$0xff] %v231_v32  }
  0x23   : > { %236 = vst [vmem:[%s984_s20 + $0x108] sm:$0xff] %v235_v33   ;;  %240 = vst [vmem:[%s984_s20 + $0x110] sm:$0xff] %v239_v34  }
  0x24   : > { %244 = vst [vmem:[%s984_s20 + $0x118] sm:$0xff] %v243_v35  }
  0x25 PF: > { %p876_p5 = scmp.ge.s32.totalorder %s930_s8, 1  ;;  %p412_p6 = scmp.lt.s32.totalorder %s930_s8, 3 }
  0x27   : > { %p413_p7 = pnand %p876_p5, %p412_p6 }
  0x28   : > { %s419_s21 = sand.u32 (!%p413_p7), 1, %s922_s6   ;;  %s877_s23 = sshll.u32 (!%p413_p7), %s870_s9, 3  ;;  %vm518_vm0 = vcmask (!%p413_p7), 519168  }
  0x29   : > { %416 = sbr.rel (%p413_p7) target bundleno = 107 (0x6b), region = 61  ;;  %p440_p8 = scmp.lt.s32.totalorder (!%p413_p7), %s877_s23, 15 }
  0x2a   : > { %s883_s22 = smul.u32 (!%p413_p7), 288, %s419_s21 }
  0x2c   : > { %s1057_s24 = scalar_lea.vmem (!%p413_p7), [#allocation2], %s883_s22 }
  0x2d   : > { %v446_v36 = vld [vmem:[%s1057_s24] sm:$0xf] (!%p413_p7)  ;;  %v447_v46 = vld [vmem:[%s1057_s24 + $0x4] sm:$0xf] (!%p413_p7)  ;;  %v448_v2 = vld [vmem:[%s1057_s24 + $0x8] sm:$0xf] (!%p413_p7) }
  0x2e   : > { %v454_v37 = vld [vmem:[%s1057_s24 + $0x20] sm:$0xf] (!%p413_p7)  ;;  %v521_v40 = vsel (!%p413_p7), %vm518_vm0, %v446_v36, 4286644096  ;;  %v455_v49 = vld [vmem:[%s1057_s24 + $0x24] sm:$0xf] (!%p413_p7) }
  0x2f   : > { %v462_v38 = vld [vmem:[%s1057_s24 + $0x40] sm:$0xf] (!%p413_p7)  ;;  %v524_v41 = vsel (!%p413_p7), %vm518_vm0, %v454_v37, 4286644096  ;;  %v463_v50 = vld [vmem:[%s1057_s24 + $0x44] sm:$0xf] (!%p413_p7) }
  0x30   : > { %v470_v39 = vld [vmem:[%s1057_s24 + $0x60] sm:$0xf]  ;;  %s1245_s23 = smov (!%p440_p8, %s877_s23), 15  ;;  %v528_v42 = vsel %vm518_vm0, %v462_v38, 4286644096  ;;  %v526_v44 = vmax.bf16 %v524_v41, %v521_v40 }
  0x31   : > { %v478_v43 = vld [vmem:[%s1057_s24 + $0x80] sm:$0xf]  ;;  %v532_v45 = vsel %vm518_vm0, %v470_v39, 4286644096  ;;  %s878_s25 = sshll.u32 %s1245_s23, 2 }
  0x32   : > { %v486_v47 = vld [vmem:[%s1057_s24 + $0xa0] sm:$0xf]  ;;  %v530_v48 = vmax.bf16 %v528_v42, %v526_v44  ;;  %v536_v51 = vsel %vm518_vm0, %v478_v43, 4286644096  ;;  %v471_v54 = vld [vmem:[%s1057_s24 + $0x64] sm:$0xf]  ;;  %s1108_s28 = scalar_lea.vmem %s1240_s1, %s878_s25 }
  0x33   : > { %v494_v52 = vld [vmem:[%s1057_s24 + $0xc0] sm:$0xf]  ;;  %v556_v55 = vsel %vm518_vm0, %v447_v46, 4286644096  ;;  %v540_v56 = vsel %vm518_vm0, %v486_v47, 4286644096 }
  0x34   : > { %v534_v53 = vmax.bf16 %v532_v45, %v530_v48  ;;  %v559_v57 = vsel %vm518_vm0, %v455_v49, 4286644096  ;;  %v563_v58 = vsel %vm518_vm0, %v463_v50, 4286644096  ;;  %v502_v59 = vld [vmem:[%s1057_s24 + $0xe0] sm:$0xf] }
  0x35   : > { %v510_v60 = vld [vmem:[%s1057_s24 + $0x100] sm:$0xf]  ;;  %v479_v62 = vld [vmem:[%s1057_s24 + $0x84] sm:$0xf]  ;;  %v561_v63 = vmax.bf16 %v559_v57, %v556_v55  ;;  %v544_v0 = vsel %vm518_vm0, %v494_v52, 4286644096 }
  0x36   : > { %v538_v61 = vmax.bf16 %v536_v51, %v534_v53  ;;  %v567_v1 = vsel %vm518_vm0, %v471_v54, 4286644096  ;;  %v487_v4 = vld [vmem:[%s1057_s24 + $0xa4] sm:$0xf]  ;;  %v456_v6 = vld [vmem:[%s1057_s24 + $0x28] sm:$0xf] }
  0x37   : > { %v565_v5 = vmax.bf16 %v563_v58, %v561_v63  ;;  %v464_v7 = vld [vmem:[%s1057_s24 + $0x48] sm:$0xf]  ;;  %v548_v8 = vsel %vm518_vm0, %v502_v59, 4286644096  ;;  %v552_v9 = vsel %vm518_vm0, %v510_v60, 4286644096 }
  0x38   : > { %v542_v3 = vmax.bf16 %v540_v56, %v538_v61  ;;  %v571_v10 = vsel %vm518_vm0, %v479_v62, 4286644096  ;;  %v495_v12 = vld [vmem:[%s1057_s24 + $0xc4] sm:$0xf]  ;;  %v472_v14 = vld [vmem:[%s1057_s24 + $0x68] sm:$0xf] }
  0x39   : > { %v569_v13 = vmax.bf16 %v567_v1, %v565_v5  ;;  %v591_v15 = vsel %vm518_vm0, %v448_v2, 4286644096  ;;  %v575_v16 = vsel %vm518_vm0, %v487_v4, 4286644096  ;;  %v594_v17 = vsel %vm518_vm0, %v456_v6, 4286644096 }
  0x3a   : > { %v546_v11 = vmax.bf16 %v544_v0, %v542_v3  ;;  %v598_v18 = vsel %vm518_vm0, %v464_v7, 4286644096  ;;  %v503_v20 = vld [vmem:[%s1057_s24 + $0xe4] sm:$0xf]  ;;  %v480_v23 = vld [vmem:[%s1057_s24 + $0x88] sm:$0xf]  ;;  %v596_v24 = vmax.bf16 %v594_v17, %v591_v15 }
  0x3b   : > { %v511_v21 = vld [vmem:[%s1057_s24 + $0x104] sm:$0xf]  ;;  %v573_v22 = vmax.bf16 %v571_v10, %v569_v13  ;;  %v579_v25 = vsel %vm518_vm0, %v495_v12, 4286644096  ;;  %v602_v26 = vsel %vm518_vm0, %v472_v14, 4286644096 }
  0x3c   : > { %v550_v19 = vmax.bf16 %v548_v8, %v546_v11  ;;  %v449_v27 = vld [vmem:[%s1057_s24 + $0xc] sm:$0xf]  ;;  %v488_v30 = vld [vmem:[%s1057_s24 + $0xa8] sm:$0xf]  ;;  %v600_v31 = vmax.bf16 %v598_v18, %v596_v24  ;;  %v583_v34 = vsel %vm518_vm0, %v503_v20, 4286644096 }
  0x3d   : > { %v577_v29 = vmax.bf16 %v575_v16, %v573_v22  ;;  %v457_v32 = vld [vmem:[%s1057_s24 + $0x2c] sm:$0xf]  ;;  %v587_v35 = vsel %vm518_vm0, %v511_v21, 4286644096  ;;  %v606_v36 = vsel %vm518_vm0, %v480_v23, 4286644096 }
  0x3e   : > { %v554_v28 = vmax.bf16 %v552_v9, %v550_v19  ;;  %v465_v33 = vld [vmem:[%s1057_s24 + $0x4c] sm:$0xf]  ;;  %v496_v38 = vld [vmem:[%s1057_s24 + $0xc8] sm:$0xf]  ;;  %v604_v39 = vmax.bf16 %v602_v26, %v600_v31  ;;  %v626_v41 = vsel %vm518_vm0, %v449_v27, 4286644096 }
  0x3f   : > { %v581_v37 = vmax.bf16 %v579_v25, %v577_v29  ;;  %v473_v40 = vld [vmem:[%s1057_s24 + $0x6c] sm:$0xf]  ;;  %v610_v42 = vsel %vm518_vm0, %v488_v30, 4286644096  ;;  %v629_v43 = vsel %vm518_vm0, %v457_v32, 4286644096 }
  0x40   : > { %800 = vst.msk [vmem:[%s1108_s28] sm:$0xf] %vm518_vm0, %v554_v28  ;;  %v633_v44 = vsel %vm518_vm0, %v465_v33, 4286644096  ;;  %v504_v46 = vld [vmem:[%s1057_s24 + $0xe8] sm:$0xf]  ;;  %v608_v48 = vmax.bf16 %v606_v36, %v604_v39  ;;  %v631_v50 = vmax.bf16 %v629_v43, %v626_v41 }
  0x41   : > { %v585_v45 = vmax.bf16 %v583_v34, %v581_v37  ;;  %v512_v47 = vld [vmem:[%s1057_s24 + $0x108] sm:$0xf]  ;;  %v481_v49 = vld [vmem:[%s1057_s24 + $0x8c] sm:$0xf]  ;;  %v614_v51 = vsel %vm518_vm0, %v496_v38, 4286644096 }
  0x42   : > { %v637_v52 = vsel %vm518_vm0, %v473_v40, 4286644096  ;;  %v450_v53 = vld [vmem:[%s1057_s24 + $0x10] sm:$0xf]  ;;  %v612_v55 = vmax.bf16 %v610_v42, %v608_v48  ;;  %v489_v56 = vld [vmem:[%s1057_s24 + $0xac] sm:$0xf]  ;;  %v635_v57 = vmax.bf16 %v633_v44, %v631_v50 }
  0x43   : > { %v589_v54 = vmax.bf16 %v587_v35, %v585_v45  ;;  %v458_v58 = vld [vmem:[%s1057_s24 + $0x30] sm:$0xf]  ;;  %v618_v60 = vsel %vm518_vm0, %v504_v46, 4286644096  ;;  %v622_v61 = vsel %vm518_vm0, %v512_v47, 4286644096 }
  0x44   : > { %v466_v59 = vld [vmem:[%s1057_s24 + $0x50] sm:$0xf]  ;;  %v641_v62 = vsel %vm518_vm0, %v481_v49, 4286644096  ;;  %v616_v63 = vmax.bf16 %v614_v51, %v612_v55  ;;  %v497_v0 = vld [vmem:[%s1057_s24 + $0xcc] sm:$0xf]  ;;  %v639_v1 = vmax.bf16 %v637_v52, %v635_v57 }
  0x45   : > { %801 = vst.msk [vmem:[%s1108_s28 + $0x4] sm:$0xf] %vm518_vm0, %v589_v54  ;;  %v474_v2 = vld [vmem:[%s1057_s24 + $0x70] sm:$0xf]  ;;  %v661_v3 = vsel %vm518_vm0, %v450_v53, 4286644096 }
  0x46   : > { %v645_v4 = vsel %vm518_vm0, %v489_v56, 4286644096  ;;  %v664_v5 = vsel %vm518_vm0, %v458_v58, 4286644096  ;;  %v668_v6 = vsel %vm518_vm0, %v466_v59, 4286644096  ;;  %v620_v7 = vmax.bf16 %v618_v60, %v616_v63 }
  0x47   : > { %v505_v8 = vld [vmem:[%s1057_s24 + $0xec] sm:$0xf]  ;;  %v643_v10 = vmax.bf16 %v641_v62, %v639_v1  ;;  %v482_v11 = vld [vmem:[%s1057_s24 + $0x90] sm:$0xf]  ;;  %v666_v12 = vmax.bf16 %v664_v5, %v661_v3  ;;  %v649_v13 = vsel %vm518_vm0, %v497_v0, 4286644096 }
  0x48   : > { %v513_v9 = vld [vmem:[%s1057_s24 + $0x10c] sm:$0xf]  ;;  %v672_v14 = vsel %vm518_vm0, %v474_v2, 4286644096  ;;  %v451_v15 = vld [vmem:[%s1057_s24 + $0x14] sm:$0xf]  ;;  %v624_v16 = vmax.bf16 %v622_v61, %v620_v7 }
  0x49   : > { %v647_v17 = vmax.bf16 %v645_v4, %v643_v10  ;;  %v490_v18 = vld [vmem:[%s1057_s24 + $0xb0] sm:$0xf]  ;;  %v670_v19 = vmax.bf16 %v668_v6, %v666_v12  ;;  %v459_v20 = vld [vmem:[%s1057_s24 + $0x34] sm:$0xf]  ;;  %v653_v22 = vsel %vm518_vm0, %v505_v8, 4286644096 }
  0x4a   : > { %v467_v21 = vld [vmem:[%s1057_s24 + $0x54] sm:$0xf]  ;;  %v657_v23 = vsel %vm518_vm0, %v513_v9, 4286644096  ;;  %v676_v24 = vsel %vm518_vm0, %v482_v11, 4286644096 }
  0x4b   : > { %802 = vst.msk [vmem:[%s1108_s28 + $0x8] sm:$0xf] %vm518_vm0, %v624_v16  ;;  %v651_v25 = vmax.bf16 %v649_v13, %v647_v17  ;;  %v498_v26 = vld [vmem:[%s1057_s24 + $0xd0] sm:$0xf]  ;;  %v674_v27 = vmax.bf16 %v672_v14, %v670_v19  ;;  %v475_v28 = vld [vmem:[%s1057_s24 + $0x74] sm:$0xf] }
  0x4c   : > { %v696_v29 = vsel %vm518_vm0, %v451_v15, 4286644096  ;;  %v680_v30 = vsel %vm518_vm0, %v490_v18, 4286644096  ;;  %v699_v31 = vsel %vm518_vm0, %v459_v20, 4286644096 }
  0x4d   : > { %v703_v32 = vsel %vm518_vm0, %v467_v21, 4286644096  ;;  %v655_v33 = vmax.bf16 %v653_v22, %v651_v25  ;;  %v506_v34 = vld [vmem:[%s1057_s24 + $0xf0] sm:$0xf]  ;;  %v678_v36 = vmax.bf16 %v676_v24, %v674_v27  ;;  %v483_v37 = vld [vmem:[%s1057_s24 + $0x94] sm:$0xf]  ;;  %v701_v38 = vmax.bf16 %v699_v31, %v696_v29 }
  0x4e   : > { %v514_v35 = vld [vmem:[%s1057_s24 + $0x110] sm:$0xf]  ;;  %v684_v39 = vsel %vm518_vm0, %v498_v26, 4286644096  ;;  %v707_v40 = vsel %vm518_vm0, %v475_v28, 4286644096 }
  0x4f   : > { %v452_v41 = vld [vmem:[%s1057_s24 + $0x18] sm:$0xf]  ;;  %v659_v42 = vmax.bf16 %v657_v23, %v655_v33  ;;  %v682_v43 = vmax.bf16 %v680_v30, %v678_v36  ;;  %v491_v44 = vld [vmem:[%s1057_s24 + $0xb4] sm:$0xf]  ;;  %v705_v45 = vmax.bf16 %v703_v32, %v701_v38  ;;  %v688_v48 = vsel %vm518_vm0, %v506_v34, 4286644096 }
  0x50   : > { %v460_v46 = vld [vmem:[%s1057_s24 + $0x38] sm:$0xf]  ;;  %v692_v49 = vsel %vm518_vm0, %v514_v35, 4286644096  ;;  %v711_v50 = vsel %vm518_vm0, %v483_v37, 4286644096 }
  0x51   : > { %v468_v47 = vld [vmem:[%s1057_s24 + $0x58] sm:$0xf]  ;;  %803 = vst.msk [vmem:[%s1108_s28 + $0xc] sm:$0xf] %vm518_vm0, %v659_v42  ;;  %v686_v51 = vmax.bf16 %v684_v39, %v682_v43  ;;  %v499_v52 = vld [vmem:[%s1057_s24 + $0xd4] sm:$0xf]  ;;  %v709_v53 = vmax.bf16 %v707_v40, %v705_v45 }
  0x52   : > { %v476_v54 = vld [vmem:[%s1057_s24 + $0x78] sm:$0xf]  ;;  %v731_v55 = vsel %vm518_vm0, %v452_v41, 4286644096  ;;  %v715_v56 = vsel %vm518_vm0, %v491_v44, 4286644096 }
  0x53   : > { %v734_v57 = vsel %vm518_vm0, %v460_v46, 4286644096  ;;  %v738_v58 = vsel %vm518_vm0, %v468_v47, 4286644096  ;;  %v690_v59 = vmax.bf16 %v688_v48, %v686_v51  ;;  %v507_v60 = vld [vmem:[%s1057_s24 + $0xf4] sm:$0xf]  ;;  %v713_v62 = vmax.bf16 %v711_v50, %v709_v53 }
  0x54   : > { %v515_v61 = vld [vmem:[%s1057_s24 + $0x114] sm:$0xf]  ;;  %v484_v63 = vld [vmem:[%s1057_s24 + $0x98] sm:$0xf]  ;;  %v736_v0 = vmax.bf16 %v734_v57, %v731_v55  ;;  %v719_v1 = vsel %vm518_vm0, %v499_v52, 4286644096 }
  0x55   : > { %v742_v2 = vsel %vm518_vm0, %v476_v54, 4286644096  ;;  %v453_v3 = vld [vmem:[%s1057_s24 + $0x1c] sm:$0xf]  ;;  %v694_v4 = vmax.bf16 %v692_v49, %v690_v59  ;;  %v717_v5 = vmax.bf16 %v715_v56, %v713_v62  ;;  %v492_v6 = vld [vmem:[%s1057_s24 + $0xb8] sm:$0xf] }
  0x56   : > { %v740_v7 = vmax.bf16 %v738_v58, %v736_v0  ;;  %v461_v8 = vld [vmem:[%s1057_s24 + $0x3c] sm:$0xf]  ;;  %v723_v10 = vsel %vm518_vm0, %v507_v60, 4286644096  ;;  %v727_v11 = vsel %vm518_vm0, %v515_v61, 4286644096 }
  0x57   : > { %v469_v9 = vld [vmem:[%s1057_s24 + $0x5c] sm:$0xf]  ;;  %v746_v12 = vsel %vm518_vm0, %v484_v63, 4286644096  ;;  %804 = vst.msk [vmem:[%s1108_s28 + $0x10] sm:$0xf] %vm518_vm0, %v694_v4  ;;  %v721_v13 = vmax.bf16 %v719_v1, %v717_v5 }
  0x58   : > { %v500_v14 = vld [vmem:[%s1057_s24 + $0xd8] sm:$0xf]  ;;  %v744_v15 = vmax.bf16 %v742_v2, %v740_v7  ;;  %v477_v16 = vld [vmem:[%s1057_s24 + $0x7c] sm:$0xf]  ;;  %v766_v17 = vsel %vm518_vm0, %v453_v3, 4286644096 }
  0x59   : > { %v750_v18 = vsel %vm518_vm0, %v492_v6, 4286644096  ;;  %v769_v19 = vsel %vm518_vm0, %v461_v8, 4286644096  ;;  %v773_v20 = vsel %vm518_vm0, %v469_v9, 4286644096  ;;  %v725_v21 = vmax.bf16 %v723_v10, %v721_v13 }
  0x5a   : > { %v508_v22 = vld [vmem:[%s1057_s24 + $0xf8] sm:$0xf]  ;;  %v748_v23 = vmax.bf16 %v746_v12, %v744_v15  ;;  %v485_v24 = vld [vmem:[%s1057_s24 + $0x9c] sm:$0xf]  ;;  %v771_v25 = vmax.bf16 %v769_v19, %v766_v17  ;;  %v754_v26 = vsel %vm518_vm0, %v500_v14, 4286644096 }
  0x5b   : > { %v777_v27 = vsel %vm518_vm0, %v477_v16, 4286644096  ;;  %v729_v28 = vmax.bf16 %v727_v11, %v725_v21  ;;  %v516_v29 = vld [vmem:[%s1057_s24 + $0x118] sm:$0xf]  ;;  %v493_v31 = vld [vmem:[%s1057_s24 + $0xbc] sm:$0xf] }
  0x5c   : > { %v752_v30 = vmax.bf16 %v750_v18, %v748_v23  ;;  %v775_v32 = vmax.bf16 %v773_v20, %v771_v25  ;;  %v758_v33 = vsel %vm518_vm0, %v508_v22, 4286644096  ;;  %v781_v34 = vsel %vm518_vm0, %v485_v24, 4286644096  ;;  %v501_v36 = vld [vmem:[%s1057_s24 + $0xdc] sm:$0xf] }
  0x5d   : > { %805 = vst.msk [vmem:[%s1108_s28 + $0x14] sm:$0xf] %vm518_vm0, %v729_v28  ;;  %v762_v38 = vsel %vm518_vm0, %v516_v29, 4286644096  ;;  %v785_v39 = vsel %vm518_vm0, %v493_v31, 4286644096 }
  0x5e   : > { %v756_v35 = vmax.bf16 %v754_v26, %v752_v30  ;;  %v779_v37 = vmax.bf16 %v777_v27, %v775_v32  ;;  %v509_v41 = vld [vmem:[%s1057_s24 + $0xfc] sm:$0xf]  ;;  %v789_v43 = vsel %vm518_vm0, %v501_v36, 4286644096 }
  0x5f   : > { %v517_v45 = vld [vmem:[%s1057_s24 + $0x11c] sm:$0xf]  ;;  %v793_v47 = vsel %vm518_vm0, %v509_v41, 4286644096 }
  0x60   : > { %v760_v40 = vmax.bf16 %v758_v33, %v756_v35  ;;  %v783_v42 = vmax.bf16 %v781_v34, %v779_v37  ;;  %v797_v49 = vsel %vm518_vm0, %v517_v45, 4286644096 }
  0x62   : > { %v764_v44 = vmax.bf16 %v762_v38, %v760_v40  ;;  %v787_v46 = vmax.bf16 %v785_v39, %v783_v42 }
  0x64   : > { %806 = vst.msk [vmem:[%s1108_s28 + $0x18] sm:$0xf] %vm518_vm0, %v764_v44  ;;  %v791_v48 = vmax.bf16 %v789_v43, %v787_v46 }
  0x66   : > { %v795_v50 = vmax.bf16 %v793_v47, %v791_v48 }
  0x68   : > { %v799_v51 = vmax.bf16 %v797_v49, %v795_v50 }
  0x6a   : > { %807 = vst.msk [vmem:[%s1108_s28 + $0x1c] sm:$0xf] %vm518_vm0, %v799_v51 }
  0x6b PF: > { %p8_p9 = scmp.ge.s32.totalorder %s959_s10, 4   ;;  %s1241_s6 = smov %s926_s7 }
  0x6c   : > { %s1242_s7 = smov %s968_s13  ;;  %s1243_s8 = smov %s959_s10 }
  0x6d   :  { %10 = sbr.rel (!%p8_p9) target bundleno = 2 (0x2), region = 100 }

// kernel: _lambda_.11
= control target key start
LH: loop header
LB: loop body
LE: loop exit
PB: predicated region body
PF: predicated region fallthrough
CT: control target
= control target key end

     0   :  { %s1382_s12 = smov 0   ;;  %s1384_s13 = smov 0   ;;  %s1554_s0 = inlined_call_operand.vmem [shape: bf16[512,147], index: 0, kind: input, shape index: {}]   ;;  %s1555_s1 = inlined_call_operand.vmem [shape: bf16[147,128], index: 1, kind: input, shape index: {}]   ;;  %s1556_s2 = inlined_call_operand.vmem [shape: f32[1,128], index: 2, kind: input, shape index: {}]   ;;  %s1557_s3 = inlined_call_operand.vmem [shape: bf16[512,128], index: 3, kind: output, shape index: {}]  }
   0x1   :  { %s1386_s14 = smov 0  }
   0x2 LB: > { %s25_s15 = sadd.s32 1, %s1354_s13  ;;  %p1005_p0 = scmp.ge.s32.totalorder %s1358_s14, 1  ;;  %s1358_s14 = sphi %s1386_s14, %s13_s14   ;;  %s1354_s13 = sphi %s1384_s13, %s1559_s13   ;;  %s1350_s12 = sphi %s1382_s12, %s1558_s12  }
   0x3   : > { %p27_p1 = scmp.ge.s32.totalorder %s25_s15, 2  ;;  %p170_p2 = scmp.lt.s32.totalorder %s1358_s14, 3 }
   0x5   : > { %s1561_s15 = smov (%p27_p1, %s25_s15), 0  ;;  %p171_p3 = pnand %p1005_p0, %p170_p2 }
   0x6   : > { %v1278_v0 = vld [vmem:[%s1555_s1] sm:$0xff] (!%p171_p3)   ;;  %v1360_v1 = vmov (!%p171_p3), 0   ;;  %v1279_v2 = vld [vmem:[%s1555_s1 + $0x8] sm:$0xff] (!%p171_p3)   ;;  %v1280_v3 = vld [vmem:[%s1555_s1 + $0x10] sm:$0xff] (!%p171_p3)   ;;  %s1006_s22 = sshll.u32 (!%p171_p3), %s1350_s12, 5  ;;  %vm488_vm0 = vcmask (!%p171_p3), 154624  }
   0x7   : > { %174 = sbr.rel (%p171_p3) target bundleno = 324 (0x144), region = 32  ;;  %544 = vmatprep.subr.bf16.mxu0 (!%p171_p3), %v1360_v1  ;;  %1232 = vmatprep.subr.bf16.mxu1 (!%p171_p3), %v1360_v1  ;;  %p206_p4 = scmp.lt.s32.totalorder (!%p171_p3), %s1006_s22, 63  ;;  %v1281_v4 = vld [vmem:[%s1555_s1 + $0x18] sm:$0xff] (!%p171_p3)   ;;  %v1282_v5 = vld [vmem:[%s1555_s1 + $0x20] sm:$0xff] (!%p171_p3)   ;;  %v1283_v8 = vld [vmem:[%s1555_s1 + $0x28] sm:$0xff] (!%p171_p3)   ;;  %vm537_vm1 = vcmask (!%p171_p3), 1040384  }
   0x8   : > { %545 = vmatpush1.bf16.msra.mxu0 (!%p171_p3), %v1278_v0  ;;  %1242 = vmatpush1.bf16.msra.mxu1 (!%p171_p3), %v1278_v0  ;;  %v1284_v9 = vld [vmem:[%s1555_s1 + $0x30] sm:$0xff] (!%p171_p3)   ;;  %v1285_v10 = vld [vmem:[%s1555_s1 + $0x38] sm:$0xff] (!%p171_p3)   ;;  %vm538_vm2 = vcmask (!%p171_p3), 1041408   ;;  %v1361_v11 = vmov (!%p171_p3), 65535   ;;  %v1286_v13 = vld [vmem:[%s1555_s1 + $0x40] sm:$0xff] (!%p171_p3)  }
   0x9   : > { %546 = vmatprep.subr.bf16.mxu0 (!%p171_p3), %v1360_v1  ;;  %1233 = vmatprep.subr.bf16.mxu1 (!%p171_p3), %v1360_v1  ;;  %v539_v12 = vsel (!%p171_p3), %vm537_vm1, 4294967295, %v1361_v11  ;;  %v1287_v14 = vld [vmem:[%s1555_s1 + $0x48] ss:$0 sps:$4 sm:$0x33] (!%p171_p3)   ;;  %v1489_v47 = vld [vmem:[%s1556_s2] ss:$0 sm:$0xff] (!%p171_p3) }
   0xa   : > { %v540_v15 = vsel (!%p171_p3), %vm538_vm2, %v539_v12, 0 }
   0xb   : > { %v542_v16 = vand.u32 (!%p171_p3), %v1287_v14, %v540_v15 }
   0xc   : > { %547 = vmatpush1.bf16.msra.mxu0 (!%p171_p3), %v1279_v2  ;;  %1243 = vmatpush1.bf16.msra.mxu1 (!%p171_p3), %v1279_v2 }
   0xd   : > { %548 = vmatprep.subr.bf16.mxu0 (!%p171_p3), %v1360_v1  ;;  %1234 = vmatprep.subr.bf16.mxu1 (!%p171_p3), %v1360_v1 }
   0xe   : > { %s1563_s22 = smov (!%p206_p4, %s1006_s22), 63 }
   0xf   : > { %s1104_s25 = sshll.u32 %s1563_s22, 3  ;;  %s1010_s19 = sshll.u32 %s1563_s22, 2 }
  0x10   : > { %549 = vmatpush1.bf16.msra.mxu0 %v1280_v3  ;;  %1244 = vmatpush1.bf16.msra.mxu1 %v1280_v3  ;;  %s1418_s28 = scalar_lea.vmem %s1554_s0, %s1104_s25  ;;  %s1499_s23 = scalar_lea.vmem %s1557_s3, %s1010_s19 }
  0x11   : > { %550 = vmatprep.subr.bf16.mxu0 %v1360_v1  ;;  %1235 = vmatprep.subr.bf16.mxu1 %v1360_v1  ;;  %v1290_v6 = vld [vmem:[%s1418_s28 + $0x4] ss:$8 sps:$4 sm:$0xff]   ;;  %v1288_v17 = vld [vmem:[%s1418_s28] ss:$8 sps:$4 sm:$0xff]   ;;  %v1294_v19 = vld [vmem:[%s1418_s28 + $0x14] ss:$8 sps:$4 sm:$0xff]  }
  0x12   : > { %v1293_v7 = vld [vmem:[%s1418_s28 + $0x84] ss:$8 sps:$4 sm:$0xff]   ;;  %1054 = vmatprep.mubr.msk.bf16.mxu0 %vm488_vm0, %v1290_v6  ;;  %v1291_v18 = vld [vmem:[%s1418_s28 + $0x80] ss:$8 sps:$4 sm:$0xff]   ;;  %v1296_v20 = vld [vmem:[%s1418_s28 + $0x94] ss:$8 sps:$4 sm:$0xff]  }
  0x13   : > { %1062 = vmatprep.mubr.msk.bf16.mxu1 %vm488_vm0, %v1293_v7  ;;  %v1298_v21 = vld [vmem:[%s1418_s28 + $0x10] ss:$8 sps:$4 sm:$0xff]   ;;  %v1300_v23 = vld [vmem:[%s1418_s28 + $0x24] ss:$8 sps:$4 sm:$0xff]   ;;  %v1304_v25 = vld [vmem:[%s1418_s28 + $0x20] ss:$8 sps:$4 sm:$0xff]  }
  0x14   : > { %551 = vmatpush1.bf16.msra.mxu0 %v1281_v4  ;;  %1245 = vmatpush1.bf16.msra.mxu1 %v1281_v4  ;;  %v1299_v22 = vld [vmem:[%s1418_s28 + $0x90] ss:$8 sps:$4 sm:$0xff]   ;;  %v1302_v24 = vld [vmem:[%s1418_s28 + $0xa4] ss:$8 sps:$4 sm:$0xff]   ;;  %v1305_v26 = vld [vmem:[%s1418_s28 + $0xa0] ss:$8 sps:$4 sm:$0xff]  }
  0x15   : > { %552 = vmatprep.subr.bf16.mxu0 %v1360_v1  ;;  %1236 = vmatprep.subr.bf16.mxu1 %v1360_v1  ;;  %v1306_v27 = vld [vmem:[%s1418_s28 + $0x34] ss:$8 sps:$4 sm:$0xff]   ;;  %v1310_v29 = vld [vmem:[%s1418_s28 + $0x30] ss:$8 sps:$4 sm:$0xff]   ;;  %v1312_v31 = vld [vmem:[%s1418_s28 + $0x44] ss:$8 sps:$4 sm:$0xff]  }
  0x16   : > { %v1308_v28 = vld [vmem:[%s1418_s28 + $0xb4] ss:$8 sps:$4 sm:$0xff]   ;;  %v1311_v30 = vld [vmem:[%s1418_s28 + $0xb0] ss:$8 sps:$4 sm:$0xff]   ;;  %v1314_v32 = vld [vmem:[%s1418_s28 + $0xc4] ss:$8 sps:$4 sm:$0xff]  }
  0x17   : > { %v1316_v33 = vld [vmem:[%s1418_s28 + $0x40] ss:$8 sps:$4 sm:$0xff]   ;;  %v1318_v35 = vld [vmem:[%s1418_s28 + $0x54] ss:$8 sps:$4 sm:$0xff]   ;;  %v1322_v37 = vld [vmem:[%s1418_s28 + $0x50] ss:$8 sps:$4 sm:$0xff]  }
  0x18   : > { %553 = vmatpush1.bf16.msra.mxu0 %v1282_v5  ;;  %1246 = vmatpush1.bf16.msra.mxu1 %v1282_v5  ;;  %v1317_v34 = vld [vmem:[%s1418_s28 + $0xc0] ss:$8 sps:$4 sm:$0xff]   ;;  %v1320_v36 = vld [vmem:[%s1418_s28 + $0xd4] ss:$8 sps:$4 sm:$0xff]   ;;  %v1323_v38 = vld [vmem:[%s1418_s28 + $0xd0] ss:$8 sps:$4 sm:$0xff]  }
  0x19   : > { %554 = vmatprep.subr.bf16.mxu0 %v1360_v1  ;;  %1237 = vmatprep.subr.bf16.mxu1 %v1360_v1  ;;  %v1324_v39 = vld [vmem:[%s1418_s28 + $0x64] ss:$8 sps:$4 sm:$0xff]   ;;  %v1328_v41 = vld [vmem:[%s1418_s28 + $0x60] ss:$8 sps:$4 sm:$0xff]   ;;  %v1330_v43 = vld [vmem:[%s1418_s28 + $0x74] ss:$8 sps:$4 sm:$0xff]  }
  0x1a   : > { %v1326_v40 = vld [vmem:[%s1418_s28 + $0xe4] ss:$8 sps:$4 sm:$0xff]   ;;  %v1329_v42 = vld [vmem:[%s1418_s28 + $0xe0] ss:$8 sps:$4 sm:$0xff]   ;;  %v1332_v44 = vld [vmem:[%s1418_s28 + $0xf4] ss:$8 sps:$4 sm:$0xff]  }
  0x1b   : > { %v1334_v45 = vld [vmem:[%s1418_s28 + $0x70] ss:$8 sps:$4 sm:$0xff]  }
  0x1c   : > { %555 = vmatpush1.bf16.msra.mxu0 %v1283_v8  ;;  %1247 = vmatpush1.bf16.msra.mxu1 %v1283_v8  ;;  %v1335_v46 = vld [vmem:[%s1418_s28 + $0xf0] ss:$8 sps:$4 sm:$0xff]  }
  0x1d   : > { %556 = vmatprep.subr.bf16.mxu0 %v1360_v1  ;;  %1238 = vmatprep.subr.bf16.mxu1 %v1360_v1 }
  0x20   : > { %557 = vmatpush1.bf16.msra.mxu0 %v1284_v9  ;;  %1248 = vmatpush1.bf16.msra.mxu1 %v1284_v9 }
  0x21   : > { %558 = vmatprep.subr.bf16.mxu0 %v1360_v1  ;;  %1239 = vmatprep.subr.bf16.mxu1 %v1360_v1 }
  0x24   : > { %559 = vmatpush1.bf16.msra.mxu0 %v1285_v10  ;;  %1249 = vmatpush1.bf16.msra.mxu1 %v1285_v10 }
  0x25   : > { %560 = vmatprep.subr.bf16.mxu0 %v1360_v1  ;;  %1240 = vmatprep.subr.bf16.mxu1 %v1360_v1 }
  0x28   : > { %561 = vmatpush1.bf16.msra.mxu0 %v1286_v13  ;;  %1250 = vmatpush1.bf16.msra.mxu1 %v1286_v13 }
  0x29   : > { %562 = vmatprep.subr.bf16.mxu0 %v1360_v1  ;;  %1241 = vmatprep.subr.bf16.mxu1 %v1360_v1 }
  0x2c   : > { %563 = vmatpush1.bf16.msra.mxu0 %v542_v16  ;;  %1251 = vmatpush1.bf16.msra.mxu1 %v542_v16 }
  0x2f   : > { %577 = vmatmul.mubr.bf16.vlgmr.msra.gmra.mrb[0].mxu0 %v1288_v17  ;;  %641 = vmatmul.mubr.bf16.vlgmr.msra.gmra.mrb[0].mxu1 %v1291_v18 }
  0x30   : > { %1055 = vmatprep.mubr.msk.bf16.mxu0 %vm488_vm0, %v1294_v19  ;;  %1063 = vmatprep.mubr.msk.bf16.mxu1 %vm488_vm0, %v1296_v20 }
  0x37   : > { %585 = vmatmul.mubr.bf16.gmra.mrb[4].mxu0 %v1298_v21  ;;  %649 = vmatmul.mubr.bf16.gmra.mrb[4].mxu1 %v1299_v22 }
  0x38   : > { %1056 = vmatprep.mubr.msk.bf16.mxu0 %vm488_vm0, %v1300_v23  ;;  %1064 = vmatprep.mubr.msk.bf16.mxu1 %vm488_vm0, %v1302_v24 }
  0x3f   : > { %593 = vmatmul.mubr.bf16.gmra.mrb[8].mxu0 %v1304_v25  ;;  %657 = vmatmul.mubr.bf16.gmra.mrb[8].mxu1 %v1305_v26 }
  0x40   : > { %1057 = vmatprep.mubr.msk.bf16.mxu0 %vm488_vm0, %v1306_v27  ;;  %1065 = vmatprep.mubr.msk.bf16.mxu1 %vm488_vm0, %v1308_v28 }
  0x47   : > { %601 = vmatmul.mubr.bf16.gmra.mrb[12].mxu0 %v1310_v29  ;;  %665 = vmatmul.mubr.bf16.gmra.mrb[12].mxu1 %v1311_v30 }
  0x48   : > { %1058 = vmatprep.mubr.msk.bf16.mxu0 %vm488_vm0, %v1312_v31  ;;  %1066 = vmatprep.mubr.msk.bf16.mxu1 %vm488_vm0, %v1314_v32 }
  0x4f   : > { %609 = vmatmul.mubr.bf16.gmra.mrb[16].mxu0 %v1316_v33  ;;  %673 = vmatmul.mubr.bf16.gmra.mrb[16].mxu1 %v1317_v34 }
  0x50   : > { %1059 = vmatprep.mubr.msk.bf16.mxu0 %vm488_vm0, %v1318_v35  ;;  %1067 = vmatprep.mubr.msk.bf16.mxu1 %vm488_vm0, %v1320_v36 }
  0x57   : > { %617 = vmatmul.mubr.bf16.gmra.mrb[20].mxu0 %v1322_v37  ;;  %681 = vmatmul.mubr.bf16.gmra.mrb[20].mxu1 %v1323_v38 }
  0x58   : > { %1060 = vmatprep.mubr.msk.bf16.mxu0 %vm488_vm0, %v1324_v39  ;;  %1068 = vmatprep.mubr.msk.bf16.mxu1 %vm488_vm0, %v1326_v40 }
  0x5f   : > { %625 = vmatmul.mubr.bf16.gmra.mrb[24].mxu0 %v1328_v41  ;;  %689 = vmatmul.mubr.bf16.gmra.mrb[24].mxu1 %v1329_v42 }
  0x60   : > { %1061 = vmatprep.mubr.msk.bf16.mxu0 %vm488_vm0, %v1330_v43  ;;  %1069 = vmatprep.mubr.msk.bf16.mxu1 %vm488_vm0, %v1332_v44 }
  0x67   : > { %633 = vmatmul.mubr.bf16.gmra.mrb[28].mxu0 %v1334_v45  ;;  %697 = vmatmul.mubr.bf16.gmra.mrb[28].mxu1 %v1335_v46 }
 0x102   : > { %v578_v48 = vpop.f32.mrb[0].mxu0  ;;  %v642_v49 = vpop.f32.mrb[0].mxu1 }
 0x103   : > { %v579_v50 = vadd.f32 %v1489_v47, %v578_v48  ;;  %v643_v51 = vadd.f32 %v1489_v47, %v642_v49  ;;  %v580_v52 = vpop.f32.mrb[1].mxu0  ;;  %v644_v53 = vpop.f32.mrb[1].mxu1 }
 0x104   : > { %v581_v54 = vpop.f32.mrb[2].mxu0  ;;  %v645_v55 = vpop.f32.mrb[2].mxu1 }
 0x105   : > { %v582_v56 = vadd.f32 %v1489_v47, %v581_v54  ;;  %v646_v57 = vadd.f32 %v1489_v47, %v645_v55  ;;  %v583_v58 = vpop.f32.mrb[3].mxu0  ;;  %v647_v59 = vpop.f32.mrb[3].mxu1  ;;  %v705_v60 = vmax.f32 %v579_v50, 0.0  ;;  %v721_v61 = vmax.f32 %v643_v51, 0.0 }
 0x107   : > { %v706_v62 = vmax.f32 %v582_v56, 0.0  ;;  %v722_v63 = vmax.f32 %v646_v57, 0.0 }
 0x109   : > { %v1140_v0 = vpack.c.bf16 %v706_v62, %v705_v60  ;;  %v1180_v1 = vpack.c.bf16 %v722_v63, %v721_v61 }
 0x10a   : > { %v586_v2 = vpop.f32.mrb[4].mxu0  ;;  %v650_v3 = vpop.f32.mrb[4].mxu1 }
 0x10b   : > { %1141 = vst [vmem:[%s1499_s23] sm:$0xff] %v1140_v0   ;;  %1224 = vst [vmem:[%s1499_s23 + $0x40] sm:$0xff] %v1180_v1   ;;  %v587_v4 = vadd.f32 %v1489_v47, %v586_v2  ;;  %v651_v5 = vadd.f32 %v1489_v47, %v650_v3  ;;  %v588_v6 = vpop.f32.mrb[5].mxu0  ;;  %v652_v7 = vpop.f32.mrb[5].mxu1 }
 0x10c   : > { %v589_v8 = vpop.f32.mrb[6].mxu0  ;;  %v653_v9 = vpop.f32.mrb[6].mxu1 }
 0x10d   : > { %v590_v10 = vadd.f32 %v1489_v47, %v589_v8  ;;  %v654_v11 = vadd.f32 %v1489_v47, %v653_v9  ;;  %v591_v12 = vpop.f32.mrb[7].mxu0  ;;  %v655_v13 = vpop.f32.mrb[7].mxu1  ;;  %v707_v14 = vmax.f32 %v587_v4, 0.0  ;;  %v723_v15 = vmax.f32 %v651_v5, 0.0 }
 0x10f   : > { %v708_v16 = vmax.f32 %v590_v10, 0.0  ;;  %v724_v17 = vmax.f32 %v654_v11, 0.0 }
 0x111   : > { %v1145_v18 = vpack.c.bf16 %v708_v16, %v707_v14  ;;  %v1185_v19 = vpack.c.bf16 %v724_v17, %v723_v15 }
 0x112   : > { %v594_v20 = vpop.f32.mrb[8].mxu0  ;;  %v658_v21 = vpop.f32.mrb[8].mxu1 }
 0x113   : > { %1217 = vst [vmem:[%s1499_s23 + $0x8] sm:$0xff] %v1145_v18   ;;  %1225 = vst [vmem:[%s1499_s23 + $0x48] sm:$0xff] %v1185_v19   ;;  %v595_v22 = vadd.f32 %v1489_v47, %v594_v20  ;;  %v659_v23 = vadd.f32 %v1489_v47, %v658_v21  ;;  %v596_v24 = vpop.f32.mrb[9].mxu0  ;;  %v660_v25 = vpop.f32.mrb[9].mxu1 }
 0x114   : > { %v597_v26 = vpop.f32.mrb[10].mxu0  ;;  %v661_v27 = vpop.f32.mrb[10].mxu1 }
 0x115   : > { %v598_v28 = vadd.f32 %v1489_v47, %v597_v26  ;;  %v662_v29 = vadd.f32 %v1489_v47, %v661_v27  ;;  %v599_v30 = vpop.f32.mrb[11].mxu0  ;;  %v663_v31 = vpop.f32.mrb[11].mxu1  ;;  %v709_v32 = vmax.f32 %v595_v22, 0.0  ;;  %v725_v33 = vmax.f32 %v659_v23, 0.0 }
 0x117   : > { %v710_v34 = vmax.f32 %v598_v28, 0.0  ;;  %v726_v35 = vmax.f32 %v662_v29, 0.0 }
 0x119   : > { %v1150_v36 = vpack.c.bf16 %v710_v34, %v709_v32  ;;  %v1190_v37 = vpack.c.bf16 %v726_v35, %v725_v33 }
 0x11a   : > { %v602_v38 = vpop.f32.mrb[12].mxu0  ;;  %v666_v39 = vpop.f32.mrb[12].mxu1 }
 0x11b   : > { %1218 = vst [vmem:[%s1499_s23 + $0x10] sm:$0xff] %v1150_v36   ;;  %1226 = vst [vmem:[%s1499_s23 + $0x50] sm:$0xff] %v1190_v37   ;;  %v603_v40 = vadd.f32 %v1489_v47, %v602_v38  ;;  %v667_v41 = vadd.f32 %v1489_v47, %v666_v39  ;;  %v604_v42 = vpop.f32.mrb[13].mxu0  ;;  %v668_v43 = vpop.f32.mrb[13].mxu1 }
 0x11c   : > { %v605_v44 = vpop.f32.mrb[14].mxu0  ;;  %v669_v45 = vpop.f32.mrb[14].mxu1 }
 0x11d   : > { %v606_v46 = vadd.f32 %v1489_v47, %v605_v44  ;;  %v670_v48 = vadd.f32 %v1489_v47, %v669_v45  ;;  %v607_v49 = vpop.f32.mrb[15].mxu0  ;;  %v671_v50 = vpop.f32.mrb[15].mxu1  ;;  %v711_v51 = vmax.f32 %v603_v40, 0.0  ;;  %v727_v52 = vmax.f32 %v667_v41, 0.0 }
 0x11f   : > { %v712_v53 = vmax.f32 %v606_v46, 0.0  ;;  %v728_v54 = vmax.f32 %v670_v48, 0.0 }
 0x121   : > { %v1155_v55 = vpack.c.bf16 %v712_v53, %v711_v51  ;;  %v1195_v56 = vpack.c.bf16 %v728_v54, %v727_v52 }
 0x122   : > { %v610_v57 = vpop.f32.mrb[16].mxu0  ;;  %v674_v58 = vpop.f32.mrb[16].mxu1 }
 0x123   : > { %1219 = vst [vmem:[%s1499_s23 + $0x18] sm:$0xff] %v1155_v55   ;;  %1227 = vst [vmem:[%s1499_s23 + $0x58] sm:$0xff] %v1195_v56   ;;  %v611_v59 = vadd.f32 %v1489_v47, %v610_v57  ;;  %v675_v60 = vadd.f32 %v1489_v47, %v674_v58  ;;  %v612_v61 = vpop.f32.mrb[17].mxu0  ;;  %v676_v62 = vpop.f32.mrb[17].mxu1 }
 0x124   : > { %v613_v63 = vpop.f32.mrb[18].mxu0  ;;  %v677_v0 = vpop.f32.mrb[18].mxu1 }
 0x125   : > { %v614_v1 = vadd.f32 %v1489_v47, %v613_v63  ;;  %v678_v2 = vadd.f32 %v1489_v47, %v677_v0  ;;  %v615_v3 = vpop.f32.mrb[19].mxu0  ;;  %v679_v4 = vpop.f32.mrb[19].mxu1  ;;  %v713_v5 = vmax.f32 %v611_v59, 0.0  ;;  %v729_v6 = vmax.f32 %v675_v60, 0.0 }
 0x127   : > { %v714_v7 = vmax.f32 %v614_v1, 0.0  ;;  %v730_v8 = vmax.f32 %v678_v2, 0.0 }
 0x129   : > { %v1160_v9 = vpack.c.bf16 %v714_v7, %v713_v5  ;;  %v1200_v10 = vpack.c.bf16 %v730_v8, %v729_v6 }
 0x12a   : > { %v618_v11 = vpop.f32.mrb[20].mxu0  ;;  %v682_v12 = vpop.f32.mrb[20].mxu1 }
 0x12b   : > { %1220 = vst [vmem:[%s1499_s23 + $0x20] sm:$0xff] %v1160_v9   ;;  %1228 = vst [vmem:[%s1499_s23 + $0x60] sm:$0xff] %v1200_v10   ;;  %v619_v13 = vadd.f32 %v1489_v47, %v618_v11  ;;  %v683_v14 = vadd.f32 %v1489_v47, %v682_v12  ;;  %v620_v15 = vpop.f32.mrb[21].mxu0  ;;  %v684_v16 = vpop.f32.mrb[21].mxu1 }
 0x12c   : > { %v621_v17 = vpop.f32.mrb[22].mxu0  ;;  %v685_v18 = vpop.f32.mrb[22].mxu1 }
 0x12d   : > { %v622_v19 = vadd.f32 %v1489_v47, %v621_v17  ;;  %v686_v20 = vadd.f32 %v1489_v47, %v685_v18  ;;  %v623_v21 = vpop.f32.mrb[23].mxu0  ;;  %v687_v22 = vpop.f32.mrb[23].mxu1  ;;  %v715_v23 = vmax.f32 %v619_v13, 0.0  ;;  %v731_v24 = vmax.f32 %v683_v14, 0.0 }
 0x12f   : > { %v716_v25 = vmax.f32 %v622_v19, 0.0  ;;  %v732_v26 = vmax.f32 %v686_v20, 0.0 }
 0x131   : > { %v1165_v27 = vpack.c.bf16 %v716_v25, %v715_v23  ;;  %v1205_v28 = vpack.c.bf16 %v732_v26, %v731_v24 }
 0x132   : > { %v626_v29 = vpop.f32.mrb[24].mxu0  ;;  %v690_v30 = vpop.f32.mrb[24].mxu1 }
 0x133   : > { %1221 = vst [vmem:[%s1499_s23 + $0x28] sm:$0xff] %v1165_v27   ;;  %1229 = vst [vmem:[%s1499_s23 + $0x68] sm:$0xff] %v1205_v28   ;;  %v627_v31 = vadd.f32 %v1489_v47, %v626_v29  ;;  %v691_v32 = vadd.f32 %v1489_v47, %v690_v30  ;;  %v628_v33 = vpop.f32.mrb[25].mxu0  ;;  %v692_v34 = vpop.f32.mrb[25].mxu1 }
 0x134   : > { %v629_v35 = vpop.f32.mrb[26].mxu0  ;;  %v693_v36 = vpop.f32.mrb[26].mxu1 }
 0x135   : > { %v630_v37 = vadd.f32 %v1489_v47, %v629_v35  ;;  %v694_v38 = vadd.f32 %v1489_v47, %v693_v36  ;;  %v631_v39 = vpop.f32.mrb[27].mxu0  ;;  %v695_v40 = vpop.f32.mrb[27].mxu1  ;;  %v717_v41 = vmax.f32 %v627_v31, 0.0  ;;  %v733_v42 = vmax.f32 %v691_v32, 0.0 }
 0x137   : > { %v718_v43 = vmax.f32 %v630_v37, 0.0  ;;  %v734_v44 = vmax.f32 %v694_v38, 0.0 }
 0x139   : > { %v1170_v45 = vpack.c.bf16 %v718_v43, %v717_v41  ;;  %v1210_v46 = vpack.c.bf16 %v734_v44, %v733_v42 }
 0x13a   : > { %v634_v48 = vpop.f32.mrb[28].mxu0  ;;  %v698_v49 = vpop.f32.mrb[28].mxu1 }
 0x13b   : > { %1222 = vst [vmem:[%s1499_s23 + $0x30] sm:$0xff] %v1170_v45   ;;  %1230 = vst [vmem:[%s1499_s23 + $0x70] sm:$0xff] %v1210_v46   ;;  %v635_v50 = vadd.f32 %v1489_v47, %v634_v48  ;;  %v699_v51 = vadd.f32 %v1489_v47, %v698_v49  ;;  %v636_v52 = vpop.f32.mrb[29].mxu0  ;;  %v700_v53 = vpop.f32.mrb[29].mxu1 }
 0x13c   : > { %v637_v54 = vpop.f32.mrb[30].mxu0  ;;  %v701_v55 = vpop.f32.mrb[30].mxu1 }
 0x13d   : > { %v638_v56 = vadd.f32 %v1489_v47, %v637_v54  ;;  %v702_v57 = vadd.f32 %v1489_v47, %v701_v55  ;;  %v639_v58 = vpop.f32.mrb[31].mxu0  ;;  %v703_v59 = vpop.f32.mrb[31].mxu1  ;;  %v719_v60 = vmax.f32 %v635_v50, 0.0  ;;  %v735_v61 = vmax.f32 %v699_v51, 0.0 }
 0x13f   : > { %v720_v62 = vmax.f32 %v638_v56, 0.0  ;;  %v736_v63 = vmax.f32 %v702_v57, 0.0 }
 0x141   : > { %v1175_v0 = vpack.c.bf16 %v720_v62, %v719_v60  ;;  %v1215_v1 = vpack.c.bf16 %v736_v63, %v735_v61 }
 0x143   : > { %1223 = vst [vmem:[%s1499_s23 + $0x38] sm:$0xff] %v1175_v0   ;;  %1231 = vst [vmem:[%s1499_s23 + $0x78] sm:$0xff] %v1215_v1  }
 0x144 PF: > { %s13_s14 = sadd.s32 1, %s1358_s14   ;;  %s1558_s12 = smov %s1354_s13 }
 0x145   : > { %p10_p5 = scmp.ge.s32.totalorder %s13_s14, 4   ;;  %s1559_s13 = smov %s1561_s15 }
 0x147   :  { %12 = sbr.rel (!%p10_p5) target bundleno = 2 (0x2), region = 68 }

// kernel: _lambda_.14
= control target key start
LH: loop header
LB: loop body
LE: loop exit
PB: predicated region body
PF: predicated region fallthrough
CT: control target
= control target key end

     0   :  { %s3243_s12 = smov 0   ;;  %s3789_s0 = inlined_call_operand.vmem [shape: bf16[2,176,64], index: 0, kind: input, shape index: {}]   ;;  %s3790_s1 = inlined_call_operand.vmem [shape: bf16[9,64,64], index: 1, kind: input, shape index: {}]   ;;  %s3791_s2 = inlined_call_operand.vmem [shape: f32[1,64], index: 2, kind: input, shape index: {}]   ;;  %s3792_s3 = inlined_call_operand.vmem [shape: bf16[2,128,64], index: 3, kind: output, shape index: {}]  }
   0x1 LB: > { %s2398_s13 = sadd.s32 4294967295, %s3221_s12   ;;  %p2402_p0 = scmp.ge.s32.totalorder %s3221_s12, 1  ;;  %s3221_s12 = sphi %s3243_s12, %s13_s12  }
   0x2   : > { %p137_p1 = scmp.lt.s32.totalorder %s3221_s12, 3 }
   0x4   : > { %p138_p2 = pnand %p2402_p0, %p137_p1 }
   0x5   : > { %v3129_v0 = vld [vmem:[%s3790_s1 + $0x20] sm:$0xff] (!%p138_p2)   ;;  %p161_p3 = scmp.lt.s32.totalorder (!%p138_p2), %s2398_s13, 1  ;;  %v3131_v2 = vld [vmem:[%s3790_s1 + $0x28] sm:$0xff] (!%p138_p2)   ;;  %v3133_v4 = vld [vmem:[%s3790_s1 + $0x30] sm:$0xff] (!%p138_p2)   ;;  %vm342_vm0 = vcmask (!%p138_p2), 523264   ;;  %vm614_vm2 = vcmask (!%p138_p2), 1046528  }
   0x6   : > { %141 = sbr.rel (%p138_p2) target bundleno = 390 (0x186), region = 32  ;;  %v3257_v1 = vld [vmem:[%s3790_s1 + $0x80] sm:$0xff] (!%p138_p2)   ;;  %2768 = vmatprep.subr.bf16.mxu1 (!%p138_p2), %v3129_v0  ;;  %v3268_v3 = vld [vmem:[%s3790_s1 + $0x88] sm:$0xff] (!%p138_p2)   ;;  %v3279_v5 = vld [vmem:[%s3790_s1 + $0x90] sm:$0xff] (!%p138_p2)   ;;  %vm249_vm1 = vsmask.f32 (!%p138_p2), 7424 }
   0x7   : > { %2864 = vmatprep.subr.bf16.mxu0 (!%p138_p2), %v3257_v1  ;;  %2769 = vmatpush3.bf16.msra.mxu1 (!%p138_p2), %v3129_v0  ;;  %v3135_v6 = vld [vmem:[%s3790_s1 + $0x38] sm:$0xff] (!%p138_p2)   ;;  %v3142_v25 = vld [vmem:[%s3790_s1] sm:$0xff] (!%p138_p2)   ;;  %v3145_v41 = vld [vmem:[%s3790_s1 + $0xa8] sm:$0xff] (!%p138_p2)   ;;  %vm2326_vm3 = vcmask (!%p138_p2), 519168  }
   0x8   : > { %2865 = vmatpush3.bf16.msra.mxu0 (!%p138_p2), %v3257_v1  ;;  %2770 = vmatprep.subr.bf16.mxu1 (!%p138_p2), %v3131_v2  ;;  %v3292_v7 = vld [vmem:[%s3790_s1 + $0x98] sm:$0xff] (!%p138_p2)   ;;  %v3144_v33 = vld [vmem:[%s3790_s1 + $0xa0] sm:$0xff] (!%p138_p2)   ;;  %v3149_v54 = vld [vmem:[%s3790_s1 + $0x8] sm:$0xff] (!%p138_p2)  }
   0x9   : > { %2866 = vmatprep.subr.bf16.mxu0 (!%p138_p2), %v3268_v3  ;;  %v3151_v0 = vld [vmem:[%s3790_s1 + $0xb0] sm:$0xff] (!%p138_p2)  }
   0xb   : > { %2771 = vmatpush3.bf16.msra.mxu1 (!%p138_p2), %v3131_v2 }
   0xc   : > { %2867 = vmatpush3.bf16.msra.mxu0 (!%p138_p2), %v3268_v3  ;;  %2772 = vmatprep.subr.bf16.mxu1 (!%p138_p2), %v3133_v4 }
   0xd   : > { %s3794_s13 = smov (!%p161_p3, %s2398_s13), 1  ;;  %2868 = vmatprep.subr.bf16.mxu0 %v3279_v5 }
   0xe   : > { %s3120_s24 = smul.u32 88, %s3794_s13  ;;  %s2643_s26 = sshll.u32 %s3794_s13, 6 }
   0xf   : > { %2773 = vmatpush3.bf16.msra.mxu1 %v3133_v4  ;;  %s3739_s29 = scalar_lea.vmem %s3792_s3, %s2643_s26 }
  0x10   : > { %s3287_s4 = scalar_lea.vmem %s3789_s0, %s3120_s24  ;;  %2869 = vmatpush3.bf16.msra.mxu0 %v3279_v5  ;;  %2774 = vmatprep.subr.bf16.mxu1 %v3135_v6 }
  0x11   : > { %v172_v8 = vld [vmem:[%s3287_s4] sm:$0xf]  ;;  %v3297_v9 = vld [vmem:[%s3287_s4 + $0x4] sm:$0xf]  ;;  %v3304_v11 = vld [vmem:[%s3287_s4 + $0x8] sm:$0xff]   ;;  %2870 = vmatprep.subr.bf16.mxu0 %v3292_v7 }
  0x12   : > { %v3301_v10 = vcombine.low %v172_v8, %v3297_v9  ;;  %v3307_v12 = vld [vmem:[%s3287_s4 + $0x10] sm:$0xff]   ;;  %v1019_v13 = vld [vmem:[%s3287_s4 + $0x8] sm:$0xf]  ;;  %v3311_v14 = vld [vmem:[%s3287_s4 + $0xc] sm:$0xf]  ;;  %v258_v17 = vshll.u32 %v3304_v11, 16 }
  0x13   : > { %v262_v18 = vshrl.u32 %v3304_v11, 16  ;;  %v2504_v19 = vcombine.low %v1019_v13, %v3311_v14  ;;  %v1096_v20 = vshll.u32 %v3307_v12, 16  ;;  %v1100_v21 = vshrl.u32 %v3307_v12, 16  ;;  %v3323_v24 = vld [vmem:[%s3287_s4 + $0x10] sm:$0xff]   ;;  %v3329_v29 = vld [vmem:[%s3287_s4 + $0x18] sm:$0xff]   ;;  %2775 = vmatpush3.bf16.msra.mxu1 %v3135_v6  ;;  %v3348_v45 = vld [vmem:[%s3287_s4 + $0x20] sm:$0xff]  }
  0x14   : > { %v251_v15 = vshrl.u32 %v3301_v10, 16  ;;  %v253_v16 = vshll.u32 %v3301_v10, 16  ;;  %v260_v23 = vrot.slane %v258_v17, 1  ;;  %v266_v32 = vshll.u32 %v3323_v24, 16  ;;  %2871 = vmatpush3.bf16.msra.mxu0 %v3292_v7  ;;  %2792 = vmatprep.subr.bf16.mxu1 %v3142_v25  ;;  %v3343_v42 = vld [vmem:[%s3287_s4 + $0x18] sm:$0xff]   ;;  %v3358_v52 = vld [vmem:[%s3287_s4 + $0x20] sm:$0xff]  }
  0x15   : > { %v1089_v26 = vshrl.u32 %v2504_v19, 16  ;;  %v1091_v27 = vshll.u32 %v2504_v19, 16  ;;  %v1098_v28 = vrot.slane %v1096_v20, 1  ;;  %v1104_v36 = vshll.u32 %v3329_v29, 16  ;;  %2888 = vmatprep.subr.bf16.mxu0 %v3144_v33  ;;  %v3366_v57 = vld [vmem:[%s3287_s4 + $0x28] sm:$0xff]  }
  0x16   : > { %v255_v22 = vrot.slane %v253_v16, 1  ;;  %v264_v31 = vor.u32 %v262_v18, %v260_v23  ;;  %v268_v38 = vrot.slane %v266_v32, 1  ;;  %v270_v44 = vshrl.u32 %v3323_v24, 16  ;;  %v3378_v8 = vld [vmem:[%s3287_s4 + $0x28] sm:$0xff]  }
  0x17   : > { %v1093_v34 = vrot.slane %v1091_v27, 1  ;;  %v1102_v35 = vor.u32 %v1100_v21, %v1098_v28  ;;  %v1106_v40 = vrot.slane %v1104_v36, 1  ;;  %v274_v48 = vshll.u32 %v3343_v42, 16  ;;  %v1317_v19 = vld [vmem:[%s3287_s4 + $0x8] sm:$0xe] }
  0x18   : > { %v256_v30 = vor.u32 %v255_v22, %v251_v15  ;;  %v269_v43 = vsel %vm249_vm1, %v264_v31, %v268_v38  ;;  %v1108_v49 = vshrl.u32 %v3329_v29, 16  ;;  %v272_v50 = vor.u32 %v270_v44, %v268_v38  ;;  %v3152_v15 = vld [vmem:[%s3790_s1 + $0xb8] sm:$0xff]  }
  0x19   : > { %v1094_v39 = vor.u32 %v1093_v34, %v1089_v26  ;;  %v1107_v47 = vsel %vm249_vm1, %v1102_v35, %v1106_v40  ;;  %v1112_v51 = vshll.u32 %v3348_v45, 16  ;;  %v278_v53 = vshrl.u32 %v3343_v42, 16  ;;  %v3410_v34 = vld [vmem:[%s3287_s4 + $0x38] sm:$0xff]  }
  0x1a   : > { %v261_v37 = vsel %vm249_vm1, %v256_v30, %v260_v23  ;;  %v276_v55 = vrot.slane %v274_v48, 1  ;;  %v1110_v56 = vor.u32 %v1108_v49, %v1106_v40  ;;  %v282_v59 = vshll.u32 %v3358_v52, 16 }
  0x1b   : > { %2776 = vmatprep.mubr.msk.bf16.mxu1 %vm342_vm0, %v261_v37  ;;  %v1099_v46 = vsel %vm249_vm1, %v1094_v39, %v1098_v28  ;;  %v1114_v58 = vrot.slane %v1112_v51, 1  ;;  %v1116_v60 = vshrl.u32 %v3348_v45, 16  ;;  %v1120_v63 = vshll.u32 %v3366_v57, 16  ;;  %v3159_v39 = vld [vmem:[%s3287_s4 + $0x40] ss:$0 sps:$4 sm:$0x11]  }
  0x1c   : > { %2777 = vmatmul.mubr.msk.bf16.vlgmr.msra.gmra.mrb[0].mxu1 %vm342_vm0, %v269_v43  ;;  %2872 = vmatprep.mubr.msk.bf16.mxu0 %vm342_vm0, %v1099_v46  ;;  %v277_v61 = vsel %vm249_vm1, %v272_v50, %v276_v55  ;;  %v280_v62 = vor.u32 %v278_v53, %v276_v55  ;;  %v284_v4 = vrot.slane %v282_v59, 1  ;;  %v286_v16 = vshrl.u32 %v3358_v52, 16  ;;  %v3162_v50 = vld [vmem:[%s3287_s4 + $0x30] sm:$0xff]   ;;  %v3163_v55 = vld [vmem:[%s3790_s1 + $0x40] sm:$0xff]  }
  0x1d   : > { %2793 = vmatpush3.bf16.msra.mxu1 %v3142_v25  ;;  %2873 = vmatmul.mubr.msk.bf16.vlgmr.msra.gmra.mrb[0].mxu0 %vm342_vm0, %v1107_v47  ;;  %v1115_v2 = vsel %vm249_vm1, %v1110_v56, %v1114_v58  ;;  %v1118_v6 = vor.u32 %v1116_v60, %v1114_v58  ;;  %v3381_v13 = vrot.slane %v1120_v63, 1  ;;  %v290_v18 = vshll.u32 %v3378_v8, 16  ;;  %v3396_v25 = vld [vmem:[%s3287_s4 + $0x30] sm:$0xff]   ;;  %v3446_v63 = vld [vmem:[%s3287_s4 + $0x40] sm:$0xff]  }
  0x1e   : > { %2889 = vmatpush3.bf16.msra.mxu0 %v3144_v33  ;;  %2794 = vmatprep.subr.bf16.mxu1 %v3149_v54  ;;  %v285_v17 = vsel %vm249_vm1, %v280_v62, %v284_v4  ;;  %v1331_v20 = vrot.slane %v3307_v12, 1  ;;  %v288_v22 = vor.u32 %v286_v16, %v284_v4  ;;  %v2533_v23 = vcombine.low %v1317_v19, %v3311_v14  ;;  %v3156_v12 = vld [vmem:[%s3790_s1 + $0x10] sm:$0xff]   ;;  %v3157_v14 = vld [vmem:[%s3790_s1 + $0xc0] sm:$0xff]  }
  0x1f   : > { %2890 = vmatprep.subr.bf16.mxu0 %v3145_v41  ;;  %2780 = vmatprep.mubr.msk.bf16.mxu1 %vm342_vm0, %v277_v61  ;;  %v1123_v21 = vsel %vm249_vm1, %v1118_v6, %v3381_v13  ;;  %v294_v26 = vshrl.u32 %v3378_v8, 16  ;;  %v292_v27 = vrot.slane %v290_v18, 1  ;;  %v1333_v28 = vrot.slane %v3329_v29, 1  ;;  %v3165_v59 = vld [vmem:[%s3790_s1 + $0xd0] sm:$0xff]   ;;  %v3164_v61 = vld [vmem:[%s3287_s4 + $0x38] sm:$0xff]   ;;  %v3173_v19 = vld [vmem:[%s3790_s1 + $0xe0] sm:$0xff]  }
  0x20   : > { %2876 = vmatprep.mubr.msk.bf16.mxu0 %vm342_vm0, %v1115_v2  ;;  %v1330_v30 = vrot.slane %v2533_v23, 1  ;;  %v298_v31 = vshll.u32 %v3396_v25, 16  ;;  %v302_v35 = vshrl.u32 %v3396_v25, 16  ;;  %v1335_v37 = vrot.slane %v3348_v45, 1  ;;  %v3161_v45 = vld [vmem:[%s3790_s1 + $0xc8] sm:$0xff]   ;;  %v3169_v2 = vld [vmem:[%s3790_s1 + $0xd8] sm:$0xff]  }
  0x21   : > { %2795 = vmatpush3.bf16.msra.mxu1 %v3149_v54  ;;  %v293_v32 = vsel %vm249_vm1, %v288_v22, %v292_v27  ;;  %v296_v33 = vor.u32 %v294_v26, %v292_v27  ;;  %v306_v38 = vshll.u32 %v3410_v34, 16  ;;  %v310_v40 = vshrl.u32 %v3410_v34, 16  ;;  %v3167_v26 = vld [vmem:[%s3790_s1 + $0x48] sm:$0xff]  }
  0x22   : > { %2891 = vmatpush3.bf16.msra.mxu0 %v3145_v41  ;;  %2796 = vmatprep.subr.bf16.mxu1 %v3156_v12  ;;  %v1332_v29 = vsel %vm614_vm2, %v1330_v30, %v1331_v20  ;;  %v300_v36 = vrot.slane %v298_v31, 1  ;;  %v3160_v41 = vld [vmem:[%s3790_s1 + $0x18] sm:$0xff]   ;;  %v1334_v46 = vsel %vm614_vm2, %v1331_v20, %v1333_v28  ;;  %v314_v48 = vshll.u32 %v3159_v39, 16  ;;  %v3485_v30 = vld [vmem:[%s3287_s4 + $0x48] ss:$0 sps:$4 sm:$0x11]  }
  0x23   : > { %2892 = vmatprep.subr.bf16.mxu0 %v3151_v0  ;;  %v308_v47 = vrot.slane %v306_v38, 1  ;;  %v1336_v49 = vsel %vm614_vm2, %v1333_v28, %v1335_v37  ;;  %v1337_v56 = vrot.slane %v3366_v57, 1  ;;  %v1339_v58 = vrot.slane %v3162_v50, 1 }
  0x24   : > { %2781 = vmatmul.mubr.msk.bf16.gmra.mrb[4].mxu1 %vm342_vm0, %v285_v17  ;;  %v301_v43 = vsel %vm249_vm1, %v296_v33, %v300_v36  ;;  %v304_v44 = vor.u32 %v302_v35, %v300_v36  ;;  %v316_v54 = vrot.slane %v314_v48, 1  ;;  %v622_v4 = vrot.slane %v3358_v52, 1  ;;  %v3180_v48 = vld [vmem:[%s3790_s1 + $0x60] sm:$0xff]  }
  0x25   : > { %2877 = vmatmul.mubr.msk.bf16.gmra.mrb[4].mxu0 %vm342_vm0, %v1123_v21  ;;  %2784 = vmatprep.mubr.msk.bf16.mxu1 %vm342_vm0, %v293_v32  ;;  %v312_v53 = vor.u32 %v310_v40, %v308_v47  ;;  %v1338_v62 = vsel %vm614_vm2, %v1335_v37, %v1337_v56  ;;  %v624_v6 = vrot.slane %v3378_v8, 1  ;;  %v626_v16 = vrot.slane %v3396_v25, 1 }
  0x26   : > { %2893 = vmatpush3.bf16.msra.mxu0 %v3151_v0  ;;  %2896 = vmatprep.mubr.msk.bf16.mxu0 %vm342_vm0, %v1332_v29  ;;  %v309_v51 = vsel %vm249_vm1, %v304_v44, %v308_v47  ;;  %v1340_v0 = vsel %vm614_vm2, %v1337_v56, %v1339_v58  ;;  %v1343_v17 = vrot.slane %v3446_v63, 1  ;;  %v630_v21 = vrot.slane %v3159_v39, 1 }
  0x27   : > { %2894 = vmatprep.subr.bf16.mxu0 %v3152_v15  ;;  %2797 = vmatpush3.bf16.msra.mxu1 %v3156_v12  ;;  %v317_v60 = vsel %vm249_vm1, %v312_v53, %v316_v54  ;;  %v3464_v18 = vsel %vm614_vm2, %v622_v4, %v624_v6  ;;  %v3471_v20 = vsel %vm614_vm2, %v624_v6, %v626_v16  ;;  %v1124_v23 = vshrl.u32 %v3366_v57, 16  ;;  %v3174_v53 = vld [vmem:[%s3287_s4 + $0x20] sm:$0xff]   ;;  %v3177_v54 = vld [vmem:[%s3790_s1 + $0xe8] sm:$0xff]  }
  0x28   : > { %2798 = vmatprep.subr.bf16.mxu1 %v3160_v41  ;;  %v1128_v12 = vshll.u32 %v3162_v50, 16  ;;  %v1136_v33 = vshll.u32 %v3164_v61, 16  ;;  %v1345_v36 = vrot.slane %v3485_v30, 1  ;;  %v1140_v38 = vshrl.u32 %v3164_v61, 16 }
  0x29   : > { %v1126_v31 = vor.u32 %v1124_v23, %v3381_v13  ;;  %v3171_v13 = vld [vmem:[%s3790_s1 + $0x50] sm:$0xff]   ;;  %v1144_v40 = vshll.u32 %v3446_v63, 16  ;;  %v616_v56 = vrot.slane %v3304_v11, 1 }
  0x2a   : > { %2895 = vmatpush3.bf16.msra.mxu0 %v3152_v15  ;;  %v1341_v15 = vrot.slane %v3164_v61, 1  ;;  %v1130_v32 = vrot.slane %v1128_v12, 1  ;;  %v1138_v37 = vrot.slane %v1136_v33, 1  ;;  %v1346_v44 = vsel %vm614_vm2, %v1343_v17, %v1345_v36  ;;  %v3193_v36 = vld [vmem:[%s3790_s1 + $0x78] sm:$0xff]  }
  0x2b   : > { %2912 = vmatprep.subr.bf16.mxu0 %v3157_v14  ;;  %2799 = vmatpush3.bf16.msra.mxu1 %v3160_v41  ;;  %v3175_v41 = vld [vmem:[%s3790_s1 + $0x58] sm:$0xff]  }
  0x2c   : > { %2785 = vmatmul.mubr.msk.bf16.gmra.mrb[8].mxu1 %vm342_vm0, %v301_v43  ;;  %2816 = vmatprep.subr.bf16.mxu1 %v3163_v55  ;;  %v1342_v28 = vsel %vm614_vm2, %v1339_v58, %v1341_v15  ;;  %v1344_v57 = vsel %vm614_vm2, %v1341_v15, %v1343_v17  ;;  %v3498_v35 = vsel %vm249_vm1, %v1126_v31, %v1130_v32  ;;  %v3542_v58 = vld [vmem:[%s3287_s4 + $0x14] sm:$0xf]  ;;  %v3191_v15 = vld [vmem:[%s3790_s1 + $0x100] sm:$0xff]   ;;  %v1152_v17 = vshll.u32 %v3485_v30, 16 }
  0x2d   : > { %2897 = vmatmul.mubr.msk.bf16.vlgmr.msra.gmra.mrb[0].mxu0 %vm342_vm0, %v1334_v46  ;;  %2788 = vmatprep.mubr.msk.bf16.mxu1 %vm342_vm0, %v309_v51  ;;  %v1142_v43 = vor.u32 %v1140_v38, %v1138_v37  ;;  %v1146_v46 = vrot.slane %v1144_v40, 1  ;;  %v3581_v30 = vld [vmem:[%s3287_s4 + $0x20] sm:$0xff]  }
  0x2e   : > { %2913 = vmatpush3.bf16.msra.mxu0 %v3157_v14  ;;  %2900 = vmatprep.mubr.msk.bf16.mxu0 %vm342_vm0, %v1336_v49  ;;  %v1132_v14 = vshrl.u32 %v3162_v50, 16  ;;  %v601_v49 = vld [vmem:[%s3287_s4] sm:$0xe]  ;;  %v3172_v50 = vld [vmem:[%s3287_s4 + $0x18] sm:$0xff]   ;;  %v1154_v12 = vrot.slane %v1152_v17, 1 }
  0x2f   : > { %2914 = vmatprep.subr.bf16.mxu0 %v3161_v45  ;;  %v3516_v47 = vsel %vm249_vm1, %v1142_v43, %v1146_v46  ;;  %v2455_v51 = vcombine.low %v601_v49, %v3297_v9  ;;  %v3182_v9 = vld [vmem:[%s3790_s1 + $0xf0] sm:$0xff]  }
  0x30   : > { %v1134_v29 = vor.u32 %v1132_v14, %v1130_v32  ;;  %v3588_v32 = vld [vmem:[%s3287_s4 + $0x28] sm:$0xff]  }
  0x31   : > { %v1831_v49 = vshrl.u32 %v3588_v32, 16 }
  0x32   : > { %2915 = vmatpush3.bf16.msra.mxu0 %v3161_v45  ;;  %v3503_v39 = vsel %vm249_vm1, %v1134_v29, %v1138_v37  ;;  %v3170_v45 = vld [vmem:[%s3287_s4 + $0x10] sm:$0xff]   ;;  %v1819_v29 = vshll.u32 %v3581_v30, 16 }
  0x33   : > { %2916 = vmatprep.subr.bf16.mxu0 %v3165_v59 }
  0x34   : > { %2789 = vmatmul.mubr.msk.bf16.gmra.mrb[12].mxu1 %vm342_vm0, %v317_v60  ;;  %v3179_v60 = vld [vmem:[%s3287_s4 + $0x30] sm:$0xff]   ;;  %v1821_v40 = vrot.slane %v1819_v29, 1  ;;  %v3206_v29 = vld [vmem:[%s3287_s4 + $0x28] sm:$0xff]  }
  0x35   : > { %2800 = vmatprep.mubr.msk.bf16.mxu1 %vm342_vm0, %v3301_v10  ;;  %2901 = vmatmul.mubr.msk.bf16.gmra.mrb[4].mxu0 %vm342_vm0, %v1338_v62  ;;  %v628_v10 = vrot.slane %v3410_v34, 1  ;;  %v618_v62 = vrot.slane %v3323_v24, 1 }
  0x36   : > { %2904 = vmatprep.mubr.msk.bf16.mxu0 %vm342_vm0, %v1340_v0  ;;  %2917 = vmatpush3.bf16.msra.mxu0 %v3165_v59  ;;  %v3176_v59 = vld [vmem:[%s3287_s4 + $0x28] sm:$0xff]   ;;  %v620_v0 = vrot.slane %v3343_v42, 1 }
  0x37   : > { %2918 = vmatprep.subr.bf16.mxu0 %v3169_v2  ;;  %v3474_v22 = vsel %vm614_vm2, %v626_v16, %v628_v10  ;;  %v3481_v27 = vsel %vm614_vm2, %v628_v10, %v630_v21  ;;  %v619_v16 = vsel %vm614_vm2, %v616_v56, %v618_v62  ;;  %v3184_v10 = vld [vmem:[%s3790_s1 + $0x68] sm:$0xff]  }
  0x38   : > { %v623_v33 = vsel %vm614_vm2, %v620_v0, %v622_v4  ;;  %v1827_v4 = vshll.u32 %v3588_v32, 16 }
  0x3a   : > { %2919 = vmatpush3.bf16.msra.mxu0 %v3169_v2  ;;  %v1148_v2 = vshrl.u32 %v3446_v63, 16 }
  0x3b   : > { %2936 = vmatprep.subr.bf16.mxu0 %v3173_v19 }
  0x3c   : > { %2801 = vmatmul.mubr.msk.bf16.vlgmr.msra.gmra.mrb[0].mxu1 %vm342_vm0, %v3304_v11  ;;  %v3186_v11 = vld [vmem:[%s3790_s1 + $0xf8] sm:$0xff]   ;;  %v1150_v63 = vor.u32 %v1148_v2, %v1146_v46 }
  0x3d   : > { %2817 = vmatpush3.bf16.msra.mxu1 %v3163_v55  ;;  %2804 = vmatprep.mubr.msk.bf16.mxu1 %vm342_vm0, %v3323_v24  ;;  %v615_v55 = vrot.slane %v2455_v51, 1  ;;  %v3181_v24 = vld [vmem:[%s3287_s4 + $0x38] sm:$0xff]   ;;  %v3195_v51 = vld [vmem:[%s3790_s1 + $0x108] sm:$0xff]  }
  0x3e   : > { %2905 = vmatmul.mubr.msk.bf16.gmra.mrb[8].mxu0 %vm342_vm0, %v1342_v28  ;;  %2818 = vmatprep.subr.bf16.mxu1 %v3167_v26  ;;  %v3189_v28 = vld [vmem:[%s3790_s1 + $0x70] sm:$0xff]   ;;  %v3585_v31 = vsel %vm249_vm1, %v1150_v63, %v1154_v12  ;;  %v3611_v46 = vld [vmem:[%s3287_s4 + $0x38] sm:$0xff]   ;;  %v3211_v12 = vld [vmem:[%s3790_s1 + $0x80] sm:$0xff]  }
  0x3f   : > { %2908 = vmatprep.mubr.msk.bf16.mxu0 %vm342_vm0, %v1344_v57  ;;  %v3205_v2 = vld [vmem:[%s3790_s1 + $0x118] sm:$0xff]  }
  0x41   : > { %2819 = vmatpush3.bf16.msra.mxu1 %v3167_v26 }
  0x42   : > { %2820 = vmatprep.subr.bf16.mxu1 %v3171_v13 }
  0x44   : > { %2805 = vmatmul.mubr.msk.bf16.gmra.mrb[4].mxu1 %vm342_vm0, %v3343_v42  ;;  %v621_v42 = vsel %vm614_vm2, %v618_v62, %v620_v0 }
  0x45   : > { %2808 = vmatprep.mubr.msk.bf16.mxu1 %vm342_vm0, %v3358_v52  ;;  %2821 = vmatpush3.bf16.msra.mxu1 %v3171_v13  ;;  %v3185_v13 = vld [vmem:[%s3287_s4 + $0x48] sm:$0xff]   ;;  %v1823_v52 = vshrl.u32 %v3581_v30, 16 }
  0x46   : > { %2909 = vmatmul.mubr.msk.bf16.gmra.mrb[12].mxu0 %vm342_vm0, %v1346_v44  ;;  %2822 = vmatprep.subr.bf16.mxu1 %v3175_v41 }
  0x47   : > { %2920 = vmatprep.mubr.msk.bf16.mxu0 %vm342_vm0, %v3170_v45  ;;  %v1825_v44 = vor.u32 %v1823_v52, %v1821_v40  ;;  %v1829_v45 = vrot.slane %v1827_v4, 1  ;;  %v3209_v52 = vld [vmem:[%s3287_s4 + $0x38] sm:$0xff]  }
  0x48   : > { %v3214_v4 = vld [vmem:[%s3790_s1 + $0x98] sm:$0xff]  }
  0x49   : > { %2823 = vmatpush3.bf16.msra.mxu1 %v3175_v41  ;;  %v3607_v41 = vld [vmem:[%s3287_s4 + $0x30] sm:$0xff]  }
  0x4a   : > { %2840 = vmatprep.subr.bf16.mxu1 %v3180_v48 }
  0x4c   : > { %2809 = vmatmul.mubr.msk.bf16.gmra.mrb[8].mxu1 %vm342_vm0, %v3378_v8  ;;  %v1734_v8 = vld [vmem:[%s3287_s4 + $0x10] sm:$0xf] }
  0x4d   : > { %2812 = vmatprep.mubr.msk.bf16.mxu1 %vm342_vm0, %v3396_v25  ;;  %v617_v25 = vsel %vm614_vm2, %v615_v55, %v616_v56  ;;  %v2582_v61 = vcombine.low %v1734_v8, %v3542_v58  ;;  %v3629_v55 = vld [vmem:[%s3287_s4 + $0x40] sm:$0xff]   ;;  %v3200_v8 = vld [vmem:[%s3790_s1 + $0x110] sm:$0xff]  }
  0x4e   : > { %2921 = vmatmul.mubr.msk.bf16.vlgmr.msra.gmra.mrb[0].mxu0 %vm342_vm0, %v3172_v50  ;;  %v1830_v50 = vsel %vm249_vm1, %v1825_v44, %v1829_v45  ;;  %v1855_v62 = vshrl.u32 %v3629_v55, 16 }
  0x4f   : > { %2937 = vmatpush3.bf16.msra.mxu0 %v3173_v19  ;;  %2924 = vmatprep.mubr.msk.bf16.mxu0 %vm342_vm0, %v3174_v53  ;;  %v1806_v6 = vshll.u32 %v2582_v61, 16  ;;  %v3183_v19 = vld [vmem:[%s3287_s4 + $0x40] sm:$0xff]   ;;  %v1804_v21 = vshrl.u32 %v2582_v61, 16  ;;  %v1839_v53 = vshrl.u32 %v3607_v41, 16 }
  0x50   : > { %2938 = vmatprep.subr.bf16.mxu0 %v3177_v54 }
  0x51   : > { %v1808_v23 = vrot.slane %v1806_v6, 1 }
  0x53   : > { %2939 = vmatpush3.bf16.msra.mxu0 %v3177_v54  ;;  %v1809_v14 = vor.u32 %v1808_v23, %v1804_v21  ;;  %v1843_v54 = vshll.u32 %v3611_v46, 16 }
  0x54   : > { %2813 = vmatmul.mubr.msk.bf16.gmra.mrb[12].mxu1 %vm342_vm0, %v3410_v34  ;;  %2940 = vmatprep.subr.bf16.mxu0 %v3182_v9  ;;  %v3559_v34 = vld [vmem:[%s3287_s4 + $0x18] sm:$0xff]  }
  0x55   : > { %2824 = vmatprep.mubr.msk.bf16.mxu1 %vm342_vm0, %v617_v25  ;;  %v1811_v26 = vshll.u32 %v3559_v34, 16  ;;  %v1815_v37 = vshrl.u32 %v3559_v34, 16  ;;  %v3196_v25 = vld [vmem:[%s3287_s4 + $0x8] sm:$0xff]  }
  0x56   : > { %2925 = vmatmul.mubr.msk.bf16.gmra.mrb[4].mxu0 %vm342_vm0, %v3176_v59  ;;  %v3636_v59 = vld [vmem:[%s3287_s4 + $0x48] sm:$0xff]  }
  0x57   : > { %2928 = vmatprep.mubr.msk.bf16.mxu0 %vm342_vm0, %v3179_v60  ;;  %2941 = vmatpush3.bf16.msra.mxu0 %v3182_v9  ;;  %v1813_v57 = vrot.slane %v1811_v26, 1  ;;  %v1845_v9 = vrot.slane %v1843_v54, 1  ;;  %v1859_v0 = vshll.u32 %v3636_v59, 16  ;;  %v1863_v63 = vshrl.u32 %v3636_v59, 16 }
  0x58   : > { %2942 = vmatprep.subr.bf16.mxu0 %v3186_v11 }
  0x59   : > { %v1814_v38 = vsel %vm249_vm1, %v1809_v14, %v1813_v57  ;;  %v1817_v43 = vor.u32 %v1815_v37, %v1813_v57  ;;  %v1861_v17 = vrot.slane %v1859_v0, 1  ;;  %v3203_v57 = vld [vmem:[%s3287_s4 + $0x20] sm:$0xff]   ;;  %v3208_v37 = vld [vmem:[%s3287_s4 + $0x30] sm:$0xff]  }
  0x5b   : > { %2943 = vmatpush3.bf16.msra.mxu0 %v3186_v11  ;;  %v1847_v11 = vshrl.u32 %v3611_v46, 16 }
  0x5c   : > { %2825 = vmatmul.mubr.msk.bf16.vlgmr.msra.gmra.mrb[0].mxu1 %vm342_vm0, %v619_v16  ;;  %2960 = vmatprep.subr.bf16.mxu0 %v3191_v15  ;;  %v3198_v16 = vld [vmem:[%s3287_s4 + $0x10] sm:$0xff]  }
  0x5d   : > { %2841 = vmatpush3.bf16.msra.mxu1 %v3180_v48  ;;  %2828 = vmatprep.mubr.msk.bf16.mxu1 %vm342_vm0, %v621_v42  ;;  %v1835_v48 = vshll.u32 %v3607_v41, 16  ;;  %v3201_v42 = vld [vmem:[%s3287_s4 + $0x18] sm:$0xff]  }
  0x5e   : > { %2929 = vmatmul.mubr.msk.bf16.gmra.mrb[8].mxu0 %vm342_vm0, %v3181_v24  ;;  %2842 = vmatprep.subr.bf16.mxu1 %v3184_v10 }
  0x5f   : > { %2932 = vmatprep.mubr.msk.bf16.mxu0 %vm342_vm0, %v3183_v19 }
  0x61   : > { %2843 = vmatpush3.bf16.msra.mxu1 %v3184_v10  ;;  %v2032_v10 = vld [vmem:[%s3287_s4 + $0x10] sm:$0xe] }
  0x62   : > { %2844 = vmatprep.subr.bf16.mxu1 %v3189_v28  ;;  %v2611_v26 = vcombine.low %v2032_v10, %v3542_v58  ;;  %v2046_v58 = vrot.slane %v3559_v34, 1  ;;  %v3213_v34 = vld [vmem:[%s3790_s1 + $0x90] sm:$0xff]  }
  0x64   : > { %2829 = vmatmul.mubr.msk.bf16.gmra.mrb[4].mxu1 %vm342_vm0, %v623_v33  ;;  %v2045_v33 = vrot.slane %v2611_v26, 1 }
  0x65   : > { %2832 = vmatprep.mubr.msk.bf16.mxu1 %vm342_vm0, %v3464_v18  ;;  %2845 = vmatpush3.bf16.msra.mxu1 %v3189_v28  ;;  %v1822_v18 = vsel %vm249_vm1, %v1817_v43, %v1821_v40  ;;  %v1865_v28 = vor.u32 %v1863_v63, %v1861_v17 }
  0x66   : > { %2933 = vmatmul.mubr.msk.bf16.gmra.mrb[12].mxu0 %vm342_vm0, %v3185_v13  ;;  %2846 = vmatprep.subr.bf16.mxu1 %v3193_v36  ;;  %v3212_v13 = vld [vmem:[%s3790_s1 + $0x88] sm:$0xff]  }
  0x67   : > { %2944 = vmatprep.mubr.msk.bf16.mxu0 %vm342_vm0, %v1814_v38  ;;  %v2050_v38 = vrot.slane %v3588_v32, 1  ;;  %v2054_v32 = vrot.slane %v3611_v46, 1 }
  0x69   : > { %2847 = vmatpush3.bf16.msra.mxu1 %v3193_v36  ;;  %v2047_v36 = vsel %vm614_vm2, %v2045_v33, %v2046_v58 }
  0x6a   : > { %2984 = vmatprep.subr.bf16.mxu1 %v3257_v1  ;;  %v1837_v1 = vrot.slane %v1835_v48, 1  ;;  %v2056_v48 = vrot.slane %v3629_v55, 1 }
  0x6c   : > { %2833 = vmatmul.mubr.msk.bf16.gmra.mrb[8].mxu1 %vm342_vm0, %v3471_v20  ;;  %v1833_v20 = vor.u32 %v1831_v49, %v1829_v45  ;;  %v1841_v56 = vor.u32 %v1839_v53, %v1837_v1 }
  0x6d   : > { %2836 = vmatprep.mubr.msk.bf16.mxu1 %vm342_vm0, %v3474_v22  ;;  %v1851_v22 = vshll.u32 %v3629_v55, 16 }
  0x6e   : > { %2945 = vmatmul.mubr.msk.bf16.vlgmr.msra.gmra.mrb[0].mxu0 %vm342_vm0, %v1822_v18  ;;  %v1838_v60 = vsel %vm249_vm1, %v1833_v20, %v1837_v1  ;;  %v1846_v61 = vsel %vm249_vm1, %v1841_v56, %v1845_v9  ;;  %v2057_v18 = vsel %vm614_vm2, %v2054_v32, %v2056_v48  ;;  %v3730_v56 = vld [vmem:[%s3791_s2] ss:$0 sm:$0xff] }
  0x6f   : > { %2961 = vmatpush3.bf16.msra.mxu0 %v3191_v15  ;;  %2948 = vmatprep.mubr.msk.bf16.mxu0 %vm342_vm0, %v1830_v50  ;;  %v1853_v6 = vrot.slane %v1851_v22, 1  ;;  %v3654_v15 = vld [vmem:[%s3287_s4 + $0x50] ss:$0 sps:$4 sm:$0x11]  }
  0x70   : > { %2962 = vmatprep.subr.bf16.mxu0 %v3195_v51  ;;  %v1867_v21 = vshll.u32 %v3654_v15, 16 }
  0x71   : > { %v1857_v24 = vor.u32 %v1855_v62, %v1853_v6 }
  0x72   : > { %v1869_v14 = vrot.slane %v1867_v21, 1 }
  0x73   : > { %2963 = vmatpush3.bf16.msra.mxu0 %v3195_v51  ;;  %v1862_v23 = vsel %vm249_vm1, %v1857_v24, %v1861_v17 }
  0x74   : > { %2837 = vmatmul.mubr.msk.bf16.gmra.mrb[12].mxu1 %vm342_vm0, %v3481_v27  ;;  %2964 = vmatprep.subr.bf16.mxu0 %v3200_v8  ;;  %v1849_v27 = vor.u32 %v1847_v11, %v1845_v9 }
  0x75   : > { %2848 = vmatprep.mubr.msk.bf16.mxu1 %vm342_vm0, %v3196_v25 }
  0x76   : > { %2949 = vmatmul.mubr.msk.bf16.gmra.mrb[4].mxu0 %vm342_vm0, %v1838_v60  ;;  %v1854_v19 = vsel %vm249_vm1, %v1849_v27, %v1853_v6 }
  0x77   : > { %2952 = vmatprep.mubr.msk.bf16.mxu0 %vm342_vm0, %v1846_v61  ;;  %2965 = vmatpush3.bf16.msra.mxu0 %v3200_v8 }
  0x78   : > { %2966 = vmatprep.subr.bf16.mxu0 %v3205_v2 }
  0x7b   : > { %2967 = vmatpush3.bf16.msra.mxu0 %v3205_v2 }
  0x7c   : > { %2849 = vmatmul.mubr.msk.bf16.vlgmr.msra.gmra.mrb[0].mxu1 %vm342_vm0, %v3198_v16 }
  0x7d   : > { %2988 = vmatpush3.bf16.msra.mxu1 %v3211_v12  ;;  %2852 = vmatprep.mubr.msk.bf16.mxu1 %vm342_vm0, %v3201_v42 }
  0x7e   : > { %2953 = vmatmul.mubr.msk.bf16.gmra.mrb[8].mxu0 %vm342_vm0, %v1854_v19  ;;  %2985 = vmatprep.subr.bf16.mxu1 %v3268_v3  ;;  %v1870_v3 = vsel %vm249_vm1, %v1865_v28, %v1869_v14 }
  0x7f   : > { %2956 = vmatprep.mubr.msk.bf16.mxu0 %vm342_vm0, %v1862_v23 }
  0x81   : > { %2989 = vmatpush3.bf16.msra.mxu1 %v3212_v13 }
  0x82   : > { %2986 = vmatprep.subr.bf16.mxu1 %v3279_v5  ;;  %v2048_v5 = vrot.slane %v3581_v30, 1  ;;  %v3210_v30 = vld [vmem:[%s3287_s4 + $0x40] sm:$0xff]  }
  0x84   : > { %2853 = vmatmul.mubr.msk.bf16.gmra.mrb[4].mxu1 %vm342_vm0, %v3203_v57  ;;  %v2049_v40 = vsel %vm614_vm2, %v2046_v58, %v2048_v5  ;;  %v2051_v43 = vsel %vm614_vm2, %v2048_v5, %v2050_v38 }
  0x85   : > { %2856 = vmatprep.mubr.msk.bf16.mxu1 %vm342_vm0, %v3206_v29  ;;  %2990 = vmatpush3.bf16.msra.mxu1 %v3213_v34 }
  0x86   : > { %2957 = vmatmul.mubr.msk.bf16.gmra.mrb[12].mxu0 %vm342_vm0, %v1870_v3  ;;  %2987 = vmatprep.subr.bf16.mxu1 %v3292_v7  ;;  %v2052_v7 = vrot.slane %v3607_v41, 1  ;;  %v2058_v41 = vrot.slane %v3636_v59, 1 }
  0x87   : > { %2968 = vmatprep.mubr.msk.bf16.mxu0 %vm342_vm0, %v2047_v36 }
  0x88   : > { %v2053_v44 = vsel %vm614_vm2, %v2050_v38, %v2052_v7  ;;  %v2055_v45 = vsel %vm614_vm2, %v2052_v7, %v2054_v32  ;;  %v2059_v46 = vsel %vm614_vm2, %v2056_v48, %v2058_v41 }
  0x89   : > { %2991 = vmatpush3.bf16.msra.mxu1 %v3214_v4 }
  0x8c   : > { %2857 = vmatmul.mubr.msk.bf16.gmra.mrb[8].mxu1 %vm342_vm0, %v3208_v37 }
  0x8d   : > { %2860 = vmatprep.mubr.msk.bf16.mxu1 %vm342_vm0, %v3209_v52 }
  0x8e   : > { %2969 = vmatmul.mubr.msk.bf16.vlgmr.msra.gmra.mrb[0].mxu0 %vm342_vm0, %v2049_v40 }
  0x8f   : > { %2972 = vmatprep.mubr.msk.bf16.mxu0 %vm342_vm0, %v2051_v43 }
  0x94   : > { %2861 = vmatmul.mubr.msk.bf16.gmra.mrb[12].mxu1 %vm342_vm0, %v3210_v30 }
  0x95   : > { %2880 = vmatprep.mubr.msk.bf16.mxu1 %vm342_vm0, %v3498_v35  ;;  %v2060_v35 = vrot.slane %v3654_v15, 1 }
  0x96   : > { %2973 = vmatmul.mubr.msk.bf16.gmra.mrb[4].mxu0 %vm342_vm0, %v2053_v44 }
  0x97   : > { %2976 = vmatprep.mubr.msk.bf16.mxu0 %vm342_vm0, %v2055_v45  ;;  %v2061_v49 = vsel %vm614_vm2, %v2058_v41, %v2060_v35 }
  0x9c   : > { %2881 = vmatmul.mubr.msk.bf16.vlgmr.msra.gmra.mrb[8].mxu1 %vm342_vm0, %v3503_v39 }
  0x9d   : > { %2884 = vmatprep.mubr.msk.bf16.mxu1 %vm342_vm0, %v3516_v47 }
  0x9e   : > { %2977 = vmatmul.mubr.msk.bf16.gmra.mrb[8].mxu0 %vm342_vm0, %v2057_v18 }
  0x9f   : > { %2980 = vmatprep.mubr.msk.bf16.mxu0 %vm342_vm0, %v2059_v46 }
  0xa4   : > { %2885 = vmatmul.mubr.msk.bf16.gmra.mrb[12].mxu1 %vm342_vm0, %v3585_v31 }
  0xa6   : > { %2981 = vmatmul.mubr.msk.bf16.gmra.mrb[12].mxu0 %vm342_vm0, %v2061_v49 }
 0x14f   : > { %v2850_v39 = vpop.f32.mrb[0].mxu1 }
 0x150   : > { %v940_v50 = vpop.f32.mrb[1].mxu1 }
 0x151   : > { %v2851_v51 = vpop.f32.mrb[2].mxu1 }
 0x152   : > { %v943_v53 = vpop.f32.mrb[3].mxu1 }
 0x157   : > { %v2854_v54 = vpop.f32.mrb[4].mxu1 }
 0x158   : > { %v956_v47 = vpop.f32.mrb[5].mxu1 }
 0x159   : > { %v2855_v1 = vpop.f32.mrb[6].mxu1 }
 0x15a   : > { %v959_v55 = vpop.f32.mrb[7].mxu1 }
 0x161   : > { %v2970_v20 = vpop.f32.mrb[0].mxu0 }
 0x162   : > { %v2992_v9 = vadd.f32 %v2970_v20, %v2850_v39  ;;  %v2144_v8 = vpop.f32.mrb[1].mxu0 }
 0x163   : > { %v2993_v31 = vadd.f32 %v2144_v8, %v940_v50  ;;  %v2971_v59 = vpop.f32.mrb[2].mxu0 }
 0x164   : > { %v2232_v25 = vadd.f32 %v2992_v9, %v3730_v56  ;;  %v2994_v22 = vadd.f32 %v2971_v59, %v2851_v51  ;;  %v2147_v60 = vpop.f32.mrb[3].mxu0 }
 0x165   : > { %v2230_v11 = vadd.f32 %v2993_v31, %v3730_v56  ;;  %v2995_v61 = vadd.f32 %v2147_v60, %v943_v53 }
 0x166   : > { %v2248_v62 = vmax.f32 %v2232_v25, 0.0  ;;  %v2233_v0 = vadd.f32 %v2994_v22, %v3730_v56 }
 0x167   : > { %v2246_v2 = vmax.f32 %v2230_v11, 0.0  ;;  %v2231_v6 = vadd.f32 %v2995_v61, %v3730_v56 }
 0x168   : > { %v2646_v27 = vpack.c.bf16 %v2248_v62, %v2248_v62  ;;  %v2249_v15 = vmax.f32 %v2233_v0, 0.0 }
 0x169   : > { %v2644_v16 = vpack.c.bf16 %v2246_v2, %v2246_v2  ;;  %v2247_v24 = vmax.f32 %v2231_v6, 0.0  ;;  %v2974_v17 = vpop.f32.mrb[4].mxu0 }
 0x16a   : > { %2329 = vst.msk [vmem:[%s3739_s29 + $0x8] sm:$0xf] %vm2326_vm3, %v2646_v27  ;;  %v2647_v42 = vpack.c.bf16 %v2249_v15, %v2249_v15  ;;  %v2996_v10 = vadd.f32 %v2974_v17, %v2854_v54  ;;  %v2160_v19 = vpop.f32.mrb[5].mxu0 }
 0x16b   : > { %2327 = vst.msk [vmem:[%s3739_s29] sm:$0xf] %vm2326_vm3, %v2644_v16  ;;  %v2645_v63 = vpack.c.bf16 %v2247_v24, %v2247_v24  ;;  %v2997_v21 = vadd.f32 %v2160_v19, %v956_v47  ;;  %v2975_v23 = vpop.f32.mrb[6].mxu0 }
 0x16c   : > { %2330 = vst.msk [vmem:[%s3739_s29 + $0xc] sm:$0xf] %vm2326_vm3, %v2647_v42  ;;  %v2236_v26 = vadd.f32 %v2996_v10, %v3730_v56  ;;  %v2998_v12 = vadd.f32 %v2975_v23, %v2855_v1  ;;  %v2163_v28 = vpop.f32.mrb[7].mxu0 }
 0x16d   : > { %2328 = vst.msk [vmem:[%s3739_s29 + $0x4] sm:$0xf] %vm2326_vm3, %v2645_v63  ;;  %v2234_v14 = vadd.f32 %v2997_v21, %v3730_v56  ;;  %v2999_v57 = vadd.f32 %v2163_v28, %v959_v55 }
 0x16e   : > { %v2252_v33 = vmax.f32 %v2236_v26, 0.0  ;;  %v2237_v58 = vadd.f32 %v2998_v12, %v3730_v56 }
 0x16f   : > { %v2250_v13 = vmax.f32 %v2234_v14, 0.0  ;;  %v2235_v29 = vadd.f32 %v2999_v57, %v3730_v56  ;;  %v2882_v3 = vpop.f32.mrb[8].mxu1 }
 0x170   : > { %v2650_v36 = vpack.c.bf16 %v2252_v33, %v2252_v33  ;;  %v2253_v34 = vmax.f32 %v2237_v58, 0.0  ;;  %v1270_v5 = vpop.f32.mrb[9].mxu1 }
 0x171   : > { %v2648_v37 = vpack.c.bf16 %v2250_v13, %v2250_v13  ;;  %v2251_v38 = vmax.f32 %v2235_v29, 0.0  ;;  %v2978_v52 = vpop.f32.mrb[8].mxu0  ;;  %v2883_v4 = vpop.f32.mrb[10].mxu1 }
 0x172   : > { %2333 = vst.msk [vmem:[%s3739_s29 + $0x18] sm:$0xf] %vm2326_vm3, %v2650_v36  ;;  %v2651_v40 = vpack.c.bf16 %v2253_v34, %v2253_v34  ;;  %v3000_v43 = vadd.f32 %v2978_v52, %v2882_v3  ;;  %v2176_v7 = vpop.f32.mrb[9].mxu0  ;;  %v1273_v30 = vpop.f32.mrb[11].mxu1 }
 0x173   : > { %2331 = vst.msk [vmem:[%s3739_s29 + $0x10] sm:$0xf] %vm2326_vm3, %v2648_v37  ;;  %v2649_v32 = vpack.c.bf16 %v2251_v38, %v2251_v38  ;;  %v3001_v44 = vadd.f32 %v2176_v7, %v1270_v5  ;;  %v2979_v45 = vpop.f32.mrb[10].mxu0 }
 0x174   : > { %2334 = vst.msk [vmem:[%s3739_s29 + $0x1c] sm:$0xf] %vm2326_vm3, %v2651_v40  ;;  %v2240_v48 = vadd.f32 %v3000_v43, %v3730_v56  ;;  %v3002_v41 = vadd.f32 %v2979_v45, %v2883_v4  ;;  %v2179_v18 = vpop.f32.mrb[11].mxu0 }
 0x175   : > { %2332 = vst.msk [vmem:[%s3739_s29 + $0x14] sm:$0xf] %vm2326_vm3, %v2649_v32  ;;  %v2238_v46 = vadd.f32 %v3001_v44, %v3730_v56  ;;  %v3003_v35 = vadd.f32 %v2179_v18, %v1273_v30 }
 0x176   : > { %v2256_v49 = vmax.f32 %v2240_v48, 0.0  ;;  %v2241_v39 = vadd.f32 %v3002_v41, %v3730_v56 }
 0x177   : > { %v2254_v50 = vmax.f32 %v2238_v46, 0.0  ;;  %v2239_v51 = vadd.f32 %v3003_v35, %v3730_v56  ;;  %v2886_v53 = vpop.f32.mrb[12].mxu1 }
 0x178   : > { %v2654_v54 = vpack.c.bf16 %v2256_v49, %v2256_v49  ;;  %v2257_v47 = vmax.f32 %v2241_v39, 0.0  ;;  %v1286_v1 = vpop.f32.mrb[13].mxu1 }
 0x179   : > { %v2652_v55 = vpack.c.bf16 %v2254_v50, %v2254_v50  ;;  %v2255_v20 = vmax.f32 %v2239_v51, 0.0  ;;  %v2982_v9 = vpop.f32.mrb[12].mxu0  ;;  %v2887_v8 = vpop.f32.mrb[14].mxu1 }
 0x17a   : > { %2337 = vst.msk [vmem:[%s3739_s29 + $0x28] sm:$0xf] %vm2326_vm3, %v2654_v54  ;;  %v2655_v31 = vpack.c.bf16 %v2257_v47, %v2257_v47  ;;  %v3004_v59 = vadd.f32 %v2982_v9, %v2886_v53  ;;  %v2192_v25 = vpop.f32.mrb[13].mxu0  ;;  %v1289_v22 = vpop.f32.mrb[15].mxu1 }
 0x17b   : > { %2335 = vst.msk [vmem:[%s3739_s29 + $0x20] sm:$0xf] %vm2326_vm3, %v2652_v55  ;;  %v2653_v60 = vpack.c.bf16 %v2255_v20, %v2255_v20  ;;  %v3005_v11 = vadd.f32 %v2192_v25, %v1286_v1  ;;  %v2983_v61 = vpop.f32.mrb[14].mxu0 }
 0x17c   : > { %2338 = vst.msk [vmem:[%s3739_s29 + $0x2c] sm:$0xf] %vm2326_vm3, %v2655_v31  ;;  %v2244_v62 = vadd.f32 %v3004_v59, %v3730_v56  ;;  %v3006_v0 = vadd.f32 %v2983_v61, %v2887_v8  ;;  %v2195_v2 = vpop.f32.mrb[15].mxu0 }
 0x17d   : > { %2336 = vst.msk [vmem:[%s3739_s29 + $0x24] sm:$0xf] %vm2326_vm3, %v2653_v60  ;;  %v2242_v6 = vadd.f32 %v3005_v11, %v3730_v56  ;;  %v3007_v27 = vadd.f32 %v2195_v2, %v1289_v22 }
 0x17e   : > { %v2260_v15 = vmax.f32 %v2244_v62, 0.0  ;;  %v2245_v16 = vadd.f32 %v3006_v0, %v3730_v56 }
 0x17f   : > { %v2258_v24 = vmax.f32 %v2242_v6, 0.0  ;;  %v2243_v17 = vadd.f32 %v3007_v27, %v3730_v56 }
 0x180   : > { %v2658_v42 = vpack.c.bf16 %v2260_v15, %v2260_v15  ;;  %v2261_v10 = vmax.f32 %v2245_v16, 0.0 }
 0x181   : > { %v2656_v19 = vpack.c.bf16 %v2258_v24, %v2258_v24  ;;  %v2259_v63 = vmax.f32 %v2243_v17, 0.0 }
 0x182   : > { %2341 = vst.msk [vmem:[%s3739_s29 + $0x38] sm:$0xf] %vm2326_vm3, %v2658_v42  ;;  %v2659_v21 = vpack.c.bf16 %v2261_v10, %v2261_v10 }
 0x183   : > { %2339 = vst.msk [vmem:[%s3739_s29 + $0x30] sm:$0xf] %vm2326_vm3, %v2656_v19  ;;  %v2657_v23 = vpack.c.bf16 %v2259_v63, %v2259_v63 }
 0x184   : > { %2342 = vst.msk [vmem:[%s3739_s29 + $0x3c] sm:$0xf] %vm2326_vm3, %v2659_v21 }
 0x185   : > { %2340 = vst.msk [vmem:[%s3739_s29 + $0x34] sm:$0xf] %vm2326_vm3, %v2657_v23 }
 0x186 PF: > { %s13_s12 = sadd.s32 1, %s3221_s12  }
 0x187   : > { %p10_p4 = scmp.ge.s32.totalorder %s13_s12, 4  }
 0x189   :  { %12 = sbr.rel (!%p10_p4) target bundleno = 1 (0x1), region = 70 }

// kernel: _lambda_.15
= control target key start
LH: loop header
LB: loop body
LE: loop exit
PB: predicated region body
PF: predicated region fallthrough
CT: control target
= control target key end

     0   :  { %s1183_s27 = smov 0   ;;  %s1381_s0 = inlined_call_operand.vmem [shape: bf16[2,64,64], index: 0, kind: input, shape index: {}]   ;;  %s1382_s1 = inlined_call_operand.vmem [shape: bf16[2,64,256], index: 1, kind: input, shape index: {}]   ;;  %s1383_s2 = inlined_call_operand.vmem [shape: bf16[64,256], index: 2, kind: input, shape index: {}]   ;;  %s1384_s3 = inlined_call_operand.vmem [shape: f32[1,256], index: 3, kind: input, shape index: {}]   ;;  %s1385_s4 = inlined_call_operand.vmem [shape: bf16[256,16], index: 4, kind: input, shape index: {}]   ;;  %s1386_s5 = inlined_call_operand.vmem [shape: f32[1,16], index: 5, kind: input, shape index: {}]   ;;  %s1387_s6 = inlined_call_operand.vmem [shape: bf16[16,256], index: 6, kind: input, shape index: {}]   ;;  %s1388_s7 = inlined_call_operand.vmem [shape: f32[1,256], index: 7, kind: input, shape index: {}]   ;;  %s1389_s8 = inlined_call_operand.vmem [shape: bf16[2,64,256], index: 8, kind: output, shape index: {}]  }
   0x1 LB: > { %s986_s28 = sadd.s32 4294967295, %s1135_s27   ;;  %p990_p0 = scmp.ge.s32.totalorder %s1135_s27, 1  ;;  %s1135_s27 = sphi %s1183_s27, %s18_s27  }
   0x2   : > { %p272_p1 = scmp.lt.s32.totalorder %s1135_s27, 3 }
   0x4   : > { %p273_p2 = pnand %p990_p0, %p272_p1 }
   0x5   : > { %v1086_v0 = vld [vmem:[%s1383_s2 + $0x4] ss:$8 sps:$4 sm:$0xff] (!%p273_p2)   ;;  %p311_p3 = scmp.lt.s32.totalorder (!%p273_p2), %s986_s28, 1  ;;  %v1088_v1 = vld [vmem:[%s1383_s2] ss:$8 sps:$4 sm:$0xff] (!%p273_p2)   ;;  %v1137_v2 = vmov (!%p273_p2), 0   ;;  %v345_v29 = vlaneseq (!%p273_p2) }
   0x6   : > { %276 = sbr.rel (%p273_p2) target bundleno = 763 (0x2fb), region = 52  ;;  %460 = vmatprep.mubr.bf16.mxu0 (!%p273_p2), %v1137_v2  ;;  %428 = vmatprep.subr.bf16.mxu0 (!%p273_p2), %v1086_v0  ;;  %v1089_v3 = vld [vmem:[%s1383_s2 + $0x14] ss:$8 sps:$4 sm:$0xff] (!%p273_p2)   ;;  %v1091_v4 = vld [vmem:[%s1383_s2 + $0x10] ss:$8 sps:$4 sm:$0xff] (!%p273_p2)   ;;  %vm415_vm0 = vcmask (!%p273_p2), 523264  }
   0x7   : > { %429 = vmatpush1.bf16.msra.mxu0 (!%p273_p2), %v1088_v1  ;;  %v1092_v5 = vld [vmem:[%s1383_s2 + $0x24] ss:$8 sps:$4 sm:$0xff] (!%p273_p2)   ;;  %v1094_v6 = vld [vmem:[%s1383_s2 + $0x20] ss:$8 sps:$4 sm:$0xff] (!%p273_p2)   ;;  %v1095_v7 = vld [vmem:[%s1383_s2 + $0x34] ss:$8 sps:$4 sm:$0xff] (!%p273_p2)  }
   0x8   : > { %430 = vmatprep.subr.bf16.mxu0 (!%p273_p2), %v1089_v3  ;;  %v1097_v8 = vld [vmem:[%s1383_s2 + $0x30] ss:$8 sps:$4 sm:$0xff] (!%p273_p2)   ;;  %v1102_v13 = vld [vmem:[%s1385_s4 + $0x40] sm:$0xff] (!%p273_p2)   ;;  %v1104_v15 = vld [vmem:[%s1385_s4 + $0x48] sm:$0xff] (!%p273_p2)   ;;  %v1273_v30 = vshrl.u32 (!%p273_p2), %v345_v29, 7  ;;  %vm726_vm1 = vcmask (!%p273_p2), 130048  }
   0x9   : > { %v1103_v14 = vld [vmem:[%s1385_s4] sm:$0xff] (!%p273_p2)   ;;  %1055 = vmatprep.subr.bf16.mxu1 (!%p273_p2), %v1102_v13  ;;  %v1105_v16 = vld [vmem:[%s1385_s4 + $0x8] sm:$0xff] (!%p273_p2)   ;;  %v1106_v17 = vld [vmem:[%s1385_s4 + $0x50] sm:$0xff] (!%p273_p2)  }
   0xa   : > { %1056 = vmatpush3.bf16.msra.mxu1 (!%p273_p2), %v1103_v14  ;;  %v1107_v18 = vld [vmem:[%s1385_s4 + $0x10] sm:$0xff] (!%p273_p2)   ;;  %v1108_v19 = vld [vmem:[%s1385_s4 + $0x58] sm:$0xff] (!%p273_p2)   ;;  %v1110_v21 = vld [vmem:[%s1385_s4 + $0x60] sm:$0xff] (!%p273_p2)   ;;  %v1276_v34 = vsub.s32 (!%p273_p2), 0, %v1273_v30  ;;  %v351_v37 = vsub.s32 (!%p273_p2), 1, %v1273_v30 }
   0xb   : > { %431 = vmatpush1.bf16.msra.mxu0 (!%p273_p2), %v1091_v4  ;;  %1057 = vmatprep.subr.bf16.mxu1 (!%p273_p2), %v1104_v15  ;;  %v1109_v20 = vld [vmem:[%s1385_s4 + $0x18] sm:$0xff] (!%p273_p2)   ;;  %v1111_v22 = vld [vmem:[%s1385_s4 + $0x20] sm:$0xff] (!%p273_p2)   ;;  %v1112_v23 = vld [vmem:[%s1385_s4 + $0x68] sm:$0xff] (!%p273_p2)  }
   0xc   : > { %432 = vmatprep.subr.bf16.mxu0 (!%p273_p2), %v1092_v5  ;;  %v1113_v24 = vld [vmem:[%s1385_s4 + $0x28] sm:$0xff] (!%p273_p2)   ;;  %v1114_v25 = vld [vmem:[%s1385_s4 + $0x70] sm:$0xff] (!%p273_p2)   ;;  %v1116_v27 = vld [vmem:[%s1385_s4 + $0x78] sm:$0xff] (!%p273_p2)  }
   0xd   : > { %s1391_s28 = smov (!%p311_p3, %s986_s28), 1  ;;  %v1115_v26 = vld [vmem:[%s1385_s4 + $0x30] sm:$0xff]   ;;  %v1117_v28 = vld [vmem:[%s1385_s4 + $0x38] sm:$0xff]   ;;  %v343_v36 = vld [vmem:[%s1384_s3] sm:$0x3] }
   0xe   : > { %s1044_s17 = sshll.u32 %s1391_s28, 5  ;;  %1058 = vmatpush3.bf16.msra.mxu1 %v1105_v16  ;;  %v348_v38 = vrot.slane %v343_v36, %v1276_v34  ;;  %v352_v39 = vrot.slane %v343_v36, %v351_v37  ;;  %s1045_s9 = sshll.u32 %s1391_s28, 6 }
   0xf   : > { %s315_s20 = scalar_lea.vmem %s1381_s0, %s1044_s17  ;;  %433 = vmatpush1.bf16.msra.mxu0 %v1094_v6  ;;  %1059 = vmatprep.subr.bf16.mxu1 %v1106_v17  ;;  %s320_s12 = scalar_lea.vmem %s1382_s1, %s1045_s9 }
  0x10   : > { %434 = vmatprep.subr.bf16.mxu0 %v1095_v7  ;;  %v1098_v9 = vld [vmem:[%s315_s20] sm:$0xff]   ;;  %v1099_v10 = vld [vmem:[%s315_s20 + $0x8] sm:$0xff]   ;;  %v1100_v11 = vld [vmem:[%s315_s20 + $0x10] sm:$0xff]   ;;  %s325_s15 = scalar_lea.vmem %s1389_s8, %s1045_s9 }
  0x11   : > { %v1101_v12 = vld [vmem:[%s315_s20 + $0x18] sm:$0xff]   ;;  %v807_v30 = vld [vmem:[%s320_s12] sm:$0xff] }
  0x12   : > { %1060 = vmatpush3.bf16.msra.mxu1 %v1107_v18 }
  0x13   : > { %435 = vmatpush1.bf16.msra.mxu0 %v1097_v8  ;;  %1061 = vmatprep.subr.bf16.mxu1 %v1108_v19 }
  0x16   : > { %1009 = vmatmul.mubr.msk.bf16.vlgmr.msra.gmra.mrb[0].mxu0 %vm415_vm0, %v1098_v9  ;;  %1062 = vmatpush3.bf16.msra.mxu1 %v1109_v20 }
  0x17   : > { %470 = vmatprep.mubr.bf16.mxu0 %v1137_v2  ;;  %1063 = vmatprep.subr.bf16.mxu1 %v1110_v21 }
  0x1a   : > { %1064 = vmatpush3.bf16.msra.mxu1 %v1111_v22 }
  0x1b   : > { %1065 = vmatprep.subr.bf16.mxu1 %v1112_v23 }
  0x1e   : > { %1010 = vmatmul.mubr.msk.bf16.gmra.mrb[4].mxu0 %vm415_vm0, %v1099_v10  ;;  %1066 = vmatpush3.bf16.msra.mxu1 %v1113_v24 }
  0x1f   : > { %480 = vmatprep.mubr.bf16.mxu0 %v1137_v2  ;;  %1067 = vmatprep.subr.bf16.mxu1 %v1114_v25 }
  0x22   : > { %1068 = vmatpush3.bf16.msra.mxu1 %v1115_v26 }
  0x23   : > { %1069 = vmatprep.subr.bf16.mxu1 %v1116_v27 }
  0x26   : > { %1011 = vmatmul.mubr.msk.bf16.gmra.mrb[8].mxu0 %vm415_vm0, %v1100_v11  ;;  %1070 = vmatpush3.bf16.msra.mxu1 %v1117_v28 }
  0x27   : > { %490 = vmatprep.mubr.bf16.mxu0 %v1137_v2 }
  0x2e   : > { %1012 = vmatmul.mubr.msk.bf16.gmra.mrb[12].mxu0 %vm415_vm0, %v1101_v12 }
  0xe9   : > { %v462_v31 = vpop.f32.mrb[0].mxu0 }
  0xea   : > { %v464_v32 = vpop.f32.mrb[1].mxu0  ;;  %v1289_v45 = vadd.f32 %v462_v31, %v348_v38 }
  0xeb   : > { %v466_v33 = vpop.f32.mrb[2].mxu0  ;;  %v1293_v48 = vadd.f32 %v464_v32, %v352_v39 }
  0xec   : > { %v468_v35 = vpop.f32.mrb[3].mxu0  ;;  %v1285_v41 = vadd.f32 %v466_v33, %v348_v38 }
  0xed   : > { %v1287_v43 = vadd.f32 %v468_v35, %v352_v39 }
  0xee   : > { %v501_v50 = vadd.f32 %v1285_v41, %v1289_v45 }
  0xef   : > { %v514_v51 = vadd.f32 %v1287_v43, %v1293_v48 }
  0xf1   : > { %v472_v40 = vpop.f32.mrb[4].mxu0 }
  0xf2   : > { %v474_v42 = vpop.f32.mrb[5].mxu0  ;;  %v1291_v46 = vadd.f32 %v472_v40, %v348_v38 }
  0xf3   : > { %v476_v44 = vpop.f32.mrb[6].mxu0  ;;  %v1295_v49 = vadd.f32 %v474_v42, %v352_v39  ;;  %v563_v42 = vld [vmem:[%s1386_s5] sm:$0x1] }
  0xf4   : > { %v478_v47 = vpop.f32.mrb[7].mxu0  ;;  %v502_v52 = vadd.f32 %v501_v50, %v1291_v46  ;;  %v1302_v53 = vadd.f32 %v476_v44, %v348_v38 }
  0xf5   : > { %v515_v54 = vadd.f32 %v514_v51, %v1295_v49  ;;  %v1305_v55 = vadd.f32 %v478_v47, %v352_v39 }
  0xf6   : > { %v503_v61 = vadd.f32 %v502_v52, %v1302_v53 }
  0xf7   : > { %v516_v63 = vadd.f32 %v515_v54, %v1305_v55 }
  0xf9   : > { %v482_v56 = vpop.f32.mrb[8].mxu0 }
  0xfa   : > { %v1307_v57 = vadd.f32 %v482_v56, %v348_v38  ;;  %v484_v58 = vpop.f32.mrb[9].mxu0  ;;  %v704_v56 = vld [vmem:[%s1388_s7] sm:$0x3] }
  0xfb   : > { %v1309_v59 = vadd.f32 %v484_v58, %v352_v39  ;;  %v486_v60 = vpop.f32.mrb[10].mxu0  ;;  %v719_v58 = vrot.slane %v704_v56, %v1276_v34 }
  0xfc   : > { %v488_v62 = vpop.f32.mrb[11].mxu0  ;;  %v504_v0 = vadd.f32 %v503_v61, %v1307_v57  ;;  %v1314_v1 = vadd.f32 %v486_v60, %v348_v38  ;;  %v723_v60 = vrot.slane %v704_v56, %v351_v37  ;;  %v808_v37 = vld [vmem:[%s320_s12 + $0x8] sm:$0xff] }
  0xfd   : > { %v517_v3 = vadd.f32 %v516_v63, %v1309_v59  ;;  %v1317_v4 = vadd.f32 %v488_v62, %v352_v39 }
  0xfe   : > { %v505_v6 = vadd.f32 %v504_v0, %v1314_v1 }
  0xff   : > { %v518_v9 = vadd.f32 %v517_v3, %v1317_v4 }
 0x101   : > { %v492_v5 = vpop.f32.mrb[12].mxu0 }
 0x102   : > { %v1320_v7 = vadd.f32 %v492_v5, %v348_v38  ;;  %v494_v8 = vpop.f32.mrb[13].mxu0 }
 0x103   : > { %v1323_v10 = vadd.f32 %v494_v8, %v352_v39  ;;  %v496_v11 = vpop.f32.mrb[14].mxu0 }
 0x104   : > { %v506_v12 = vadd.f32 %v505_v6, %v1320_v7  ;;  %v1326_v13 = vadd.f32 %v496_v11, %v348_v38  ;;  %v498_v14 = vpop.f32.mrb[15].mxu0  ;;  %v1120_v38 = vld [vmem:[%s1387_s6 + $0x4] ss:$8 sps:$4 sm:$0xff]  }
 0x105   : > { %v519_v15 = vadd.f32 %v518_v9, %v1323_v10  ;;  %v1329_v16 = vadd.f32 %v498_v14, %v352_v39  ;;  %v1118_v39 = vld [vmem:[%s1387_s6] ss:$8 sps:$4 sm:$0xff]   ;;  %730 = vmatprep.subr.bf16.mxu1 %v1120_v38 }
 0x106   : > { %v507_v17 = vadd.f32 %v506_v12, %v1326_v13 }
 0x107   : > { %v520_v18 = vadd.f32 %v519_v15, %v1329_v16  ;;  %v809_v15 = vld [vmem:[%s320_s12 + $0x10] sm:$0xff] }
 0x108   : > { %v508_v19 = vrot.slane %v507_v17, 4 }
 0x109   : > { %v521_v20 = vrot.slane %v520_v18, 4 }
 0x10a   : > { %v509_v21 = vadd.f32 %v508_v19, %v507_v17  ;;  %v810_v17 = vld [vmem:[%s320_s12 + $0x18] sm:$0xff]  ;;  %v812_v19 = vld [vmem:[%s320_s12 + $0x28] sm:$0xff] }
 0x10b   : > { %v522_v22 = vadd.f32 %v521_v20, %v520_v18  ;;  %v811_v18 = vld [vmem:[%s320_s12 + $0x20] sm:$0xff]  ;;  %v813_v20 = vld [vmem:[%s320_s12 + $0x30] sm:$0xff]  ;;  %v826_v38 = vunpack.c.h.bf16 %v812_v19 }
 0x10c   : > { %v510_v23 = vrot.slane %v509_v21, 2 }
 0x10d   : > { %v523_v24 = vrot.slane %v522_v22, 2 }
 0x10e   : > { %v511_v25 = vadd.f32 %v510_v23, %v509_v21  ;;  %v815_v21 = vunpack.c.l.bf16 %v807_v30  ;;  %v814_v23 = vld [vmem:[%s320_s12 + $0x38] sm:$0xff] }
 0x10f   : > { %v524_v26 = vadd.f32 %v523_v24, %v522_v22  ;;  %v816_v22 = vunpack.c.h.bf16 %v807_v30  ;;  %v817_v24 = vunpack.c.l.bf16 %v808_v37 }
 0x110   : > { %v512_v27 = vrot.slane %v511_v25, 1 }
 0x111   : > { %v525_v28 = vrot.slane %v524_v26, 1 }
 0x112   : > { %v513_v29 = vadd.f32 %v512_v27, %v511_v25  ;;  %v818_v25 = vunpack.c.h.bf16 %v808_v37  ;;  %v820_v27 = vunpack.c.h.bf16 %v809_v15 }
 0x113   : > { %v526_v31 = vadd.f32 %v525_v28, %v524_v26  ;;  %v819_v26 = vunpack.c.l.bf16 %v809_v15 }
 0x114   : > { %v527_v32 = vmul.f32 0.015625, %v513_v29  ;;  %v821_v29 = vunpack.c.l.bf16 %v810_v17 }
 0x115   : > { %v528_v33 = vmul.f32 0.015625, %v526_v31  ;;  %v822_v31 = vunpack.c.h.bf16 %v810_v17 }
 0x116   : > { %v529_v36 = vpack.c.bf16 %v527_v32, %v527_v32  ;;  %v823_v32 = vunpack.c.l.bf16 %v811_v18 }
 0x117   : > { %v530_v35 = vpack.c.bf16 %v528_v33, %v528_v33  ;;  %v824_v33 = vunpack.c.h.bf16 %v811_v18 }
 0x119   : > { %692 = vmatprep.mubr.bf16.mxu1 %v530_v35 }
 0x11a   : > { %693 = vmatmul.mubr.bf16.vlgmr.msra.gmra.mrb[0].mxu1 %v529_v36  ;;  %v825_v36 = vunpack.c.l.bf16 %v812_v19 }
 0x11b   : > { %762 = vmatprep.mubr.bf16.mxu1 %v1137_v2  ;;  %731 = vmatpush1.bf16.msra.mxu1 %v1118_v39  ;;  %v827_v39 = vunpack.c.l.bf16 %v813_v20 }
 0x1ed   : > { %v1071_v40 = vpop.f32.mrb[0].mxu1 }
 0x1ee   : > { %v1072_v44 = vpop.f32.mrb[1].mxu1 }
 0x1ef   : > { %v1073_v47 = vadd.f32 %v1072_v44, %v1071_v40  ;;  %v1074_v50 = vpop.f32.mrb[2].mxu1  ;;  %v829_v44 = vunpack.c.l.bf16 %v814_v23 }
 0x1f0   : > { %v1075_v51 = vpop.f32.mrb[3].mxu1 }
 0x1f1   : > { %v695_v2 = vadd.f32 %v1073_v47, %v563_v42  ;;  %v828_v42 = vunpack.c.h.bf16 %v813_v20  ;;  %v830_v47 = vunpack.c.h.bf16 %v814_v23 }
 0x1f3   : > { %v700_v52 = vmax.f32 %v695_v2, 0.0 }
 0x1f5   : > { %v701_v54 = vpack.c.bf16 %v700_v52, %v700_v52 }
 0x1f7   : > { %1031 = vmatmul.mubr.msk.bf16.vlgmr.msra.gmra.mrb[4].mxu1 %vm726_vm1, %v701_v54 }
 0x2ca   : > { %v764_v61 = vpop.f32.mrb[4].mxu1 }
 0x2cb   : > { %v765_v62 = vadd.f32 %v764_v61, %v719_v58  ;;  %v766_v63 = vpop.f32.mrb[5].mxu1 }
 0x2cc   : > { %v767_v0 = vadd.f32 %v766_v63, %v723_v60  ;;  %v768_v3 = vpop.f32.mrb[6].mxu1 }
 0x2cd   : > { %v1032_v5 = vmul.f32 -1.442695, %v765_v62  ;;  %v769_v6 = vpop.f32.mrb[7].mxu1 }
 0x2ce   : > { %v1033_v8 = vmul.f32 -1.442695, %v767_v0 }
 0x2cf   : > { %1121 = vpow2.f32 %v1032_v5 }
 0x2d0   : > { %1123 = vpow2.f32 %v1033_v8 }
 0x2d9   : > { %v1122_v9 = vpop.eup %1121 }
 0x2da   : > { %v1124_v11 = vpop.eup %1123  ;;  %v777_v12 = vadd.f32 1.0, %v1122_v9 }
 0x2db   : > { %v778_v14 = vadd.f32 1.0, %v1124_v11 }
 0x2dc   : > { %1125 = vrcp.f32 %v777_v12 }
 0x2dd   : > { %1127 = vrcp.f32 %v778_v14 }
 0x2e6   : > { %v1126_v28 = vpop.eup %1125 }
 0x2e7   : > { %v1128_v35 = vpop.eup %1127  ;;  %v786_v40 = vrot.slane %v1126_v28, %v1276_v34 }
 0x2e8   : > { %v790_v50 = vrot.slane %v1128_v35, %v1276_v34 }
 0x2e9   : > { %v791_v51 = vmul.f32 %v786_v40, %v1289_v45  ;;  %v793_v2 = vmul.f32 %v786_v40, %v1285_v41  ;;  %v795_v52 = vmul.f32 %v786_v40, %v1291_v46  ;;  %v797_v54 = vmul.f32 %v786_v40, %v1302_v53 }
 0x2ea   : > { %v799_v56 = vmul.f32 %v786_v40, %v1307_v57  ;;  %v801_v58 = vmul.f32 %v786_v40, %v1314_v1  ;;  %v803_v60 = vmul.f32 %v786_v40, %v1320_v7  ;;  %v805_v61 = vmul.f32 %v786_v40, %v1326_v13 }
 0x2eb   : > { %v831_v62 = vadd.f32 %v815_v21, %v791_v51  ;;  %v833_v63 = vadd.f32 %v817_v24, %v793_v2  ;;  %v835_v0 = vadd.f32 %v819_v26, %v795_v52  ;;  %v837_v34 = vadd.f32 %v821_v29, %v797_v54 }
 0x2ec   : > { %v839_v3 = vadd.f32 %v823_v32, %v799_v56  ;;  %v841_v45 = vadd.f32 %v825_v36, %v801_v58  ;;  %v843_v5 = vadd.f32 %v827_v39, %v803_v60  ;;  %v845_v41 = vadd.f32 %v829_v44, %v805_v61 }
 0x2ed   : > { %v847_v6 = vmax.f32 %v831_v62, 0.0  ;;  %v849_v46 = vmax.f32 %v833_v63, 0.0  ;;  %v851_v8 = vmax.f32 %v835_v0, 0.0  ;;  %v853_v53 = vmax.f32 %v837_v34, 0.0 }
 0x2ee   : > { %v855_v9 = vmax.f32 %v839_v3, 0.0  ;;  %v857_v57 = vmax.f32 %v841_v45, 0.0  ;;  %v859_v11 = vmax.f32 %v843_v5, 0.0  ;;  %v861_v1 = vmax.f32 %v845_v41, 0.0 }
 0x2ef   : > { %v792_v7 = vmul.f32 %v790_v50, %v1293_v48  ;;  %v794_v13 = vmul.f32 %v790_v50, %v1287_v43  ;;  %v796_v12 = vmul.f32 %v790_v50, %v1295_v49  ;;  %v798_v14 = vmul.f32 %v790_v50, %v1305_v55 }
 0x2f0   : > { %v800_v30 = vmul.f32 %v790_v50, %v1309_v59  ;;  %v802_v37 = vmul.f32 %v790_v50, %v1317_v4  ;;  %v804_v15 = vmul.f32 %v790_v50, %v1323_v10  ;;  %v806_v17 = vmul.f32 %v790_v50, %v1329_v16 }
 0x2f1   : > { %v832_v18 = vadd.f32 %v816_v22, %v792_v7  ;;  %v834_v19 = vadd.f32 %v818_v25, %v794_v13  ;;  %v836_v20 = vadd.f32 %v820_v27, %v796_v12  ;;  %v838_v21 = vadd.f32 %v822_v31, %v798_v14 }
 0x2f2   : > { %v840_v48 = vadd.f32 %v824_v33, %v800_v30  ;;  %v842_v23 = vadd.f32 %v826_v38, %v802_v37  ;;  %v844_v43 = vadd.f32 %v828_v42, %v804_v15  ;;  %v846_v24 = vadd.f32 %v830_v47, %v806_v17 }
 0x2f3   : > { %v848_v49 = vmax.f32 %v832_v18, 0.0  ;;  %v850_v26 = vmax.f32 %v834_v19, 0.0  ;;  %v852_v55 = vmax.f32 %v836_v20, 0.0  ;;  %v854_v28 = vmax.f32 %v838_v21, 0.0 }
 0x2f4   : > { %v856_v59 = vmax.f32 %v840_v48, 0.0  ;;  %v858_v4 = vmax.f32 %v842_v23, 0.0  ;;  %v860_v10 = vmax.f32 %v844_v43, 0.0  ;;  %v862_v16 = vmax.f32 %v846_v24, 0.0 }
 0x2f5   : > { %v1047_v22 = vpack.c.bf16 %v848_v49, %v847_v6  ;;  %v1048_v25 = vpack.c.bf16 %v850_v26, %v849_v46  ;;  %v1049_v27 = vpack.c.bf16 %v852_v55, %v851_v8  ;;  %v1050_v29 = vpack.c.bf16 %v854_v28, %v853_v53 }
 0x2f6   : > { %v1051_v31 = vpack.c.bf16 %v856_v59, %v855_v9  ;;  %v1052_v32 = vpack.c.bf16 %v858_v4, %v857_v57  ;;  %v1053_v33 = vpack.c.bf16 %v860_v10, %v859_v11  ;;  %v1054_v35 = vpack.c.bf16 %v862_v16, %v861_v1 }
 0x2f7   : > { %911 = vst [vmem:[%s325_s15] sm:$0xff] %v1047_v22  ;;  %912 = vst [vmem:[%s325_s15 + $0x8] sm:$0xff] %v1048_v25 }
 0x2f8   : > { %913 = vst [vmem:[%s325_s15 + $0x10] sm:$0xff] %v1049_v27  ;;  %914 = vst [vmem:[%s325_s15 + $0x18] sm:$0xff] %v1050_v29 }
 0x2f9   : > { %915 = vst [vmem:[%s325_s15 + $0x20] sm:$0xff] %v1051_v31  ;;  %916 = vst [vmem:[%s325_s15 + $0x28] sm:$0xff] %v1052_v32 }
 0x2fa   : > { %917 = vst [vmem:[%s325_s15 + $0x30] sm:$0xff] %v1053_v33  ;;  %918 = vst [vmem:[%s325_s15 + $0x38] sm:$0xff] %v1054_v35 }
 0x2fb PF: > { %s18_s27 = sadd.s32 1, %s1135_s27  }
 0x2fc   : > { %p15_p4 = scmp.ge.s32.totalorder %s18_s27, 4  }
 0x2fe   :  { %17 = sbr.rel (!%p15_p4) target bundleno = 1 (0x1), region = 85 }

// kernel: _lambda_.16
= control target key start
LH: loop header
LB: loop body
LE: loop exit
PB: predicated region body
PF: predicated region fallthrough
CT: control target
= control target key end

     0   :  { %s1392_s21 = smov 0   ;;  %s1672_s0 = inlined_call_operand.vmem [shape: bf16[32,256], index: 0, kind: input, shape index: {}]   ;;  %s1673_s1 = inlined_call_operand.vmem [shape: bf16[256,128], index: 1, kind: input, shape index: {}]   ;;  %s1674_s2 = inlined_call_operand.vmem [shape: f32[1,128], index: 2, kind: input, shape index: {}]   ;;  %s1675_s3 = inlined_call_operand.vmem [shape: bf16[256,512], index: 3, kind: input, shape index: {}]   ;;  %s1676_s4 = inlined_call_operand.vmem [shape: f32[1,512], index: 4, kind: input, shape index: {}]   ;;  %s1677_s5 = inlined_call_operand.vmem [shape: bf16[32,128], index: 5, kind: output, shape index: {0}]   ;;  %s1678_s6 = inlined_call_operand.vmem [shape: bf16[32,512], index: 6, kind: output, shape index: {1}]  }
   0x1 LB: > { %s1087_s22 = sadd.s32 4294967295, %s1355_s21   ;;  %p1091_p0 = scmp.ge.s32.totalorder %s1355_s21, 1  ;;  %s1355_s21 = sphi %s1392_s21, %s17_s21  }
   0x2   : > { %p217_p1 = scmp.lt.s32.totalorder %s1355_s21, 3 }
   0x4   : > { %p218_p2 = pnand %p1091_p0, %p217_p1 }
   0x5   : > { %v1234_v0 = vld [vmem:[%s1673_s1 + $0x40] sm:$0xff] (!%p218_p2)   ;;  %s1092_s27 = sshll.u32 (!%p218_p2), %s1087_s22, 1  ;;  %v1236_v2 = vld [vmem:[%s1673_s1 + $0x48] sm:$0xff] (!%p218_p2)   ;;  %v1238_v4 = vld [vmem:[%s1673_s1 + $0x50] sm:$0xff] (!%p218_p2)  }
   0x6   : > { %221 = sbr.rel (%p218_p2) target bundleno = 322 (0x142), region = 40  ;;  %v1235_v1 = vld [vmem:[%s1673_s1] sm:$0xff] (!%p218_p2)   ;;  %1204 = vmatprep.subr.bf16.mxu0 (!%p218_p2), %v1234_v0  ;;  %v1237_v3 = vld [vmem:[%s1673_s1 + $0x8] sm:$0xff] (!%p218_p2)   ;;  %p255_p3 = scmp.lt.s32.totalorder (!%p218_p2), %s1092_s27, 3  ;;  %v1239_v5 = vld [vmem:[%s1673_s1 + $0x10] sm:$0xff] (!%p218_p2)  }
   0x7   : > { %1205 = vmatpush3.bf16.msra.mxu0 (!%p218_p2), %v1235_v1  ;;  %v1240_v6 = vld [vmem:[%s1673_s1 + $0x58] sm:$0xff] (!%p218_p2)   ;;  %v1242_v8 = vld [vmem:[%s1673_s1 + $0x60] sm:$0xff] (!%p218_p2)   ;;  %v1244_v10 = vld [vmem:[%s1673_s1 + $0x68] sm:$0xff] (!%p218_p2)  }
   0x8   : > { %1206 = vmatprep.subr.bf16.mxu0 (!%p218_p2), %v1236_v2  ;;  %v1241_v7 = vld [vmem:[%s1673_s1 + $0x18] sm:$0xff] (!%p218_p2)   ;;  %v1243_v9 = vld [vmem:[%s1673_s1 + $0x20] sm:$0xff] (!%p218_p2)   ;;  %v1245_v14 = vld [vmem:[%s1673_s1 + $0x28] sm:$0xff] (!%p218_p2)  }
   0x9   : > { %v1250_v11 = vld [vmem:[%s1675_s3 + $0x4] ss:$16 sps:$4 sm:$0xff] (!%p218_p2)   ;;  %v1252_v12 = vld [vmem:[%s1675_s3] ss:$16 sps:$4 sm:$0xff] (!%p218_p2)   ;;  %v1248_v21 = vld [vmem:[%s1673_s1 + $0x78] sm:$0xff] (!%p218_p2)  }
   0xa   : > { %881 = vmatprep.subr.bf16.mxu1 (!%p218_p2), %v1250_v11  ;;  %v1246_v15 = vld [vmem:[%s1673_s1 + $0x70] sm:$0xff] (!%p218_p2)   ;;  %v1249_v22 = vld [vmem:[%s1673_s1 + $0x38] sm:$0xff] (!%p218_p2)  }
   0xb   : > { %1207 = vmatpush3.bf16.msra.mxu0 (!%p218_p2), %v1237_v3  ;;  %882 = vmatpush1.bf16.msra.mxu1 (!%p218_p2), %v1252_v12  ;;  %v1259_v16 = vld [vmem:[%s1675_s3 + $0x24] ss:$16 sps:$4 sm:$0xff] (!%p218_p2)   ;;  %v1261_v17 = vld [vmem:[%s1675_s3 + $0x20] ss:$16 sps:$4 sm:$0xff] (!%p218_p2)   ;;  %v1258_v24 = vld [vmem:[%s1675_s3 + $0xc] ss:$16 sps:$4 sm:$0xff] (!%p218_p2)  }
   0xc   : > { %1208 = vmatprep.subr.bf16.mxu0 (!%p218_p2), %v1238_v4  ;;  %v1247_v18 = vld [vmem:[%s1673_s1 + $0x30] sm:$0xff] (!%p218_p2)   ;;  %883 = vmatprep.subr.bf16.mxu1 (!%p218_p2), %v1259_v16  ;;  %v1256_v28 = vld [vmem:[%s1675_s3 + $0x8] ss:$16 sps:$4 sm:$0xff] (!%p218_p2)   ;;  %v1264_v29 = vld [vmem:[%s1675_s3 + $0x2c] ss:$16 sps:$4 sm:$0xff] (!%p218_p2)  }
   0xd   : > { %s1680_s27 = smov (!%p255_p3, %s1092_s27), 3  ;;  %v1265_v19 = vld [vmem:[%s1675_s3 + $0x44] ss:$16 sps:$4 sm:$0xff]   ;;  %v1267_v20 = vld [vmem:[%s1675_s3 + $0x40] ss:$16 sps:$4 sm:$0xff]  }
   0xe   : > { %s1191_s18 = sshll.u32 %s1680_s27, 3  ;;  %v1271_v23 = vld [vmem:[%s1675_s3 + $0x64] ss:$16 sps:$4 sm:$0xff]   ;;  %v1273_v25 = vld [vmem:[%s1675_s3 + $0x60] ss:$16 sps:$4 sm:$0xff]   ;;  %s1096_s13 = sshll.u32 %s1680_s27, 2 }
   0xf   : > { %1209 = vmatpush3.bf16.msra.mxu0 %v1239_v5  ;;  %s1439_s26 = scalar_lea.vmem %s1672_s0, %s1191_s18  ;;  %884 = vmatpush1.bf16.msra.mxu1 %v1261_v17  ;;  %v1277_v26 = vld [vmem:[%s1675_s3 + $0x84] ss:$16 sps:$4 sm:$0xff]   ;;  %v1279_v30 = vld [vmem:[%s1675_s3 + $0x80] ss:$16 sps:$4 sm:$0xff]   ;;  %v1262_v32 = vld [vmem:[%s1675_s3 + $0x28] ss:$16 sps:$4 sm:$0xff]   ;;  %s265_s16 = scalar_lea.vmem %s1677_s5, %s1096_s13 }
  0x10   : > { %1210 = vmatprep.subr.bf16.mxu0 %v1240_v6  ;;  %v1253_v13 = vld [vmem:[%s1439_s26 + $0x4] ss:$8 sps:$4 sm:$0xff]   ;;  %885 = vmatprep.subr.bf16.mxu1 %v1265_v19  ;;  %v1488_v27 = vld [vmem:[%s1439_s26] ss:$8 sps:$4 sm:$0xff]   ;;  %s1192_s19 = sshll.u32 %s1680_s27, 4 }
  0x11   : > { %454 = vmatprep.mubr.bf16.mxu0 %v1253_v13  ;;  %913 = vmatprep.mubr.bf16.mxu1 %v1253_v13  ;;  %v1283_v31 = vld [vmem:[%s1675_s3 + $0xa4] ss:$16 sps:$4 sm:$0xff]   ;;  %v1270_v33 = vld [vmem:[%s1675_s3 + $0x4c] ss:$16 sps:$4 sm:$0xff]   ;;  %v1285_v34 = vld [vmem:[%s1675_s3 + $0xa0] ss:$16 sps:$4 sm:$0xff]   ;;  %s272_s22 = scalar_lea.vmem %s1678_s6, %s1192_s19 }
  0x12   : > { %v1289_v35 = vld [vmem:[%s1675_s3 + $0xc4] ss:$16 sps:$4 sm:$0xff]   ;;  %v1268_v36 = vld [vmem:[%s1675_s3 + $0x48] ss:$16 sps:$4 sm:$0xff]   ;;  %v1276_v37 = vld [vmem:[%s1675_s3 + $0x6c] ss:$16 sps:$4 sm:$0xff]  }
  0x13   : > { %1211 = vmatpush3.bf16.msra.mxu0 %v1241_v7  ;;  %886 = vmatpush1.bf16.msra.mxu1 %v1267_v20  ;;  %v1291_v38 = vld [vmem:[%s1675_s3 + $0xc0] ss:$16 sps:$4 sm:$0xff]   ;;  %v1295_v39 = vld [vmem:[%s1675_s3 + $0xe4] ss:$16 sps:$4 sm:$0xff]   ;;  %v1274_v40 = vld [vmem:[%s1675_s3 + $0x68] ss:$16 sps:$4 sm:$0xff]  }
  0x14   : > { %1212 = vmatprep.subr.bf16.mxu0 %v1242_v8  ;;  %887 = vmatprep.subr.bf16.mxu1 %v1271_v23  ;;  %v1282_v41 = vld [vmem:[%s1675_s3 + $0x8c] ss:$16 sps:$4 sm:$0xff]   ;;  %v1297_v42 = vld [vmem:[%s1675_s3 + $0xe0] ss:$16 sps:$4 sm:$0xff]   ;;  %v1301_v43 = vld [vmem:[%s1675_s3 + $0x104] ss:$16 sps:$4 sm:$0xff]  }
  0x15   : > { %v1280_v44 = vld [vmem:[%s1675_s3 + $0x88] ss:$16 sps:$4 sm:$0xff]   ;;  %v1288_v45 = vld [vmem:[%s1675_s3 + $0xac] ss:$16 sps:$4 sm:$0xff]   ;;  %v1303_v46 = vld [vmem:[%s1675_s3 + $0x100] ss:$16 sps:$4 sm:$0xff]  }
  0x16   : > { %v1307_v47 = vld [vmem:[%s1675_s3 + $0x124] ss:$16 sps:$4 sm:$0xff]   ;;  %v1286_v48 = vld [vmem:[%s1675_s3 + $0xa8] ss:$16 sps:$4 sm:$0xff]   ;;  %v1294_v49 = vld [vmem:[%s1675_s3 + $0xcc] ss:$16 sps:$4 sm:$0xff]  }
  0x17   : > { %1213 = vmatpush3.bf16.msra.mxu0 %v1243_v9  ;;  %888 = vmatpush1.bf16.msra.mxu1 %v1273_v25  ;;  %v1309_v50 = vld [vmem:[%s1675_s3 + $0x120] ss:$16 sps:$4 sm:$0xff]   ;;  %v1313_v51 = vld [vmem:[%s1675_s3 + $0x144] ss:$16 sps:$4 sm:$0xff]   ;;  %v1292_v52 = vld [vmem:[%s1675_s3 + $0xc8] ss:$16 sps:$4 sm:$0xff]  }
  0x18   : > { %1214 = vmatprep.subr.bf16.mxu0 %v1244_v10  ;;  %889 = vmatprep.subr.bf16.mxu1 %v1277_v26  ;;  %v1300_v53 = vld [vmem:[%s1675_s3 + $0xec] ss:$16 sps:$4 sm:$0xff]   ;;  %v1315_v54 = vld [vmem:[%s1675_s3 + $0x140] ss:$16 sps:$4 sm:$0xff]   ;;  %v1319_v55 = vld [vmem:[%s1675_s3 + $0x164] ss:$16 sps:$4 sm:$0xff]  }
  0x19   : > { %v1298_v56 = vld [vmem:[%s1675_s3 + $0xe8] ss:$16 sps:$4 sm:$0xff]   ;;  %v1321_v57 = vld [vmem:[%s1675_s3 + $0x160] ss:$16 sps:$4 sm:$0xff]   ;;  %v1306_v58 = vld [vmem:[%s1675_s3 + $0x10c] ss:$16 sps:$4 sm:$0xff]  }
  0x1a   : > { %v1325_v59 = vld [vmem:[%s1675_s3 + $0x184] ss:$16 sps:$4 sm:$0xff]   ;;  %v1304_v60 = vld [vmem:[%s1675_s3 + $0x108] ss:$16 sps:$4 sm:$0xff]   ;;  %v1327_v61 = vld [vmem:[%s1675_s3 + $0x180] ss:$16 sps:$4 sm:$0xff]  }
  0x1b   : > { %1215 = vmatpush3.bf16.msra.mxu0 %v1245_v14  ;;  %890 = vmatpush1.bf16.msra.mxu1 %v1279_v30  ;;  %v1312_v62 = vld [vmem:[%s1675_s3 + $0x12c] ss:$16 sps:$4 sm:$0xff]   ;;  %v1331_v63 = vld [vmem:[%s1675_s3 + $0x1a4] ss:$16 sps:$4 sm:$0xff]   ;;  %v1310_v0 = vld [vmem:[%s1675_s3 + $0x128] ss:$16 sps:$4 sm:$0xff]   ;;  %v541_v30 = vlaneseq }
  0x1c   : > { %1216 = vmatprep.subr.bf16.mxu0 %v1246_v15  ;;  %891 = vmatprep.subr.bf16.mxu1 %v1283_v31  ;;  %v1333_v1 = vld [vmem:[%s1675_s3 + $0x1a0] ss:$16 sps:$4 sm:$0xff]   ;;  %v1318_v2 = vld [vmem:[%s1675_s3 + $0x14c] ss:$16 sps:$4 sm:$0xff]   ;;  %v1337_v3 = vld [vmem:[%s1675_s3 + $0x1c4] ss:$16 sps:$4 sm:$0xff]  }
  0x1d   : > { %v1316_v4 = vld [vmem:[%s1675_s3 + $0x148] ss:$16 sps:$4 sm:$0xff]   ;;  %v1339_v5 = vld [vmem:[%s1675_s3 + $0x1c0] ss:$16 sps:$4 sm:$0xff]   ;;  %v1324_v6 = vld [vmem:[%s1675_s3 + $0x16c] ss:$16 sps:$4 sm:$0xff]  }
  0x1e   : > { %v1343_v7 = vld [vmem:[%s1675_s3 + $0x1e4] ss:$16 sps:$4 sm:$0xff]   ;;  %v1322_v8 = vld [vmem:[%s1675_s3 + $0x168] ss:$16 sps:$4 sm:$0xff]   ;;  %v1345_v9 = vld [vmem:[%s1675_s3 + $0x1e0] ss:$16 sps:$4 sm:$0xff]  }
  0x1f   : > { %1217 = vmatpush3.bf16.msra.mxu0 %v1247_v18  ;;  %892 = vmatpush1.bf16.msra.mxu1 %v1285_v34  ;;  %v1330_v10 = vld [vmem:[%s1675_s3 + $0x18c] ss:$16 sps:$4 sm:$0xff]   ;;  %v1328_v11 = vld [vmem:[%s1675_s3 + $0x188] ss:$16 sps:$4 sm:$0xff]   ;;  %v1100_v19 = vld [vmem:[%s1674_s2] ss:$0 sm:$0xff] }
  0x20   : > { %1218 = vmatprep.subr.bf16.mxu0 %v1248_v21  ;;  %893 = vmatprep.subr.bf16.mxu1 %v1289_v35  ;;  %v1336_v12 = vld [vmem:[%s1675_s3 + $0x1ac] ss:$16 sps:$4 sm:$0xff]   ;;  %v1340_v15 = vld [vmem:[%s1675_s3 + $0x1c8] ss:$16 sps:$4 sm:$0xff]   ;;  %v542_v31 = vshrl.u32 %v541_v30, 7 }
  0x21   : > { %v1342_v14 = vld [vmem:[%s1675_s3 + $0x1cc] ss:$16 sps:$4 sm:$0xff]   ;;  %v1346_v17 = vld [vmem:[%s1675_s3 + $0x1e8] ss:$16 sps:$4 sm:$0xff]  }
  0x22   : > { %v1348_v16 = vld [vmem:[%s1675_s3 + $0x1ec] ss:$16 sps:$4 sm:$0xff]   ;;  %v547_v34 = vsub.s32 1, %v542_v31 }
  0x23   : > { %1219 = vmatpush3.bf16.msra.mxu0 %v1249_v22  ;;  %894 = vmatpush1.bf16.msra.mxu1 %v1291_v38 }
  0x24   : > { %924 = vmatprep.subr.bf16.mxu0 %v1258_v24  ;;  %895 = vmatprep.subr.bf16.mxu1 %v1295_v39 }
  0x26   : > { %455 = vmatmul.mubr.bf16.vlgmr.msra.gmra.mrb[0].mxu0 %v1488_v27 }
  0x27   : > { %925 = vmatpush1.bf16.msra.mxu0 %v1256_v28  ;;  %956 = vmatprep.mubr.bf16.mxu0 %v1253_v13  ;;  %v1334_v13 = vld [vmem:[%s1675_s3 + $0x1a8] ss:$16 sps:$4 sm:$0xff]  }
  0x28   : > { %926 = vmatprep.subr.bf16.mxu0 %v1264_v29  ;;  %896 = vmatpush1.bf16.msra.mxu1 %v1297_v42 }
  0x29   : > { %897 = vmatprep.subr.bf16.mxu1 %v1301_v43 }
  0x2b   : > { %927 = vmatpush1.bf16.msra.mxu0 %v1262_v32  ;;  %v543_v32 = vsub.s32 0, %v542_v31 }
  0x2c   : > { %928 = vmatprep.subr.bf16.mxu0 %v1270_v33  ;;  %898 = vmatpush1.bf16.msra.mxu1 %v1303_v46  ;;  %v539_v33 = vld [vmem:[%s1676_s4] sm:$0xf] }
  0x2d   : > { %899 = vmatprep.subr.bf16.mxu1 %v1307_v47  ;;  %v544_v35 = vrot.slane %v539_v33, %v543_v32  ;;  %v551_v47 = vsub.s32 2, %v542_v31 }
  0x2f   : > { %929 = vmatpush1.bf16.msra.mxu0 %v1268_v36  ;;  %v548_v36 = vrot.slane %v539_v33, %v547_v34 }
  0x30   : > { %930 = vmatprep.subr.bf16.mxu0 %v1276_v37  ;;  %900 = vmatpush1.bf16.msra.mxu1 %v1309_v50 }
  0x31   : > { %901 = vmatprep.subr.bf16.mxu1 %v1313_v51 }
  0x33   : > { %931 = vmatpush1.bf16.msra.mxu0 %v1274_v40 }
  0x34   : > { %932 = vmatprep.subr.bf16.mxu0 %v1282_v41  ;;  %902 = vmatpush1.bf16.msra.mxu1 %v1315_v54 }
  0x35   : > { %903 = vmatprep.subr.bf16.mxu1 %v1319_v55 }
  0x37   : > { %933 = vmatpush1.bf16.msra.mxu0 %v1280_v44 }
  0x38   : > { %934 = vmatprep.subr.bf16.mxu0 %v1288_v45  ;;  %904 = vmatpush1.bf16.msra.mxu1 %v1321_v57 }
  0x39   : > { %905 = vmatprep.subr.bf16.mxu1 %v1325_v59 }
  0x3b   : > { %935 = vmatpush1.bf16.msra.mxu0 %v1286_v48  ;;  %v555_v48 = vsub.s32 3, %v542_v31 }
  0x3c   : > { %936 = vmatprep.subr.bf16.mxu0 %v1294_v49  ;;  %906 = vmatpush1.bf16.msra.mxu1 %v1327_v61  ;;  %v552_v49 = vrot.slane %v539_v33, %v551_v47 }
  0x3d   : > { %907 = vmatprep.subr.bf16.mxu1 %v1331_v63  ;;  %v556_v50 = vrot.slane %v539_v33, %v555_v48 }
  0x3f   : > { %937 = vmatpush1.bf16.msra.mxu0 %v1292_v52 }
  0x40   : > { %938 = vmatprep.subr.bf16.mxu0 %v1300_v53  ;;  %908 = vmatpush1.bf16.msra.mxu1 %v1333_v1 }
  0x41   : > { %909 = vmatprep.subr.bf16.mxu1 %v1337_v3 }
  0x43   : > { %939 = vmatpush1.bf16.msra.mxu0 %v1298_v56 }
  0x44   : > { %940 = vmatprep.subr.bf16.mxu0 %v1306_v58  ;;  %910 = vmatpush1.bf16.msra.mxu1 %v1339_v5 }
  0x45   : > { %911 = vmatprep.subr.bf16.mxu1 %v1343_v7 }
  0x47   : > { %941 = vmatpush1.bf16.msra.mxu0 %v1304_v60 }
  0x48   : > { %942 = vmatprep.subr.bf16.mxu0 %v1312_v62  ;;  %912 = vmatpush1.bf16.msra.mxu1 %v1345_v9 }
  0x4b   : > { %943 = vmatpush1.bf16.msra.mxu0 %v1310_v0  ;;  %914 = vmatmul.mubr.bf16.vlgmr.msra.gmra.mrb[0].mxu1 %v1488_v27 }
  0x4c   : > { %944 = vmatprep.subr.bf16.mxu0 %v1318_v2 }
  0x4f   : > { %945 = vmatpush1.bf16.msra.mxu0 %v1316_v4 }
  0x50   : > { %946 = vmatprep.subr.bf16.mxu0 %v1324_v6 }
  0x53   : > { %947 = vmatpush1.bf16.msra.mxu0 %v1322_v8 }
  0x54   : > { %948 = vmatprep.subr.bf16.mxu0 %v1330_v10 }
  0x57   : > { %949 = vmatpush1.bf16.msra.mxu0 %v1328_v11 }
  0x58   : > { %950 = vmatprep.subr.bf16.mxu0 %v1336_v12 }
  0x5b   : > { %951 = vmatpush1.bf16.msra.mxu0 %v1334_v13 }
  0x5c   : > { %952 = vmatprep.subr.bf16.mxu0 %v1342_v14 }
  0x5f   : > { %953 = vmatpush1.bf16.msra.mxu0 %v1340_v15 }
  0x60   : > { %954 = vmatprep.subr.bf16.mxu0 %v1348_v16 }
  0x63   : > { %955 = vmatpush1.bf16.msra.mxu0 %v1346_v17 }
  0x66   : > { %957 = vmatmul.mubr.bf16.vlgmr.msra.gmra.mrb[4].mxu0 %v1488_v27 }
  0xf9   : > { %v1220_v18 = vpop.f32.mrb[0].mxu0 }
  0xfa   : > { %v1221_v20 = vpop.f32.mrb[1].mxu0 }
  0xfb   : > { %v1222_v21 = vadd.f32 %v1221_v20, %v1220_v18  ;;  %v1223_v22 = vpop.f32.mrb[2].mxu0 }
  0xfc   : > { %v1224_v23 = vpop.f32.mrb[3].mxu0 }
  0xfd   : > { %v457_v24 = vadd.f32 %v1222_v21, %v1100_v19  ;;  %v1225_v25 = vadd.f32 %v1224_v23, %v1223_v22 }
  0xff   : > { %v460_v26 = vadd.f32 %v1225_v25, %v1100_v19  ;;  %v463_v28 = vmax.f32 %v457_v24, 0.0 }
 0x101   : > { %v464_v29 = vmax.f32 %v460_v26, 0.0 }
 0x103   : > { %v1202_v27 = vpack.c.bf16 %v464_v29, %v463_v28 }
 0x105   : > { %1203 = vst [vmem:[%s265_s16] sm:$0xff] %v1202_v27  }
 0x11e   : > { %v915_v37 = vpop.f32.mrb[0].mxu1 }
 0x11f   : > { %v916_v38 = vadd.f32 %v915_v37, %v544_v35  ;;  %v917_v39 = vpop.f32.mrb[1].mxu1 }
 0x120   : > { %v918_v40 = vadd.f32 %v917_v39, %v548_v36  ;;  %v919_v41 = vpop.f32.mrb[2].mxu1 }
 0x121   : > { %v920_v42 = vadd.f32 %v919_v41, %v544_v35  ;;  %v921_v43 = vpop.f32.mrb[3].mxu1 }
 0x122   : > { %v1195_v44 = vpack.c.bf16 %v918_v40, %v916_v38  ;;  %v922_v45 = vadd.f32 %v921_v43, %v548_v36 }
 0x124   : > { %991 = vst [vmem:[%s272_s22] sm:$0xff] %v1195_v44  ;;  %v1197_v46 = vpack.c.bf16 %v922_v45, %v920_v42 }
 0x126   : > { %993 = vst [vmem:[%s272_s22 + $0x10] sm:$0xff] %v1197_v46 }
 0x139   : > { %v958_v51 = vpop.f32.mrb[4].mxu0 }
 0x13a   : > { %v959_v52 = vadd.f32 %v958_v51, %v552_v49  ;;  %v960_v53 = vpop.f32.mrb[5].mxu0 }
 0x13b   : > { %v961_v54 = vadd.f32 %v960_v53, %v556_v50  ;;  %v962_v55 = vpop.f32.mrb[6].mxu0 }
 0x13c   : > { %v963_v56 = vadd.f32 %v962_v55, %v552_v49  ;;  %v964_v57 = vpop.f32.mrb[7].mxu0 }
 0x13d   : > { %v1196_v58 = vpack.c.bf16 %v961_v54, %v959_v52  ;;  %v965_v59 = vadd.f32 %v964_v57, %v556_v50 }
 0x13f   : > { %992 = vst [vmem:[%s272_s22 + $0x8] sm:$0xff] %v1196_v58  ;;  %v1198_v60 = vpack.c.bf16 %v965_v59, %v963_v56 }
 0x141   : > { %994 = vst [vmem:[%s272_s22 + $0x18] sm:$0xff] %v1198_v60 }
 0x142 PF: > { %s17_s21 = sadd.s32 1, %s1355_s21  }
 0x143   : > { %p14_p4 = scmp.ge.s32.totalorder %s17_s21, 4  }
 0x145   :  { %16 = sbr.rel (!%p14_p4) target bundleno = 1 (0x1), region = 82 }

// kernel: _lambda_.17
= control target key start
LH: loop header
LB: loop body
LE: loop exit
PB: predicated region body
PF: predicated region fallthrough
CT: control target
= control target key end

     0   :  { %s2160_s12 = smov 0   ;;  %s2499_s0 = inlined_call_operand.vmem [shape: bf16[2,56,128], index: 0, kind: input, shape index: {}]   ;;  %s2500_s1 = inlined_call_operand.vmem [shape: bf16[9,128,128], index: 1, kind: input, shape index: {}]   ;;  %s2501_s2 = inlined_call_operand.vmem [shape: f32[1,128], index: 2, kind: input, shape index: {}]   ;;  %s2502_s3 = inlined_call_operand.vmem [shape: bf16[2,32,128], index: 3, kind: output, shape index: {}]  }
   0x1 LB: > { %s1486_s13 = sadd.s32 4294967295, %s2138_s12   ;;  %p1490_p0 = scmp.ge.s32.totalorder %s2138_s12, 1  ;;  %s2138_s12 = sphi %s2160_s12, %s13_s12  }
   0x2   : > { %p137_p1 = scmp.lt.s32.totalorder %s2138_s12, 3 }
   0x4   : > { %p138_p2 = pnand %p1490_p0, %p137_p1 }
   0x5   : > { %v2044_v0 = vld [vmem:[%s2500_s1 + $0x40] sm:$0xff] (!%p138_p2)   ;;  %p161_p3 = scmp.lt.s32.totalorder (!%p138_p2), %s1486_s13, 1  ;;  %v2046_v2 = vld [vmem:[%s2500_s1 + $0x48] sm:$0xff] (!%p138_p2)   ;;  %v2048_v4 = vld [vmem:[%s2500_s1 + $0x50] sm:$0xff] (!%p138_p2)   ;;  %vm223_vm0 = vsmask.f32 (!%p138_p2), 7424 }
   0x6   : > { %141 = sbr.rel (%p138_p2) target bundleno = 391 (0x187), region = 32  ;;  %v2045_v1 = vld [vmem:[%s2500_s1 + $0x100] sm:$0xff] (!%p138_p2)   ;;  %1823 = vmatprep.subr.bf16.mxu1 (!%p138_p2), %v2044_v0  ;;  %v2047_v3 = vld [vmem:[%s2500_s1 + $0x108] sm:$0xff] (!%p138_p2)   ;;  %v2049_v5 = vld [vmem:[%s2500_s1 + $0x110] sm:$0xff] (!%p138_p2)   ;;  %vm463_vm1 = vcmask (!%p138_p2), 1046528  }
   0x7   : > { %1903 = vmatprep.subr.bf16.mxu0 (!%p138_p2), %v2045_v1  ;;  %1824 = vmatpush3.bf16.msra.mxu1 (!%p138_p2), %v2044_v0  ;;  %v2050_v6 = vld [vmem:[%s2500_s1 + $0x58] sm:$0xff] (!%p138_p2)   ;;  %v2052_v8 = vld [vmem:[%s2500_s1 + $0x60] sm:$0xff] (!%p138_p2)   ;;  %v2054_v10 = vld [vmem:[%s2500_s1 + $0x68] sm:$0xff] (!%p138_p2)  }
   0x8   : > { %1904 = vmatpush3.bf16.msra.mxu0 (!%p138_p2), %v2045_v1  ;;  %1825 = vmatprep.subr.bf16.mxu1 (!%p138_p2), %v2046_v2  ;;  %v2051_v7 = vld [vmem:[%s2500_s1 + $0x118] sm:$0xff] (!%p138_p2)   ;;  %v2053_v9 = vld [vmem:[%s2500_s1 + $0x120] sm:$0xff] (!%p138_p2)   ;;  %v2055_v14 = vld [vmem:[%s2500_s1 + $0x128] sm:$0xff] (!%p138_p2)  }
   0x9   : > { %1905 = vmatprep.subr.bf16.mxu0 (!%p138_p2), %v2047_v3  ;;  %v2056_v18 = vld [vmem:[%s2500_s1 + $0x70] sm:$0xff] (!%p138_p2)   ;;  %v2058_v32 = vld [vmem:[%s2500_s1 + $0x78] sm:$0xff] (!%p138_p2)   ;;  %v2062_v50 = vld [vmem:[%s2500_s1] sm:$0xff] (!%p138_p2)  }
   0xa   : > { %v2057_v25 = vld [vmem:[%s2500_s1 + $0x130] sm:$0xff] (!%p138_p2)   ;;  %v2059_v40 = vld [vmem:[%s2500_s1 + $0x138] sm:$0xff] (!%p138_p2)   ;;  %v2065_v54 = vld [vmem:[%s2500_s1 + $0x140] sm:$0xff] (!%p138_p2)  }
   0xb   : > { %1826 = vmatpush3.bf16.msra.mxu1 (!%p138_p2), %v2046_v2  ;;  %v2068_v57 = vld [vmem:[%s2500_s1 + $0x8] sm:$0xff] (!%p138_p2)   ;;  %v2070_v59 = vld [vmem:[%s2500_s1 + $0x10] sm:$0xff] (!%p138_p2)   ;;  %v2072_v62 = vld [vmem:[%s2500_s1 + $0x18] sm:$0xff] (!%p138_p2)  }
   0xc   : > { %1906 = vmatpush3.bf16.msra.mxu0 (!%p138_p2), %v2047_v3  ;;  %1827 = vmatprep.subr.bf16.mxu1 (!%p138_p2), %v2048_v4  ;;  %v2069_v58 = vld [vmem:[%s2500_s1 + $0x148] sm:$0xff] (!%p138_p2)   ;;  %v2071_v60 = vld [vmem:[%s2500_s1 + $0x150] sm:$0xff] (!%p138_p2)   ;;  %v2073_v1 = vld [vmem:[%s2500_s1 + $0x158] sm:$0xff] (!%p138_p2)  }
   0xd   : > { %s2504_s13 = smov (!%p161_p3, %s1486_s13), 1  ;;  %1907 = vmatprep.subr.bf16.mxu0 %v2049_v5  ;;  %v2074_v3 = vld [vmem:[%s2500_s1 + $0x20] sm:$0xff]  }
   0xe   : > { %s2035_s30 = smul.u32 28, %s2504_s13  ;;  %s1717_s18 = sshll.u32 %s2504_s13, 4 }
   0xf   : > { %1828 = vmatpush3.bf16.msra.mxu1 %v2048_v4  ;;  %s170_s21 = scalar_lea.vmem %s2502_s3, %s1717_s18 }
  0x10   : > { %1908 = vmatpush3.bf16.msra.mxu0 %v2049_v5  ;;  %1829 = vmatprep.subr.bf16.mxu1 %v2050_v6  ;;  %s2204_s10 = scalar_lea.vmem %s2499_s0, %s2035_s30  ;;  %v2075_v5 = vld [vmem:[%s2500_s1 + $0x160] sm:$0xff]  }
  0x11   : > { %1909 = vmatprep.subr.bf16.mxu0 %v2051_v7  ;;  %v172_v11 = vld [vmem:[%s2204_s10] sm:$0xf]  ;;  %v2211_v12 = vld [vmem:[%s2204_s10 + $0x4] sm:$0xf]  ;;  %v2214_v13 = vld [vmem:[%s2204_s10 + $0x8] sm:$0xf] }
  0x12   : > { %v2220_v15 = vld [vmem:[%s2204_s10 + $0xc] sm:$0xf]  ;;  %v2223_v16 = vcombine.low %v172_v11, %v2211_v12  ;;  %v1570_v17 = vcombine.low %v2211_v12, %v2214_v13  ;;  %v697_v20 = vld [vmem:[%s2204_s10 + $0x4] sm:$0xf]  ;;  %v2238_v23 = vld [vmem:[%s2204_s10 + $0x8] sm:$0xf] }
  0x13   : > { %1830 = vmatpush3.bf16.msra.mxu1 %v2050_v6  ;;  %v2232_v19 = vcombine.low %v2214_v13, %v2220_v15  ;;  %v2241_v24 = vld [vmem:[%s2204_s10 + $0xc] sm:$0xf]  ;;  %v2248_v27 = vld [vmem:[%s2204_s10 + $0x10] sm:$0xf]  ;;  %v1596_v28 = vcombine.low %v697_v20, %v2238_v23  ;;  %v855_v61 = vld [vmem:[%s2204_s10 + $0x4] sm:$0xe] }
  0x14   : > { %1910 = vmatpush3.bf16.msra.mxu0 %v2051_v7  ;;  %1831 = vmatprep.subr.bf16.mxu1 %v2052_v8  ;;  %v225_v21 = vshrl.u32 %v2223_v16, 16  ;;  %v227_v22 = vshll.u32 %v2223_v16, 16  ;;  %v2253_v30 = vcombine.low %v2241_v24, %v2248_v27  ;;  %v2260_v36 = vld [vmem:[%s2204_s10 + $0x10] ss:$0 sps:$4 sm:$0x11]   ;;  %v1623_v63 = vcombine.low %v855_v61, %v2238_v23  ;;  %v2076_v6 = vld [vmem:[%s2500_s1 + $0x28] sm:$0xff]  }
  0x15   : > { %1911 = vmatprep.subr.bf16.mxu0 %v2053_v9  ;;  %v232_v26 = vshll.u32 %v2232_v19, 16  ;;  %v236_v31 = vshrl.u32 %v2232_v19, 16  ;;  %v733_v34 = vshrl.u32 %v1596_v28, 16  ;;  %v735_v35 = vshll.u32 %v1596_v28, 16  ;;  %v2077_v7 = vld [vmem:[%s2500_s1 + $0x168] sm:$0xff]   ;;  %v2080_v11 = vld [vmem:[%s2500_s1 + $0x38] sm:$0xff]  }
  0x16   : > { %v229_v29 = vrot.slane %v227_v22, 1  ;;  %v740_v38 = vshll.u32 %v2253_v30, 16  ;;  %v2264_v39 = vld [vmem:[%s2204_s10 + $0x14] ss:$0 sps:$4 sm:$0x11]   ;;  %v240_v42 = vshll.u32 %v2260_v36, 16 }
  0x17   : > { %1832 = vmatpush3.bf16.msra.mxu1 %v2052_v8  ;;  %v234_v33 = vrot.slane %v232_v26, 1  ;;  %v737_v41 = vrot.slane %v735_v35, 1  ;;  %v744_v43 = vshrl.u32 %v2253_v30, 16  ;;  %v748_v46 = vshll.u32 %v2264_v39, 16  ;;  %v2078_v8 = vld [vmem:[%s2500_s1 + $0x30] sm:$0xff]   ;;  %v2085_v28 = vld [vmem:[%s2500_s1 + $0x88] sm:$0xff]  }
  0x18   : > { %1912 = vmatpush3.bf16.msra.mxu0 %v2053_v9  ;;  %1833 = vmatprep.subr.bf16.mxu1 %v2054_v10  ;;  %v230_v37 = vor.u32 %v229_v29, %v225_v21  ;;  %v742_v45 = vrot.slane %v740_v38, 1  ;;  %v242_v49 = vrot.slane %v240_v42, 1  ;;  %v877_v0 = vrot.slane %v2253_v30, 1  ;;  %v2079_v9 = vld [vmem:[%s2500_s1 + $0x170] sm:$0xff]   ;;  %v2084_v21 = vld [vmem:[%s2500_s1 + $0x180] sm:$0xff]   ;;  %v2086_v29 = vld [vmem:[%s2500_s1 + $0x188] sm:$0xff]  }
  0x19   : > { %1913 = vmatprep.subr.bf16.mxu0 %v2055_v14  ;;  %v738_v47 = vor.u32 %v737_v41, %v733_v34  ;;  %v238_v48 = vor.u32 %v236_v31, %v234_v33  ;;  %v750_v53 = vrot.slane %v748_v46, 1  ;;  %v876_v2 = vrot.slane %v1623_v63, 1  ;;  %v2091_v34 = vld [vmem:[%s2500_s1 + $0xa0] sm:$0xff]   ;;  %v1109_v38 = vld [vmem:[%s2204_s10 + $0x8] sm:$0xf]  ;;  %v2095_v42 = vld [vmem:[%s2500_s1 + $0xb0] sm:$0xff]  }
  0x1a   : > { %v235_v44 = vsel %vm223_vm0, %v230_v37, %v234_v33  ;;  %v746_v52 = vor.u32 %v744_v43, %v742_v45  ;;  %v879_v20 = vrot.slane %v2264_v39, 1  ;;  %v1648_v31 = vcombine.low %v2238_v23, %v2241_v24  ;;  %v2088_v33 = vld [vmem:[%s2500_s1 + $0x190] sm:$0xff]   ;;  %v2089_v23 = vld [vmem:[%s2500_s1 + $0x98] sm:$0xff]   ;;  %v2092_v35 = vld [vmem:[%s2500_s1 + $0x1a0] sm:$0xff]  }
  0x1b   : > { %1834 = vmatpush3.bf16.msra.mxu1 %v2054_v10  ;;  %1839 = vmatprep.mubr.bf16.mxu1 %v235_v44  ;;  %v743_v51 = vsel %vm223_vm0, %v738_v47, %v742_v45  ;;  %v243_v55 = vsel %vm223_vm0, %v238_v48, %v242_v49  ;;  %v878_v4 = vsel %vm463_vm1, %v876_v2, %v877_v0  ;;  %v442_v10 = vld [vmem:[%s2204_s10] sm:$0xe]  ;;  %v2090_v24 = vld [vmem:[%s2500_s1 + $0x198] sm:$0xff]   ;;  %v2093_v37 = vld [vmem:[%s2500_s1 + $0xa8] sm:$0xff]   ;;  %v467_v48 = vrot.slane %v2260_v36, 1 }
  0x1c   : > { %1914 = vmatpush3.bf16.msra.mxu0 %v2055_v14  ;;  %1835 = vmatprep.subr.bf16.mxu1 %v2056_v18  ;;  %v751_v56 = vsel %vm223_vm0, %v746_v52, %v750_v53  ;;  %v2081_v14 = vld [vmem:[%s2500_s1 + $0x178] sm:$0xff]   ;;  %v880_v26 = vsel %vm463_vm1, %v877_v0, %v879_v20  ;;  %v2375_v39 = vld [vmem:[%s2204_s10 + $0xc] sm:$0xf]  ;;  %v2096_v43 = vld [vmem:[%s2500_s1 + $0x1b0] sm:$0xff]  }
  0x1d   : > { %1915 = vmatprep.subr.bf16.mxu0 %v2057_v25  ;;  %1919 = vmatprep.mubr.bf16.mxu0 %v743_v51  ;;  %v1674_v41 = vcombine.low %v1109_v38, %v2375_v39  ;;  %v2388_v44 = vld [vmem:[%s2204_s10 + $0x10] sm:$0xff]   ;;  %v2097_v46 = vld [vmem:[%s2500_s1 + $0xb8] sm:$0xff]   ;;  %v2100_v52 = vld [vmem:[%s2500_s1 + $0xc0] sm:$0xff]  }
  0x1e   : > { %v2098_v47 = vld [vmem:[%s2500_s1 + $0x1b8] sm:$0xff]   ;;  %v1152_v51 = vshll.u32 %v2388_v44, 16  ;;  %v984_v53 = vld [vmem:[%s2204_s10 + $0x14] sm:$0xf]  ;;  %v2111_v13 = vld [vmem:[%s2500_s1 + $0x1e0] sm:$0xff]  }
  0x1f   : > { %1836 = vmatpush3.bf16.msra.mxu1 %v2056_v18  ;;  %v2082_v18 = vld [vmem:[%s2500_s1 + $0x80] sm:$0xff]   ;;  %v1147_v45 = vshll.u32 %v1674_v41, 16  ;;  %v1145_v49 = vshrl.u32 %v1674_v41, 16  ;;  %v2108_v61 = vld [vmem:[%s2500_s1 + $0xd8] sm:$0xff]   ;;  %v2113_v63 = vld [vmem:[%s2500_s1 + $0x1e8] sm:$0xff]  }
  0x20   : > { %1916 = vmatpush3.bf16.msra.mxu0 %v2057_v25  ;;  %1837 = vmatprep.subr.bf16.mxu1 %v2058_v32  ;;  %v465_v25 = vrot.slane %v2232_v19, 1  ;;  %v2114_v0 = vld [vmem:[%s2500_s1 + $0xf0] sm:$0xff]   ;;  %v1710_v38 = vld [vmem:[%s2501_s2] ss:$0 sm:$0xff] }
  0x21   : > { %1917 = vmatprep.subr.bf16.mxu0 %v2059_v40  ;;  %v2115_v2 = vld [vmem:[%s2500_s1 + $0x1f0] sm:$0xff]  }
  0x22   : > { %v468_v36 = vsel %vm463_vm1, %v465_v25, %v467_v48 }
  0x23   : > { %1838 = vmatpush3.bf16.msra.mxu1 %v2058_v32  ;;  %v2087_v32 = vld [vmem:[%s2500_s1 + $0x90] sm:$0xff]  }
  0x24   : > { %1918 = vmatpush3.bf16.msra.mxu0 %v2059_v40  ;;  %1843 = vmatprep.subr.bf16.mxu1 %v2062_v50  ;;  %v2094_v40 = vld [vmem:[%s2500_s1 + $0x1a8] sm:$0xff]  }
  0x25   : > { %1923 = vmatprep.subr.bf16.mxu0 %v2065_v54 }
  0x26   : > { %1840 = vmatmul.mubr.bf16.vlgmr.msra.gmra.mrb[0].mxu1 %v243_v55  ;;  %v1649_v55 = vcombine.low %v2248_v27, %v984_v53  ;;  %v2106_v27 = vld [vmem:[%s2500_s1 + $0xd0] sm:$0xff]  }
  0x27   : > { %1844 = vmatpush3.bf16.msra.mxu1 %v2062_v50  ;;  %1920 = vmatmul.mubr.bf16.vlgmr.msra.gmra.mrb[0].mxu0 %v751_v56  ;;  %v1149_v50 = vrot.slane %v1147_v45, 1 }
  0x28   : > { %1924 = vmatpush3.bf16.msra.mxu0 %v2065_v54  ;;  %1845 = vmatprep.subr.bf16.mxu1 %v2068_v57  ;;  %v2102_v54 = vld [vmem:[%s2500_s1 + $0x1c0] sm:$0xff]  }
  0x29   : > { %1925 = vmatprep.subr.bf16.mxu0 %v2069_v58  ;;  %1859 = vmatprep.mubr.bf16.mxu1 %v2223_v16  ;;  %v1545_v16 = vcombine.low %v442_v10, %v2211_v12  ;;  %v1150_v56 = vor.u32 %v1149_v50, %v1145_v49  ;;  %v2110_v12 = vld [vmem:[%s2500_s1 + $0xe0] sm:$0xff]  }
  0x2a   : > { %1939 = vmatprep.mubr.bf16.mxu0 %v878_v4  ;;  %v2116_v4 = vld [vmem:[%s2500_s1 + $0xf8] sm:$0xff]  }
  0x2b   : > { %1846 = vmatpush3.bf16.msra.mxu1 %v2068_v57  ;;  %v464_v22 = vrot.slane %v1545_v16, 1  ;;  %v1154_v57 = vrot.slane %v1152_v51, 1 }
  0x2c   : > { %1926 = vmatpush3.bf16.msra.mxu0 %v2069_v58  ;;  %1847 = vmatprep.subr.bf16.mxu1 %v2070_v59  ;;  %v2104_v58 = vld [vmem:[%s2500_s1 + $0xc8] sm:$0xff]  }
  0x2d   : > { %1927 = vmatprep.subr.bf16.mxu0 %v2071_v60  ;;  %v466_v30 = vsel %vm463_vm1, %v464_v22, %v465_v25  ;;  %v2124_v22 = vld [vmem:[%s2500_s1 + $0x208] sm:$0xff]  }
  0x2f   : > { %1848 = vmatpush3.bf16.msra.mxu1 %v2070_v59  ;;  %v2105_v59 = vld [vmem:[%s2500_s1 + $0x1c8] sm:$0xff]  }
  0x30   : > { %1928 = vmatpush3.bf16.msra.mxu0 %v2071_v60  ;;  %1849 = vmatprep.subr.bf16.mxu1 %v2072_v62  ;;  %v2107_v60 = vld [vmem:[%s2500_s1 + $0x1d0] sm:$0xff]  }
  0x31   : > { %1929 = vmatprep.subr.bf16.mxu0 %v2073_v1 }
  0x33   : > { %1850 = vmatpush3.bf16.msra.mxu1 %v2072_v62  ;;  %v2109_v62 = vld [vmem:[%s2500_s1 + $0x1d8] sm:$0xff]  }
  0x34   : > { %1930 = vmatpush3.bf16.msra.mxu0 %v2073_v1  ;;  %1851 = vmatprep.subr.bf16.mxu1 %v2074_v3  ;;  %v2123_v1 = vld [vmem:[%s2204_s10 + $0x18] ss:$0 sps:$4 sm:$0x11]  }
  0x35   : > { %1931 = vmatprep.subr.bf16.mxu0 %v2075_v5 }
  0x37   : > { %1852 = vmatpush3.bf16.msra.mxu1 %v2074_v3  ;;  %v1267_v3 = vld [vmem:[%s2204_s10 + $0x8] sm:$0xe] }
  0x38   : > { %1932 = vmatpush3.bf16.msra.mxu0 %v2075_v5  ;;  %1853 = vmatprep.subr.bf16.mxu1 %v2076_v6  ;;  %v1156_v5 = vshrl.u32 %v2388_v44, 16 }
  0x39   : > { %1933 = vmatprep.subr.bf16.mxu0 %v2077_v7 }
  0x3a   : > { %v1158_v10 = vor.u32 %v1156_v5, %v1154_v57 }
  0x3b   : > { %1854 = vmatpush3.bf16.msra.mxu1 %v2076_v6  ;;  %v1160_v6 = vshll.u32 %v2123_v1, 16 }
  0x3c   : > { %1934 = vmatpush3.bf16.msra.mxu0 %v2077_v7  ;;  %1855 = vmatprep.subr.bf16.mxu1 %v2078_v8  ;;  %v2117_v7 = vld [vmem:[%s2500_s1 + $0x1f8] sm:$0xff]  }
  0x3d   : > { %1935 = vmatprep.subr.bf16.mxu0 %v2079_v9 }
  0x3f   : > { %1856 = vmatpush3.bf16.msra.mxu1 %v2078_v8  ;;  %v1701_v8 = vcombine.low %v1267_v3, %v2375_v39 }
  0x40   : > { %1936 = vmatpush3.bf16.msra.mxu0 %v2079_v9  ;;  %1857 = vmatprep.subr.bf16.mxu1 %v2080_v11  ;;  %v572_v9 = vld [vmem:[%s2204_s10 + $0x10] sm:$0xf] }
  0x41   : > { %1937 = vmatprep.subr.bf16.mxu0 %v2081_v14  ;;  %v1288_v16 = vrot.slane %v1701_v8, 1  ;;  %v1571_v20 = vcombine.low %v2220_v15, %v572_v9  ;;  %v2125_v15 = vld [vmem:[%s2500_s1 + $0x210] sm:$0xff]  }
  0x43   : > { %1858 = vmatpush3.bf16.msra.mxu1 %v2080_v11  ;;  %v1162_v11 = vrot.slane %v1160_v6, 1 }
  0x44   : > { %1938 = vmatpush3.bf16.msra.mxu0 %v2081_v14  ;;  %1863 = vmatprep.subr.bf16.mxu1 %v2082_v18  ;;  %v2122_v14 = vld [vmem:[%s2500_s1 + $0x200] sm:$0xff]  }
  0x45   : > { %1943 = vmatprep.subr.bf16.mxu0 %v2084_v21 }
  0x46   : > { %1860 = vmatmul.mubr.bf16.vlgmr.msra.gmra.mrb[0].mxu1 %v2232_v19  ;;  %v1155_v19 = vsel %vm223_vm0, %v1150_v56, %v1154_v57 }
  0x47   : > { %1864 = vmatpush3.bf16.msra.mxu1 %v2082_v18  ;;  %1940 = vmatmul.mubr.bf16.vlgmr.msra.gmra.mrb[0].mxu0 %v880_v26  ;;  %v1289_v18 = vrot.slane %v2388_v44, 1  ;;  %v2126_v26 = vld [vmem:[%s2500_s1 + $0x218] sm:$0xff]  }
  0x48   : > { %1944 = vmatpush3.bf16.msra.mxu0 %v2084_v21  ;;  %1865 = vmatprep.subr.bf16.mxu1 %v2085_v28  ;;  %v1163_v21 = vsel %vm223_vm0, %v1158_v10, %v1162_v11 }
  0x49   : > { %1945 = vmatprep.subr.bf16.mxu0 %v2086_v29  ;;  %1879 = vmatprep.mubr.bf16.mxu1 %v466_v30  ;;  %v1290_v25 = vsel %vm463_vm1, %v1288_v16, %v1289_v18  ;;  %v2129_v30 = vld [vmem:[%s2500_s1 + $0x230] sm:$0xff]  }
  0x4a   : > { %1959 = vmatprep.mubr.bf16.mxu0 %v1648_v31  ;;  %v2130_v31 = vld [vmem:[%s2500_s1 + $0x238] sm:$0xff]  }
  0x4b   : > { %1866 = vmatpush3.bf16.msra.mxu1 %v2085_v28  ;;  %v2127_v28 = vld [vmem:[%s2500_s1 + $0x220] sm:$0xff]  }
  0x4c   : > { %1946 = vmatpush3.bf16.msra.mxu0 %v2086_v29  ;;  %1867 = vmatprep.subr.bf16.mxu1 %v2087_v32  ;;  %v2128_v29 = vld [vmem:[%s2500_s1 + $0x228] sm:$0xff]  }
  0x4d   : > { %1947 = vmatprep.subr.bf16.mxu0 %v2088_v33 }
  0x4f   : > { %1868 = vmatpush3.bf16.msra.mxu1 %v2087_v32  ;;  %v1291_v32 = vrot.slane %v2123_v1, 1 }
  0x50   : > { %1948 = vmatpush3.bf16.msra.mxu0 %v2088_v33  ;;  %1869 = vmatprep.subr.bf16.mxu1 %v2089_v23 }
  0x51   : > { %1949 = vmatprep.subr.bf16.mxu0 %v2090_v24  ;;  %v1292_v33 = vsel %vm463_vm1, %v1289_v18, %v1291_v32 }
  0x53   : > { %1870 = vmatpush3.bf16.msra.mxu1 %v2089_v23 }
  0x54   : > { %1950 = vmatpush3.bf16.msra.mxu0 %v2090_v24  ;;  %1871 = vmatprep.subr.bf16.mxu1 %v2091_v34 }
  0x55   : > { %1951 = vmatprep.subr.bf16.mxu0 %v2092_v35 }
  0x57   : > { %1872 = vmatpush3.bf16.msra.mxu1 %v2091_v34 }
  0x58   : > { %1952 = vmatpush3.bf16.msra.mxu0 %v2092_v35  ;;  %1873 = vmatprep.subr.bf16.mxu1 %v2093_v37 }
  0x59   : > { %1953 = vmatprep.subr.bf16.mxu0 %v2094_v40 }
  0x5b   : > { %1874 = vmatpush3.bf16.msra.mxu1 %v2093_v37 }
  0x5c   : > { %1954 = vmatpush3.bf16.msra.mxu0 %v2094_v40  ;;  %1875 = vmatprep.subr.bf16.mxu1 %v2095_v42 }
  0x5d   : > { %1955 = vmatprep.subr.bf16.mxu0 %v2096_v43 }
  0x5f   : > { %1876 = vmatpush3.bf16.msra.mxu1 %v2095_v42 }
  0x60   : > { %1956 = vmatpush3.bf16.msra.mxu0 %v2096_v43  ;;  %1877 = vmatprep.subr.bf16.mxu1 %v2097_v46 }
  0x61   : > { %1957 = vmatprep.subr.bf16.mxu0 %v2098_v47 }
  0x63   : > { %1878 = vmatpush3.bf16.msra.mxu1 %v2097_v46 }
  0x64   : > { %1958 = vmatpush3.bf16.msra.mxu0 %v2098_v47  ;;  %1883 = vmatprep.subr.bf16.mxu1 %v2100_v52 }
  0x65   : > { %1963 = vmatprep.subr.bf16.mxu0 %v2102_v54 }
  0x66   : > { %1880 = vmatmul.mubr.bf16.vlgmr.msra.gmra.mrb[0].mxu1 %v468_v36 }
  0x67   : > { %1884 = vmatpush3.bf16.msra.mxu1 %v2100_v52  ;;  %1960 = vmatmul.mubr.bf16.vlgmr.msra.gmra.mrb[0].mxu0 %v1649_v55 }
  0x68   : > { %1964 = vmatpush3.bf16.msra.mxu0 %v2102_v54  ;;  %1885 = vmatprep.subr.bf16.mxu1 %v2104_v58 }
  0x69   : > { %1965 = vmatprep.subr.bf16.mxu0 %v2105_v59  ;;  %1899 = vmatprep.mubr.bf16.mxu1 %v1570_v17  ;;  %v2112_v17 = vld [vmem:[%s2500_s1 + $0xe8] sm:$0xff]  }
  0x6a   : > { %1979 = vmatprep.mubr.bf16.mxu0 %v1155_v19 }
  0x6b   : > { %1886 = vmatpush3.bf16.msra.mxu1 %v2104_v58 }
  0x6c   : > { %1966 = vmatpush3.bf16.msra.mxu0 %v2105_v59  ;;  %1887 = vmatprep.subr.bf16.mxu1 %v2106_v27 }
  0x6d   : > { %1967 = vmatprep.subr.bf16.mxu0 %v2107_v60 }
  0x6f   : > { %1888 = vmatpush3.bf16.msra.mxu1 %v2106_v27 }
  0x70   : > { %1968 = vmatpush3.bf16.msra.mxu0 %v2107_v60  ;;  %1889 = vmatprep.subr.bf16.mxu1 %v2108_v61 }
  0x71   : > { %1969 = vmatprep.subr.bf16.mxu0 %v2109_v62 }
  0x73   : > { %1890 = vmatpush3.bf16.msra.mxu1 %v2108_v61 }
  0x74   : > { %1970 = vmatpush3.bf16.msra.mxu0 %v2109_v62  ;;  %1891 = vmatprep.subr.bf16.mxu1 %v2110_v12 }
  0x75   : > { %1971 = vmatprep.subr.bf16.mxu0 %v2111_v13 }
  0x77   : > { %1892 = vmatpush3.bf16.msra.mxu1 %v2110_v12 }
  0x78   : > { %1972 = vmatpush3.bf16.msra.mxu0 %v2111_v13  ;;  %1893 = vmatprep.subr.bf16.mxu1 %v2112_v17 }
  0x79   : > { %1973 = vmatprep.subr.bf16.mxu0 %v2113_v63 }
  0x7b   : > { %1894 = vmatpush3.bf16.msra.mxu1 %v2112_v17 }
  0x7c   : > { %1974 = vmatpush3.bf16.msra.mxu0 %v2113_v63  ;;  %1895 = vmatprep.subr.bf16.mxu1 %v2114_v0 }
  0x7d   : > { %1975 = vmatprep.subr.bf16.mxu0 %v2115_v2 }
  0x7f   : > { %1896 = vmatpush3.bf16.msra.mxu1 %v2114_v0 }
  0x80   : > { %1976 = vmatpush3.bf16.msra.mxu0 %v2115_v2  ;;  %1897 = vmatprep.subr.bf16.mxu1 %v2116_v4 }
  0x81   : > { %1977 = vmatprep.subr.bf16.mxu0 %v2117_v7 }
  0x83   : > { %1898 = vmatpush3.bf16.msra.mxu1 %v2116_v4 }
  0x84   : > { %1978 = vmatpush3.bf16.msra.mxu0 %v2117_v7 }
  0x85   : > { %1983 = vmatprep.subr.bf16.mxu0 %v2122_v14 }
  0x86   : > { %1900 = vmatmul.mubr.bf16.vlgmr.msra.gmra.mrb[0].mxu1 %v1571_v20 }
  0x87   : > { %1980 = vmatmul.mubr.bf16.vlgmr.msra.gmra.mrb[0].mxu0 %v1163_v21 }
  0x88   : > { %1984 = vmatpush3.bf16.msra.mxu0 %v2122_v14  ;;  %1999 = vmatprep.mubr.bf16.mxu0 %v1290_v25 }
  0x89   : > { %1985 = vmatprep.subr.bf16.mxu0 %v2124_v22 }
  0x8c   : > { %1986 = vmatpush3.bf16.msra.mxu0 %v2124_v22 }
  0x8d   : > { %1987 = vmatprep.subr.bf16.mxu0 %v2125_v15 }
  0x90   : > { %1988 = vmatpush3.bf16.msra.mxu0 %v2125_v15 }
  0x91   : > { %1989 = vmatprep.subr.bf16.mxu0 %v2126_v26 }
  0x94   : > { %1990 = vmatpush3.bf16.msra.mxu0 %v2126_v26 }
  0x95   : > { %1991 = vmatprep.subr.bf16.mxu0 %v2127_v28 }
  0x98   : > { %1992 = vmatpush3.bf16.msra.mxu0 %v2127_v28 }
  0x99   : > { %1993 = vmatprep.subr.bf16.mxu0 %v2128_v29 }
  0x9c   : > { %1994 = vmatpush3.bf16.msra.mxu0 %v2128_v29 }
  0x9d   : > { %1995 = vmatprep.subr.bf16.mxu0 %v2129_v30 }
  0xa0   : > { %1996 = vmatpush3.bf16.msra.mxu0 %v2129_v30 }
  0xa1   : > { %1997 = vmatprep.subr.bf16.mxu0 %v2130_v31 }
  0xa4   : > { %1998 = vmatpush3.bf16.msra.mxu0 %v2130_v31 }
  0xa7   : > { %2000 = vmatmul.mubr.bf16.vlgmr.msra.gmra.mrb[0].mxu0 %v1292_v33 }
 0x159   : > { %v1901_v23 = vpop.f32.mrb[0].mxu1 }
 0x15a   : > { %v678_v24 = vpop.f32.mrb[1].mxu1 }
 0x15b   : > { %v1902_v34 = vpop.f32.mrb[2].mxu1 }
 0x15c   : > { %v681_v35 = vpop.f32.mrb[3].mxu1 }
 0x17a   : > { %v2001_v37 = vpop.f32.mrb[0].mxu0 }
 0x17b   : > { %v2003_v39 = vadd.f32 %v2001_v37, %v1901_v23  ;;  %v1377_v40 = vpop.f32.mrb[1].mxu0 }
 0x17c   : > { %v2004_v41 = vadd.f32 %v1377_v40, %v678_v24  ;;  %v2002_v42 = vpop.f32.mrb[2].mxu0 }
 0x17d   : > { %v1405_v43 = vadd.f32 %v2003_v39, %v1710_v38  ;;  %v2005_v44 = vadd.f32 %v2002_v42, %v1902_v34  ;;  %v1380_v45 = vpop.f32.mrb[3].mxu0 }
 0x17e   : > { %v1403_v46 = vadd.f32 %v2004_v41, %v1710_v38  ;;  %v2006_v47 = vadd.f32 %v1380_v45, %v681_v35 }
 0x17f   : > { %v1406_v48 = vadd.f32 %v2005_v44, %v1710_v38  ;;  %v1409_v50 = vmax.f32 %v1405_v43, 0.0 }
 0x180   : > { %v1404_v49 = vadd.f32 %v2006_v47, %v1710_v38  ;;  %v1407_v52 = vmax.f32 %v1403_v46, 0.0 }
 0x181   : > { %v1410_v51 = vmax.f32 %v1406_v48, 0.0 }
 0x182   : > { %v1408_v53 = vmax.f32 %v1404_v49, 0.0 }
 0x183   : > { %v1730_v54 = vpack.c.bf16 %v1410_v51, %v1409_v50 }
 0x184   : > { %v1725_v36 = vpack.c.bf16 %v1408_v53, %v1407_v52 }
 0x185   : > { %1732 = vst [vmem:[%s170_s21 + $0x8] sm:$0xff] %v1730_v54  }
 0x186   : > { %1726 = vst [vmem:[%s170_s21] sm:$0xff] %v1725_v36  }
 0x187 PF: > { %s13_s12 = sadd.s32 1, %s2138_s12  }
 0x188   : > { %p10_p4 = scmp.ge.s32.totalorder %s13_s12, 4  }
 0x18a   :  { %12 = sbr.rel (!%p10_p4) target bundleno = 1 (0x1), region = 70 }

// kernel: _lambda_.18
= control target key start
LH: loop header
LB: loop body
LE: loop exit
PB: predicated region body
PF: predicated region fallthrough
CT: control target
= control target key end

     0   :  { %s1656_s27 = smov 0   ;;  %s1975_s0 = inlined_call_operand.vmem [shape: bf16[2,16,128], index: 0, kind: input, shape index: {}]   ;;  %s1976_s1 = inlined_call_operand.vmem [shape: bf16[2,16,512], index: 1, kind: input, shape index: {}]   ;;  %s1977_s2 = inlined_call_operand.vmem [shape: bf16[128,512], index: 2, kind: input, shape index: {}]   ;;  %s1978_s3 = inlined_call_operand.vmem [shape: f32[1,512], index: 3, kind: input, shape index: {}]   ;;  %s1979_s4 = inlined_call_operand.vmem [shape: bf16[512,32], index: 4, kind: input, shape index: {}]   ;;  %s1980_s5 = inlined_call_operand.vmem [shape: f32[1,32], index: 5, kind: input, shape index: {}]   ;;  %s1981_s6 = inlined_call_operand.vmem [shape: bf16[32,512], index: 6, kind: input, shape index: {}]   ;;  %s1982_s7 = inlined_call_operand.vmem [shape: f32[1,512], index: 7, kind: input, shape index: {}]   ;;  %s1983_s8 = inlined_call_operand.vmem [shape: bf16[2,16,512], index: 8, kind: output, shape index: {}]  }
   0x1 LB: > { %s1337_s28 = sadd.s32 4294967295, %s1608_s27   ;;  %p1341_p0 = scmp.ge.s32.totalorder %s1608_s27, 1  ;;  %s1608_s27 = sphi %s1656_s27, %s18_s27  }
   0x2   : > { %p272_p1 = scmp.lt.s32.totalorder %s1608_s27, 3 }
   0x4   : > { %p273_p2 = pnand %p1341_p0, %p272_p1 }
   0x5   : > { %v1493_v0 = vld [vmem:[%s1977_s2 + $0x4] ss:$16 sps:$4 sm:$0xff] (!%p273_p2)   ;;  %v1495_v1 = vld [vmem:[%s1977_s2 + $0xc] ss:$16 sps:$4 sm:$0xff] (!%p273_p2)   ;;  %v1610_v2 = vmov (!%p273_p2), 0   ;;  %p311_p3 = scmp.lt.s32.totalorder (!%p273_p2), %s1337_s28, 1 }
   0x6   : > { %276 = sbr.rel (%p273_p2) target bundleno = 752 (0x2f0), region = 52  ;;  %581 = vmatprep.mubr.bf16.mxu0 (!%p273_p2), %v1610_v2  ;;  %624 = vmatprep.mubr.bf16.mxu1 (!%p273_p2), %v1610_v2  ;;  %v1497_v3 = vld [vmem:[%s1977_s2] ss:$16 sps:$4 sm:$0xff] (!%p273_p2)   ;;  %v1498_v4 = vld [vmem:[%s1977_s2 + $0x8] ss:$16 sps:$4 sm:$0xff] (!%p273_p2)   ;;  %vm1080_vm0 = vcmask (!%p273_p2), 261120  }
   0x7   : > { %549 = vmatprep.subr.bf16.mxu0 (!%p273_p2), %v1493_v0  ;;  %592 = vmatprep.subr.bf16.mxu1 (!%p273_p2), %v1495_v1  ;;  %v1499_v5 = vld [vmem:[%s1977_s2 + $0x24] ss:$16 sps:$4 sm:$0xff] (!%p273_p2)   ;;  %v1501_v6 = vld [vmem:[%s1977_s2 + $0x2c] ss:$16 sps:$4 sm:$0xff] (!%p273_p2)   ;;  %v1503_v7 = vld [vmem:[%s1977_s2 + $0x20] ss:$16 sps:$4 sm:$0xff] (!%p273_p2)  }
   0x8   : > { %550 = vmatpush1.bf16.msra.mxu0 (!%p273_p2), %v1497_v3  ;;  %593 = vmatpush1.bf16.msra.mxu1 (!%p273_p2), %v1498_v4  ;;  %v1504_v8 = vld [vmem:[%s1977_s2 + $0x28] ss:$16 sps:$4 sm:$0xff] (!%p273_p2)   ;;  %v1505_v9 = vld [vmem:[%s1977_s2 + $0x44] ss:$16 sps:$4 sm:$0xff] (!%p273_p2)   ;;  %v1507_v10 = vld [vmem:[%s1977_s2 + $0x4c] ss:$16 sps:$4 sm:$0xff] (!%p273_p2)   ;;  %v363_v3 = vlaneseq (!%p273_p2) }
   0x9   : > { %551 = vmatprep.subr.bf16.mxu0 (!%p273_p2), %v1499_v5  ;;  %594 = vmatprep.subr.bf16.mxu1 (!%p273_p2), %v1501_v6  ;;  %v1509_v11 = vld [vmem:[%s1977_s2 + $0x40] ss:$16 sps:$4 sm:$0xff] (!%p273_p2)   ;;  %v1510_v12 = vld [vmem:[%s1977_s2 + $0x48] ss:$16 sps:$4 sm:$0xff] (!%p273_p2)   ;;  %v1511_v13 = vld [vmem:[%s1977_s2 + $0x64] ss:$16 sps:$4 sm:$0xff] (!%p273_p2)  }
   0xa   : > { %v1513_v14 = vld [vmem:[%s1977_s2 + $0x6c] ss:$16 sps:$4 sm:$0xff] (!%p273_p2)   ;;  %v1515_v15 = vld [vmem:[%s1977_s2 + $0x60] ss:$16 sps:$4 sm:$0xff] (!%p273_p2)   ;;  %v1516_v16 = vld [vmem:[%s1977_s2 + $0x68] ss:$16 sps:$4 sm:$0xff] (!%p273_p2)  }
   0xb   : > { %v1517_v17 = vld [vmem:[%s1977_s2 + $0x84] ss:$16 sps:$4 sm:$0xff] (!%p273_p2)   ;;  %v1519_v18 = vld [vmem:[%s1977_s2 + $0x8c] ss:$16 sps:$4 sm:$0xff] (!%p273_p2)   ;;  %v1521_v19 = vld [vmem:[%s1977_s2 + $0x80] ss:$16 sps:$4 sm:$0xff] (!%p273_p2)  }
   0xc   : > { %552 = vmatpush1.bf16.msra.mxu0 (!%p273_p2), %v1503_v7  ;;  %595 = vmatpush1.bf16.msra.mxu1 (!%p273_p2), %v1504_v8  ;;  %v1522_v20 = vld [vmem:[%s1977_s2 + $0x88] ss:$16 sps:$4 sm:$0xff] (!%p273_p2)   ;;  %v1523_v21 = vld [vmem:[%s1977_s2 + $0xa4] ss:$16 sps:$4 sm:$0xff] (!%p273_p2)   ;;  %v1525_v22 = vld [vmem:[%s1977_s2 + $0xac] ss:$16 sps:$4 sm:$0xff] (!%p273_p2)  }
   0xd   : > { %553 = vmatprep.subr.bf16.mxu0 %v1505_v9  ;;  %596 = vmatprep.subr.bf16.mxu1 %v1507_v10  ;;  %s1985_s28 = smov (!%p311_p3, %s1337_s28), 1  ;;  %v1527_v23 = vld [vmem:[%s1977_s2 + $0xa0] ss:$16 sps:$4 sm:$0xff]   ;;  %v1528_v24 = vld [vmem:[%s1977_s2 + $0xa8] ss:$16 sps:$4 sm:$0xff]   ;;  %v1868_v4 = vshrl.u32 %v363_v3, 7 }
   0xe   : > { %s1433_s11 = sshll.u32 %s1985_s28, 3  ;;  %v1529_v25 = vld [vmem:[%s1977_s2 + $0xc4] ss:$16 sps:$4 sm:$0xff]   ;;  %v1531_v26 = vld [vmem:[%s1977_s2 + $0xcc] ss:$16 sps:$4 sm:$0xff]   ;;  %s1434_s22 = sshll.u32 %s1985_s28, 5 }
   0xf   : > { %s315_s20 = scalar_lea.vmem %s1975_s0, %s1433_s11  ;;  %v1533_v27 = vld [vmem:[%s1977_s2 + $0xc0] ss:$16 sps:$4 sm:$0xff]   ;;  %v1534_v28 = vld [vmem:[%s1977_s2 + $0xc8] ss:$16 sps:$4 sm:$0xff]   ;;  %v1535_v29 = vld [vmem:[%s1977_s2 + $0xe4] ss:$16 sps:$4 sm:$0xff]   ;;  %s320_s25 = scalar_lea.vmem %s1976_s1, %s1434_s22 }
  0x10   : > { %554 = vmatpush1.bf16.msra.mxu0 %v1509_v11  ;;  %597 = vmatpush1.bf16.msra.mxu1 %v1510_v12  ;;  %v1537_v30 = vld [vmem:[%s1977_s2 + $0xec] ss:$16 sps:$4 sm:$0xff]   ;;  %v1539_v31 = vld [vmem:[%s1977_s2 + $0xe0] ss:$16 sps:$4 sm:$0xff]   ;;  %v1540_v32 = vld [vmem:[%s1977_s2 + $0xe8] ss:$16 sps:$4 sm:$0xff]  }
  0x11   : > { %555 = vmatprep.subr.bf16.mxu0 %v1511_v13  ;;  %598 = vmatprep.subr.bf16.mxu1 %v1513_v14  ;;  %v1542_v33 = vld [vmem:[%s1979_s4 + $0x40] sm:$0xff]   ;;  %v1546_v38 = vld [vmem:[%s1979_s4 + $0x48] sm:$0xff]   ;;  %v1550_v42 = vld [vmem:[%s1979_s4 + $0x50] sm:$0xff]   ;;  %v373_v5 = vsub.s32 2, %v1868_v4  ;;  %v377_v6 = vsub.s32 3, %v1868_v4  ;;  %v1873_v7 = vsub.s32 0, %v1868_v4 }
  0x12   : > { %v1541_v34 = vld [vmem:[%s315_s20] sm:$0xff]   ;;  %v1547_v39 = vld [vmem:[%s1979_s4 + $0xc8] sm:$0xff]   ;;  %v1551_v43 = vld [vmem:[%s1979_s4 + $0xd0] sm:$0xff]   ;;  %v369_v9 = vsub.s32 1, %v1868_v4  ;;  %s325_s20 = scalar_lea.vmem %s1983_s8, %s1434_s22 }
  0x13   : > { %v1543_v35 = vld [vmem:[%s1979_s4 + $0xc0] sm:$0xff]   ;;  %v1548_v40 = vld [vmem:[%s1979_s4 + $0x8] sm:$0xff]   ;;  %v1552_v44 = vld [vmem:[%s1979_s4 + $0x10] sm:$0xff]  }
  0x14   : > { %556 = vmatpush1.bf16.msra.mxu0 %v1515_v15  ;;  %599 = vmatpush1.bf16.msra.mxu1 %v1516_v16  ;;  %v1544_v36 = vld [vmem:[%s1979_s4] sm:$0xff]   ;;  %v1549_v41 = vld [vmem:[%s1979_s4 + $0x88] sm:$0xff]   ;;  %v1553_v45 = vld [vmem:[%s1979_s4 + $0x90] sm:$0xff]  }
  0x15   : > { %557 = vmatprep.subr.bf16.mxu0 %v1517_v17  ;;  %600 = vmatprep.subr.bf16.mxu1 %v1519_v18  ;;  %v1545_v37 = vld [vmem:[%s1979_s4 + $0x80] sm:$0xff]   ;;  %v1554_v46 = vld [vmem:[%s1979_s4 + $0x58] sm:$0xff]   ;;  %v1562_v54 = vld [vmem:[%s1979_s4 + $0x68] sm:$0xff]  }
  0x16   : > { %v1555_v47 = vld [vmem:[%s1979_s4 + $0xd8] sm:$0xff]   ;;  %v1558_v50 = vld [vmem:[%s1979_s4 + $0x60] sm:$0xff]   ;;  %v1563_v55 = vld [vmem:[%s1979_s4 + $0xe8] sm:$0xff]  }
  0x17   : > { %v1556_v48 = vld [vmem:[%s1979_s4 + $0x18] sm:$0xff]   ;;  %v1559_v51 = vld [vmem:[%s1979_s4 + $0xe0] sm:$0xff]   ;;  %v1564_v56 = vld [vmem:[%s1979_s4 + $0x28] sm:$0xff]  }
  0x18   : > { %558 = vmatpush1.bf16.msra.mxu0 %v1521_v19  ;;  %601 = vmatpush1.bf16.msra.mxu1 %v1522_v20  ;;  %v1557_v49 = vld [vmem:[%s1979_s4 + $0x98] sm:$0xff]   ;;  %v1560_v52 = vld [vmem:[%s1979_s4 + $0x20] sm:$0xff]   ;;  %v1565_v57 = vld [vmem:[%s1979_s4 + $0xa8] sm:$0xff]  }
  0x19   : > { %559 = vmatprep.subr.bf16.mxu0 %v1523_v21  ;;  %602 = vmatprep.subr.bf16.mxu1 %v1525_v22  ;;  %v1561_v53 = vld [vmem:[%s1979_s4 + $0xa0] sm:$0xff]   ;;  %v1566_v58 = vld [vmem:[%s1979_s4 + $0x70] sm:$0xff]   ;;  %v1570_v62 = vld [vmem:[%s1979_s4 + $0x78] sm:$0xff]  }
  0x1a   : > { %v1567_v59 = vld [vmem:[%s1979_s4 + $0xf0] sm:$0xff]   ;;  %v1571_v63 = vld [vmem:[%s1979_s4 + $0xf8] sm:$0xff]   ;;  %v361_v8 = vld [vmem:[%s1978_s3] sm:$0xf] }
  0x1b   : > { %v1568_v60 = vld [vmem:[%s1979_s4 + $0x30] sm:$0xff]   ;;  %v1572_v0 = vld [vmem:[%s1979_s4 + $0x38] sm:$0xff]   ;;  %v374_v10 = vrot.slane %v361_v8, %v373_v5  ;;  %v378_v11 = vrot.slane %v361_v8, %v377_v6  ;;  %v366_v12 = vrot.slane %v361_v8, %v1873_v7  ;;  %v370_v15 = vrot.slane %v361_v8, %v369_v9 }
  0x1c   : > { %560 = vmatpush1.bf16.msra.mxu0 %v1527_v23  ;;  %603 = vmatpush1.bf16.msra.mxu1 %v1528_v24  ;;  %v1569_v61 = vld [vmem:[%s1979_s4 + $0xb0] sm:$0xff]   ;;  %v1573_v1 = vld [vmem:[%s1979_s4 + $0xb8] sm:$0xff]  }
  0x1d   : > { %561 = vmatprep.subr.bf16.mxu0 %v1529_v25  ;;  %604 = vmatprep.subr.bf16.mxu1 %v1531_v26  ;;  %v1576_v3 = vld [vmem:[%s1981_s6 + $0x4] ss:$16 sps:$4 sm:$0xff]   ;;  %v1579_v8 = vld [vmem:[%s1981_s6 + $0xc] ss:$16 sps:$4 sm:$0xff]  }
  0x20   : > { %562 = vmatpush1.bf16.msra.mxu0 %v1533_v27  ;;  %605 = vmatpush1.bf16.msra.mxu1 %v1534_v28 }
  0x21   : > { %563 = vmatprep.subr.bf16.mxu0 %v1535_v29  ;;  %606 = vmatprep.subr.bf16.mxu1 %v1537_v30 }
  0x24   : > { %564 = vmatpush1.bf16.msra.mxu0 %v1539_v31  ;;  %607 = vmatpush1.bf16.msra.mxu1 %v1540_v32 }
  0x25   : > { %1440 = vmatprep.subr.bf16.mxu0 %v1542_v33  ;;  %1462 = vmatprep.subr.bf16.mxu1 %v1543_v35 }
  0x27   : > { %582 = vmatmul.mubr.bf16.vlgmr.msra.gmra.mrb[0].mxu0 %v1541_v34  ;;  %625 = vmatmul.mubr.bf16.vlgmr.msra.gmra.mrb[0].mxu1 %v1541_v34 }
  0x28   : > { %1441 = vmatpush3.bf16.msra.mxu0 %v1544_v36  ;;  %1463 = vmatpush3.bf16.msra.mxu1 %v1545_v37 }
  0x29   : > { %1442 = vmatprep.subr.bf16.mxu0 %v1546_v38  ;;  %1464 = vmatprep.subr.bf16.mxu1 %v1547_v39 }
  0x2c   : > { %1443 = vmatpush3.bf16.msra.mxu0 %v1548_v40  ;;  %1465 = vmatpush3.bf16.msra.mxu1 %v1549_v41 }
  0x2d   : > { %1444 = vmatprep.subr.bf16.mxu0 %v1550_v42  ;;  %1466 = vmatprep.subr.bf16.mxu1 %v1551_v43 }
  0x30   : > { %1445 = vmatpush3.bf16.msra.mxu0 %v1552_v44  ;;  %1467 = vmatpush3.bf16.msra.mxu1 %v1553_v45 }
  0x31   : > { %1446 = vmatprep.subr.bf16.mxu0 %v1554_v46  ;;  %1468 = vmatprep.subr.bf16.mxu1 %v1555_v47 }
  0x34   : > { %1447 = vmatpush3.bf16.msra.mxu0 %v1556_v48  ;;  %1469 = vmatpush3.bf16.msra.mxu1 %v1557_v49 }
  0x35   : > { %1448 = vmatprep.subr.bf16.mxu0 %v1558_v50  ;;  %1470 = vmatprep.subr.bf16.mxu1 %v1559_v51 }
  0x38   : > { %1449 = vmatpush3.bf16.msra.mxu0 %v1560_v52  ;;  %1471 = vmatpush3.bf16.msra.mxu1 %v1561_v53 }
  0x39   : > { %1450 = vmatprep.subr.bf16.mxu0 %v1562_v54  ;;  %1472 = vmatprep.subr.bf16.mxu1 %v1563_v55 }
  0x3c   : > { %1451 = vmatpush3.bf16.msra.mxu0 %v1564_v56  ;;  %1473 = vmatpush3.bf16.msra.mxu1 %v1565_v57 }
  0x3d   : > { %1452 = vmatprep.subr.bf16.mxu0 %v1566_v58  ;;  %1474 = vmatprep.subr.bf16.mxu1 %v1567_v59 }
  0x40   : > { %1453 = vmatpush3.bf16.msra.mxu0 %v1568_v60  ;;  %1475 = vmatpush3.bf16.msra.mxu1 %v1569_v61 }
  0x41   : > { %1454 = vmatprep.subr.bf16.mxu0 %v1570_v62  ;;  %1476 = vmatprep.subr.bf16.mxu1 %v1571_v63 }
  0x44   : > { %1455 = vmatpush3.bf16.msra.mxu0 %v1572_v0  ;;  %1477 = vmatpush3.bf16.msra.mxu1 %v1573_v1 }
  0x45   : > { %1084 = vmatprep.subr.bf16.mxu0 %v1576_v3  ;;  %1125 = vmatprep.subr.bf16.mxu1 %v1579_v8  ;;  %v1217_v3 = vld [vmem:[%s320_s25 + $0x18] sm:$0xff] }
  0xfa   : > { %v583_v13 = vpop.f32.mrb[0].mxu0  ;;  %v626_v14 = vpop.f32.mrb[0].mxu1 }
  0xfb   : > { %v1886_v16 = vadd.f32 %v626_v14, %v374_v10  ;;  %v585_v17 = vpop.f32.mrb[1].mxu0  ;;  %v628_v18 = vpop.f32.mrb[1].mxu1  ;;  %v1890_v22 = vadd.f32 %v583_v13, %v366_v12  ;;  %v1580_v13 = vld [vmem:[%s1981_s6 + $0x20] ss:$16 sps:$4 sm:$0xff]   ;;  %v1583_v14 = vld [vmem:[%s1981_s6 + $0x28] ss:$16 sps:$4 sm:$0xff]  }
  0xfc   : > { %v1888_v19 = vadd.f32 %v628_v18, %v378_v11  ;;  %v587_v20 = vpop.f32.mrb[2].mxu0  ;;  %v630_v21 = vpop.f32.mrb[2].mxu1  ;;  %v1896_v27 = vadd.f32 %v585_v17, %v370_v15  ;;  %v735_v18 = vld [vmem:[%s1980_s5] sm:$0x1] }
  0xfd   : > { %v1892_v23 = vadd.f32 %v587_v20, %v366_v12  ;;  %v1894_v24 = vadd.f32 %v630_v21, %v374_v10  ;;  %v589_v25 = vpop.f32.mrb[3].mxu0  ;;  %v632_v26 = vpop.f32.mrb[3].mxu1  ;;  %v1574_v10 = vld [vmem:[%s1981_s6] ss:$16 sps:$4 sm:$0xff]   ;;  %v1585_v12 = vld [vmem:[%s1981_s6 + $0x2c] ss:$16 sps:$4 sm:$0xff]  }
  0xfe   : > { %v1898_v28 = vadd.f32 %v589_v25, %v370_v15  ;;  %v1900_v29 = vadd.f32 %v632_v26, %v378_v11  ;;  %v1577_v11 = vld [vmem:[%s1981_s6 + $0x8] ss:$16 sps:$4 sm:$0xff]  }
  0xff   : > { %v635_v30 = vadd.f32 %v1892_v23, %v1890_v22  ;;  %v649_v31 = vadd.f32 %v1894_v24, %v1886_v16 }
 0x100   : > { %v642_v32 = vadd.f32 %v1898_v28, %v1896_v27  ;;  %v656_v33 = vadd.f32 %v1900_v29, %v1888_v19 }
 0x101   : > { %v636_v34 = vrot.slane %v635_v30, 4  ;;  %v650_v35 = vrot.slane %v649_v31, 4 }
 0x102   : > { %v643_v36 = vrot.slane %v642_v32, 4  ;;  %v657_v37 = vrot.slane %v656_v33, 4 }
 0x103   : > { %v637_v38 = vadd.f32 %v636_v34, %v635_v30  ;;  %v651_v39 = vadd.f32 %v650_v35, %v649_v31 }
 0x104   : > { %v644_v40 = vadd.f32 %v643_v36, %v642_v32  ;;  %v658_v41 = vadd.f32 %v657_v37, %v656_v33 }
 0x105   : > { %v638_v42 = vrot.slane %v637_v38, 2  ;;  %v652_v43 = vrot.slane %v651_v39, 2 }
 0x106   : > { %v645_v44 = vrot.slane %v644_v40, 2  ;;  %v659_v45 = vrot.slane %v658_v41, 2 }
 0x107   : > { %v639_v46 = vadd.f32 %v638_v42, %v637_v38  ;;  %v653_v47 = vadd.f32 %v652_v43, %v651_v39  ;;  %v1018_v38 = vld [vmem:[%s1982_s7] sm:$0xf] }
 0x108   : > { %v646_v48 = vadd.f32 %v645_v44, %v644_v40  ;;  %v660_v49 = vadd.f32 %v659_v45, %v658_v41  ;;  %v1063_v39 = vrot.slane %v1018_v38, %v1873_v7  ;;  %v1071_v40 = vrot.slane %v1018_v38, %v373_v5 }
 0x109   : > { %v640_v50 = vrot.slane %v639_v46, 1  ;;  %v654_v51 = vrot.slane %v653_v47, 1  ;;  %v1067_v41 = vrot.slane %v1018_v38, %v369_v9  ;;  %v1075_v42 = vrot.slane %v1018_v38, %v377_v6 }
 0x10a   : > { %v647_v52 = vrot.slane %v646_v48, 1  ;;  %v661_v53 = vrot.slane %v660_v49, 1 }
 0x10b   : > { %v641_v54 = vadd.f32 %v640_v50, %v639_v46  ;;  %v655_v55 = vadd.f32 %v654_v51, %v653_v47 }
 0x10c   : > { %v648_v56 = vadd.f32 %v647_v52, %v646_v48  ;;  %v662_v57 = vadd.f32 %v661_v53, %v660_v49 }
 0x10d   : > { %v663_v58 = vmul.f32 0.0625, %v641_v54  ;;  %v665_v59 = vmul.f32 0.0625, %v655_v55 }
 0x10e   : > { %v664_v60 = vmul.f32 0.0625, %v648_v56  ;;  %v666_v61 = vmul.f32 0.0625, %v662_v57 }
 0x10f   : > { %v667_v0 = vpack.c.bf16 %v663_v58, %v663_v58  ;;  %v669_v1 = vpack.c.bf16 %v665_v59, %v665_v59 }
 0x110   : > { %v668_v62 = vpack.c.bf16 %v664_v60, %v664_v60  ;;  %v670_v63 = vpack.c.bf16 %v666_v61, %v666_v61 }
 0x112   : > { %960 = vmatprep.mubr.bf16.mxu0 %v668_v62  ;;  %1000 = vmatprep.mubr.bf16.mxu1 %v670_v63  ;;  %v1214_v63 = vld [vmem:[%s320_s25] sm:$0xff] }
 0x113   : > { %961 = vmatmul.mubr.bf16.vlgmr.msra.gmra.mrb[4].mxu0 %v667_v0  ;;  %1001 = vmatmul.mubr.bf16.vlgmr.msra.gmra.mrb[4].mxu1 %v669_v1  ;;  %v1216_v0 = vld [vmem:[%s320_s25 + $0x10] sm:$0xff]  ;;  %v1215_v1 = vld [vmem:[%s320_s25 + $0x8] sm:$0xff] }
 0x114   : > { %1116 = vmatprep.mubr.bf16.mxu0 %v1610_v2  ;;  %1157 = vmatprep.mubr.bf16.mxu1 %v1610_v2  ;;  %v1582_v2 = vld [vmem:[%s1981_s6 + $0x24] ss:$16 sps:$4 sm:$0xff]  }
 0x115   : > { %1085 = vmatpush1.bf16.msra.mxu0 %v1574_v10  ;;  %1126 = vmatpush1.bf16.msra.mxu1 %v1577_v11  ;;  %v1218_v11 = vunpack.c.l.bf16 %v1214_v63 }
 0x116   : > { %1086 = vmatprep.subr.bf16.mxu0 %v1582_v2  ;;  %1127 = vmatprep.subr.bf16.mxu1 %v1585_v12  ;;  %v1219_v2 = vunpack.c.h.bf16 %v1214_v63  ;;  %v1222_v12 = vunpack.c.l.bf16 %v1216_v0 }
 0x119   : > { %1087 = vmatpush1.bf16.msra.mxu0 %v1580_v13  ;;  %1128 = vmatpush1.bf16.msra.mxu1 %v1583_v14 }
 0x1e6   : > { %v1456_v15 = vpop.f32.mrb[4].mxu0  ;;  %v1478_v17 = vpop.f32.mrb[4].mxu1 }
 0x1e7   : > { %v1457_v20 = vpop.f32.mrb[5].mxu0  ;;  %v1479_v21 = vpop.f32.mrb[5].mxu1 }
 0x1e8   : > { %v1458_v25 = vadd.f32 %v1457_v20, %v1456_v15  ;;  %v1480_v26 = vadd.f32 %v1479_v21, %v1478_v17  ;;  %v1459_v30 = vpop.f32.mrb[6].mxu0  ;;  %v1481_v31 = vpop.f32.mrb[6].mxu1  ;;  %v1220_v15 = vunpack.c.l.bf16 %v1215_v1  ;;  %v1221_v17 = vunpack.c.h.bf16 %v1215_v1 }
 0x1e9   : > { %v1460_v32 = vpop.f32.mrb[7].mxu0  ;;  %v1482_v33 = vpop.f32.mrb[7].mxu1 }
 0x1ea   : > { %v963_v34 = vadd.f32 %v1458_v25, %v735_v18  ;;  %v1224_v18 = vunpack.c.l.bf16 %v1217_v3  ;;  %v1223_v25 = vunpack.c.h.bf16 %v1216_v0  ;;  %v1225_v32 = vunpack.c.h.bf16 %v1217_v3 }
 0x1ec   : > { %v1003_v35 = vadd.f32 %v1480_v26, %v963_v34 }
 0x1ee   : > { %v1008_v36 = vmax.f32 %v1003_v35, 0.0 }
 0x1f0   : > { %v1009_v37 = vpack.c.bf16 %v1008_v36, %v1008_v36 }
 0x1f2   : > { %1421 = vmatmul.mubr.msk.bf16.vlgmr.msra.gmra.mrb[8].mxu0 %vm1080_vm0, %v1009_v37  ;;  %1422 = vmatmul.mubr.msk.bf16.vlgmr.msra.gmra.mrb[8].mxu1 %vm1080_vm0, %v1009_v37 }
 0x2c5   : > { %v1118_v43 = vpop.f32.mrb[8].mxu0  ;;  %v1159_v44 = vpop.f32.mrb[8].mxu1 }
 0x2c6   : > { %v1119_v45 = vadd.f32 %v1118_v43, %v1063_v39  ;;  %v1160_v46 = vadd.f32 %v1159_v44, %v1071_v40  ;;  %v1120_v47 = vpop.f32.mrb[9].mxu0  ;;  %v1161_v48 = vpop.f32.mrb[9].mxu1 }
 0x2c7   : > { %v1121_v49 = vadd.f32 %v1120_v47, %v1067_v41  ;;  %v1162_v50 = vadd.f32 %v1161_v48, %v1075_v42  ;;  %v1122_v51 = vpop.f32.mrb[10].mxu0  ;;  %v1163_v52 = vpop.f32.mrb[10].mxu1 }
 0x2c8   : > { %v1423_v53 = vmul.f32 -1.442695, %v1119_v45  ;;  %v1425_v54 = vmul.f32 -1.442695, %v1160_v46  ;;  %v1123_v55 = vpop.f32.mrb[11].mxu0  ;;  %v1164_v5 = vpop.f32.mrb[11].mxu1 }
 0x2c9   : > { %v1424_v56 = vmul.f32 -1.442695, %v1121_v49  ;;  %v1426_v9 = vmul.f32 -1.442695, %v1162_v50 }
 0x2ca   : > { %1586 = vpow2.f32 %v1423_v53 }
 0x2cb   : > { %1588 = vpow2.f32 %v1425_v54 }
 0x2cc   : > { %1590 = vpow2.f32 %v1424_v56 }
 0x2cd   : > { %1592 = vpow2.f32 %v1426_v9 }
 0x2d4   : > { %v1587_v4 = vpop.eup %1586 }
 0x2d5   : > { %v1589_v6 = vpop.eup %1588  ;;  %v1178_v57 = vadd.f32 1.0, %v1587_v4 }
 0x2d6   : > { %v1591_v58 = vpop.eup %1590  ;;  %v1180_v59 = vadd.f32 1.0, %v1589_v6 }
 0x2d7   : > { %v1593_v60 = vpop.eup %1592  ;;  %1594 = vrcp.f32 %v1178_v57  ;;  %v1179_v61 = vadd.f32 1.0, %v1591_v58 }
 0x2d8   : > { %1596 = vrcp.f32 %v1180_v59  ;;  %v1181_v62 = vadd.f32 1.0, %v1593_v60 }
 0x2d9   : > { %1598 = vrcp.f32 %v1179_v61 }
 0x2da   : > { %1600 = vrcp.f32 %v1181_v62 }
 0x2e1   : > { %v1595_v8 = vpop.eup %1594 }
 0x2e2   : > { %v1597_v10 = vpop.eup %1596  ;;  %v1193_v13 = vrot.slane %v1595_v8, %v1873_v7 }
 0x2e3   : > { %v1599_v14 = vpop.eup %1598  ;;  %v1201_v20 = vrot.slane %v1597_v10, %v1873_v7 }
 0x2e4   : > { %v1601_v21 = vpop.eup %1600  ;;  %v1206_v26 = vmul.f32 %v1193_v13, %v1890_v22  ;;  %v1210_v30 = vmul.f32 %v1193_v13, %v1892_v23  ;;  %v1197_v31 = vrot.slane %v1599_v14, %v1873_v7 }
 0x2e5   : > { %v1208_v33 = vmul.f32 %v1201_v20, %v1886_v16  ;;  %v1212_v34 = vmul.f32 %v1201_v20, %v1894_v24  ;;  %v1205_v35 = vrot.slane %v1601_v21, %v1873_v7 }
 0x2e6   : > { %v1226_v36 = vadd.f32 %v1218_v11, %v1206_v26  ;;  %v1230_v37 = vadd.f32 %v1222_v12, %v1210_v30  ;;  %v1207_v38 = vmul.f32 %v1197_v31, %v1896_v27  ;;  %v1211_v39 = vmul.f32 %v1197_v31, %v1898_v28 }
 0x2e7   : > { %v1228_v40 = vadd.f32 %v1220_v15, %v1208_v33  ;;  %v1232_v22 = vadd.f32 %v1224_v18, %v1212_v34  ;;  %v1209_v23 = vmul.f32 %v1205_v35, %v1888_v19  ;;  %v1213_v41 = vmul.f32 %v1205_v35, %v1900_v29 }
 0x2e8   : > { %v1234_v42 = vmax.f32 %v1226_v36, 0.0  ;;  %v1238_v43 = vmax.f32 %v1230_v37, 0.0  ;;  %v1227_v16 = vadd.f32 %v1219_v2, %v1207_v38  ;;  %v1231_v44 = vadd.f32 %v1223_v25, %v1211_v39 }
 0x2e9   : > { %v1236_v24 = vmax.f32 %v1228_v40, 0.0  ;;  %v1240_v45 = vmax.f32 %v1232_v22, 0.0  ;;  %v1229_v7 = vadd.f32 %v1221_v17, %v1209_v23  ;;  %v1233_v46 = vadd.f32 %v1225_v32, %v1213_v41 }
 0x2ea   : > { %v1235_v47 = vmax.f32 %v1227_v16, 0.0  ;;  %v1239_v48 = vmax.f32 %v1231_v44, 0.0 }
 0x2eb   : > { %v1237_v27 = vmax.f32 %v1229_v7, 0.0  ;;  %v1241_v28 = vmax.f32 %v1233_v46, 0.0 }
 0x2ec   : > { %v1436_v19 = vpack.c.bf16 %v1235_v47, %v1234_v42  ;;  %v1438_v49 = vpack.c.bf16 %v1239_v48, %v1238_v43 }
 0x2ed   : > { %v1437_v29 = vpack.c.bf16 %v1237_v27, %v1236_v24  ;;  %v1439_v50 = vpack.c.bf16 %v1241_v28, %v1240_v45 }
 0x2ee   : > { %1266 = vst [vmem:[%s325_s20] sm:$0xff] %v1436_v19  ;;  %1268 = vst [vmem:[%s325_s20 + $0x10] sm:$0xff] %v1438_v49 }
 0x2ef   : > { %1267 = vst [vmem:[%s325_s20 + $0x8] sm:$0xff] %v1437_v29  ;;  %1269 = vst [vmem:[%s325_s20 + $0x18] sm:$0xff] %v1439_v50 }
 0x2f0 PF: > { %s18_s27 = sadd.s32 1, %s1608_s27  }
 0x2f1   : > { %p15_p4 = scmp.ge.s32.totalorder %s18_s27, 4  }
 0x2f3   :  { %17 = sbr.rel (!%p15_p4) target bundleno = 1 (0x1), region = 85 }

// kernel: _lambda_.19
= control target key start
LH: loop header
LB: loop body
LE: loop exit
PB: predicated region body
PF: predicated region fallthrough
CT: control target
= control target key end

     0   :  { %s4007_s1 = inlined_call_operand.vmem [shape: bf16[512,256], index: 1, kind: input, shape index: {}]   ;;  %s4008_s0 = inlined_call_operand.vmem [shape: bf16[8,512], index: 0, kind: input, shape index: {}]   ;;  %s4009_s3 = inlined_call_operand.vmem [shape: bf16[512,1024], index: 3, kind: input, shape index: {}]   ;;  %s4010_s2 = inlined_call_operand.vmem [shape: f32[1,256], index: 2, kind: input, shape index: {}]   ;;  %s4011_s5 = inlined_call_operand.vmem [shape: bf16[8,256], index: 5, kind: output, shape index: {0}]   ;;  %s4012_s4 = inlined_call_operand.vmem [shape: f32[1,1024], index: 4, kind: input, shape index: {}]   ;;  %s4013_s6 = inlined_call_operand.vmem [shape: bf16[8,1024], index: 6, kind: output, shape index: {1}]  }
   0x1   :  { %v2839_v0 = vld [vmem:[%s4007_s1 + $0x4] ss:$8 sps:$4 sm:$0xff]   ;;  %v2843_v2 = vld [vmem:[%s4007_s1] ss:$8 sps:$4 sm:$0xff]   ;;  %v2845_v4 = vld [vmem:[%s4007_s1 + $0x14] ss:$8 sps:$4 sm:$0xff]  }
   0x2   :  { %v2841_v1 = vld [vmem:[%s4007_s1 + $0x104] ss:$8 sps:$4 sm:$0xff]   ;;  %434 = vmatprep.subr.bf16.mxu1 %v2839_v0  ;;  %v2844_v3 = vld [vmem:[%s4007_s1 + $0x100] ss:$8 sps:$4 sm:$0xff]   ;;  %v2847_v5 = vld [vmem:[%s4007_s1 + $0x114] ss:$8 sps:$4 sm:$0xff]  }
   0x3   :  { %475 = vmatprep.subr.bf16.mxu0 %v2841_v1  ;;  %435 = vmatpush1.bf16.msra.mxu1 %v2843_v2  ;;  %v2849_v6 = vld [vmem:[%s4007_s1 + $0x10] ss:$8 sps:$4 sm:$0xff]   ;;  %v2851_v8 = vld [vmem:[%s4007_s1 + $0x24] ss:$8 sps:$4 sm:$0xff]   ;;  %v2855_v10 = vld [vmem:[%s4007_s1 + $0x20] ss:$8 sps:$4 sm:$0xff]  }
   0x4   :  { %476 = vmatpush1.bf16.msra.mxu0 %v2844_v3  ;;  %436 = vmatprep.subr.bf16.mxu1 %v2845_v4  ;;  %v2850_v7 = vld [vmem:[%s4007_s1 + $0x110] ss:$8 sps:$4 sm:$0xff]   ;;  %v2853_v9 = vld [vmem:[%s4007_s1 + $0x124] ss:$8 sps:$4 sm:$0xff]   ;;  %v2856_v11 = vld [vmem:[%s4007_s1 + $0x120] ss:$8 sps:$4 sm:$0xff]  }
   0x5   :  { %477 = vmatprep.subr.bf16.mxu0 %v2847_v5  ;;  %v2857_v12 = vld [vmem:[%s4007_s1 + $0x34] ss:$8 sps:$4 sm:$0xff]   ;;  %v2861_v14 = vld [vmem:[%s4007_s1 + $0x30] ss:$8 sps:$4 sm:$0xff]   ;;  %v2863_v16 = vld [vmem:[%s4007_s1 + $0x44] ss:$8 sps:$4 sm:$0xff]  }
   0x6   :  { %v2859_v13 = vld [vmem:[%s4007_s1 + $0x134] ss:$8 sps:$4 sm:$0xff]   ;;  %v2862_v15 = vld [vmem:[%s4007_s1 + $0x130] ss:$8 sps:$4 sm:$0xff]   ;;  %v2865_v17 = vld [vmem:[%s4007_s1 + $0x144] ss:$8 sps:$4 sm:$0xff]  }
   0x7   :  { %437 = vmatpush1.bf16.msra.mxu1 %v2849_v6  ;;  %v2867_v18 = vld [vmem:[%s4007_s1 + $0x40] ss:$8 sps:$4 sm:$0xff]   ;;  %v2869_v20 = vld [vmem:[%s4007_s1 + $0x54] ss:$8 sps:$4 sm:$0xff]   ;;  %v2873_v22 = vld [vmem:[%s4007_s1 + $0x50] ss:$8 sps:$4 sm:$0xff]  }
   0x8   :  { %478 = vmatpush1.bf16.msra.mxu0 %v2850_v7  ;;  %438 = vmatprep.subr.bf16.mxu1 %v2851_v8  ;;  %v2868_v19 = vld [vmem:[%s4007_s1 + $0x140] ss:$8 sps:$4 sm:$0xff]   ;;  %v2871_v21 = vld [vmem:[%s4007_s1 + $0x154] ss:$8 sps:$4 sm:$0xff]   ;;  %v2874_v23 = vld [vmem:[%s4007_s1 + $0x150] ss:$8 sps:$4 sm:$0xff]  }
   0x9   :  { %479 = vmatprep.subr.bf16.mxu0 %v2853_v9  ;;  %v2875_v24 = vld [vmem:[%s4007_s1 + $0x64] ss:$8 sps:$4 sm:$0xff]   ;;  %v2879_v26 = vld [vmem:[%s4007_s1 + $0x60] ss:$8 sps:$4 sm:$0xff]   ;;  %v2881_v28 = vld [vmem:[%s4007_s1 + $0x74] ss:$8 sps:$4 sm:$0xff]  }
   0xa   :  { %v2877_v25 = vld [vmem:[%s4007_s1 + $0x164] ss:$8 sps:$4 sm:$0xff]   ;;  %v2880_v27 = vld [vmem:[%s4007_s1 + $0x160] ss:$8 sps:$4 sm:$0xff]   ;;  %v2883_v29 = vld [vmem:[%s4007_s1 + $0x174] ss:$8 sps:$4 sm:$0xff]  }
   0xb   :  { %439 = vmatpush1.bf16.msra.mxu1 %v2855_v10  ;;  %v2885_v30 = vld [vmem:[%s4007_s1 + $0x70] ss:$8 sps:$4 sm:$0xff]   ;;  %v2887_v32 = vld [vmem:[%s4007_s1 + $0x84] ss:$8 sps:$4 sm:$0xff]   ;;  %v2891_v34 = vld [vmem:[%s4007_s1 + $0x80] ss:$8 sps:$4 sm:$0xff]  }
   0xc   :  { %480 = vmatpush1.bf16.msra.mxu0 %v2856_v11  ;;  %440 = vmatprep.subr.bf16.mxu1 %v2857_v12  ;;  %v2886_v31 = vld [vmem:[%s4007_s1 + $0x170] ss:$8 sps:$4 sm:$0xff]   ;;  %v2889_v33 = vld [vmem:[%s4007_s1 + $0x184] ss:$8 sps:$4 sm:$0xff]   ;;  %v2892_v35 = vld [vmem:[%s4007_s1 + $0x180] ss:$8 sps:$4 sm:$0xff]  }
   0xd   :  { %481 = vmatprep.subr.bf16.mxu0 %v2859_v13  ;;  %v2893_v36 = vld [vmem:[%s4007_s1 + $0x94] ss:$8 sps:$4 sm:$0xff]   ;;  %v2897_v38 = vld [vmem:[%s4007_s1 + $0x90] ss:$8 sps:$4 sm:$0xff]   ;;  %v2899_v40 = vld [vmem:[%s4007_s1 + $0xa4] ss:$8 sps:$4 sm:$0xff]  }
   0xe   :  { %v2895_v37 = vld [vmem:[%s4007_s1 + $0x194] ss:$8 sps:$4 sm:$0xff]   ;;  %v2898_v39 = vld [vmem:[%s4007_s1 + $0x190] ss:$8 sps:$4 sm:$0xff]   ;;  %v2901_v41 = vld [vmem:[%s4007_s1 + $0x1a4] ss:$8 sps:$4 sm:$0xff]  }
   0xf   :  { %441 = vmatpush1.bf16.msra.mxu1 %v2861_v14  ;;  %v2903_v42 = vld [vmem:[%s4007_s1 + $0xa0] ss:$8 sps:$4 sm:$0xff]   ;;  %v2905_v44 = vld [vmem:[%s4007_s1 + $0xb4] ss:$8 sps:$4 sm:$0xff]   ;;  %v2909_v49 = vld [vmem:[%s4007_s1 + $0xb0] ss:$8 sps:$4 sm:$0xff]  }
  0x10   :  { %482 = vmatpush1.bf16.msra.mxu0 %v2862_v15  ;;  %442 = vmatprep.subr.bf16.mxu1 %v2863_v16  ;;  %v2904_v43 = vld [vmem:[%s4007_s1 + $0x1a0] ss:$8 sps:$4 sm:$0xff]   ;;  %v2907_v45 = vld [vmem:[%s4007_s1 + $0x1b4] ss:$8 sps:$4 sm:$0xff]   ;;  %v2910_v50 = vld [vmem:[%s4007_s1 + $0x1b0] ss:$8 sps:$4 sm:$0xff]  }
  0x11   :  { %483 = vmatprep.subr.bf16.mxu0 %v2865_v17  ;;  %v22_v46 = vld [vmem:[%s4008_s0] sm:$0xff]  ;;  %v23_v48 = vld [vmem:[%s4008_s0 + $0x8] sm:$0xff]  ;;  %v2917_v56 = vld [vmem:[%s4007_s1 + $0xd4] ss:$8 sps:$4 sm:$0xff]  }
  0x12   :  { %v3115_v47 = vcombine.high %v22_v46, %v22_v46  ;;  %v3126_v51 = vcombine.high %v23_v48, %v23_v48  ;;  %v2911_v52 = vld [vmem:[%s4007_s1 + $0xc4] ss:$8 sps:$4 sm:$0xff]   ;;  %v2915_v54 = vld [vmem:[%s4007_s1 + $0xc0] ss:$8 sps:$4 sm:$0xff]   ;;  %v2919_v57 = vld [vmem:[%s4007_s1 + $0x1d4] ss:$8 sps:$4 sm:$0xff]   ;;  %v3202_v14 = vcombine.low %v22_v46, %v22_v46  ;;  %v3204_v15 = vcombine.low %v23_v48, %v23_v48 }
  0x13   :  { %443 = vmatpush1.bf16.msra.mxu1 %v2867_v18  ;;  %v2913_v53 = vld [vmem:[%s4007_s1 + $0x1c4] ss:$8 sps:$4 sm:$0xff]   ;;  %v2916_v55 = vld [vmem:[%s4007_s1 + $0x1c0] ss:$8 sps:$4 sm:$0xff]   ;;  %v2921_v58 = vld [vmem:[%s4007_s1 + $0xd0] ss:$8 sps:$4 sm:$0xff]  }
  0x14   :  { %484 = vmatpush1.bf16.msra.mxu0 %v2868_v19  ;;  %444 = vmatprep.subr.bf16.mxu1 %v2869_v20  ;;  %v2922_v59 = vld [vmem:[%s4007_s1 + $0x1d0] ss:$8 sps:$4 sm:$0xff]   ;;  %v2923_v60 = vld [vmem:[%s4007_s1 + $0xe4] ss:$8 sps:$4 sm:$0xff]   ;;  %v2927_v62 = vld [vmem:[%s4007_s1 + $0xe0] ss:$8 sps:$4 sm:$0xff]  }
  0x15   :  { %485 = vmatprep.subr.bf16.mxu0 %v2871_v21  ;;  %466 = vmatprep.mubr.bf16.mxu1 %v3115_v47  ;;  %v2925_v61 = vld [vmem:[%s4007_s1 + $0x1e4] ss:$8 sps:$4 sm:$0xff]   ;;  %v2928_v63 = vld [vmem:[%s4007_s1 + $0x1e0] ss:$8 sps:$4 sm:$0xff]   ;;  %v2929_v0 = vld [vmem:[%s4007_s1 + $0xf4] ss:$8 sps:$4 sm:$0xff]  }
  0x16   :  { %507 = vmatprep.mubr.bf16.mxu0 %v3126_v51  ;;  %v2931_v1 = vld [vmem:[%s4007_s1 + $0x1f4] ss:$8 sps:$4 sm:$0xff]   ;;  %v527_v2 = vld [vmem:[%s4009_s3] sm:$0xff]  ;;  %v528_v4 = vld [vmem:[%s4009_s3 + $0x8] sm:$0xff] }
  0x17   :  { %445 = vmatpush1.bf16.msra.mxu1 %v2873_v22  ;;  %v531_v3 = vld [vmem:[%s4009_s3 + $0x20] sm:$0xff]  ;;  %v532_v5 = vld [vmem:[%s4009_s3 + $0x28] sm:$0xff]  ;;  %v2933_v6 = vld [vmem:[%s4007_s1 + $0xf0] ss:$8 sps:$4 sm:$0xff]  }
  0x18   :  { %486 = vmatpush1.bf16.msra.mxu0 %v2874_v23  ;;  %446 = vmatprep.subr.bf16.mxu1 %v2875_v24  ;;  %v2934_v7 = vld [vmem:[%s4007_s1 + $0x1f0] ss:$8 sps:$4 sm:$0xff]   ;;  %v2547_v8 = vcombine.high %v527_v2, %v531_v3  ;;  %v2549_v9 = vcombine.high %v528_v4, %v532_v5  ;;  %v535_v10 = vld [vmem:[%s4009_s3 + $0x40] sm:$0xff]  ;;  %v536_v12 = vld [vmem:[%s4009_s3 + $0x48] sm:$0xff]  ;;  %v2546_v16 = vcombine.low %v527_v2, %v531_v3 }
  0x19   :  { %487 = vmatprep.subr.bf16.mxu0 %v2877_v25  ;;  %v539_v11 = vld [vmem:[%s4009_s3 + $0x60] sm:$0xff]  ;;  %v540_v13 = vld [vmem:[%s4009_s3 + $0x68] sm:$0xff]  ;;  %v2548_v17 = vcombine.low %v528_v4, %v532_v5 }
  0x1a   :  { %v2555_v18 = vcombine.high %v535_v10, %v539_v11  ;;  %v2557_v19 = vcombine.high %v536_v12, %v540_v13  ;;  %v543_v20 = vld [vmem:[%s4009_s3 + $0x80] sm:$0xff]  ;;  %v544_v22 = vld [vmem:[%s4009_s3 + $0x88] sm:$0xff]  ;;  %v2554_v24 = vcombine.low %v535_v10, %v539_v11  ;;  %v2556_v25 = vcombine.low %v536_v12, %v540_v13 }
  0x1b   :  { %447 = vmatpush1.bf16.msra.mxu1 %v2879_v26  ;;  %v547_v21 = vld [vmem:[%s4009_s3 + $0xa0] sm:$0xff]  ;;  %v548_v23 = vld [vmem:[%s4009_s3 + $0xa8] sm:$0xff] }
  0x1c   :  { %488 = vmatpush1.bf16.msra.mxu0 %v2880_v27  ;;  %448 = vmatprep.subr.bf16.mxu1 %v2881_v28  ;;  %v2563_v26 = vcombine.high %v543_v20, %v547_v21  ;;  %v2565_v27 = vcombine.high %v544_v22, %v548_v23  ;;  %v551_v28 = vld [vmem:[%s4009_s3 + $0xc0] sm:$0xff]  ;;  %v568_v46 = vld [vmem:[%s4009_s3 + $0x148] sm:$0xff] }
  0x1d   :  { %489 = vmatprep.subr.bf16.mxu0 %v2883_v29  ;;  %v555_v29 = vld [vmem:[%s4009_s3 + $0xe0] sm:$0xff]  ;;  %v572_v48 = vld [vmem:[%s4009_s3 + $0x168] sm:$0xff] }
  0x1f   :  { %449 = vmatpush1.bf16.msra.mxu1 %v2885_v30  ;;  %v552_v30 = vld [vmem:[%s4009_s3 + $0xc8] sm:$0xff] }
  0x20   :  { %490 = vmatpush1.bf16.msra.mxu0 %v2886_v31  ;;  %450 = vmatprep.subr.bf16.mxu1 %v2887_v32  ;;  %v556_v31 = vld [vmem:[%s4009_s3 + $0xe8] sm:$0xff]  ;;  %v2562_v32 = vcombine.low %v543_v20, %v547_v21 }
  0x21   :  { %491 = vmatprep.subr.bf16.mxu0 %v2889_v33  ;;  %v2564_v33 = vcombine.low %v544_v22, %v548_v23 }
  0x23   :  { %451 = vmatpush1.bf16.msra.mxu1 %v2891_v34  ;;  %v2571_v34 = vcombine.high %v551_v28, %v555_v29 }
  0x24   :  { %492 = vmatpush1.bf16.msra.mxu0 %v2892_v35  ;;  %452 = vmatprep.subr.bf16.mxu1 %v2893_v36  ;;  %v2573_v35 = vcombine.high %v552_v30, %v556_v31  ;;  %v559_v36 = vld [vmem:[%s4009_s3 + $0x100] sm:$0xff] }
  0x25   :  { %493 = vmatprep.subr.bf16.mxu0 %v2895_v37  ;;  %v563_v37 = vld [vmem:[%s4009_s3 + $0x120] sm:$0xff] }
  0x27   :  { %453 = vmatpush1.bf16.msra.mxu1 %v2897_v38  ;;  %v560_v38 = vld [vmem:[%s4009_s3 + $0x108] sm:$0xff] }
  0x28   :  { %494 = vmatpush1.bf16.msra.mxu0 %v2898_v39  ;;  %454 = vmatprep.subr.bf16.mxu1 %v2899_v40  ;;  %v564_v39 = vld [vmem:[%s4009_s3 + $0x128] sm:$0xff]  ;;  %v2570_v40 = vcombine.low %v551_v28, %v555_v29 }
  0x29   :  { %495 = vmatprep.subr.bf16.mxu0 %v2901_v41  ;;  %v2572_v41 = vcombine.low %v552_v30, %v556_v31 }
  0x2b   :  { %455 = vmatpush1.bf16.msra.mxu1 %v2903_v42  ;;  %v2579_v42 = vcombine.high %v559_v36, %v563_v37 }
  0x2c   :  { %496 = vmatpush1.bf16.msra.mxu0 %v2904_v43  ;;  %456 = vmatprep.subr.bf16.mxu1 %v2905_v44  ;;  %v2581_v43 = vcombine.high %v560_v38, %v564_v39  ;;  %v567_v44 = vld [vmem:[%s4009_s3 + $0x140] sm:$0xff] }
  0x2d   :  { %497 = vmatprep.subr.bf16.mxu0 %v2907_v45  ;;  %v571_v45 = vld [vmem:[%s4009_s3 + $0x160] sm:$0xff] }
  0x2f   :  { %457 = vmatpush1.bf16.msra.mxu1 %v2909_v49  ;;  %v2578_v49 = vcombine.low %v559_v36, %v563_v37 }
  0x30   :  { %498 = vmatpush1.bf16.msra.mxu0 %v2910_v50  ;;  %458 = vmatprep.subr.bf16.mxu1 %v2911_v52  ;;  %v2580_v50 = vcombine.low %v560_v38, %v564_v39  ;;  %v2587_v52 = vcombine.high %v567_v44, %v571_v45 }
  0x31   :  { %499 = vmatprep.subr.bf16.mxu0 %v2913_v53  ;;  %v2589_v53 = vcombine.high %v568_v46, %v572_v48 }
  0x33   :  { %459 = vmatpush1.bf16.msra.mxu1 %v2915_v54  ;;  %v575_v54 = vld [vmem:[%s4009_s3 + $0x180] sm:$0xff] }
  0x34   :  { %500 = vmatpush1.bf16.msra.mxu0 %v2916_v55  ;;  %460 = vmatprep.subr.bf16.mxu1 %v2917_v56  ;;  %v579_v55 = vld [vmem:[%s4009_s3 + $0x1a0] sm:$0xff]  ;;  %v576_v56 = vld [vmem:[%s4009_s3 + $0x188] sm:$0xff] }
  0x35   :  { %501 = vmatprep.subr.bf16.mxu0 %v2919_v57  ;;  %v580_v57 = vld [vmem:[%s4009_s3 + $0x1a8] sm:$0xff]  ;;  %v2594_v2 = vcombine.low %v575_v54, %v579_v55 }
  0x36   :  { %v2596_v3 = vcombine.low %v576_v56, %v580_v57 }
  0x37   :  { %461 = vmatpush1.bf16.msra.mxu1 %v2921_v58  ;;  %v2586_v58 = vcombine.low %v567_v44, %v571_v45 }
  0x38   :  { %502 = vmatpush1.bf16.msra.mxu0 %v2922_v59  ;;  %462 = vmatprep.subr.bf16.mxu1 %v2923_v60  ;;  %v2588_v59 = vcombine.low %v568_v46, %v572_v48  ;;  %v2595_v60 = vcombine.high %v575_v54, %v579_v55 }
  0x39   :  { %503 = vmatprep.subr.bf16.mxu0 %v2925_v61  ;;  %v2597_v61 = vcombine.high %v576_v56, %v580_v57 }
  0x3b   :  { %463 = vmatpush1.bf16.msra.mxu1 %v2927_v62  ;;  %v583_v62 = vld [vmem:[%s4009_s3 + $0x1c0] sm:$0xff] }
  0x3c   :  { %504 = vmatpush1.bf16.msra.mxu0 %v2928_v63  ;;  %464 = vmatprep.subr.bf16.mxu1 %v2929_v0  ;;  %v587_v63 = vld [vmem:[%s4009_s3 + $0x1e0] sm:$0xff]  ;;  %v584_v0 = vld [vmem:[%s4009_s3 + $0x1c8] sm:$0xff] }
  0x3d   :  { %505 = vmatprep.subr.bf16.mxu0 %v2931_v1  ;;  %v588_v1 = vld [vmem:[%s4009_s3 + $0x1e8] sm:$0xff]  ;;  %v2603_v4 = vcombine.high %v583_v62, %v587_v63  ;;  %v2602_v10 = vcombine.low %v583_v62, %v587_v63 }
  0x3e   :  { %v2605_v5 = vcombine.high %v584_v0, %v588_v1  ;;  %v2604_v11 = vcombine.low %v584_v0, %v588_v1 }
  0x3f   :  { %465 = vmatpush1.bf16.msra.mxu1 %v2933_v6  ;;  %v591_v6 = vld [vmem:[%s4009_s3 + $0x200] sm:$0xff] }
  0x40   :  { %506 = vmatpush1.bf16.msra.mxu0 %v2934_v7  ;;  %2105 = vmatprep.subr.bf16.mxu1 %v2547_v8  ;;  %v595_v7 = vld [vmem:[%s4009_s3 + $0x220] sm:$0xff]  ;;  %v592_v8 = vld [vmem:[%s4009_s3 + $0x208] sm:$0xff] }
  0x41   :  { %2187 = vmatprep.subr.bf16.mxu0 %v2549_v9  ;;  %v596_v9 = vld [vmem:[%s4009_s3 + $0x228] sm:$0xff]  ;;  %v2611_v12 = vcombine.high %v591_v6, %v595_v7  ;;  %v2610_v20 = vcombine.low %v591_v6, %v595_v7 }
  0x42   :  { %467 = vmatmul.mubr.bf16.vlgmr.msra.gmra.mrb[0].mxu1 %v3202_v14  ;;  %v2613_v13 = vcombine.high %v592_v8, %v596_v9  ;;  %v2612_v21 = vcombine.low %v592_v8, %v596_v9 }
  0x43   :  { %508 = vmatmul.mubr.bf16.vlgmr.msra.gmra.mrb[0].mxu0 %v3204_v15  ;;  %2106 = vmatpush1.bf16.msra.mxu1 %v2546_v16  ;;  %v599_v16 = vld [vmem:[%s4009_s3 + $0x240] sm:$0xff] }
  0x44   :  { %2188 = vmatpush1.bf16.msra.mxu0 %v2548_v17  ;;  %2107 = vmatprep.subr.bf16.mxu1 %v2555_v18  ;;  %v603_v17 = vld [vmem:[%s4009_s3 + $0x260] sm:$0xff]  ;;  %v600_v18 = vld [vmem:[%s4009_s3 + $0x248] sm:$0xff] }
  0x45   :  { %2189 = vmatprep.subr.bf16.mxu0 %v2557_v19  ;;  %2137 = vmatprep.mubr.bf16.mxu1 %v3115_v47  ;;  %v604_v19 = vld [vmem:[%s4009_s3 + $0x268] sm:$0xff]  ;;  %v2619_v22 = vcombine.high %v599_v16, %v603_v17  ;;  %v2618_v28 = vcombine.low %v599_v16, %v603_v17 }
  0x46   :  { %2219 = vmatprep.mubr.bf16.mxu0 %v3115_v47  ;;  %v2621_v23 = vcombine.high %v600_v18, %v604_v19  ;;  %v2620_v29 = vcombine.low %v600_v18, %v604_v19 }
  0x47   :  { %2108 = vmatpush1.bf16.msra.mxu1 %v2554_v24  ;;  %v607_v24 = vld [vmem:[%s4009_s3 + $0x280] sm:$0xff] }
  0x48   :  { %2190 = vmatpush1.bf16.msra.mxu0 %v2556_v25  ;;  %2109 = vmatprep.subr.bf16.mxu1 %v2563_v26  ;;  %v611_v25 = vld [vmem:[%s4009_s3 + $0x2a0] sm:$0xff]  ;;  %v608_v26 = vld [vmem:[%s4009_s3 + $0x288] sm:$0xff] }
  0x49   :  { %2191 = vmatprep.subr.bf16.mxu0 %v2565_v27  ;;  %v612_v27 = vld [vmem:[%s4009_s3 + $0x2a8] sm:$0xff]  ;;  %v2627_v30 = vcombine.high %v607_v24, %v611_v25  ;;  %v2626_v36 = vcombine.low %v607_v24, %v611_v25 }
  0x4a   :  { %v2629_v31 = vcombine.high %v608_v26, %v612_v27  ;;  %v2628_v37 = vcombine.low %v608_v26, %v612_v27 }
  0x4b   :  { %2110 = vmatpush1.bf16.msra.mxu1 %v2562_v32  ;;  %v615_v32 = vld [vmem:[%s4009_s3 + $0x2c0] sm:$0xff] }
  0x4c   :  { %2192 = vmatpush1.bf16.msra.mxu0 %v2564_v33  ;;  %2111 = vmatprep.subr.bf16.mxu1 %v2571_v34  ;;  %v619_v33 = vld [vmem:[%s4009_s3 + $0x2e0] sm:$0xff]  ;;  %v616_v34 = vld [vmem:[%s4009_s3 + $0x2c8] sm:$0xff] }
  0x4d   :  { %2193 = vmatprep.subr.bf16.mxu0 %v2573_v35  ;;  %v620_v35 = vld [vmem:[%s4009_s3 + $0x2e8] sm:$0xff]  ;;  %v2635_v38 = vcombine.high %v615_v32, %v619_v33  ;;  %v2634_v44 = vcombine.low %v615_v32, %v619_v33 }
  0x4e   :  { %v2637_v39 = vcombine.high %v616_v34, %v620_v35  ;;  %v2636_v45 = vcombine.low %v616_v34, %v620_v35 }
  0x4f   :  { %2112 = vmatpush1.bf16.msra.mxu1 %v2570_v40  ;;  %v623_v40 = vld [vmem:[%s4009_s3 + $0x300] sm:$0xff] }
  0x50   :  { %2194 = vmatpush1.bf16.msra.mxu0 %v2572_v41  ;;  %2113 = vmatprep.subr.bf16.mxu1 %v2579_v42  ;;  %v627_v41 = vld [vmem:[%s4009_s3 + $0x320] sm:$0xff]  ;;  %v624_v42 = vld [vmem:[%s4009_s3 + $0x308] sm:$0xff] }
  0x51   :  { %2195 = vmatprep.subr.bf16.mxu0 %v2581_v43  ;;  %v628_v43 = vld [vmem:[%s4009_s3 + $0x328] sm:$0xff]  ;;  %v2643_v46 = vcombine.high %v623_v40, %v627_v41  ;;  %v2642_v54 = vcombine.low %v623_v40, %v627_v41 }
  0x52   :  { %v2645_v48 = vcombine.high %v624_v42, %v628_v43  ;;  %v2644_v55 = vcombine.low %v624_v42, %v628_v43 }
  0x53   :  { %2114 = vmatpush1.bf16.msra.mxu1 %v2578_v49  ;;  %v631_v49 = vld [vmem:[%s4009_s3 + $0x340] sm:$0xff] }
  0x54   :  { %2196 = vmatpush1.bf16.msra.mxu0 %v2580_v50  ;;  %2115 = vmatprep.subr.bf16.mxu1 %v2587_v52  ;;  %v635_v50 = vld [vmem:[%s4009_s3 + $0x360] sm:$0xff]  ;;  %v632_v52 = vld [vmem:[%s4009_s3 + $0x348] sm:$0xff] }
  0x55   :  { %2197 = vmatprep.subr.bf16.mxu0 %v2589_v53  ;;  %v636_v53 = vld [vmem:[%s4009_s3 + $0x368] sm:$0xff]  ;;  %v2651_v56 = vcombine.high %v631_v49, %v635_v50  ;;  %v2650_v62 = vcombine.low %v631_v49, %v635_v50 }
  0x56   :  { %v2653_v57 = vcombine.high %v632_v52, %v636_v53  ;;  %v2652_v63 = vcombine.low %v632_v52, %v636_v53 }
  0x57   :  { %2116 = vmatpush1.bf16.msra.mxu1 %v2586_v58  ;;  %v639_v58 = vld [vmem:[%s4009_s3 + $0x380] sm:$0xff] }
  0x58   :  { %2198 = vmatpush1.bf16.msra.mxu0 %v2588_v59  ;;  %2117 = vmatprep.subr.bf16.mxu1 %v2595_v60  ;;  %v643_v59 = vld [vmem:[%s4009_s3 + $0x3a0] sm:$0xff]  ;;  %v640_v60 = vld [vmem:[%s4009_s3 + $0x388] sm:$0xff] }
  0x59   :  { %2199 = vmatprep.subr.bf16.mxu0 %v2597_v61  ;;  %v644_v61 = vld [vmem:[%s4009_s3 + $0x3a8] sm:$0xff]  ;;  %v2659_v0 = vcombine.high %v639_v58, %v643_v59  ;;  %v2658_v6 = vcombine.low %v639_v58, %v643_v59 }
  0x5a   :  { %v2661_v1 = vcombine.high %v640_v60, %v644_v61  ;;  %v2660_v7 = vcombine.low %v640_v60, %v644_v61 }
  0x5b   :  { %2118 = vmatpush1.bf16.msra.mxu1 %v2594_v2  ;;  %v647_v2 = vld [vmem:[%s4009_s3 + $0x3c0] sm:$0xff] }
  0x5c   :  { %2200 = vmatpush1.bf16.msra.mxu0 %v2596_v3  ;;  %2119 = vmatprep.subr.bf16.mxu1 %v2603_v4  ;;  %v651_v3 = vld [vmem:[%s4009_s3 + $0x3e0] sm:$0xff]  ;;  %v648_v4 = vld [vmem:[%s4009_s3 + $0x3c8] sm:$0xff] }
  0x5d   :  { %2201 = vmatprep.subr.bf16.mxu0 %v2605_v5  ;;  %v652_v5 = vld [vmem:[%s4009_s3 + $0x3e8] sm:$0xff]  ;;  %v2667_v8 = vcombine.high %v647_v2, %v651_v3  ;;  %v2666_v16 = vcombine.low %v647_v2, %v651_v3 }
  0x5e   :  { %v2669_v9 = vcombine.high %v648_v4, %v652_v5  ;;  %v2668_v17 = vcombine.low %v648_v4, %v652_v5 }
  0x5f   :  { %2120 = vmatpush1.bf16.msra.mxu1 %v2602_v10  ;;  %v655_v10 = vld [vmem:[%s4009_s3 + $0x400] sm:$0xff] }
  0x60   :  { %2202 = vmatpush1.bf16.msra.mxu0 %v2604_v11  ;;  %2121 = vmatprep.subr.bf16.mxu1 %v2611_v12  ;;  %v659_v11 = vld [vmem:[%s4009_s3 + $0x420] sm:$0xff]  ;;  %v656_v12 = vld [vmem:[%s4009_s3 + $0x408] sm:$0xff] }
  0x61   :  { %2203 = vmatprep.subr.bf16.mxu0 %v2613_v13  ;;  %v660_v13 = vld [vmem:[%s4009_s3 + $0x428] sm:$0xff]  ;;  %v2675_v18 = vcombine.high %v655_v10, %v659_v11  ;;  %v2674_v24 = vcombine.low %v655_v10, %v659_v11 }
  0x62   :  { %v2677_v19 = vcombine.high %v656_v12, %v660_v13  ;;  %v2676_v25 = vcombine.low %v656_v12, %v660_v13 }
  0x63   :  { %2122 = vmatpush1.bf16.msra.mxu1 %v2610_v20  ;;  %v663_v20 = vld [vmem:[%s4009_s3 + $0x440] sm:$0xff] }
  0x64   :  { %2204 = vmatpush1.bf16.msra.mxu0 %v2612_v21  ;;  %2123 = vmatprep.subr.bf16.mxu1 %v2619_v22  ;;  %v667_v21 = vld [vmem:[%s4009_s3 + $0x460] sm:$0xff]  ;;  %v664_v22 = vld [vmem:[%s4009_s3 + $0x448] sm:$0xff] }
  0x65   :  { %2205 = vmatprep.subr.bf16.mxu0 %v2621_v23  ;;  %v668_v23 = vld [vmem:[%s4009_s3 + $0x468] sm:$0xff]  ;;  %v2683_v26 = vcombine.high %v663_v20, %v667_v21  ;;  %v2682_v32 = vcombine.low %v663_v20, %v667_v21 }
  0x66   :  { %v2685_v27 = vcombine.high %v664_v22, %v668_v23  ;;  %v2684_v33 = vcombine.low %v664_v22, %v668_v23 }
  0x67   :  { %2124 = vmatpush1.bf16.msra.mxu1 %v2618_v28  ;;  %v671_v28 = vld [vmem:[%s4009_s3 + $0x480] sm:$0xff] }
  0x68   :  { %2206 = vmatpush1.bf16.msra.mxu0 %v2620_v29  ;;  %2125 = vmatprep.subr.bf16.mxu1 %v2627_v30  ;;  %v675_v29 = vld [vmem:[%s4009_s3 + $0x4a0] sm:$0xff]  ;;  %v672_v30 = vld [vmem:[%s4009_s3 + $0x488] sm:$0xff] }
  0x69   :  { %2207 = vmatprep.subr.bf16.mxu0 %v2629_v31  ;;  %v676_v31 = vld [vmem:[%s4009_s3 + $0x4a8] sm:$0xff]  ;;  %v2691_v34 = vcombine.high %v671_v28, %v675_v29  ;;  %v2690_v40 = vcombine.low %v671_v28, %v675_v29 }
  0x6a   :  { %v2693_v35 = vcombine.high %v672_v30, %v676_v31  ;;  %v2692_v41 = vcombine.low %v672_v30, %v676_v31 }
  0x6b   :  { %2126 = vmatpush1.bf16.msra.mxu1 %v2626_v36  ;;  %v679_v36 = vld [vmem:[%s4009_s3 + $0x4c0] sm:$0xff] }
  0x6c   :  { %2208 = vmatpush1.bf16.msra.mxu0 %v2628_v37  ;;  %2127 = vmatprep.subr.bf16.mxu1 %v2635_v38  ;;  %v683_v37 = vld [vmem:[%s4009_s3 + $0x4e0] sm:$0xff]  ;;  %v680_v38 = vld [vmem:[%s4009_s3 + $0x4c8] sm:$0xff] }
  0x6d   :  { %2209 = vmatprep.subr.bf16.mxu0 %v2637_v39  ;;  %v684_v39 = vld [vmem:[%s4009_s3 + $0x4e8] sm:$0xff]  ;;  %v2699_v42 = vcombine.high %v679_v36, %v683_v37  ;;  %v2698_v49 = vcombine.low %v679_v36, %v683_v37 }
  0x6e   :  { %v2701_v43 = vcombine.high %v680_v38, %v684_v39  ;;  %v2700_v50 = vcombine.low %v680_v38, %v684_v39 }
  0x6f   :  { %2128 = vmatpush1.bf16.msra.mxu1 %v2634_v44  ;;  %v687_v44 = vld [vmem:[%s4009_s3 + $0x500] sm:$0xff] }
  0x70   :  { %2210 = vmatpush1.bf16.msra.mxu0 %v2636_v45  ;;  %2129 = vmatprep.subr.bf16.mxu1 %v2643_v46  ;;  %v691_v45 = vld [vmem:[%s4009_s3 + $0x520] sm:$0xff]  ;;  %v688_v46 = vld [vmem:[%s4009_s3 + $0x508] sm:$0xff] }
  0x71   :  { %2211 = vmatprep.subr.bf16.mxu0 %v2645_v48  ;;  %v692_v48 = vld [vmem:[%s4009_s3 + $0x528] sm:$0xff]  ;;  %v2707_v52 = vcombine.high %v687_v44, %v691_v45  ;;  %v2706_v58 = vcombine.low %v687_v44, %v691_v45 }
  0x72   :  { %v2709_v53 = vcombine.high %v688_v46, %v692_v48  ;;  %v2708_v59 = vcombine.low %v688_v46, %v692_v48 }
  0x73   :  { %2130 = vmatpush1.bf16.msra.mxu1 %v2642_v54  ;;  %v695_v54 = vld [vmem:[%s4009_s3 + $0x540] sm:$0xff] }
  0x74   :  { %2212 = vmatpush1.bf16.msra.mxu0 %v2644_v55  ;;  %2131 = vmatprep.subr.bf16.mxu1 %v2651_v56  ;;  %v699_v55 = vld [vmem:[%s4009_s3 + $0x560] sm:$0xff]  ;;  %v696_v56 = vld [vmem:[%s4009_s3 + $0x548] sm:$0xff] }
  0x75   :  { %2213 = vmatprep.subr.bf16.mxu0 %v2653_v57  ;;  %v700_v57 = vld [vmem:[%s4009_s3 + $0x568] sm:$0xff]  ;;  %v2715_v60 = vcombine.high %v695_v54, %v699_v55  ;;  %v2714_v2 = vcombine.low %v695_v54, %v699_v55 }
  0x76   :  { %v2717_v61 = vcombine.high %v696_v56, %v700_v57  ;;  %v2716_v3 = vcombine.low %v696_v56, %v700_v57 }
  0x77   :  { %2132 = vmatpush1.bf16.msra.mxu1 %v2650_v62  ;;  %v703_v62 = vld [vmem:[%s4009_s3 + $0x580] sm:$0xff] }
  0x78   :  { %2214 = vmatpush1.bf16.msra.mxu0 %v2652_v63  ;;  %2133 = vmatprep.subr.bf16.mxu1 %v2659_v0  ;;  %v707_v63 = vld [vmem:[%s4009_s3 + $0x5a0] sm:$0xff]  ;;  %v704_v0 = vld [vmem:[%s4009_s3 + $0x588] sm:$0xff] }
  0x79   :  { %2215 = vmatprep.subr.bf16.mxu0 %v2661_v1  ;;  %v708_v1 = vld [vmem:[%s4009_s3 + $0x5a8] sm:$0xff]  ;;  %v2723_v4 = vcombine.high %v703_v62, %v707_v63  ;;  %v2722_v10 = vcombine.low %v703_v62, %v707_v63 }
  0x7a   :  { %v2725_v5 = vcombine.high %v704_v0, %v708_v1  ;;  %v2724_v11 = vcombine.low %v704_v0, %v708_v1 }
  0x7b   :  { %2134 = vmatpush1.bf16.msra.mxu1 %v2658_v6  ;;  %v711_v6 = vld [vmem:[%s4009_s3 + $0x5c0] sm:$0xff] }
  0x7c   :  { %2216 = vmatpush1.bf16.msra.mxu0 %v2660_v7  ;;  %2135 = vmatprep.subr.bf16.mxu1 %v2667_v8  ;;  %v715_v7 = vld [vmem:[%s4009_s3 + $0x5e0] sm:$0xff]  ;;  %v712_v8 = vld [vmem:[%s4009_s3 + $0x5c8] sm:$0xff] }
  0x7d   :  { %2217 = vmatprep.subr.bf16.mxu0 %v2669_v9  ;;  %v716_v9 = vld [vmem:[%s4009_s3 + $0x5e8] sm:$0xff]  ;;  %v2731_v12 = vcombine.high %v711_v6, %v715_v7  ;;  %v2730_v20 = vcombine.low %v711_v6, %v715_v7 }
  0x7e   :  { %v2733_v13 = vcombine.high %v712_v8, %v716_v9  ;;  %v2732_v21 = vcombine.low %v712_v8, %v716_v9 }
  0x7f   :  { %2136 = vmatpush1.bf16.msra.mxu1 %v2666_v16  ;;  %v719_v16 = vld [vmem:[%s4009_s3 + $0x600] sm:$0xff] }
  0x80   :  { %2218 = vmatpush1.bf16.msra.mxu0 %v2668_v17  ;;  %2146 = vmatprep.subr.bf16.mxu1 %v2675_v18  ;;  %v723_v17 = vld [vmem:[%s4009_s3 + $0x620] sm:$0xff]  ;;  %v720_v18 = vld [vmem:[%s4009_s3 + $0x608] sm:$0xff] }
  0x81   :  { %2228 = vmatprep.subr.bf16.mxu0 %v2677_v19  ;;  %v724_v19 = vld [vmem:[%s4009_s3 + $0x628] sm:$0xff]  ;;  %v2739_v22 = vcombine.high %v719_v16, %v723_v17  ;;  %v2738_v28 = vcombine.low %v719_v16, %v723_v17 }
  0x82   :  { %2138 = vmatmul.mubr.bf16.vlgmr.msra.gmra.mrb[4].mxu1 %v3202_v14  ;;  %v2741_v23 = vcombine.high %v720_v18, %v724_v19  ;;  %v2740_v29 = vcombine.low %v720_v18, %v724_v19 }
  0x83   :  { %2220 = vmatmul.mubr.bf16.vlgmr.msra.gmra.mrb[4].mxu0 %v3202_v14  ;;  %2147 = vmatpush1.bf16.msra.mxu1 %v2674_v24  ;;  %v727_v24 = vld [vmem:[%s4009_s3 + $0x640] sm:$0xff] }
  0x84   :  { %2229 = vmatpush1.bf16.msra.mxu0 %v2676_v25  ;;  %2148 = vmatprep.subr.bf16.mxu1 %v2683_v26  ;;  %v731_v25 = vld [vmem:[%s4009_s3 + $0x660] sm:$0xff]  ;;  %v728_v26 = vld [vmem:[%s4009_s3 + $0x648] sm:$0xff] }
  0x85   :  { %2230 = vmatprep.subr.bf16.mxu0 %v2685_v27  ;;  %2178 = vmatprep.mubr.bf16.mxu1 %v3126_v51  ;;  %v732_v27 = vld [vmem:[%s4009_s3 + $0x668] sm:$0xff]  ;;  %v2747_v30 = vcombine.high %v727_v24, %v731_v25  ;;  %v2746_v36 = vcombine.low %v727_v24, %v731_v25 }
  0x86   :  { %2260 = vmatprep.mubr.bf16.mxu0 %v3126_v51  ;;  %v2749_v31 = vcombine.high %v728_v26, %v732_v27  ;;  %v2748_v37 = vcombine.low %v728_v26, %v732_v27 }
  0x87   :  { %2149 = vmatpush1.bf16.msra.mxu1 %v2682_v32  ;;  %v735_v32 = vld [vmem:[%s4009_s3 + $0x680] sm:$0xff] }
  0x88   :  { %2231 = vmatpush1.bf16.msra.mxu0 %v2684_v33  ;;  %2150 = vmatprep.subr.bf16.mxu1 %v2691_v34  ;;  %v739_v33 = vld [vmem:[%s4009_s3 + $0x6a0] sm:$0xff]  ;;  %v736_v34 = vld [vmem:[%s4009_s3 + $0x688] sm:$0xff] }
  0x89   :  { %2232 = vmatprep.subr.bf16.mxu0 %v2693_v35  ;;  %v740_v35 = vld [vmem:[%s4009_s3 + $0x6a8] sm:$0xff]  ;;  %v2755_v38 = vcombine.high %v735_v32, %v739_v33  ;;  %v2754_v44 = vcombine.low %v735_v32, %v739_v33 }
  0x8a   :  { %v2757_v39 = vcombine.high %v736_v34, %v740_v35  ;;  %v2756_v45 = vcombine.low %v736_v34, %v740_v35 }
  0x8b   :  { %2151 = vmatpush1.bf16.msra.mxu1 %v2690_v40  ;;  %v743_v40 = vld [vmem:[%s4009_s3 + $0x6c0] sm:$0xff] }
  0x8c   :  { %2233 = vmatpush1.bf16.msra.mxu0 %v2692_v41  ;;  %2152 = vmatprep.subr.bf16.mxu1 %v2699_v42  ;;  %v747_v41 = vld [vmem:[%s4009_s3 + $0x6e0] sm:$0xff]  ;;  %v744_v42 = vld [vmem:[%s4009_s3 + $0x6c8] sm:$0xff] }
  0x8d   :  { %2234 = vmatprep.subr.bf16.mxu0 %v2701_v43  ;;  %v748_v43 = vld [vmem:[%s4009_s3 + $0x6e8] sm:$0xff]  ;;  %v2763_v46 = vcombine.high %v743_v40, %v747_v41  ;;  %v2762_v54 = vcombine.low %v743_v40, %v747_v41 }
  0x8e   :  { %v2765_v48 = vcombine.high %v744_v42, %v748_v43  ;;  %v2764_v55 = vcombine.low %v744_v42, %v748_v43 }
  0x8f   :  { %2153 = vmatpush1.bf16.msra.mxu1 %v2698_v49  ;;  %v751_v49 = vld [vmem:[%s4009_s3 + $0x700] sm:$0xff] }
  0x90   :  { %2235 = vmatpush1.bf16.msra.mxu0 %v2700_v50  ;;  %2154 = vmatprep.subr.bf16.mxu1 %v2707_v52  ;;  %v755_v50 = vld [vmem:[%s4009_s3 + $0x720] sm:$0xff]  ;;  %v752_v52 = vld [vmem:[%s4009_s3 + $0x708] sm:$0xff] }
  0x91   :  { %2236 = vmatprep.subr.bf16.mxu0 %v2709_v53  ;;  %v756_v53 = vld [vmem:[%s4009_s3 + $0x728] sm:$0xff]  ;;  %v2771_v56 = vcombine.high %v751_v49, %v755_v50  ;;  %v2770_v62 = vcombine.low %v751_v49, %v755_v50 }
  0x92   :  { %v2773_v57 = vcombine.high %v752_v52, %v756_v53  ;;  %v2772_v63 = vcombine.low %v752_v52, %v756_v53 }
  0x93   :  { %2155 = vmatpush1.bf16.msra.mxu1 %v2706_v58  ;;  %v759_v58 = vld [vmem:[%s4009_s3 + $0x740] sm:$0xff] }
  0x94   :  { %2237 = vmatpush1.bf16.msra.mxu0 %v2708_v59  ;;  %2156 = vmatprep.subr.bf16.mxu1 %v2715_v60  ;;  %v763_v59 = vld [vmem:[%s4009_s3 + $0x760] sm:$0xff]  ;;  %v760_v60 = vld [vmem:[%s4009_s3 + $0x748] sm:$0xff] }
  0x95   :  { %2238 = vmatprep.subr.bf16.mxu0 %v2717_v61  ;;  %v764_v61 = vld [vmem:[%s4009_s3 + $0x768] sm:$0xff]  ;;  %v2779_v0 = vcombine.high %v759_v58, %v763_v59  ;;  %v2778_v6 = vcombine.low %v759_v58, %v763_v59 }
  0x96   :  { %v2781_v1 = vcombine.high %v760_v60, %v764_v61  ;;  %v2780_v7 = vcombine.low %v760_v60, %v764_v61  ;;  %v569_v61 = vld [vmem:[%s4009_s3 + $0x150] sm:$0xff] }
  0x97   :  { %2157 = vmatpush1.bf16.msra.mxu1 %v2714_v2  ;;  %v767_v2 = vld [vmem:[%s4009_s3 + $0x780] sm:$0xff] }
  0x98   :  { %2239 = vmatpush1.bf16.msra.mxu0 %v2716_v3  ;;  %2158 = vmatprep.subr.bf16.mxu1 %v2723_v4  ;;  %v771_v3 = vld [vmem:[%s4009_s3 + $0x7a0] sm:$0xff]  ;;  %v768_v4 = vld [vmem:[%s4009_s3 + $0x788] sm:$0xff] }
  0x99   :  { %2240 = vmatprep.subr.bf16.mxu0 %v2725_v5  ;;  %v772_v5 = vld [vmem:[%s4009_s3 + $0x7a8] sm:$0xff]  ;;  %v2787_v8 = vcombine.high %v767_v2, %v771_v3  ;;  %v2786_v16 = vcombine.low %v767_v2, %v771_v3 }
  0x9a   :  { %v2789_v9 = vcombine.high %v768_v4, %v772_v5  ;;  %v2788_v17 = vcombine.low %v768_v4, %v772_v5  ;;  %v577_v5 = vld [vmem:[%s4009_s3 + $0x190] sm:$0xff] }
  0x9b   :  { %2159 = vmatpush1.bf16.msra.mxu1 %v2722_v10  ;;  %v775_v10 = vld [vmem:[%s4009_s3 + $0x7c0] sm:$0xff] }
  0x9c   :  { %2241 = vmatpush1.bf16.msra.mxu0 %v2724_v11  ;;  %2160 = vmatprep.subr.bf16.mxu1 %v2731_v12  ;;  %v779_v11 = vld [vmem:[%s4009_s3 + $0x7e0] sm:$0xff]  ;;  %v776_v12 = vld [vmem:[%s4009_s3 + $0x7c8] sm:$0xff] }
  0x9d   :  { %2242 = vmatprep.subr.bf16.mxu0 %v2733_v13  ;;  %v780_v13 = vld [vmem:[%s4009_s3 + $0x7e8] sm:$0xff]  ;;  %v2795_v18 = vcombine.high %v775_v10, %v779_v11  ;;  %v2794_v24 = vcombine.low %v775_v10, %v779_v11 }
  0x9e   :  { %v2797_v19 = vcombine.high %v776_v12, %v780_v13  ;;  %v2796_v25 = vcombine.low %v776_v12, %v780_v13  ;;  %v585_v13 = vld [vmem:[%s4009_s3 + $0x1d0] sm:$0xff] }
  0x9f   :  { %2161 = vmatpush1.bf16.msra.mxu1 %v2730_v20  ;;  %v529_v20 = vld [vmem:[%s4009_s3 + $0x10] sm:$0xff] }
  0xa0   :  { %2243 = vmatpush1.bf16.msra.mxu0 %v2732_v21  ;;  %2162 = vmatprep.subr.bf16.mxu1 %v2739_v22  ;;  %v533_v21 = vld [vmem:[%s4009_s3 + $0x30] sm:$0xff]  ;;  %v530_v22 = vld [vmem:[%s4009_s3 + $0x18] sm:$0xff] }
  0xa1   :  { %2244 = vmatprep.subr.bf16.mxu0 %v2741_v23  ;;  %v534_v23 = vld [vmem:[%s4009_s3 + $0x38] sm:$0xff]  ;;  %v2551_v26 = vcombine.high %v529_v20, %v533_v21  ;;  %v2550_v32 = vcombine.low %v529_v20, %v533_v21 }
  0xa2   :  { %v2553_v27 = vcombine.high %v530_v22, %v534_v23  ;;  %v2552_v33 = vcombine.low %v530_v22, %v534_v23  ;;  %v593_v23 = vld [vmem:[%s4009_s3 + $0x210] sm:$0xff] }
  0xa3   :  { %2163 = vmatpush1.bf16.msra.mxu1 %v2738_v28  ;;  %v537_v28 = vld [vmem:[%s4009_s3 + $0x50] sm:$0xff] }
  0xa4   :  { %2245 = vmatpush1.bf16.msra.mxu0 %v2740_v29  ;;  %2164 = vmatprep.subr.bf16.mxu1 %v2747_v30  ;;  %v541_v29 = vld [vmem:[%s4009_s3 + $0x70] sm:$0xff]  ;;  %v538_v30 = vld [vmem:[%s4009_s3 + $0x58] sm:$0xff] }
  0xa5   :  { %2246 = vmatprep.subr.bf16.mxu0 %v2749_v31  ;;  %v542_v31 = vld [vmem:[%s4009_s3 + $0x78] sm:$0xff]  ;;  %v2559_v34 = vcombine.high %v537_v28, %v541_v29  ;;  %v2558_v40 = vcombine.low %v537_v28, %v541_v29 }
  0xa6   :  { %v2561_v35 = vcombine.high %v538_v30, %v542_v31  ;;  %v2560_v41 = vcombine.low %v538_v30, %v542_v31  ;;  %v601_v31 = vld [vmem:[%s4009_s3 + $0x250] sm:$0xff] }
  0xa7   :  { %2165 = vmatpush1.bf16.msra.mxu1 %v2746_v36  ;;  %v545_v36 = vld [vmem:[%s4009_s3 + $0x90] sm:$0xff] }
  0xa8   :  { %2247 = vmatpush1.bf16.msra.mxu0 %v2748_v37  ;;  %2166 = vmatprep.subr.bf16.mxu1 %v2755_v38  ;;  %v549_v37 = vld [vmem:[%s4009_s3 + $0xb0] sm:$0xff]  ;;  %v546_v38 = vld [vmem:[%s4009_s3 + $0x98] sm:$0xff] }
  0xa9   :  { %2248 = vmatprep.subr.bf16.mxu0 %v2757_v39  ;;  %v550_v39 = vld [vmem:[%s4009_s3 + $0xb8] sm:$0xff]  ;;  %v2567_v42 = vcombine.high %v545_v36, %v549_v37  ;;  %v2566_v49 = vcombine.low %v545_v36, %v549_v37 }
  0xaa   :  { %v2569_v43 = vcombine.high %v546_v38, %v550_v39  ;;  %v2568_v50 = vcombine.low %v546_v38, %v550_v39  ;;  %v609_v39 = vld [vmem:[%s4009_s3 + $0x290] sm:$0xff] }
  0xab   :  { %2167 = vmatpush1.bf16.msra.mxu1 %v2754_v44  ;;  %v553_v44 = vld [vmem:[%s4009_s3 + $0xd0] sm:$0xff] }
  0xac   :  { %2249 = vmatpush1.bf16.msra.mxu0 %v2756_v45  ;;  %2168 = vmatprep.subr.bf16.mxu1 %v2763_v46  ;;  %v557_v45 = vld [vmem:[%s4009_s3 + $0xf0] sm:$0xff]  ;;  %v554_v46 = vld [vmem:[%s4009_s3 + $0xd8] sm:$0xff] }
  0xad   :  { %2250 = vmatprep.subr.bf16.mxu0 %v2765_v48  ;;  %v558_v48 = vld [vmem:[%s4009_s3 + $0xf8] sm:$0xff]  ;;  %v2575_v52 = vcombine.high %v553_v44, %v557_v45 }
  0xae   :  { %v2577_v53 = vcombine.high %v554_v46, %v558_v48  ;;  %v2576_v58 = vcombine.low %v554_v46, %v558_v48  ;;  %v617_v48 = vld [vmem:[%s4009_s3 + $0x2d0] sm:$0xff] }
  0xaf   :  { %2169 = vmatpush1.bf16.msra.mxu1 %v2762_v54  ;;  %v561_v54 = vld [vmem:[%s4009_s3 + $0x110] sm:$0xff] }
  0xb0   :  { %2251 = vmatpush1.bf16.msra.mxu0 %v2764_v55  ;;  %2170 = vmatprep.subr.bf16.mxu1 %v2771_v56  ;;  %v565_v55 = vld [vmem:[%s4009_s3 + $0x130] sm:$0xff]  ;;  %v566_v56 = vld [vmem:[%s4009_s3 + $0x138] sm:$0xff] }
  0xb1   :  { %2252 = vmatprep.subr.bf16.mxu0 %v2773_v57  ;;  %v2574_v57 = vcombine.low %v553_v44, %v557_v45  ;;  %v2583_v59 = vcombine.high %v561_v54, %v565_v55 }
  0xb3   :  { %2171 = vmatpush1.bf16.msra.mxu1 %v2770_v62  ;;  %v573_v62 = vld [vmem:[%s4009_s3 + $0x170] sm:$0xff] }
  0xb4   :  { %2253 = vmatpush1.bf16.msra.mxu0 %v2772_v63  ;;  %2172 = vmatprep.subr.bf16.mxu1 %v2779_v0  ;;  %v570_v63 = vld [vmem:[%s4009_s3 + $0x158] sm:$0xff]  ;;  %v2591_v3 = vcombine.high %v569_v61, %v573_v62 }
  0xb5   :  { %2254 = vmatprep.subr.bf16.mxu0 %v2781_v1  ;;  %v574_v0 = vld [vmem:[%s4009_s3 + $0x178] sm:$0xff]  ;;  %v2582_v1 = vcombine.low %v561_v54, %v565_v55 }
  0xb6   :  { %v2593_v4 = vcombine.high %v570_v63, %v574_v0  ;;  %v2592_v10 = vcombine.low %v570_v63, %v574_v0  ;;  %v633_v0 = vld [vmem:[%s4009_s3 + $0x350] sm:$0xff] }
  0xb7   :  { %2173 = vmatpush1.bf16.msra.mxu1 %v2778_v6  ;;  %v581_v6 = vld [vmem:[%s4009_s3 + $0x1b0] sm:$0xff] }
  0xb8   :  { %2255 = vmatpush1.bf16.msra.mxu0 %v2780_v7  ;;  %2174 = vmatprep.subr.bf16.mxu1 %v2787_v8  ;;  %v578_v7 = vld [vmem:[%s4009_s3 + $0x198] sm:$0xff]  ;;  %v2599_v11 = vcombine.high %v577_v5, %v581_v6 }
  0xb9   :  { %2256 = vmatprep.subr.bf16.mxu0 %v2789_v9  ;;  %v582_v8 = vld [vmem:[%s4009_s3 + $0x1b8] sm:$0xff]  ;;  %v2590_v9 = vcombine.low %v569_v61, %v573_v62 }
  0xba   :  { %v2601_v12 = vcombine.high %v578_v7, %v582_v8  ;;  %v2600_v20 = vcombine.low %v578_v7, %v582_v8  ;;  %v641_v8 = vld [vmem:[%s4009_s3 + $0x390] sm:$0xff] }
  0xbb   :  { %2175 = vmatpush1.bf16.msra.mxu1 %v2786_v16  ;;  %v589_v16 = vld [vmem:[%s4009_s3 + $0x1f0] sm:$0xff] }
  0xbc   :  { %2257 = vmatpush1.bf16.msra.mxu0 %v2788_v17  ;;  %2176 = vmatprep.subr.bf16.mxu1 %v2795_v18  ;;  %v586_v17 = vld [vmem:[%s4009_s3 + $0x1d8] sm:$0xff]  ;;  %v2607_v21 = vcombine.high %v585_v13, %v589_v16 }
  0xbd   :  { %2258 = vmatprep.subr.bf16.mxu0 %v2797_v19  ;;  %v590_v18 = vld [vmem:[%s4009_s3 + $0x1f8] sm:$0xff]  ;;  %v2598_v19 = vcombine.low %v577_v5, %v581_v6 }
  0xbe   :  { %v2609_v22 = vcombine.high %v586_v17, %v590_v18  ;;  %v2608_v28 = vcombine.low %v586_v17, %v590_v18  ;;  %v649_v18 = vld [vmem:[%s4009_s3 + $0x3d0] sm:$0xff] }
  0xbf   :  { %2177 = vmatpush1.bf16.msra.mxu1 %v2794_v24  ;;  %v597_v24 = vld [vmem:[%s4009_s3 + $0x230] sm:$0xff] }
  0xc0   :  { %2259 = vmatpush1.bf16.msra.mxu0 %v2796_v25  ;;  %2269 = vmatprep.subr.bf16.mxu1 %v2551_v26  ;;  %v594_v25 = vld [vmem:[%s4009_s3 + $0x218] sm:$0xff]  ;;  %v2615_v29 = vcombine.high %v593_v23, %v597_v24 }
  0xc1   :  { %2351 = vmatprep.subr.bf16.mxu0 %v2553_v27  ;;  %v598_v26 = vld [vmem:[%s4009_s3 + $0x238] sm:$0xff]  ;;  %v2606_v27 = vcombine.low %v585_v13, %v589_v16 }
  0xc2   :  { %2179 = vmatmul.mubr.bf16.vlgmr.msra.gmra.mrb[4].mxu1 %v3204_v15  ;;  %v2617_v30 = vcombine.high %v594_v25, %v598_v26  ;;  %v2616_v36 = vcombine.low %v594_v25, %v598_v26  ;;  %v657_v26 = vld [vmem:[%s4009_s3 + $0x410] sm:$0xff] }
  0xc3   :  { %2261 = vmatmul.mubr.bf16.vlgmr.msra.gmra.mrb[4].mxu0 %v3204_v15  ;;  %2270 = vmatpush1.bf16.msra.mxu1 %v2550_v32  ;;  %v605_v32 = vld [vmem:[%s4009_s3 + $0x270] sm:$0xff] }
  0xc4   :  { %2352 = vmatpush1.bf16.msra.mxu0 %v2552_v33  ;;  %2271 = vmatprep.subr.bf16.mxu1 %v2559_v34  ;;  %v602_v33 = vld [vmem:[%s4009_s3 + $0x258] sm:$0xff]  ;;  %v2623_v37 = vcombine.high %v601_v31, %v605_v32 }
  0xc5   :  { %2353 = vmatprep.subr.bf16.mxu0 %v2561_v35  ;;  %2301 = vmatprep.mubr.bf16.mxu1 %v3115_v47  ;;  %v606_v34 = vld [vmem:[%s4009_s3 + $0x278] sm:$0xff]  ;;  %v2614_v35 = vcombine.low %v593_v23, %v597_v24 }
  0xc6   :  { %2383 = vmatprep.mubr.bf16.mxu0 %v3115_v47  ;;  %v562_v47 = vld [vmem:[%s4009_s3 + $0x118] sm:$0xff]  ;;  %v2625_v38 = vcombine.high %v602_v33, %v606_v34  ;;  %v2624_v44 = vcombine.low %v602_v33, %v606_v34  ;;  %v665_v34 = vld [vmem:[%s4009_s3 + $0x450] sm:$0xff] }
  0xc7   :  { %2272 = vmatpush1.bf16.msra.mxu1 %v2558_v40  ;;  %v2585_v60 = vcombine.high %v562_v47, %v566_v56  ;;  %v2584_v2 = vcombine.low %v562_v47, %v566_v56  ;;  %v613_v40 = vld [vmem:[%s4009_s3 + $0x2b0] sm:$0xff] }
  0xc8   :  { %2354 = vmatpush1.bf16.msra.mxu0 %v2560_v41  ;;  %2273 = vmatprep.subr.bf16.mxu1 %v2567_v42  ;;  %v610_v41 = vld [vmem:[%s4009_s3 + $0x298] sm:$0xff]  ;;  %v2631_v45 = vcombine.high %v609_v39, %v613_v40  ;;  %v625_v56 = vld [vmem:[%s4009_s3 + $0x310] sm:$0xff] }
  0xc9   :  { %2355 = vmatprep.subr.bf16.mxu0 %v2569_v43  ;;  %v614_v42 = vld [vmem:[%s4009_s3 + $0x2b8] sm:$0xff]  ;;  %v2622_v43 = vcombine.low %v601_v31, %v605_v32 }
  0xca   :  { %v2633_v46 = vcombine.high %v610_v41, %v614_v42  ;;  %v2632_v54 = vcombine.low %v610_v41, %v614_v42  ;;  %v673_v42 = vld [vmem:[%s4009_s3 + $0x490] sm:$0xff] }
  0xcb   :  { %2274 = vmatpush1.bf16.msra.mxu1 %v2566_v49  ;;  %v621_v49 = vld [vmem:[%s4009_s3 + $0x2f0] sm:$0xff] }
  0xcc   :  { %2356 = vmatpush1.bf16.msra.mxu0 %v2568_v50  ;;  %2275 = vmatprep.subr.bf16.mxu1 %v2575_v52  ;;  %v618_v50 = vld [vmem:[%s4009_s3 + $0x2d8] sm:$0xff]  ;;  %v2639_v55 = vcombine.high %v617_v48, %v621_v49 }
  0xcd   :  { %2357 = vmatprep.subr.bf16.mxu0 %v2577_v53  ;;  %v622_v52 = vld [vmem:[%s4009_s3 + $0x2f8] sm:$0xff]  ;;  %v2630_v53 = vcombine.low %v609_v39, %v613_v40 }
  0xce   :  { %v2641_v47 = vcombine.high %v618_v50, %v622_v52  ;;  %v2640_v61 = vcombine.low %v618_v50, %v622_v52  ;;  %v681_v52 = vld [vmem:[%s4009_s3 + $0x4d0] sm:$0xff] }
  0xcf   :  { %2276 = vmatpush1.bf16.msra.mxu1 %v2574_v57  ;;  %v629_v57 = vld [vmem:[%s4009_s3 + $0x330] sm:$0xff] }
  0xd0   :  { %2358 = vmatpush1.bf16.msra.mxu0 %v2576_v58  ;;  %2277 = vmatprep.subr.bf16.mxu1 %v2583_v59  ;;  %v626_v58 = vld [vmem:[%s4009_s3 + $0x318] sm:$0xff]  ;;  %v2647_v62 = vcombine.high %v625_v56, %v629_v57 }
  0xd1   :  { %2359 = vmatprep.subr.bf16.mxu0 %v2585_v60  ;;  %v630_v59 = vld [vmem:[%s4009_s3 + $0x338] sm:$0xff]  ;;  %v2638_v60 = vcombine.low %v617_v48, %v621_v49 }
  0xd2   :  { %v2649_v63 = vcombine.high %v626_v58, %v630_v59  ;;  %v2648_v5 = vcombine.low %v626_v58, %v630_v59  ;;  %v689_v59 = vld [vmem:[%s4009_s3 + $0x510] sm:$0xff] }
  0xd3   :  { %2278 = vmatpush1.bf16.msra.mxu1 %v2582_v1  ;;  %v637_v1 = vld [vmem:[%s4009_s3 + $0x370] sm:$0xff] }
  0xd4   :  { %2360 = vmatpush1.bf16.msra.mxu0 %v2584_v2  ;;  %2279 = vmatprep.subr.bf16.mxu1 %v2591_v3  ;;  %v634_v2 = vld [vmem:[%s4009_s3 + $0x358] sm:$0xff]  ;;  %v2655_v6 = vcombine.high %v633_v0, %v637_v1 }
  0xd5   :  { %2361 = vmatprep.subr.bf16.mxu0 %v2593_v4  ;;  %v638_v3 = vld [vmem:[%s4009_s3 + $0x378] sm:$0xff]  ;;  %v2646_v4 = vcombine.low %v625_v56, %v629_v57 }
  0xd6   :  { %v2657_v7 = vcombine.high %v634_v2, %v638_v3  ;;  %v2656_v13 = vcombine.low %v634_v2, %v638_v3  ;;  %v697_v3 = vld [vmem:[%s4009_s3 + $0x550] sm:$0xff] }
  0xd7   :  { %2280 = vmatpush1.bf16.msra.mxu1 %v2590_v9  ;;  %v645_v9 = vld [vmem:[%s4009_s3 + $0x3b0] sm:$0xff] }
  0xd8   :  { %2362 = vmatpush1.bf16.msra.mxu0 %v2592_v10  ;;  %2281 = vmatprep.subr.bf16.mxu1 %v2599_v11  ;;  %v642_v10 = vld [vmem:[%s4009_s3 + $0x398] sm:$0xff]  ;;  %v2663_v16 = vcombine.high %v641_v8, %v645_v9 }
  0xd9   :  { %2363 = vmatprep.subr.bf16.mxu0 %v2601_v12  ;;  %v646_v11 = vld [vmem:[%s4009_s3 + $0x3b8] sm:$0xff]  ;;  %v2654_v12 = vcombine.low %v633_v0, %v637_v1 }
  0xda   :  { %v2665_v17 = vcombine.high %v642_v10, %v646_v11  ;;  %v2664_v23 = vcombine.low %v642_v10, %v646_v11  ;;  %v88_v10 = vld [vmem:[%s4010_s2] sm:$0x3] }
  0xdb   :  { %2282 = vmatpush1.bf16.msra.mxu1 %v2598_v19  ;;  %v653_v19 = vld [vmem:[%s4009_s3 + $0x3f0] sm:$0xff] }
  0xdc   :  { %2364 = vmatpush1.bf16.msra.mxu0 %v2600_v20  ;;  %2283 = vmatprep.subr.bf16.mxu1 %v2607_v21  ;;  %v650_v20 = vld [vmem:[%s4009_s3 + $0x3d8] sm:$0xff]  ;;  %v2671_v24 = vcombine.high %v649_v18, %v653_v19 }
  0xdd   :  { %2365 = vmatprep.subr.bf16.mxu0 %v2609_v22  ;;  %v654_v21 = vld [vmem:[%s4009_s3 + $0x3f8] sm:$0xff]  ;;  %v2662_v22 = vcombine.low %v641_v8, %v645_v9 }
  0xde   :  { %v2673_v25 = vcombine.high %v650_v20, %v654_v21  ;;  %v2672_v31 = vcombine.low %v650_v20, %v654_v21 }
  0xdf   :  { %2284 = vmatpush1.bf16.msra.mxu1 %v2606_v27  ;;  %v661_v27 = vld [vmem:[%s4009_s3 + $0x430] sm:$0xff] }
  0xe0   :  { %2366 = vmatpush1.bf16.msra.mxu0 %v2608_v28  ;;  %2285 = vmatprep.subr.bf16.mxu1 %v2615_v29  ;;  %v658_v28 = vld [vmem:[%s4009_s3 + $0x418] sm:$0xff]  ;;  %v2679_v32 = vcombine.high %v657_v26, %v661_v27 }
  0xe1   :  { %2367 = vmatprep.subr.bf16.mxu0 %v2617_v30  ;;  %v662_v29 = vld [vmem:[%s4009_s3 + $0x438] sm:$0xff]  ;;  %v2670_v30 = vcombine.low %v649_v18, %v653_v19 }
  0xe2   :  { %v2681_v33 = vcombine.high %v658_v28, %v662_v29  ;;  %v2680_v39 = vcombine.low %v658_v28, %v662_v29  ;;  %v706_v18 = vld [vmem:[%s4009_s3 + $0x598] sm:$0xff]  ;;  %v717_v29 = vld [vmem:[%s4009_s3 + $0x5f0] sm:$0xff] }
  0xe3   :  { %2286 = vmatpush1.bf16.msra.mxu1 %v2614_v35  ;;  %v669_v35 = vld [vmem:[%s4009_s3 + $0x470] sm:$0xff]  ;;  %v710_v19 = vld [vmem:[%s4009_s3 + $0x5b8] sm:$0xff] }
  0xe4   :  { %2368 = vmatpush1.bf16.msra.mxu0 %v2616_v36  ;;  %2287 = vmatprep.subr.bf16.mxu1 %v2623_v37  ;;  %v666_v36 = vld [vmem:[%s4009_s3 + $0x458] sm:$0xff]  ;;  %v2687_v40 = vcombine.high %v665_v34, %v669_v35 }
  0xe5   :  { %2369 = vmatprep.subr.bf16.mxu0 %v2625_v38  ;;  %v670_v37 = vld [vmem:[%s4009_s3 + $0x478] sm:$0xff]  ;;  %v2678_v38 = vcombine.low %v657_v26, %v661_v27  ;;  %v713_v26 = vld [vmem:[%s4009_s3 + $0x5d0] sm:$0xff] }
  0xe6   :  { %v2689_v41 = vcombine.high %v666_v36, %v670_v37  ;;  %v2688_v48 = vcombine.low %v666_v36, %v670_v37 }
  0xe7   :  { %2288 = vmatpush1.bf16.msra.mxu1 %v2622_v43  ;;  %v677_v43 = vld [vmem:[%s4009_s3 + $0x4b0] sm:$0xff] }
  0xe8   :  { %2370 = vmatpush1.bf16.msra.mxu0 %v2624_v44  ;;  %2289 = vmatprep.subr.bf16.mxu1 %v2631_v45  ;;  %v674_v44 = vld [vmem:[%s4009_s3 + $0x498] sm:$0xff]  ;;  %v2695_v49 = vcombine.high %v673_v42, %v677_v43 }
  0xe9   :  { %2371 = vmatprep.subr.bf16.mxu0 %v2633_v46  ;;  %v678_v45 = vld [vmem:[%s4009_s3 + $0x4b8] sm:$0xff]  ;;  %v2686_v46 = vcombine.low %v665_v34, %v669_v35 }
  0xea   :  { %v2697_v50 = vcombine.high %v674_v44, %v678_v45  ;;  %v2696_v56 = vcombine.low %v674_v44, %v678_v45  ;;  %v721_v45 = vld [vmem:[%s4009_s3 + $0x610] sm:$0xff] }
  0xeb   :  { %2290 = vmatpush1.bf16.msra.mxu1 %v2630_v53  ;;  %v685_v53 = vld [vmem:[%s4009_s3 + $0x4f0] sm:$0xff] }
  0xec   :  { %2372 = vmatpush1.bf16.msra.mxu0 %v2632_v54  ;;  %2291 = vmatprep.subr.bf16.mxu1 %v2639_v55  ;;  %v686_v54 = vld [vmem:[%s4009_s3 + $0x4f8] sm:$0xff]  ;;  %v90_v55 = vlaneseq  ;;  %v2703_v57 = vcombine.high %v681_v52, %v685_v53 }
  0xed   :  { %2373 = vmatprep.subr.bf16.mxu0 %v2641_v47  ;;  %v2694_v47 = vcombine.low %v673_v42, %v677_v43  ;;  %v2735_v43 = vcombine.high %v713_v26, %v717_v29 }
  0xef   :  { %2292 = vmatpush1.bf16.msra.mxu1 %v2638_v60  ;;  %v693_v60 = vld [vmem:[%s4009_s3 + $0x530] sm:$0xff] }
  0xf0   :  { %2374 = vmatpush1.bf16.msra.mxu0 %v2640_v61  ;;  %2293 = vmatprep.subr.bf16.mxu1 %v2647_v62  ;;  %v694_v61 = vld [vmem:[%s4009_s3 + $0x538] sm:$0xff]  ;;  %v3834_v62 = vshrl.u32 %v90_v55, 7  ;;  %v2711_v1 = vcombine.high %v689_v59, %v693_v60  ;;  %v2710_v8 = vcombine.low %v689_v59, %v693_v60 }
  0xf1   :  { %2375 = vmatprep.subr.bf16.mxu0 %v2649_v63  ;;  %v2702_v63 = vcombine.low %v681_v52, %v685_v53  ;;  %v730_v59 = vld [vmem:[%s4009_s3 + $0x658] sm:$0xff] }
  0xf2   :  { %v96_v11 = vsub.s32 1, %v3834_v62  ;;  %v734_v60 = vld [vmem:[%s4009_s3 + $0x678] sm:$0xff] }
  0xf3   :  { %2294 = vmatpush1.bf16.msra.mxu1 %v2646_v4  ;;  %v701_v4 = vld [vmem:[%s4009_s3 + $0x570] sm:$0xff] }
  0xf4   :  { %2376 = vmatpush1.bf16.msra.mxu0 %v2648_v5  ;;  %2295 = vmatprep.subr.bf16.mxu1 %v2655_v6  ;;  %v698_v5 = vld [vmem:[%s4009_s3 + $0x558] sm:$0xff]  ;;  %v97_v21 = vrot.slane %v88_v10, %v96_v11 }
  0xf5   :  { %2377 = vmatprep.subr.bf16.mxu0 %v2657_v7  ;;  %v702_v6 = vld [vmem:[%s4009_s3 + $0x578] sm:$0xff]  ;;  %v92_v7 = vsub.s32 0, %v3834_v62 }
  0xf7   :  { %2296 = vmatpush1.bf16.msra.mxu1 %v2654_v12  ;;  %v2719_v12 = vcombine.high %v697_v3, %v701_v4  ;;  %v93_v20 = vrot.slane %v88_v10, %v92_v7  ;;  %v745_v10 = vld [vmem:[%s4009_s3 + $0x6d0] sm:$0xff] }
  0xf8   :  { %2378 = vmatpush1.bf16.msra.mxu0 %v2656_v13  ;;  %2297 = vmatprep.subr.bf16.mxu1 %v2663_v16  ;;  %v2721_v13 = vcombine.high %v698_v5, %v702_v6  ;;  %v705_v16 = vld [vmem:[%s4009_s3 + $0x590] sm:$0xff] }
  0xf9   :  { %2379 = vmatprep.subr.bf16.mxu0 %v2665_v17  ;;  %v709_v17 = vld [vmem:[%s4009_s3 + $0x5b0] sm:$0xff] }
  0xfb   :  { %2298 = vmatpush1.bf16.msra.mxu1 %v2662_v22  ;;  %v2718_v22 = vcombine.low %v697_v3, %v701_v4  ;;  %v738_v3 = vld [vmem:[%s4009_s3 + $0x698] sm:$0xff] }
  0xfc   :  { %2380 = vmatpush1.bf16.msra.mxu0 %v2664_v23  ;;  %2299 = vmatprep.subr.bf16.mxu1 %v2671_v24  ;;  %v2720_v23 = vcombine.low %v698_v5, %v702_v6  ;;  %v2727_v24 = vcombine.high %v705_v16, %v709_v17  ;;  %v742_v4 = vld [vmem:[%s4009_s3 + $0x6b8] sm:$0xff]  ;;  %v2752_v6 = vcombine.low %v730_v59, %v734_v60 }
  0xfd   :  { %2381 = vmatprep.subr.bf16.mxu0 %v2673_v25  ;;  %v2729_v25 = vcombine.high %v706_v18, %v710_v19 }
  0xff   :  { %2300 = vmatpush1.bf16.msra.mxu1 %v2670_v30  ;;  %v714_v30 = vld [vmem:[%s4009_s3 + $0x5d8] sm:$0xff] }
 0x100   :  { %2382 = vmatpush1.bf16.msra.mxu0 %v2672_v31  ;;  %2310 = vmatprep.subr.bf16.mxu1 %v2679_v32  ;;  %v718_v31 = vld [vmem:[%s4009_s3 + $0x5f8] sm:$0xff] }
 0x101   :  { %2392 = vmatprep.subr.bf16.mxu0 %v2681_v33  ;;  %v2737_v44 = vcombine.high %v714_v30, %v718_v31 }
 0x102   :  { %2302 = vmatmul.mubr.bf16.vlgmr.msra.gmra.mrb[8].mxu1 %v3202_v14 }
 0x103   :  { %2384 = vmatmul.mubr.bf16.vlgmr.msra.gmra.mrb[8].mxu0 %v3202_v14  ;;  %2311 = vmatpush1.bf16.msra.mxu1 %v2678_v38  ;;  %v682_v14 = vld [vmem:[%s4009_s3 + $0x4d8] sm:$0xff]  ;;  %v2726_v38 = vcombine.low %v705_v16, %v709_v17 }
 0x104   :  { %2393 = vmatpush1.bf16.msra.mxu0 %v2680_v39  ;;  %2312 = vmatprep.subr.bf16.mxu1 %v2687_v40  ;;  %v2705_v58 = vcombine.high %v682_v14, %v686_v54  ;;  %v2704_v0 = vcombine.low %v682_v14, %v686_v54  ;;  %v2728_v39 = vcombine.low %v706_v18, %v710_v19  ;;  %v750_v16 = vld [vmem:[%s4009_s3 + $0x6f8] sm:$0xff] }
 0x105   :  { %2394 = vmatprep.subr.bf16.mxu0 %v2689_v41  ;;  %2342 = vmatprep.mubr.bf16.mxu1 %v3126_v51  ;;  %v2734_v14 = vcombine.low %v713_v26, %v717_v29  ;;  %v2736_v54 = vcombine.low %v714_v30, %v718_v31  ;;  %v2760_v18 = vcombine.low %v738_v3, %v742_v4  ;;  %v761_v29 = vld [vmem:[%s4009_s3 + $0x750] sm:$0xff]  ;;  %v762_v31 = vld [vmem:[%s4009_s3 + $0x758] sm:$0xff] }
 0x106   :  { %2424 = vmatprep.mubr.bf16.mxu0 %v3126_v51  ;;  %v690_v51 = vld [vmem:[%s4009_s3 + $0x518] sm:$0xff]  ;;  %v765_v30 = vld [vmem:[%s4009_s3 + $0x770] sm:$0xff] }
 0x107   :  { %2313 = vmatpush1.bf16.msra.mxu1 %v2686_v46  ;;  %v2713_v2 = vcombine.high %v690_v51, %v694_v61  ;;  %v2712_v9 = vcombine.low %v690_v51, %v694_v61 }
 0x108   :  { %2395 = vmatpush1.bf16.msra.mxu0 %v2688_v48  ;;  %2314 = vmatprep.subr.bf16.mxu1 %v2695_v49  ;;  %v725_v48 = vld [vmem:[%s4009_s3 + $0x630] sm:$0xff]  ;;  %v722_v49 = vld [vmem:[%s4009_s3 + $0x618] sm:$0xff] }
 0x109   :  { %2396 = vmatprep.subr.bf16.mxu0 %v2697_v50  ;;  %v726_v50 = vld [vmem:[%s4009_s3 + $0x638] sm:$0xff]  ;;  %v2743_v55 = vcombine.high %v721_v45, %v725_v48  ;;  %v2742_v51 = vcombine.low %v721_v45, %v725_v48  ;;  %v777_v45 = vld [vmem:[%s4009_s3 + $0x7d0] sm:$0xff] }
 0x10a   :  { %v2744_v61 = vcombine.low %v722_v49, %v726_v50  ;;  %v778_v48 = vld [vmem:[%s4009_s3 + $0x7d8] sm:$0xff] }
 0x10b   :  { %2315 = vmatpush1.bf16.msra.mxu1 %v2694_v47  ;;  %v2745_v47 = vcombine.high %v722_v49, %v726_v50  ;;  %v782_v49 = vld [vmem:[%s4009_s3 + $0x7f8] sm:$0xff] }
 0x10c   :  { %2397 = vmatpush1.bf16.msra.mxu0 %v2696_v56  ;;  %2316 = vmatprep.subr.bf16.mxu1 %v2703_v57  ;;  %v729_v56 = vld [vmem:[%s4009_s3 + $0x650] sm:$0xff] }
 0x10d   :  { %2398 = vmatprep.subr.bf16.mxu0 %v2705_v58  ;;  %v733_v58 = vld [vmem:[%s4009_s3 + $0x670] sm:$0xff] }
 0x10e   :  { %v2750_v5 = vcombine.low %v729_v56, %v733_v58 }
 0x10f   :  { %2317 = vmatpush1.bf16.msra.mxu1 %v2702_v63  ;;  %v2751_v63 = vcombine.high %v729_v56, %v733_v58  ;;  %v783_v56 = vld [vmem:[%s4012_s4] sm:$0xff] }
 0x110   :  { %2399 = vmatpush1.bf16.msra.mxu0 %v2704_v0  ;;  %2318 = vmatprep.subr.bf16.mxu1 %v2711_v1  ;;  %v2753_v0 = vcombine.high %v730_v59, %v734_v60  ;;  %v737_v1 = vld [vmem:[%s4009_s3 + $0x690] sm:$0xff]  ;;  %v788_v58 = vrot.slane %v783_v56, %v92_v7  ;;  %v792_v60 = vrot.slane %v783_v56, %v96_v11  ;;  %v803_v7 = vsub.s32 4, %v3834_v62 }
 0x111   :  { %2400 = vmatprep.subr.bf16.mxu0 %v2713_v2  ;;  %v741_v2 = vld [vmem:[%s4009_s3 + $0x6b0] sm:$0xff]  ;;  %v811_v11 = vsub.s32 6, %v3834_v62 }
 0x112   :  { %v2758_v17 = vcombine.low %v737_v1, %v741_v2 }
 0x113   :  { %2319 = vmatpush1.bf16.msra.mxu1 %v2710_v8  ;;  %v2759_v8 = vcombine.high %v737_v1, %v741_v2 }
 0x114   :  { %2401 = vmatpush1.bf16.msra.mxu0 %v2712_v9  ;;  %2320 = vmatprep.subr.bf16.mxu1 %v2719_v12  ;;  %v2761_v9 = vcombine.high %v738_v3, %v742_v4  ;;  %v749_v12 = vld [vmem:[%s4009_s3 + $0x6f0] sm:$0xff] }
 0x115   :  { %2402 = vmatprep.subr.bf16.mxu0 %v2721_v13  ;;  %v468_v27 = vpop.f32.mrb[0].mxu1  ;;  %v746_v13 = vld [vmem:[%s4009_s3 + $0x6d8] sm:$0xff]  ;;  %v2767_v19 = vcombine.high %v745_v10, %v749_v12 }
 0x116   :  { %v509_v28 = vpop.f32.mrb[0].mxu0  ;;  %v469_v32 = vadd.f32 %v468_v27, %v93_v20  ;;  %v470_v33 = vpop.f32.mrb[1].mxu1  ;;  %v2769_v20 = vcombine.high %v746_v13, %v750_v16  ;;  %v2768_v26 = vcombine.low %v746_v13, %v750_v16  ;;  %v807_v13 = vsub.s32 5, %v3834_v62 }
 0x117   :  { %v511_v34 = vpop.f32.mrb[1].mxu0  ;;  %v471_v35 = vadd.f32 %v470_v33, %v97_v21  ;;  %v472_v36 = vpop.f32.mrb[2].mxu1  ;;  %2321 = vmatpush1.bf16.msra.mxu1 %v2718_v22  ;;  %v753_v21 = vld [vmem:[%s4009_s3 + $0x710] sm:$0xff]  ;;  %v815_v16 = vsub.s32 7, %v3834_v62 }
 0x118   :  { %v513_v37 = vpop.f32.mrb[2].mxu0  ;;  %2403 = vmatpush1.bf16.msra.mxu0 %v2720_v23  ;;  %v510_v40 = vadd.f32 %v509_v28, %v469_v32  ;;  %v473_v41 = vpop.f32.mrb[3].mxu1  ;;  %2322 = vmatprep.subr.bf16.mxu1 %v2727_v24  ;;  %v757_v22 = vld [vmem:[%s4009_s3 + $0x730] sm:$0xff]  ;;  %v754_v23 = vld [vmem:[%s4009_s3 + $0x718] sm:$0xff] }
 0x119   :  { %v514_v42 = vpop.f32.mrb[3].mxu0  ;;  %2404 = vmatprep.subr.bf16.mxu0 %v2729_v25  ;;  %v512_v46 = vadd.f32 %v511_v34, %v471_v35  ;;  %v758_v24 = vld [vmem:[%s4009_s3 + $0x738] sm:$0xff]  ;;  %v2766_v25 = vcombine.low %v745_v10, %v749_v12  ;;  %v2775_v27 = vcombine.high %v753_v21, %v757_v22  ;;  %v2774_v33 = vcombine.low %v753_v21, %v757_v22  ;;  %v769_v37 = vld [vmem:[%s4009_s3 + $0x790] sm:$0xff] }
 0x11a   :  { %v516_v52 = vmax.f32 %v510_v40, 0.0  ;;  %v2777_v28 = vcombine.high %v754_v23, %v758_v24  ;;  %v766_v32 = vld [vmem:[%s4009_s3 + $0x778] sm:$0xff]  ;;  %v2776_v34 = vcombine.low %v754_v23, %v758_v24  ;;  %v2783_v35 = vcombine.high %v761_v29, %v765_v30 }
 0x11b   :  { %v517_v53 = vmax.f32 %v512_v46, 0.0  ;;  %2323 = vmatpush1.bf16.msra.mxu1 %v2726_v38  ;;  %v2785_v36 = vcombine.high %v762_v31, %v766_v32  ;;  %v773_v38 = vld [vmem:[%s4009_s3 + $0x7b0] sm:$0xff]  ;;  %v774_v40 = vld [vmem:[%s4009_s3 + $0x7b8] sm:$0xff]  ;;  %v2782_v41 = vcombine.low %v761_v29, %v765_v30  ;;  %v2784_v42 = vcombine.low %v762_v31, %v766_v32 }
 0x11c   :  { %2405 = vmatpush1.bf16.msra.mxu0 %v2728_v39  ;;  %2324 = vmatprep.subr.bf16.mxu1 %v2735_v43  ;;  %v770_v39 = vld [vmem:[%s4009_s3 + $0x798] sm:$0xff]  ;;  %v2791_v43 = vcombine.high %v769_v37, %v773_v38  ;;  %v781_v46 = vld [vmem:[%s4009_s3 + $0x7f0] sm:$0xff]  ;;  %v2790_v50 = vcombine.low %v769_v37, %v773_v38 }
 0x11d   :  { %2406 = vmatprep.subr.bf16.mxu0 %v2737_v44  ;;  %v2806_v57 = vpack.c.bf16 %v517_v53, %v516_v52  ;;  %v2793_v44 = vcombine.high %v770_v39, %v774_v40  ;;  %v2792_v52 = vcombine.low %v770_v39, %v774_v40  ;;  %v2799_v53 = vcombine.high %v777_v45, %v781_v46 }
 0x11f   :  { %526 = vst [vmem:[%s4011_s5] sm:$0xff] %v2806_v57  ;;  %2325 = vmatpush1.bf16.msra.mxu1 %v2734_v14  ;;  %v2801_v14 = vcombine.high %v778_v48, %v782_v49  ;;  %v799_v57 = vsub.s32 3, %v3834_v62 }
 0x120   :  { %2407 = vmatpush1.bf16.msra.mxu0 %v2736_v54  ;;  %2326 = vmatprep.subr.bf16.mxu1 %v2743_v55  ;;  %v2798_v54 = vcombine.low %v777_v45, %v781_v46  ;;  %v2800_v55 = vcombine.low %v778_v48, %v782_v49 }
 0x121   :  { %2408 = vmatprep.subr.bf16.mxu0 %v2745_v47  ;;  %v795_v47 = vsub.s32 2, %v3834_v62 }
 0x123   :  { %2327 = vmatpush1.bf16.msra.mxu1 %v2742_v51  ;;  %v796_v59 = vrot.slane %v783_v56, %v795_v47  ;;  %v800_v51 = vrot.slane %v783_v56, %v799_v57 }
 0x124   :  { %2409 = vmatpush1.bf16.msra.mxu0 %v2744_v61  ;;  %2328 = vmatprep.subr.bf16.mxu1 %v2751_v63 }
 0x125   :  { %2410 = vmatprep.subr.bf16.mxu0 %v2753_v0 }
 0x127   :  { %2329 = vmatpush1.bf16.msra.mxu1 %v2750_v5 }
 0x128   :  { %2411 = vmatpush1.bf16.msra.mxu0 %v2752_v6  ;;  %2330 = vmatprep.subr.bf16.mxu1 %v2759_v8 }
 0x129   :  { %2412 = vmatprep.subr.bf16.mxu0 %v2761_v9 }
 0x12b   :  { %2331 = vmatpush1.bf16.msra.mxu1 %v2758_v17  ;;  %v804_v17 = vrot.slane %v783_v56, %v803_v7 }
 0x12c   :  { %2413 = vmatpush1.bf16.msra.mxu0 %v2760_v18  ;;  %2332 = vmatprep.subr.bf16.mxu1 %v2767_v19  ;;  %v812_v18 = vrot.slane %v783_v56, %v811_v11  ;;  %v808_v19 = vrot.slane %v783_v56, %v807_v13 }
 0x12d   :  { %2414 = vmatprep.subr.bf16.mxu0 %v2769_v20  ;;  %v816_v20 = vrot.slane %v783_v56, %v815_v16 }
 0x12f   :  { %2333 = vmatpush1.bf16.msra.mxu1 %v2766_v25 }
 0x130   :  { %2415 = vmatpush1.bf16.msra.mxu0 %v2768_v26  ;;  %2334 = vmatprep.subr.bf16.mxu1 %v2775_v27 }
 0x131   :  { %2416 = vmatprep.subr.bf16.mxu0 %v2777_v28 }
 0x133   :  { %2335 = vmatpush1.bf16.msra.mxu1 %v2774_v33 }
 0x134   :  { %2417 = vmatpush1.bf16.msra.mxu0 %v2776_v34  ;;  %2336 = vmatprep.subr.bf16.mxu1 %v2783_v35 }
 0x135   :  { %2418 = vmatprep.subr.bf16.mxu0 %v2785_v36 }
 0x137   :  { %2337 = vmatpush1.bf16.msra.mxu1 %v2782_v41 }
 0x138   :  { %2419 = vmatpush1.bf16.msra.mxu0 %v2784_v42  ;;  %2338 = vmatprep.subr.bf16.mxu1 %v2791_v43 }
 0x139   :  { %2420 = vmatprep.subr.bf16.mxu0 %v2793_v44 }
 0x13b   :  { %2339 = vmatpush1.bf16.msra.mxu1 %v2790_v50 }
 0x13c   :  { %2421 = vmatpush1.bf16.msra.mxu0 %v2792_v52  ;;  %2340 = vmatprep.subr.bf16.mxu1 %v2799_v53 }
 0x13d   :  { %2422 = vmatprep.subr.bf16.mxu0 %v2801_v14 }
 0x13f   :  { %2341 = vmatpush1.bf16.msra.mxu1 %v2798_v54 }
 0x140   :  { %2423 = vmatpush1.bf16.msra.mxu0 %v2800_v55 }
 0x142   :  { %2343 = vmatmul.mubr.bf16.vlgmr.msra.gmra.mrb[8].mxu1 %v3204_v15 }
 0x143   :  { %2425 = vmatmul.mubr.bf16.vlgmr.msra.gmra.mrb[8].mxu0 %v3204_v15 }
 0x195   :  { %v2180_v61 = vpop.f32.mrb[4].mxu1 }
 0x196   :  { %v2262_v63 = vpop.f32.mrb[4].mxu0  ;;  %v2815_v0 = vadd.f32 %v2180_v61, %v788_v58  ;;  %v2182_v1 = vpop.f32.mrb[5].mxu1 }
 0x197   :  { %v2817_v15 = vadd.f32 %v2262_v63, %v796_v59  ;;  %v2264_v2 = vpop.f32.mrb[5].mxu0  ;;  %v2816_v3 = vadd.f32 %v2182_v1, %v792_v60  ;;  %v2184_v5 = vpop.f32.mrb[6].mxu1 }
 0x198   :  { %v2818_v4 = vadd.f32 %v2264_v2, %v800_v51  ;;  %v2266_v6 = vpop.f32.mrb[6].mxu0  ;;  %v2185_v8 = vpop.f32.mrb[7].mxu1 }
 0x199   :  { %v2267_v9 = vpop.f32.mrb[7].mxu0  ;;  %v2807_v10 = vpack.c.bf16 %v2816_v3, %v2815_v0 }
 0x19a   :  { %v2808_v12 = vpack.c.bf16 %v2818_v4, %v2817_v15 }
 0x19b   :  { %2465 = vst [vmem:[%s4013_s6] sm:$0xff] %v2807_v10 }
 0x19c   :  { %2466 = vst [vmem:[%s4013_s6 + $0x8] sm:$0xff] %v2808_v12 }
 0x215   :  { %v2344_v21 = vpop.f32.mrb[8].mxu1 }
 0x216   :  { %v2426_v22 = vpop.f32.mrb[8].mxu0  ;;  %v2819_v23 = vadd.f32 %v2344_v21, %v804_v17  ;;  %v2346_v25 = vpop.f32.mrb[9].mxu1 }
 0x217   :  { %v2821_v24 = vadd.f32 %v2426_v22, %v812_v18  ;;  %v2428_v26 = vpop.f32.mrb[9].mxu0  ;;  %v2820_v27 = vadd.f32 %v2346_v25, %v808_v19  ;;  %v2348_v29 = vpop.f32.mrb[10].mxu1 }
 0x218   :  { %v2822_v28 = vadd.f32 %v2428_v26, %v816_v20  ;;  %v2430_v30 = vpop.f32.mrb[10].mxu0  ;;  %v2349_v31 = vpop.f32.mrb[11].mxu1 }
 0x219   :  { %v2431_v32 = vpop.f32.mrb[11].mxu0  ;;  %v2809_v33 = vpack.c.bf16 %v2820_v27, %v2819_v23 }
 0x21a   :  { %v2810_v34 = vpack.c.bf16 %v2822_v28, %v2821_v24 }
 0x21b   :  { %2467 = vst [vmem:[%s4013_s6 + $0x10] sm:$0xff] %v2809_v33 }
 0x21c   :  { %2468 = vst [vmem:[%s4013_s6 + $0x18] sm:$0xff] %v2810_v34 }

// kernel: _lambda_.20
= control target key start
LH: loop header
LB: loop body
LE: loop exit
PB: predicated region body
PF: predicated region fallthrough
CT: control target
= control target key end

     0   :  { %s3705_s12 = smov 0   ;;  %s4709_s0 = inlined_call_operand.vmem [shape: bf16[2,40,256], index: 0, kind: input, shape index: {}]   ;;  %s4710_s1 = inlined_call_operand.vmem [shape: bf16[9,256,256], index: 1, kind: input, shape index: {}]   ;;  %s4711_s2 = inlined_call_operand.vmem [shape: f32[1,256], index: 2, kind: input, shape index: {}]   ;;  %s4712_s3 = inlined_call_operand.vmem [shape: bf16[2,16,256], index: 3, kind: output, shape index: {}]  }
   0x1 LB: > { %s2599_s13 = sadd.s32 4294967295, %s3683_s12   ;;  %p2603_p0 = scmp.ge.s32.totalorder %s3683_s12, 1  ;;  %s3683_s12 = sphi %s3705_s12, %s13_s12  }
   0x2   : > { %p137_p1 = scmp.lt.s32.totalorder %s3683_s12, 3 }
   0x4   : > { %p138_p2 = pnand %p2603_p0, %p137_p1 }
   0x5   : > { %v3221_v0 = vld [vmem:[%s4710_s1 + $0x104] ss:$8 sps:$4 sm:$0xff] (!%p138_p2)   ;;  %v3225_v2 = vld [vmem:[%s4710_s1 + $0x100] ss:$8 sps:$4 sm:$0xff] (!%p138_p2)   ;;  %v3227_v4 = vld [vmem:[%s4710_s1 + $0x114] ss:$8 sps:$4 sm:$0xff] (!%p138_p2)  }
   0x6   : > { %141 = sbr.rel (%p138_p2) target bundleno = 551 (0x227), region = 32  ;;  %v3223_v1 = vld [vmem:[%s4710_s1 + $0x404] ss:$8 sps:$4 sm:$0xff] (!%p138_p2)   ;;  %439 = vmatprep.subr.bf16.mxu1 (!%p138_p2), %v3221_v0  ;;  %v3226_v3 = vld [vmem:[%s4710_s1 + $0x400] ss:$8 sps:$4 sm:$0xff] (!%p138_p2)   ;;  %p161_p3 = scmp.lt.s32.totalorder (!%p138_p2), %s2599_s13, 1 }
   0x7   : > { %1425 = vmatprep.subr.bf16.mxu0 (!%p138_p2), %v3223_v1  ;;  %440 = vmatpush1.bf16.msra.mxu1 (!%p138_p2), %v3225_v2  ;;  %v3229_v5 = vld [vmem:[%s4710_s1 + $0x414] ss:$8 sps:$4 sm:$0xff] (!%p138_p2)   ;;  %v3231_v6 = vld [vmem:[%s4710_s1 + $0x110] ss:$8 sps:$4 sm:$0xff] (!%p138_p2)   ;;  %v3233_v8 = vld [vmem:[%s4710_s1 + $0x124] ss:$8 sps:$4 sm:$0xff] (!%p138_p2)  }
   0x8   : > { %1426 = vmatpush1.bf16.msra.mxu0 (!%p138_p2), %v3226_v3  ;;  %441 = vmatprep.subr.bf16.mxu1 (!%p138_p2), %v3227_v4  ;;  %v3232_v7 = vld [vmem:[%s4710_s1 + $0x410] ss:$8 sps:$4 sm:$0xff] (!%p138_p2)   ;;  %v3235_v9 = vld [vmem:[%s4710_s1 + $0x424] ss:$8 sps:$4 sm:$0xff] (!%p138_p2)   ;;  %v3237_v10 = vld [vmem:[%s4710_s1 + $0x120] ss:$8 sps:$4 sm:$0xff] (!%p138_p2)  }
   0x9   : > { %1427 = vmatprep.subr.bf16.mxu0 (!%p138_p2), %v3229_v5  ;;  %v3238_v11 = vld [vmem:[%s4710_s1 + $0x420] ss:$8 sps:$4 sm:$0xff] (!%p138_p2)   ;;  %v3239_v12 = vld [vmem:[%s4710_s1 + $0x134] ss:$8 sps:$4 sm:$0xff] (!%p138_p2)   ;;  %v3243_v14 = vld [vmem:[%s4710_s1 + $0x130] ss:$8 sps:$4 sm:$0xff] (!%p138_p2)  }
   0xa   : > { %v3241_v13 = vld [vmem:[%s4710_s1 + $0x434] ss:$8 sps:$4 sm:$0xff] (!%p138_p2)   ;;  %v3244_v15 = vld [vmem:[%s4710_s1 + $0x430] ss:$8 sps:$4 sm:$0xff] (!%p138_p2)   ;;  %v3245_v16 = vld [vmem:[%s4710_s1 + $0x144] ss:$8 sps:$4 sm:$0xff] (!%p138_p2)  }
   0xb   : > { %442 = vmatpush1.bf16.msra.mxu1 (!%p138_p2), %v3231_v6  ;;  %v3247_v17 = vld [vmem:[%s4710_s1 + $0x444] ss:$8 sps:$4 sm:$0xff] (!%p138_p2)   ;;  %v3249_v18 = vld [vmem:[%s4710_s1 + $0x140] ss:$8 sps:$4 sm:$0xff] (!%p138_p2)   ;;  %v3251_v20 = vld [vmem:[%s4710_s1 + $0x154] ss:$8 sps:$4 sm:$0xff] (!%p138_p2)  }
   0xc   : > { %1428 = vmatpush1.bf16.msra.mxu0 (!%p138_p2), %v3232_v7  ;;  %443 = vmatprep.subr.bf16.mxu1 (!%p138_p2), %v3233_v8  ;;  %v3250_v19 = vld [vmem:[%s4710_s1 + $0x440] ss:$8 sps:$4 sm:$0xff] (!%p138_p2)   ;;  %v3253_v21 = vld [vmem:[%s4710_s1 + $0x454] ss:$8 sps:$4 sm:$0xff] (!%p138_p2)   ;;  %v3255_v22 = vld [vmem:[%s4710_s1 + $0x150] ss:$8 sps:$4 sm:$0xff] (!%p138_p2)  }
   0xd   : > { %1429 = vmatprep.subr.bf16.mxu0 %v3235_v9  ;;  %v3256_v23 = vld [vmem:[%s4710_s1 + $0x450] ss:$8 sps:$4 sm:$0xff]   ;;  %v3257_v24 = vld [vmem:[%s4710_s1 + $0x164] ss:$8 sps:$4 sm:$0xff]   ;;  %v3261_v26 = vld [vmem:[%s4710_s1 + $0x160] ss:$8 sps:$4 sm:$0xff]  }
   0xe   : > { %v3259_v25 = vld [vmem:[%s4710_s1 + $0x464] ss:$8 sps:$4 sm:$0xff]   ;;  %v3262_v27 = vld [vmem:[%s4710_s1 + $0x460] ss:$8 sps:$4 sm:$0xff]   ;;  %v3263_v28 = vld [vmem:[%s4710_s1 + $0x174] ss:$8 sps:$4 sm:$0xff]  }
   0xf   : > { %444 = vmatpush1.bf16.msra.mxu1 %v3237_v10  ;;  %v3265_v29 = vld [vmem:[%s4710_s1 + $0x474] ss:$8 sps:$4 sm:$0xff]   ;;  %v3267_v30 = vld [vmem:[%s4710_s1 + $0x170] ss:$8 sps:$4 sm:$0xff]   ;;  %v3269_v32 = vld [vmem:[%s4710_s1 + $0x184] ss:$8 sps:$4 sm:$0xff]  }
  0x10   : > { %1430 = vmatpush1.bf16.msra.mxu0 %v3238_v11  ;;  %445 = vmatprep.subr.bf16.mxu1 %v3239_v12  ;;  %v3268_v31 = vld [vmem:[%s4710_s1 + $0x470] ss:$8 sps:$4 sm:$0xff]   ;;  %v3271_v33 = vld [vmem:[%s4710_s1 + $0x484] ss:$8 sps:$4 sm:$0xff]   ;;  %v3273_v34 = vld [vmem:[%s4710_s1 + $0x180] ss:$8 sps:$4 sm:$0xff]  }
  0x11   : > { %1431 = vmatprep.subr.bf16.mxu0 %v3241_v13  ;;  %v3274_v35 = vld [vmem:[%s4710_s1 + $0x480] ss:$8 sps:$4 sm:$0xff]   ;;  %s4714_s13 = smov (!%p161_p3, %s2599_s13), 1  ;;  %v3275_v36 = vld [vmem:[%s4710_s1 + $0x194] ss:$8 sps:$4 sm:$0xff]   ;;  %vm726_vm1 = vcmask 1046528  }
  0x12   : > { %v3277_v37 = vld [vmem:[%s4710_s1 + $0x494] ss:$8 sps:$4 sm:$0xff]   ;;  %v3279_v38 = vld [vmem:[%s4710_s1 + $0x190] ss:$8 sps:$4 sm:$0xff]   ;;  %s3212_s17 = smul.u32 40, %s4714_s13  ;;  %s3177_s11 = sshll.u32 %s4714_s13, 4 }
  0x13   : > { %446 = vmatpush1.bf16.msra.mxu1 %v3243_v14  ;;  %v3280_v39 = vld [vmem:[%s4710_s1 + $0x490] ss:$8 sps:$4 sm:$0xff]   ;;  %v3281_v40 = vld [vmem:[%s4710_s1 + $0x1a4] ss:$8 sps:$4 sm:$0xff]   ;;  %v3285_v42 = vld [vmem:[%s4710_s1 + $0x1a0] ss:$8 sps:$4 sm:$0xff]  }
  0x14   : > { %1432 = vmatpush1.bf16.msra.mxu0 %v3244_v15  ;;  %447 = vmatprep.subr.bf16.mxu1 %v3245_v16  ;;  %v3283_v41 = vld [vmem:[%s4710_s1 + $0x4a4] ss:$8 sps:$4 sm:$0xff]   ;;  %v3286_v43 = vld [vmem:[%s4710_s1 + $0x4a0] ss:$8 sps:$4 sm:$0xff]   ;;  %s3855_s30 = scalar_lea.vmem %s4709_s0, %s3212_s17  ;;  %v3287_v44 = vld [vmem:[%s4710_s1 + $0x1b4] ss:$8 sps:$4 sm:$0xff]  }
  0x15   : > { %1433 = vmatprep.subr.bf16.mxu0 %v3247_v17  ;;  %v3289_v45 = vld [vmem:[%s4710_s1 + $0x4b4] ss:$8 sps:$4 sm:$0xff]   ;;  %v3291_v46 = vld [vmem:[%s4710_s1 + $0x1b0] ss:$8 sps:$4 sm:$0xff]   ;;  %v171_v48 = vld [vmem:[%s3855_s30] sm:$0xff] }
  0x16   : > { %v3292_v47 = vld [vmem:[%s4710_s1 + $0x4b0] ss:$8 sps:$4 sm:$0xff]   ;;  %v3871_v49 = vld [vmem:[%s3855_s30 + $0x8] sm:$0xff]  ;;  %vm252_vm0 = vsmask.f32 7424 }
  0x17   : > { %448 = vmatpush1.bf16.msra.mxu1 %v3249_v18  ;;  %v205_v50 = vld [vmem:[%s3855_s30 + $0x10] sm:$0x11]  ;;  %v3293_v51 = vld [vmem:[%s4710_s1 + $0x1c4] ss:$8 sps:$4 sm:$0xff]   ;;  %v3881_v53 = vcombine.high %v171_v48, %v3871_v49  ;;  %v1192_v56 = vld [vmem:[%s3855_s30 + $0x18] sm:$0x11]  ;;  %v3903_v0 = vcombine.low %v171_v48, %v3871_v49 }
  0x18   : > { %1434 = vmatpush1.bf16.msra.mxu0 %v3250_v19  ;;  %449 = vmatprep.subr.bf16.mxu1 %v3251_v20  ;;  %v3295_v52 = vld [vmem:[%s4710_s1 + $0x4c4] ss:$8 sps:$4 sm:$0xff]   ;;  %v3883_v54 = vcombine.high %v205_v50, %v205_v50  ;;  %v3886_v55 = vld [vmem:[%s3855_s30 + $0x10] sm:$0xff]  ;;  %v3297_v61 = vld [vmem:[%s4710_s1 + $0x1c0] ss:$8 sps:$4 sm:$0xff]   ;;  %v3900_v63 = vcombine.high %v1192_v56, %v1192_v56  ;;  %v3914_v12 = vcombine.low %v205_v50, %v205_v50 }
  0x19   : > { %1435 = vmatprep.subr.bf16.mxu0 %v3253_v21  ;;  %v266_v57 = vshrl.u32 %v3881_v53, 16  ;;  %v268_v58 = vshll.u32 %v3881_v53, 16  ;;  %v2872_v60 = vcombine.high %v3871_v49, %v3886_v55  ;;  %v3298_v62 = vld [vmem:[%s4710_s1 + $0x4c0] ss:$8 sps:$4 sm:$0xff]   ;;  %v3299_v5 = vld [vmem:[%s4710_s1 + $0x1d4] ss:$8 sps:$4 sm:$0xff]   ;;  %v2871_v8 = vcombine.low %v3871_v49, %v3886_v55 }
  0x1a   : > { %v273_v59 = vshll.u32 %v3883_v54, 16  ;;  %v3301_v6 = vld [vmem:[%s4710_s1 + $0x4d4] ss:$8 sps:$4 sm:$0xff]   ;;  %v1259_v7 = vshll.u32 %v3900_v63, 16  ;;  %v256_v13 = vshll.u32 %v3903_v0, 16  ;;  %v3924_v18 = vcombine.low %v1192_v56, %v1192_v56 }
  0x1b   : > { %450 = vmatpush1.bf16.msra.mxu1 %v3255_v22  ;;  %v270_v1 = vrot.slane %v268_v58, 1  ;;  %v1252_v3 = vshrl.u32 %v2872_v60, 16  ;;  %v1254_v4 = vshll.u32 %v2872_v60, 16  ;;  %v3303_v14 = vld [vmem:[%s4710_s1 + $0x1d0] ss:$8 sps:$4 sm:$0xff]   ;;  %v1242_v19 = vshll.u32 %v2871_v8, 16 }
  0x1c   : > { %1436 = vmatpush1.bf16.msra.mxu0 %v3256_v23  ;;  %451 = vmatprep.subr.bf16.mxu1 %v3257_v24  ;;  %v275_v2 = vrot.slane %v273_v59, 1  ;;  %v1261_v11 = vrot.slane %v1259_v7, 1  ;;  %v3304_v15 = vld [vmem:[%s4710_s1 + $0x4d0] ss:$8 sps:$4 sm:$0xff]   ;;  %v3305_v20 = vld [vmem:[%s4710_s1 + $0x1e4] ss:$8 sps:$4 sm:$0xff]  }
  0x1d   : > { %1437 = vmatprep.subr.bf16.mxu0 %v3259_v25  ;;  %v271_v9 = vor.u32 %v270_v1, %v266_v57  ;;  %v1256_v10 = vrot.slane %v1254_v4, 1  ;;  %v3307_v21 = vld [vmem:[%s4710_s1 + $0x4e4] ss:$8 sps:$4 sm:$0xff]   ;;  %v3309_v22 = vld [vmem:[%s4710_s1 + $0x1e0] ss:$8 sps:$4 sm:$0xff]   ;;  %v254_v25 = vshrl.u32 %v3903_v0, 16 }
  0x1e   : > { %v3310_v24 = vld [vmem:[%s4710_s1 + $0x4e0] ss:$8 sps:$4 sm:$0xff]   ;;  %v3334_v48 = vld [vmem:[%s4710_s1 + $0x510] ss:$8 sps:$4 sm:$0xff]   ;;  %v3339_v50 = vld [vmem:[%s4710_s1 + $0x24] ss:$8 sps:$4 sm:$0xff]  }
  0x1f   : > { %452 = vmatpush1.bf16.msra.mxu1 %v3261_v26  ;;  %v276_v16 = vsel %vm252_vm0, %v271_v9, %v275_v2  ;;  %v1257_v17 = vor.u32 %v1256_v10, %v1252_v3  ;;  %v261_v26 = vshll.u32 %v3914_v12, 16  ;;  %v3340_v56 = vld [vmem:[%s4710_s1 + $0x520] ss:$8 sps:$4 sm:$0xff]   ;;  %v3345_v57 = vld [vmem:[%s4710_s1 + $0x34] ss:$8 sps:$4 sm:$0xff]  }
  0x20   : > { %1438 = vmatpush1.bf16.msra.mxu0 %v3262_v27  ;;  %453 = vmatprep.subr.bf16.mxu1 %v3263_v28  ;;  %v258_v27 = vrot.slane %v256_v13, 1  ;;  %v1240_v28 = vshrl.u32 %v2871_v8, 16  ;;  %v3343_v58 = vld [vmem:[%s4710_s1 + $0x30] ss:$8 sps:$4 sm:$0xff]   ;;  %v3351_v60 = vld [vmem:[%s4710_s1 + $0x44] ss:$8 sps:$4 sm:$0xff]  }
  0x21   : > { %1439 = vmatprep.subr.bf16.mxu0 %v3265_v29  ;;  %471 = vmatprep.mubr.bf16.mxu1 %v276_v16  ;;  %v1262_v23 = vsel %vm252_vm0, %v1257_v17, %v1261_v11  ;;  %v1244_v29 = vrot.slane %v1242_v19, 1  ;;  %v3346_v59 = vld [vmem:[%s4710_s1 + $0x530] ss:$8 sps:$4 sm:$0xff]   ;;  %v3352_v1 = vld [vmem:[%s4710_s1 + $0x540] ss:$8 sps:$4 sm:$0xff]   ;;  %v1515_v16 = vrot.slane %v3900_v63, 1 }
  0x22   : > { %1457 = vmatprep.mubr.bf16.mxu0 %v1262_v23  ;;  %v3357_v2 = vld [vmem:[%s4710_s1 + $0x54] ss:$8 sps:$4 sm:$0xff]   ;;  %v3355_v4 = vld [vmem:[%s4710_s1 + $0x50] ss:$8 sps:$4 sm:$0xff]   ;;  %v3366_v7 = vld [vmem:[%s4710_s1 + $0x564] ss:$8 sps:$4 sm:$0xff]  }
  0x23   : > { %454 = vmatpush1.bf16.msra.mxu1 %v3267_v30  ;;  %v1247_v30 = vshll.u32 %v3924_v18, 16  ;;  %v3360_v3 = vld [vmem:[%s4710_s1 + $0x554] ss:$8 sps:$4 sm:$0xff]   ;;  %v3361_v8 = vld [vmem:[%s4710_s1 + $0x60] ss:$8 sps:$4 sm:$0xff]  }
  0x24   : > { %1440 = vmatpush1.bf16.msra.mxu0 %v3268_v31  ;;  %455 = vmatprep.subr.bf16.mxu1 %v3269_v32  ;;  %v3311_v31 = vld [vmem:[%s4710_s1 + $0x1f4] ss:$8 sps:$4 sm:$0xff]   ;;  %v3364_v9 = vld [vmem:[%s4710_s1 + $0x560] ss:$8 sps:$4 sm:$0xff]   ;;  %v3370_v17 = vld [vmem:[%s4710_s1 + $0x570] ss:$8 sps:$4 sm:$0xff]  }
  0x25   : > { %1441 = vmatprep.subr.bf16.mxu0 %v3271_v33  ;;  %v3313_v32 = vld [vmem:[%s4710_s1 + $0x4f4] ss:$8 sps:$4 sm:$0xff]   ;;  %v3315_v33 = vld [vmem:[%s4710_s1 + $0x1f0] ss:$8 sps:$4 sm:$0xff]   ;;  %v4048_v13 = vld [vmem:[%s3855_s30 + $0x8] sm:$0xee] }
  0x26   : > { %v3369_v10 = vld [vmem:[%s4710_s1 + $0x74] ss:$8 sps:$4 sm:$0xff]   ;;  %v3375_v19 = vld [vmem:[%s4710_s1 + $0x84] ss:$8 sps:$4 sm:$0xff]   ;;  %v3373_v63 = vld [vmem:[%s4710_s1 + $0x80] ss:$8 sps:$4 sm:$0xff]  }
  0x27   : > { %456 = vmatpush1.bf16.msra.mxu1 %v3273_v34  ;;  %v3316_v34 = vld [vmem:[%s4710_s1 + $0x4f0] ss:$8 sps:$4 sm:$0xff]   ;;  %v3372_v11 = vld [vmem:[%s4710_s1 + $0x574] ss:$8 sps:$4 sm:$0xff]   ;;  %v3376_v23 = vld [vmem:[%s4710_s1 + $0x580] ss:$8 sps:$4 sm:$0xff]  }
  0x28   : > { %1442 = vmatpush1.bf16.msra.mxu0 %v3274_v35  ;;  %457 = vmatprep.subr.bf16.mxu1 %v3275_v36  ;;  %v259_v35 = vor.u32 %v258_v27, %v254_v25  ;;  %v263_v36 = vrot.slane %v261_v26, 1  ;;  %v3384_v25 = vld [vmem:[%s4710_s1 + $0x594] ss:$8 sps:$4 sm:$0xff]   ;;  %v3379_v26 = vld [vmem:[%s4710_s1 + $0x90] ss:$8 sps:$4 sm:$0xff]  }
  0x29   : > { %1443 = vmatprep.subr.bf16.mxu0 %v3277_v37  ;;  %v1245_v37 = vor.u32 %v1244_v29, %v1240_v28  ;;  %v3382_v27 = vld [vmem:[%s4710_s1 + $0x590] ss:$8 sps:$4 sm:$0xff]   ;;  %v3387_v28 = vld [vmem:[%s4710_s1 + $0xa4] ss:$8 sps:$4 sm:$0xff]  }
  0x2a   : > { %v3390_v29 = vld [vmem:[%s4710_s1 + $0x5a4] ss:$8 sps:$4 sm:$0xff]  }
  0x2b   : > { %458 = vmatpush1.bf16.msra.mxu1 %v3279_v38  ;;  %v1249_v38 = vrot.slane %v1247_v30, 1  ;;  %v3385_v30 = vld [vmem:[%s4710_s1 + $0xa0] ss:$8 sps:$4 sm:$0xff]  }
  0x2c   : > { %1444 = vmatpush1.bf16.msra.mxu0 %v3280_v39  ;;  %459 = vmatprep.subr.bf16.mxu1 %v3281_v40  ;;  %v3321_v39 = vld [vmem:[%s4710_s1 + $0x4] ss:$8 sps:$4 sm:$0xff]  }
  0x2d   : > { %1445 = vmatprep.subr.bf16.mxu0 %v3283_v41  ;;  %v3326_v40 = vld [vmem:[%s4710_s1 + $0x504] ss:$8 sps:$4 sm:$0xff]   ;;  %v3319_v41 = vld [vmem:[%s4710_s1] ss:$8 sps:$4 sm:$0xff]  }
  0x2f   : > { %460 = vmatpush1.bf16.msra.mxu1 %v3285_v42  ;;  %v3324_v42 = vld [vmem:[%s4710_s1 + $0x500] ss:$8 sps:$4 sm:$0xff]  }
  0x30   : > { %1446 = vmatpush1.bf16.msra.mxu0 %v3286_v43  ;;  %461 = vmatprep.subr.bf16.mxu1 %v3287_v44  ;;  %v264_v43 = vsel %vm252_vm0, %v259_v35, %v263_v36  ;;  %v1250_v44 = vsel %vm252_vm0, %v1245_v37, %v1249_v38  ;;  %v3394_v35 = vld [vmem:[%s4710_s1 + $0x5b0] ss:$8 sps:$4 sm:$0xff]   ;;  %v3399_v36 = vld [vmem:[%s4710_s1 + $0xc4] ss:$8 sps:$4 sm:$0xff]   ;;  %v3397_v38 = vld [vmem:[%s4710_s1 + $0xc0] ss:$8 sps:$4 sm:$0xff]  }
  0x31   : > { %1447 = vmatprep.subr.bf16.mxu0 %v3289_v45  ;;  %v3333_v45 = vld [vmem:[%s4710_s1 + $0x14] ss:$8 sps:$4 sm:$0xff]   ;;  %v3402_v37 = vld [vmem:[%s4710_s1 + $0x5c4] ss:$8 sps:$4 sm:$0xff]  }
  0x33   : > { %462 = vmatpush1.bf16.msra.mxu1 %v3291_v46  ;;  %v3336_v46 = vld [vmem:[%s4710_s1 + $0x514] ss:$8 sps:$4 sm:$0xff]  }
  0x34   : > { %1448 = vmatpush1.bf16.msra.mxu0 %v3292_v47  ;;  %463 = vmatprep.subr.bf16.mxu1 %v3293_v51  ;;  %v3331_v47 = vld [vmem:[%s4710_s1 + $0x10] ss:$8 sps:$4 sm:$0xff]   ;;  %v3342_v51 = vld [vmem:[%s4710_s1 + $0x524] ss:$8 sps:$4 sm:$0xff]  }
  0x35   : > { %1449 = vmatprep.subr.bf16.mxu0 %v3295_v52  ;;  %v3337_v52 = vld [vmem:[%s4710_s1 + $0x20] ss:$8 sps:$4 sm:$0xff]  }
  0x37   : > { %464 = vmatpush1.bf16.msra.mxu1 %v3297_v61  ;;  %v3354_v61 = vld [vmem:[%s4710_s1 + $0x544] ss:$8 sps:$4 sm:$0xff]  }
  0x38   : > { %1450 = vmatpush1.bf16.msra.mxu0 %v3298_v62  ;;  %465 = vmatprep.subr.bf16.mxu1 %v3299_v5  ;;  %v3349_v62 = vld [vmem:[%s4710_s1 + $0x40] ss:$8 sps:$4 sm:$0xff]   ;;  %v3358_v5 = vld [vmem:[%s4710_s1 + $0x550] ss:$8 sps:$4 sm:$0xff]  }
  0x39   : > { %1451 = vmatprep.subr.bf16.mxu0 %v3301_v6  ;;  %v3363_v6 = vld [vmem:[%s4710_s1 + $0x64] ss:$8 sps:$4 sm:$0xff]  }
  0x3b   : > { %466 = vmatpush1.bf16.msra.mxu1 %v3303_v14  ;;  %v3367_v14 = vld [vmem:[%s4710_s1 + $0x70] ss:$8 sps:$4 sm:$0xff]  }
  0x3c   : > { %1452 = vmatpush1.bf16.msra.mxu0 %v3304_v15  ;;  %467 = vmatprep.subr.bf16.mxu1 %v3305_v20  ;;  %v2940_v15 = vcombine.high %v4048_v13, %v3886_v55  ;;  %v3378_v20 = vld [vmem:[%s4710_s1 + $0x584] ss:$8 sps:$4 sm:$0xff]  }
  0x3d   : > { %1453 = vmatprep.subr.bf16.mxu0 %v3307_v21 }
  0x3e   : > { %v1514_v21 = vrot.slane %v2940_v15, 1  ;;  %v3444_v15 = vld [vmem:[%s4710_s1 + $0x630] ss:$8 sps:$4 sm:$0xff]  }
  0x3f   : > { %468 = vmatpush1.bf16.msra.mxu1 %v3309_v22 }
  0x40   : > { %1454 = vmatpush1.bf16.msra.mxu0 %v3310_v24  ;;  %469 = vmatprep.subr.bf16.mxu1 %v3311_v31  ;;  %v1516_v22 = vsel %vm726_vm1, %v1514_v21, %v1515_v16  ;;  %v3381_v24 = vld [vmem:[%s4710_s1 + $0x94] ss:$8 sps:$4 sm:$0xff]   ;;  %v3388_v31 = vld [vmem:[%s4710_s1 + $0x5a0] ss:$8 sps:$4 sm:$0xff]   ;;  %v3449_v16 = vld [vmem:[%s4710_s1 + $0x244] ss:$8 sps:$4 sm:$0xff]  }
  0x41   : > { %1455 = vmatprep.subr.bf16.mxu0 %v3313_v32  ;;  %v3393_v32 = vld [vmem:[%s4710_s1 + $0xb4] ss:$8 sps:$4 sm:$0xff]  }
  0x42   : > { %v3455_v21 = vld [vmem:[%s4710_s1 + $0x254] ss:$8 sps:$4 sm:$0xff]  }
  0x43   : > { %470 = vmatpush1.bf16.msra.mxu1 %v3315_v33  ;;  %v3396_v33 = vld [vmem:[%s4710_s1 + $0x5b4] ss:$8 sps:$4 sm:$0xff]  }
  0x44   : > { %1456 = vmatpush1.bf16.msra.mxu0 %v3316_v34  ;;  %644 = vmatprep.subr.bf16.mxu1 %v3321_v39  ;;  %v3391_v34 = vld [vmem:[%s4710_s1 + $0xb0] ss:$8 sps:$4 sm:$0xff]   ;;  %v3400_v39 = vld [vmem:[%s4710_s1 + $0x5c0] ss:$8 sps:$4 sm:$0xff]  }
  0x45   : > { %1679 = vmatprep.subr.bf16.mxu0 %v3326_v40  ;;  %v3405_v40 = vld [vmem:[%s4710_s1 + $0xd4] ss:$8 sps:$4 sm:$0xff]  }
  0x46   : > { %472 = vmatmul.mubr.bf16.vlgmr.msra.gmra.mrb[0].mxu1 %v264_v43  ;;  %v3406_v43 = vld [vmem:[%s4710_s1 + $0x5d0] ss:$8 sps:$4 sm:$0xff]  }
  0x47   : > { %1458 = vmatmul.mubr.bf16.vlgmr.msra.gmra.mrb[0].mxu0 %v1250_v44  ;;  %645 = vmatpush1.bf16.msra.mxu1 %v3319_v41  ;;  %v3408_v41 = vld [vmem:[%s4710_s1 + $0x5d4] ss:$8 sps:$4 sm:$0xff]   ;;  %v3411_v44 = vld [vmem:[%s4710_s1 + $0xe4] ss:$8 sps:$4 sm:$0xff]  }
  0x48   : > { %1680 = vmatpush1.bf16.msra.mxu0 %v3324_v42  ;;  %646 = vmatprep.subr.bf16.mxu1 %v3333_v45  ;;  %v3403_v42 = vld [vmem:[%s4710_s1 + $0xd0] ss:$8 sps:$4 sm:$0xff]   ;;  %v3414_v45 = vld [vmem:[%s4710_s1 + $0x5e4] ss:$8 sps:$4 sm:$0xff]  }
  0x49   : > { %1681 = vmatprep.subr.bf16.mxu0 %v3336_v46  ;;  %676 = vmatprep.mubr.bf16.mxu1 %v3881_v53  ;;  %v3348_v53 = vld [vmem:[%s4710_s1 + $0x534] ss:$8 sps:$4 sm:$0xff]   ;;  %v3409_v46 = vld [vmem:[%s4710_s1 + $0xe0] ss:$8 sps:$4 sm:$0xff]  }
  0x4a   : > { %1711 = vmatprep.mubr.bf16.mxu0 %v1516_v22  ;;  %v3453_v22 = vld [vmem:[%s4710_s1 + $0x250] ss:$8 sps:$4 sm:$0xff]  }
  0x4b   : > { %647 = vmatpush1.bf16.msra.mxu1 %v3331_v47  ;;  %v3412_v47 = vld [vmem:[%s4710_s1 + $0x5e0] ss:$8 sps:$4 sm:$0xff]  }
  0x4c   : > { %1682 = vmatpush1.bf16.msra.mxu0 %v3334_v48  ;;  %648 = vmatprep.subr.bf16.mxu1 %v3339_v50  ;;  %v3417_v48 = vld [vmem:[%s4710_s1 + $0xf4] ss:$8 sps:$4 sm:$0xff]   ;;  %v2939_v50 = vcombine.low %v4048_v13, %v3886_v55 }
  0x4d   : > { %1683 = vmatprep.subr.bf16.mxu0 %v3342_v51  ;;  %v3420_v51 = vld [vmem:[%s4710_s1 + $0x5f4] ss:$8 sps:$4 sm:$0xff]  }
  0x4e   : > { %v3443_v13 = vld [vmem:[%s4710_s1 + $0x234] ss:$8 sps:$4 sm:$0xff]  }
  0x4f   : > { %649 = vmatpush1.bf16.msra.mxu1 %v3337_v52  ;;  %v3415_v52 = vld [vmem:[%s4710_s1 + $0xf0] ss:$8 sps:$4 sm:$0xff]  }
  0x50   : > { %1684 = vmatpush1.bf16.msra.mxu0 %v3340_v56  ;;  %650 = vmatprep.subr.bf16.mxu1 %v3345_v57  ;;  %v1512_v56 = vrot.slane %v3924_v18, 1  ;;  %v3418_v57 = vld [vmem:[%s4710_s1 + $0x5f0] ss:$8 sps:$4 sm:$0xff]   ;;  %v3421_v18 = vld [vmem:[%s4710_s1 + $0x200] ss:$8 sps:$4 sm:$0xff]  }
  0x51   : > { %1685 = vmatprep.subr.bf16.mxu0 %v3348_v53  ;;  %v3423_v53 = vld [vmem:[%s4710_s1 + $0x204] ss:$8 sps:$4 sm:$0xff]  }
  0x53   : > { %651 = vmatpush1.bf16.msra.mxu1 %v3343_v58  ;;  %v1511_v58 = vrot.slane %v2939_v50, 1  ;;  %v3500_v50 = vld [vmem:[%s4710_s1 + $0x6c4] ss:$8 sps:$4 sm:$0xff]  }
  0x54   : > { %1686 = vmatpush1.bf16.msra.mxu0 %v3346_v59  ;;  %652 = vmatprep.subr.bf16.mxu1 %v3351_v60  ;;  %v3427_v59 = vld [vmem:[%s4710_s1 + $0x604] ss:$8 sps:$4 sm:$0xff]   ;;  %v3425_v60 = vld [vmem:[%s4710_s1 + $0x600] ss:$8 sps:$4 sm:$0xff]  }
  0x55   : > { %1687 = vmatprep.subr.bf16.mxu0 %v3354_v61  ;;  %v1513_v61 = vsel %vm726_vm1, %v1511_v58, %v1512_v56  ;;  %v3503_v56 = vld [vmem:[%s4710_s1 + $0x2d4] ss:$8 sps:$4 sm:$0xff]   ;;  %v3501_v58 = vld [vmem:[%s4710_s1 + $0x2d0] ss:$8 sps:$4 sm:$0xff]  }
  0x57   : > { %653 = vmatpush1.bf16.msra.mxu1 %v3349_v62  ;;  %v3431_v62 = vld [vmem:[%s4710_s1 + $0x214] ss:$8 sps:$4 sm:$0xff]  }
  0x58   : > { %1688 = vmatpush1.bf16.msra.mxu0 %v3352_v1  ;;  %654 = vmatprep.subr.bf16.mxu1 %v3357_v2  ;;  %v3434_v1 = vld [vmem:[%s4710_s1 + $0x614] ss:$8 sps:$4 sm:$0xff]   ;;  %v3429_v2 = vld [vmem:[%s4710_s1 + $0x210] ss:$8 sps:$4 sm:$0xff]  }
  0x59   : > { %1689 = vmatprep.subr.bf16.mxu0 %v3360_v3  ;;  %v3432_v3 = vld [vmem:[%s4710_s1 + $0x610] ss:$8 sps:$4 sm:$0xff]  }
  0x5b   : > { %655 = vmatpush1.bf16.msra.mxu1 %v3355_v4  ;;  %v4186_v4 = vld [vmem:[%s3855_s30] sm:$0xee] }
  0x5c   : > { %1690 = vmatpush1.bf16.msra.mxu0 %v3358_v5  ;;  %656 = vmatprep.subr.bf16.mxu1 %v3363_v6  ;;  %v3437_v5 = vld [vmem:[%s4710_s1 + $0x224] ss:$8 sps:$4 sm:$0xff]   ;;  %v731_v6 = vrot.slane %v3883_v54, 1 }
  0x5d   : > { %1691 = vmatprep.subr.bf16.mxu0 %v3366_v7  ;;  %v3440_v7 = vld [vmem:[%s4710_s1 + $0x624] ss:$8 sps:$4 sm:$0xff]  }
  0x5f   : > { %657 = vmatpush1.bf16.msra.mxu1 %v3361_v8  ;;  %v4198_v8 = vld [vmem:[%s3855_s30 + $0x18] sm:$0xff] }
  0x60   : > { %1692 = vmatpush1.bf16.msra.mxu0 %v3364_v9  ;;  %658 = vmatprep.subr.bf16.mxu1 %v3369_v10  ;;  %v3006_v10 = vcombine.high %v3886_v55, %v4198_v8  ;;  %v3446_v55 = vld [vmem:[%s4710_s1 + $0x634] ss:$8 sps:$4 sm:$0xff]  }
  0x61   : > { %1693 = vmatprep.subr.bf16.mxu0 %v3372_v11  ;;  %v3435_v11 = vld [vmem:[%s4710_s1 + $0x220] ss:$8 sps:$4 sm:$0xff]  }
  0x63   : > { %659 = vmatpush1.bf16.msra.mxu1 %v3367_v14  ;;  %v3441_v14 = vld [vmem:[%s4710_s1 + $0x230] ss:$8 sps:$4 sm:$0xff]  }
  0x64   : > { %1694 = vmatpush1.bf16.msra.mxu0 %v3370_v17  ;;  %660 = vmatprep.subr.bf16.mxu1 %v3375_v19  ;;  %v3452_v17 = vld [vmem:[%s4710_s1 + $0x644] ss:$8 sps:$4 sm:$0xff]   ;;  %v3447_v19 = vld [vmem:[%s4710_s1 + $0x240] ss:$8 sps:$4 sm:$0xff]  }
  0x65   : > { %1695 = vmatprep.subr.bf16.mxu0 %v3378_v20  ;;  %v3450_v20 = vld [vmem:[%s4710_s1 + $0x640] ss:$8 sps:$4 sm:$0xff]  }
  0x67   : > { %661 = vmatpush1.bf16.msra.mxu1 %v3373_v63  ;;  %v3458_v63 = vld [vmem:[%s4710_s1 + $0x654] ss:$8 sps:$4 sm:$0xff]  }
  0x68   : > { %1696 = vmatpush1.bf16.msra.mxu0 %v3376_v23  ;;  %662 = vmatprep.subr.bf16.mxu1 %v3381_v24  ;;  %v3456_v23 = vld [vmem:[%s4710_s1 + $0x650] ss:$8 sps:$4 sm:$0xff]   ;;  %v3461_v24 = vld [vmem:[%s4710_s1 + $0x264] ss:$8 sps:$4 sm:$0xff]  }
  0x69   : > { %1697 = vmatprep.subr.bf16.mxu0 %v3384_v25  ;;  %v3464_v25 = vld [vmem:[%s4710_s1 + $0x664] ss:$8 sps:$4 sm:$0xff]  }
  0x6b   : > { %663 = vmatpush1.bf16.msra.mxu1 %v3379_v26  ;;  %v3459_v26 = vld [vmem:[%s4710_s1 + $0x260] ss:$8 sps:$4 sm:$0xff]  }
  0x6c   : > { %1698 = vmatpush1.bf16.msra.mxu0 %v3382_v27  ;;  %664 = vmatprep.subr.bf16.mxu1 %v3387_v28  ;;  %v3462_v27 = vld [vmem:[%s4710_s1 + $0x660] ss:$8 sps:$4 sm:$0xff]   ;;  %v3467_v28 = vld [vmem:[%s4710_s1 + $0x274] ss:$8 sps:$4 sm:$0xff]  }
  0x6d   : > { %1699 = vmatprep.subr.bf16.mxu0 %v3390_v29  ;;  %v3470_v29 = vld [vmem:[%s4710_s1 + $0x674] ss:$8 sps:$4 sm:$0xff]  }
  0x6f   : > { %665 = vmatpush1.bf16.msra.mxu1 %v3385_v30  ;;  %v3465_v30 = vld [vmem:[%s4710_s1 + $0x270] ss:$8 sps:$4 sm:$0xff]  }
  0x70   : > { %1700 = vmatpush1.bf16.msra.mxu0 %v3388_v31  ;;  %666 = vmatprep.subr.bf16.mxu1 %v3393_v32  ;;  %v3468_v31 = vld [vmem:[%s4710_s1 + $0x670] ss:$8 sps:$4 sm:$0xff]   ;;  %v3473_v32 = vld [vmem:[%s4710_s1 + $0x284] ss:$8 sps:$4 sm:$0xff]  }
  0x71   : > { %1701 = vmatprep.subr.bf16.mxu0 %v3396_v33  ;;  %v3476_v33 = vld [vmem:[%s4710_s1 + $0x684] ss:$8 sps:$4 sm:$0xff]  }
  0x73   : > { %667 = vmatpush1.bf16.msra.mxu1 %v3391_v34  ;;  %v3471_v34 = vld [vmem:[%s4710_s1 + $0x280] ss:$8 sps:$4 sm:$0xff]  }
  0x74   : > { %1702 = vmatpush1.bf16.msra.mxu0 %v3394_v35  ;;  %668 = vmatprep.subr.bf16.mxu1 %v3399_v36  ;;  %v3474_v35 = vld [vmem:[%s4710_s1 + $0x680] ss:$8 sps:$4 sm:$0xff]   ;;  %v3479_v36 = vld [vmem:[%s4710_s1 + $0x294] ss:$8 sps:$4 sm:$0xff]  }
  0x75   : > { %1703 = vmatprep.subr.bf16.mxu0 %v3402_v37  ;;  %v3482_v37 = vld [vmem:[%s4710_s1 + $0x694] ss:$8 sps:$4 sm:$0xff]  }
  0x77   : > { %669 = vmatpush1.bf16.msra.mxu1 %v3397_v38  ;;  %v3477_v38 = vld [vmem:[%s4710_s1 + $0x290] ss:$8 sps:$4 sm:$0xff]  }
  0x78   : > { %1704 = vmatpush1.bf16.msra.mxu0 %v3400_v39  ;;  %670 = vmatprep.subr.bf16.mxu1 %v3405_v40  ;;  %v3480_v39 = vld [vmem:[%s4710_s1 + $0x690] ss:$8 sps:$4 sm:$0xff]   ;;  %v3485_v40 = vld [vmem:[%s4710_s1 + $0x2a4] ss:$8 sps:$4 sm:$0xff]  }
  0x79   : > { %1705 = vmatprep.subr.bf16.mxu0 %v3408_v41  ;;  %v3488_v41 = vld [vmem:[%s4710_s1 + $0x6a4] ss:$8 sps:$4 sm:$0xff]  }
  0x7b   : > { %671 = vmatpush1.bf16.msra.mxu1 %v3403_v42  ;;  %v3483_v42 = vld [vmem:[%s4710_s1 + $0x2a0] ss:$8 sps:$4 sm:$0xff]  }
  0x7c   : > { %1706 = vmatpush1.bf16.msra.mxu0 %v3406_v43  ;;  %672 = vmatprep.subr.bf16.mxu1 %v3411_v44  ;;  %v3486_v43 = vld [vmem:[%s4710_s1 + $0x6a0] ss:$8 sps:$4 sm:$0xff]   ;;  %v3491_v44 = vld [vmem:[%s4710_s1 + $0x2b4] ss:$8 sps:$4 sm:$0xff]  }
  0x7d   : > { %1707 = vmatprep.subr.bf16.mxu0 %v3414_v45  ;;  %v3494_v45 = vld [vmem:[%s4710_s1 + $0x6b4] ss:$8 sps:$4 sm:$0xff]  }
  0x7f   : > { %673 = vmatpush1.bf16.msra.mxu1 %v3409_v46  ;;  %v3489_v46 = vld [vmem:[%s4710_s1 + $0x2b0] ss:$8 sps:$4 sm:$0xff]  }
  0x80   : > { %1708 = vmatpush1.bf16.msra.mxu0 %v3412_v47  ;;  %674 = vmatprep.subr.bf16.mxu1 %v3417_v48  ;;  %v3492_v47 = vld [vmem:[%s4710_s1 + $0x6b0] ss:$8 sps:$4 sm:$0xff]   ;;  %v3497_v48 = vld [vmem:[%s4710_s1 + $0x2c4] ss:$8 sps:$4 sm:$0xff]  }
  0x81   : > { %1709 = vmatprep.subr.bf16.mxu0 %v3420_v51  ;;  %v3495_v51 = vld [vmem:[%s4710_s1 + $0x2c0] ss:$8 sps:$4 sm:$0xff]  }
  0x83   : > { %675 = vmatpush1.bf16.msra.mxu1 %v3415_v52  ;;  %v3498_v52 = vld [vmem:[%s4710_s1 + $0x6c0] ss:$8 sps:$4 sm:$0xff]  }
  0x84   : > { %1710 = vmatpush1.bf16.msra.mxu0 %v3418_v57  ;;  %895 = vmatprep.subr.bf16.mxu1 %v3423_v53  ;;  %v4333_v57 = vld [vmem:[%s3855_s30 + $0x10] sm:$0xff] }
  0x85   : > { %1927 = vmatprep.subr.bf16.mxu0 %v3427_v59  ;;  %v3506_v53 = vld [vmem:[%s4710_s1 + $0x6d4] ss:$8 sps:$4 sm:$0xff]   ;;  %v3504_v59 = vld [vmem:[%s4710_s1 + $0x6d0] ss:$8 sps:$4 sm:$0xff]  }
  0x86   : > { %677 = vmatmul.mubr.bf16.vlgmr.msra.gmra.mrb[0].mxu1 %v3903_v0  ;;  %v2740_v0 = vcombine.high %v4186_v4, %v3871_v49  ;;  %v3438_v49 = vld [vmem:[%s4710_s1 + $0x620] ss:$8 sps:$4 sm:$0xff]  }
  0x87   : > { %1712 = vmatmul.mubr.bf16.vlgmr.msra.gmra.mrb[0].mxu0 %v1513_v61  ;;  %896 = vmatpush1.bf16.msra.mxu1 %v3421_v18  ;;  %v3072_v18 = vcombine.high %v4333_v57, %v4198_v8  ;;  %v3509_v61 = vld [vmem:[%s4710_s1 + $0x2e4] ss:$8 sps:$4 sm:$0xff]  }
  0x88   : > { %1928 = vmatpush1.bf16.msra.mxu0 %v3425_v60  ;;  %897 = vmatprep.subr.bf16.mxu1 %v3431_v62  ;;  %v730_v9 = vrot.slane %v2740_v0, 1  ;;  %v4347_v60 = vld [vmem:[%s3855_s30 + $0x20] sm:$0x11]  ;;  %v4366_v0 = vld [vmem:[%s3855_s30 + $0x8] sm:$0xff] }
  0x89   : > { %1929 = vmatprep.subr.bf16.mxu0 %v3434_v1  ;;  %1959 = vmatprep.mubr.bf16.mxu0 %v3006_v10  ;;  %v3512_v62 = vld [vmem:[%s4710_s1 + $0x6e4] ss:$8 sps:$4 sm:$0xff]   ;;  %v4357_v1 = vcombine.high %v4347_v60, %v4347_v60  ;;  %v728_v10 = vrot.slane %v3914_v12, 1 }
  0x8a   : > { %v732_v54 = vsel %vm726_vm1, %v730_v9, %v731_v6  ;;  %v2739_v6 = vcombine.low %v4186_v4, %v4366_v0  ;;  %v3518_v9 = vld [vmem:[%s4710_s1 + $0x6f4] ss:$8 sps:$4 sm:$0xff]   ;;  %v3513_v4 = vld [vmem:[%s4710_s1 + $0x2f0] ss:$8 sps:$4 sm:$0xff]   ;;  %v3522_v12 = vld [vmem:[%s4710_s1 + $0x304] ss:$8 sps:$4 sm:$0xff]  }
  0x8b   : > { %898 = vmatpush1.bf16.msra.mxu1 %v3429_v2  ;;  %927 = vmatprep.mubr.bf16.mxu1 %v732_v54  ;;  %v2038_v2 = vshll.u32 %v3072_v18, 16  ;;  %v2043_v54 = vshll.u32 %v4357_v1, 16 }
  0x8c   : > { %1930 = vmatpush1.bf16.msra.mxu0 %v3432_v3  ;;  %899 = vmatprep.subr.bf16.mxu1 %v3437_v5  ;;  %v3507_v3 = vld [vmem:[%s4710_s1 + $0x2e0] ss:$8 sps:$4 sm:$0xff]  }
  0x8d   : > { %1931 = vmatprep.subr.bf16.mxu0 %v3440_v7  ;;  %v3510_v5 = vld [vmem:[%s4710_s1 + $0x6e0] ss:$8 sps:$4 sm:$0xff]   ;;  %v3515_v7 = vld [vmem:[%s4710_s1 + $0x2f4] ss:$8 sps:$4 sm:$0xff]  }
  0x8f   : > { %900 = vmatpush1.bf16.msra.mxu1 %v3435_v11  ;;  %v2036_v11 = vshrl.u32 %v3072_v18, 16  ;;  %v3579_v18 = vld [vmem:[%s4710_s1 + $0x394] ss:$8 sps:$4 sm:$0xff]  }
  0x90   : > { %1932 = vmatpush1.bf16.msra.mxu0 %v3438_v49  ;;  %901 = vmatprep.subr.bf16.mxu1 %v3443_v13  ;;  %v2040_v49 = vrot.slane %v2038_v2, 1  ;;  %v3516_v13 = vld [vmem:[%s4710_s1 + $0x6f0] ss:$8 sps:$4 sm:$0xff]  }
  0x91   : > { %1933 = vmatprep.subr.bf16.mxu0 %v3446_v55  ;;  %v727_v55 = vrot.slane %v2739_v6, 1  ;;  %v3580_v2 = vld [vmem:[%s4710_s1 + $0x790] ss:$8 sps:$4 sm:$0xff]   ;;  %v3583_v6 = vld [vmem:[%s4710_s1 + $0x3a0] ss:$8 sps:$4 sm:$0xff]  }
  0x93   : > { %902 = vmatpush1.bf16.msra.mxu1 %v3441_v14  ;;  %v3527_v14 = vld [vmem:[%s4710_s1 + $0x704] ss:$8 sps:$4 sm:$0xff]  }
  0x94   : > { %1934 = vmatpush1.bf16.msra.mxu0 %v3444_v15  ;;  %903 = vmatprep.subr.bf16.mxu1 %v3449_v16  ;;  %v3676_v15 = vld [vmem:[%s3855_s30 + $0x10] sm:$0xff] }
  0x95   : > { %1935 = vmatprep.subr.bf16.mxu0 %v3452_v17  ;;  %v3005_v16 = vcombine.low %v3676_v15, %v4198_v8  ;;  %v2041_v17 = vor.u32 %v2040_v49, %v2036_v11  ;;  %v3589_v11 = vld [vmem:[%s4710_s1 + $0x3b0] ss:$8 sps:$4 sm:$0xff]   ;;  %v3606_v15 = vld [vmem:[%s4710_s1 + $0x7d4] ss:$8 sps:$4 sm:$0xff]  }
  0x96   : > { %v3592_v49 = vld [vmem:[%s4710_s1 + $0x7b0] ss:$8 sps:$4 sm:$0xff]  }
  0x97   : > { %904 = vmatpush1.bf16.msra.mxu1 %v3447_v19  ;;  %v2045_v19 = vrot.slane %v2043_v54, 1  ;;  %v3597_v54 = vld [vmem:[%s4710_s1 + $0x3c4] ss:$8 sps:$4 sm:$0xff]  }
  0x98   : > { %1936 = vmatpush1.bf16.msra.mxu0 %v3450_v20  ;;  %905 = vmatprep.subr.bf16.mxu1 %v3455_v21  ;;  %v3520_v20 = vld [vmem:[%s4710_s1 + $0x300] ss:$8 sps:$4 sm:$0xff]  }
  0x99   : > { %1937 = vmatprep.subr.bf16.mxu0 %v3458_v63  ;;  %v3525_v21 = vld [vmem:[%s4710_s1 + $0x700] ss:$8 sps:$4 sm:$0xff]   ;;  %v729_v63 = vsel %vm726_vm1, %v727_v55, %v728_v10  ;;  %v3594_v10 = vld [vmem:[%s4710_s1 + $0x7b4] ss:$8 sps:$4 sm:$0xff]  }
  0x9a   : > { %v3598_v55 = vld [vmem:[%s4710_s1 + $0x7c0] ss:$8 sps:$4 sm:$0xff]  }
  0x9b   : > { %906 = vmatpush1.bf16.msra.mxu1 %v3453_v22  ;;  %v3531_v22 = vld [vmem:[%s4710_s1 + $0x314] ss:$8 sps:$4 sm:$0xff]  }
  0x9c   : > { %1938 = vmatpush1.bf16.msra.mxu0 %v3456_v23  ;;  %907 = vmatprep.subr.bf16.mxu1 %v3461_v24  ;;  %v3534_v23 = vld [vmem:[%s4710_s1 + $0x714] ss:$8 sps:$4 sm:$0xff]   ;;  %v2806_v24 = vcombine.high %v4366_v0, %v4333_v57 }
  0x9d   : > { %1939 = vmatprep.subr.bf16.mxu0 %v3464_v25  ;;  %v2046_v25 = vsel %vm252_vm0, %v2041_v17, %v2045_v19  ;;  %v3604_v17 = vld [vmem:[%s4710_s1 + $0x7d0] ss:$8 sps:$4 sm:$0xff]   ;;  %v4562_v19 = vcombine.low %v4347_v60, %v4347_v60  ;;  %v3610_v60 = vld [vmem:[%s4710_s1 + $0x7e0] ss:$8 sps:$4 sm:$0xff]  }
  0x9f   : > { %908 = vmatpush1.bf16.msra.mxu1 %v3459_v26  ;;  %v3529_v26 = vld [vmem:[%s4710_s1 + $0x310] ss:$8 sps:$4 sm:$0xff]  }
  0xa0   : > { %1940 = vmatpush1.bf16.msra.mxu0 %v3462_v27  ;;  %909 = vmatprep.subr.bf16.mxu1 %v3467_v28  ;;  %v3532_v27 = vld [vmem:[%s4710_s1 + $0x710] ss:$8 sps:$4 sm:$0xff]   ;;  %v3537_v28 = vld [vmem:[%s4710_s1 + $0x324] ss:$8 sps:$4 sm:$0xff]  }
  0xa1   : > { %1941 = vmatprep.subr.bf16.mxu0 %v3470_v29  ;;  %v3540_v29 = vld [vmem:[%s4710_s1 + $0x724] ss:$8 sps:$4 sm:$0xff]  }
  0xa3   : > { %910 = vmatpush1.bf16.msra.mxu1 %v3465_v30  ;;  %v3535_v30 = vld [vmem:[%s4710_s1 + $0x320] ss:$8 sps:$4 sm:$0xff]  }
  0xa4   : > { %1942 = vmatpush1.bf16.msra.mxu0 %v3468_v31  ;;  %911 = vmatprep.subr.bf16.mxu1 %v3473_v32  ;;  %v3538_v31 = vld [vmem:[%s4710_s1 + $0x720] ss:$8 sps:$4 sm:$0xff]   ;;  %v3543_v32 = vld [vmem:[%s4710_s1 + $0x334] ss:$8 sps:$4 sm:$0xff]  }
  0xa5   : > { %1943 = vmatprep.subr.bf16.mxu0 %v3476_v33  ;;  %v3546_v33 = vld [vmem:[%s4710_s1 + $0x734] ss:$8 sps:$4 sm:$0xff]  }
  0xa7   : > { %912 = vmatpush1.bf16.msra.mxu1 %v3471_v34  ;;  %v3541_v34 = vld [vmem:[%s4710_s1 + $0x330] ss:$8 sps:$4 sm:$0xff]  }
  0xa8   : > { %1944 = vmatpush1.bf16.msra.mxu0 %v3474_v35  ;;  %913 = vmatprep.subr.bf16.mxu1 %v3479_v36  ;;  %v3544_v35 = vld [vmem:[%s4710_s1 + $0x730] ss:$8 sps:$4 sm:$0xff]   ;;  %v3549_v36 = vld [vmem:[%s4710_s1 + $0x344] ss:$8 sps:$4 sm:$0xff]  }
  0xa9   : > { %1945 = vmatprep.subr.bf16.mxu0 %v3482_v37  ;;  %v3552_v37 = vld [vmem:[%s4710_s1 + $0x744] ss:$8 sps:$4 sm:$0xff]  }
  0xab   : > { %914 = vmatpush1.bf16.msra.mxu1 %v3477_v38  ;;  %v3547_v38 = vld [vmem:[%s4710_s1 + $0x340] ss:$8 sps:$4 sm:$0xff]  }
  0xac   : > { %1946 = vmatpush1.bf16.msra.mxu0 %v3480_v39  ;;  %915 = vmatprep.subr.bf16.mxu1 %v3485_v40  ;;  %v3550_v39 = vld [vmem:[%s4710_s1 + $0x740] ss:$8 sps:$4 sm:$0xff]   ;;  %v3555_v40 = vld [vmem:[%s4710_s1 + $0x354] ss:$8 sps:$4 sm:$0xff]  }
  0xad   : > { %1947 = vmatprep.subr.bf16.mxu0 %v3488_v41  ;;  %v3558_v41 = vld [vmem:[%s4710_s1 + $0x754] ss:$8 sps:$4 sm:$0xff]  }
  0xaf   : > { %916 = vmatpush1.bf16.msra.mxu1 %v3483_v42  ;;  %v3553_v42 = vld [vmem:[%s4710_s1 + $0x350] ss:$8 sps:$4 sm:$0xff]  }
  0xb0   : > { %1948 = vmatpush1.bf16.msra.mxu0 %v3486_v43  ;;  %917 = vmatprep.subr.bf16.mxu1 %v3491_v44  ;;  %v3556_v43 = vld [vmem:[%s4710_s1 + $0x750] ss:$8 sps:$4 sm:$0xff]   ;;  %v3561_v44 = vld [vmem:[%s4710_s1 + $0x364] ss:$8 sps:$4 sm:$0xff]  }
  0xb1   : > { %1949 = vmatprep.subr.bf16.mxu0 %v3494_v45  ;;  %v3564_v45 = vld [vmem:[%s4710_s1 + $0x764] ss:$8 sps:$4 sm:$0xff]  }
  0xb3   : > { %918 = vmatpush1.bf16.msra.mxu1 %v3489_v46  ;;  %v3559_v46 = vld [vmem:[%s4710_s1 + $0x360] ss:$8 sps:$4 sm:$0xff]  }
  0xb4   : > { %1950 = vmatpush1.bf16.msra.mxu0 %v3492_v47  ;;  %919 = vmatprep.subr.bf16.mxu1 %v3497_v48  ;;  %v3562_v47 = vld [vmem:[%s4710_s1 + $0x760] ss:$8 sps:$4 sm:$0xff]   ;;  %v3567_v48 = vld [vmem:[%s4710_s1 + $0x374] ss:$8 sps:$4 sm:$0xff]  }
  0xb5   : > { %1951 = vmatprep.subr.bf16.mxu0 %v3500_v50  ;;  %v3570_v50 = vld [vmem:[%s4710_s1 + $0x774] ss:$8 sps:$4 sm:$0xff]  }
  0xb7   : > { %920 = vmatpush1.bf16.msra.mxu1 %v3495_v51  ;;  %v3565_v51 = vld [vmem:[%s4710_s1 + $0x370] ss:$8 sps:$4 sm:$0xff]  }
  0xb8   : > { %1952 = vmatpush1.bf16.msra.mxu0 %v3498_v52  ;;  %921 = vmatprep.subr.bf16.mxu1 %v3503_v56  ;;  %v3568_v52 = vld [vmem:[%s4710_s1 + $0x770] ss:$8 sps:$4 sm:$0xff]   ;;  %v3573_v56 = vld [vmem:[%s4710_s1 + $0x384] ss:$8 sps:$4 sm:$0xff]  }
  0xb9   : > { %1953 = vmatprep.subr.bf16.mxu0 %v3506_v53  ;;  %v3576_v53 = vld [vmem:[%s4710_s1 + $0x784] ss:$8 sps:$4 sm:$0xff]  }
  0xbb   : > { %922 = vmatpush1.bf16.msra.mxu1 %v3501_v58  ;;  %v3571_v58 = vld [vmem:[%s4710_s1 + $0x380] ss:$8 sps:$4 sm:$0xff]  }
  0xbc   : > { %1954 = vmatpush1.bf16.msra.mxu0 %v3504_v59  ;;  %923 = vmatprep.subr.bf16.mxu1 %v3509_v61  ;;  %v3574_v59 = vld [vmem:[%s4710_s1 + $0x780] ss:$8 sps:$4 sm:$0xff]   ;;  %v3582_v61 = vld [vmem:[%s4710_s1 + $0x794] ss:$8 sps:$4 sm:$0xff]  }
  0xbd   : > { %1955 = vmatprep.subr.bf16.mxu0 %v3512_v62  ;;  %v3577_v62 = vld [vmem:[%s4710_s1 + $0x390] ss:$8 sps:$4 sm:$0xff]  }
  0xbf   : > { %924 = vmatpush1.bf16.msra.mxu1 %v3507_v3  ;;  %v3585_v3 = vld [vmem:[%s4710_s1 + $0x3a4] ss:$8 sps:$4 sm:$0xff]  }
  0xc0   : > { %1956 = vmatpush1.bf16.msra.mxu0 %v3510_v5  ;;  %925 = vmatprep.subr.bf16.mxu1 %v3515_v7  ;;  %v3588_v5 = vld [vmem:[%s4710_s1 + $0x7a4] ss:$8 sps:$4 sm:$0xff]   ;;  %v3586_v7 = vld [vmem:[%s4710_s1 + $0x7a0] ss:$8 sps:$4 sm:$0xff]  }
  0xc1   : > { %1957 = vmatprep.subr.bf16.mxu0 %v3518_v9  ;;  %v3591_v9 = vld [vmem:[%s4710_s1 + $0x3b4] ss:$8 sps:$4 sm:$0xff]  }
  0xc3   : > { %926 = vmatpush1.bf16.msra.mxu1 %v3513_v4  ;;  %v3600_v4 = vld [vmem:[%s4710_s1 + $0x7c4] ss:$8 sps:$4 sm:$0xff]  }
  0xc4   : > { %1958 = vmatpush1.bf16.msra.mxu0 %v3516_v13  ;;  %1143 = vmatprep.subr.bf16.mxu1 %v3522_v12  ;;  %v3595_v13 = vld [vmem:[%s4710_s1 + $0x3c0] ss:$8 sps:$4 sm:$0xff]   ;;  %v3071_v12 = vcombine.low %v4333_v57, %v4198_v8 }
  0xc5   : > { %2209 = vmatprep.subr.bf16.mxu0 %v3527_v14  ;;  %v3603_v14 = vld [vmem:[%s4710_s1 + $0x3d4] ss:$8 sps:$4 sm:$0xff]  }
  0xc6   : > { %928 = vmatmul.mubr.bf16.vlgmr.msra.gmra.mrb[0].mxu1 %v729_v63  ;;  %v3612_v63 = vld [vmem:[%s4710_s1 + $0x7e4] ss:$8 sps:$4 sm:$0xff]  }
  0xc7   : > { %1960 = vmatmul.mubr.bf16.vlgmr.msra.gmra.mrb[0].mxu0 %v3005_v16  ;;  %1144 = vmatpush1.bf16.msra.mxu1 %v3520_v20  ;;  %v3601_v16 = vld [vmem:[%s4710_s1 + $0x3d0] ss:$8 sps:$4 sm:$0xff]   ;;  %v2026_v20 = vshll.u32 %v3071_v12, 16 }
  0xc8   : > { %2210 = vmatpush1.bf16.msra.mxu0 %v3525_v21  ;;  %1145 = vmatprep.subr.bf16.mxu1 %v3531_v22  ;;  %v3609_v21 = vld [vmem:[%s4710_s1 + $0x3e4] ss:$8 sps:$4 sm:$0xff]   ;;  %v4571_v22 = vld [vmem:[%s3855_s30 + $0x10] sm:$0xee]  ;;  %s170_s30 = scalar_lea.vmem %s4712_s3, %s3177_s11 }
  0xc9   : > { %2211 = vmatprep.subr.bf16.mxu0 %v3534_v23  ;;  %1175 = vmatprep.mubr.bf16.mxu1 %v2806_v24  ;;  %v3607_v23 = vld [vmem:[%s4710_s1 + $0x3e0] ss:$8 sps:$4 sm:$0xff]   ;;  %v2024_v24 = vshrl.u32 %v3071_v12, 16 }
  0xca   : > { %2241 = vmatprep.mubr.bf16.mxu0 %v2046_v25  ;;  %v2028_v25 = vrot.slane %v2026_v20, 1 }
  0xcb   : > { %1146 = vmatpush1.bf16.msra.mxu1 %v3529_v26  ;;  %v2031_v26 = vshll.u32 %v4562_v19, 16 }
  0xcc   : > { %2212 = vmatpush1.bf16.msra.mxu0 %v3532_v27  ;;  %1147 = vmatprep.subr.bf16.mxu1 %v3537_v28  ;;  %v3615_v27 = vld [vmem:[%s4710_s1 + $0x3f4] ss:$8 sps:$4 sm:$0xff]  }
  0xcd   : > { %2213 = vmatprep.subr.bf16.mxu0 %v3540_v29  ;;  %v3618_v28 = vld [vmem:[%s4710_s1 + $0x7f4] ss:$8 sps:$4 sm:$0xff]   ;;  %v3140_v29 = vcombine.high %v4571_v22, %v4198_v8 }
  0xcf   : > { %1148 = vmatpush1.bf16.msra.mxu1 %v3535_v30  ;;  %v3613_v30 = vld [vmem:[%s4710_s1 + $0x3f0] ss:$8 sps:$4 sm:$0xff]  }
  0xd0   : > { %2214 = vmatpush1.bf16.msra.mxu0 %v3538_v31  ;;  %1149 = vmatprep.subr.bf16.mxu1 %v3543_v32  ;;  %v3616_v31 = vld [vmem:[%s4710_s1 + $0x7f0] ss:$8 sps:$4 sm:$0xff]   ;;  %v2029_v32 = vor.u32 %v2028_v25, %v2024_v24 }
  0xd1   : > { %2215 = vmatprep.subr.bf16.mxu0 %v3546_v33  ;;  %v2033_v33 = vrot.slane %v2031_v26, 1 }
  0xd3   : > { %1150 = vmatpush1.bf16.msra.mxu1 %v3541_v34  ;;  %v3625_v34 = vld [vmem:[%s4710_s1 + $0x804] ss:$8 sps:$4 sm:$0xff]  }
  0xd4   : > { %2216 = vmatpush1.bf16.msra.mxu0 %v3544_v35  ;;  %1151 = vmatprep.subr.bf16.mxu1 %v3549_v36  ;;  %v2298_v35 = vrot.slane %v3140_v29, 1  ;;  %v2299_v36 = vrot.slane %v4357_v1, 1  ;;  %v3633_v1 = vld [vmem:[%s4710_s1 + $0x824] ss:$8 sps:$4 sm:$0xff]  }
  0xd5   : > { %2217 = vmatprep.subr.bf16.mxu0 %v3552_v37  ;;  %v2805_v37 = vcombine.low %v4366_v0, %v4333_v57  ;;  %v3628_v57 = vld [vmem:[%s4710_s1 + $0x810] ss:$8 sps:$4 sm:$0xff]   ;;  %v3631_v0 = vld [vmem:[%s4710_s1 + $0x820] ss:$8 sps:$4 sm:$0xff]  }
  0xd7   : > { %1152 = vmatpush1.bf16.msra.mxu1 %v3547_v38  ;;  %v3623_v38 = vld [vmem:[%s4710_s1 + $0x800] ss:$8 sps:$4 sm:$0xff]  }
  0xd8   : > { %2218 = vmatpush1.bf16.msra.mxu0 %v3550_v39  ;;  %1153 = vmatprep.subr.bf16.mxu1 %v3555_v40  ;;  %v2034_v39 = vsel %vm252_vm0, %v2029_v32, %v2033_v33  ;;  %v3630_v40 = vld [vmem:[%s4710_s1 + $0x814] ss:$8 sps:$4 sm:$0xff]  }
  0xd9   : > { %2219 = vmatprep.subr.bf16.mxu0 %v3558_v41  ;;  %v2300_v41 = vsel %vm726_vm1, %v2298_v35, %v2299_v36 }
  0xdb   : > { %1154 = vmatpush1.bf16.msra.mxu1 %v3553_v42  ;;  %v3636_v42 = vld [vmem:[%s4710_s1 + $0x834] ss:$8 sps:$4 sm:$0xff]  }
  0xdc   : > { %2220 = vmatpush1.bf16.msra.mxu0 %v3556_v43  ;;  %1155 = vmatprep.subr.bf16.mxu1 %v3561_v44  ;;  %v3634_v43 = vld [vmem:[%s4710_s1 + $0x830] ss:$8 sps:$4 sm:$0xff]   ;;  %v3639_v44 = vld [vmem:[%s4710_s1 + $0x844] ss:$8 sps:$4 sm:$0xff]  }
  0xdd   : > { %2221 = vmatprep.subr.bf16.mxu0 %v3564_v45  ;;  %v3637_v45 = vld [vmem:[%s4710_s1 + $0x840] ss:$8 sps:$4 sm:$0xff]  }
  0xdf   : > { %1156 = vmatpush1.bf16.msra.mxu1 %v3559_v46  ;;  %v3642_v46 = vld [vmem:[%s4710_s1 + $0x854] ss:$8 sps:$4 sm:$0xff]  }
  0xe0   : > { %2222 = vmatpush1.bf16.msra.mxu0 %v3562_v47  ;;  %1157 = vmatprep.subr.bf16.mxu1 %v3567_v48  ;;  %v3640_v47 = vld [vmem:[%s4710_s1 + $0x850] ss:$8 sps:$4 sm:$0xff]   ;;  %v3645_v48 = vld [vmem:[%s4710_s1 + $0x864] ss:$8 sps:$4 sm:$0xff]  }
  0xe1   : > { %2223 = vmatprep.subr.bf16.mxu0 %v3570_v50  ;;  %v3643_v50 = vld [vmem:[%s4710_s1 + $0x860] ss:$8 sps:$4 sm:$0xff]  }
  0xe3   : > { %1158 = vmatpush1.bf16.msra.mxu1 %v3565_v51  ;;  %v3648_v51 = vld [vmem:[%s4710_s1 + $0x874] ss:$8 sps:$4 sm:$0xff]  }
  0xe4   : > { %2224 = vmatpush1.bf16.msra.mxu0 %v3568_v52  ;;  %1159 = vmatprep.subr.bf16.mxu1 %v3573_v56  ;;  %v3646_v52 = vld [vmem:[%s4710_s1 + $0x870] ss:$8 sps:$4 sm:$0xff]   ;;  %v3651_v56 = vld [vmem:[%s4710_s1 + $0x884] ss:$8 sps:$4 sm:$0xff]  }
  0xe5   : > { %2225 = vmatprep.subr.bf16.mxu0 %v3576_v53  ;;  %v3649_v53 = vld [vmem:[%s4710_s1 + $0x880] ss:$8 sps:$4 sm:$0xff]  }
  0xe7   : > { %1160 = vmatpush1.bf16.msra.mxu1 %v3571_v58  ;;  %v3654_v58 = vld [vmem:[%s4710_s1 + $0x894] ss:$8 sps:$4 sm:$0xff]  }
  0xe8   : > { %2226 = vmatpush1.bf16.msra.mxu0 %v3574_v59  ;;  %1161 = vmatprep.subr.bf16.mxu1 %v3579_v18  ;;  %v3652_v59 = vld [vmem:[%s4710_s1 + $0x890] ss:$8 sps:$4 sm:$0xff]   ;;  %v3657_v18 = vld [vmem:[%s4710_s1 + $0x8a4] ss:$8 sps:$4 sm:$0xff]  }
  0xe9   : > { %2227 = vmatprep.subr.bf16.mxu0 %v3582_v61  ;;  %v3655_v61 = vld [vmem:[%s4710_s1 + $0x8a0] ss:$8 sps:$4 sm:$0xff]  }
  0xeb   : > { %1162 = vmatpush1.bf16.msra.mxu1 %v3577_v62  ;;  %v3660_v62 = vld [vmem:[%s4710_s1 + $0x8b4] ss:$8 sps:$4 sm:$0xff]  }
  0xec   : > { %2228 = vmatpush1.bf16.msra.mxu0 %v3580_v2  ;;  %1163 = vmatprep.subr.bf16.mxu1 %v3585_v3  ;;  %v3658_v2 = vld [vmem:[%s4710_s1 + $0x8b0] ss:$8 sps:$4 sm:$0xff]   ;;  %v3663_v3 = vld [vmem:[%s4710_s1 + $0x8c4] ss:$8 sps:$4 sm:$0xff]  }
  0xed   : > { %2229 = vmatprep.subr.bf16.mxu0 %v3588_v5  ;;  %v3661_v5 = vld [vmem:[%s4710_s1 + $0x8c0] ss:$8 sps:$4 sm:$0xff]  }
  0xef   : > { %1164 = vmatpush1.bf16.msra.mxu1 %v3583_v6  ;;  %v3666_v6 = vld [vmem:[%s4710_s1 + $0x8d4] ss:$8 sps:$4 sm:$0xff]  }
  0xf0   : > { %2230 = vmatpush1.bf16.msra.mxu0 %v3586_v7  ;;  %1165 = vmatprep.subr.bf16.mxu1 %v3591_v9  ;;  %v3664_v7 = vld [vmem:[%s4710_s1 + $0x8d0] ss:$8 sps:$4 sm:$0xff]   ;;  %v3669_v9 = vld [vmem:[%s4710_s1 + $0x8e4] ss:$8 sps:$4 sm:$0xff]  }
  0xf1   : > { %2231 = vmatprep.subr.bf16.mxu0 %v3594_v10  ;;  %v3667_v10 = vld [vmem:[%s4710_s1 + $0x8e0] ss:$8 sps:$4 sm:$0xff]  }
  0xf3   : > { %1166 = vmatpush1.bf16.msra.mxu1 %v3589_v11  ;;  %v3139_v11 = vcombine.low %v4571_v22, %v4198_v8 }
  0xf4   : > { %2232 = vmatpush1.bf16.msra.mxu0 %v3592_v49  ;;  %1167 = vmatprep.subr.bf16.mxu1 %v3597_v54  ;;  %v3672_v49 = vld [vmem:[%s4710_s1 + $0x8f4] ss:$8 sps:$4 sm:$0xff]   ;;  %v3670_v54 = vld [vmem:[%s4710_s1 + $0x8f0] ss:$8 sps:$4 sm:$0xff]  }
  0xf5   : > { %2233 = vmatprep.subr.bf16.mxu0 %v3600_v4  ;;  %v2295_v4 = vrot.slane %v3139_v11, 1 }
  0xf7   : > { %1168 = vmatpush1.bf16.msra.mxu1 %v3595_v13  ;;  %v2296_v13 = vrot.slane %v4562_v19, 1 }
  0xf8   : > { %2234 = vmatpush1.bf16.msra.mxu0 %v3598_v55  ;;  %1169 = vmatprep.subr.bf16.mxu1 %v3603_v14 }
  0xf9   : > { %2235 = vmatprep.subr.bf16.mxu0 %v3606_v15  ;;  %v2297_v55 = vsel %vm726_vm1, %v2295_v4, %v2296_v13 }
  0xfb   : > { %1170 = vmatpush1.bf16.msra.mxu1 %v3601_v16  ;;  %v2512_v16 = vlaneseq }
  0xfc   : > { %2236 = vmatpush1.bf16.msra.mxu0 %v3604_v17  ;;  %1171 = vmatprep.subr.bf16.mxu1 %v3609_v21  ;;  %v2510_v21 = vld [vmem:[%s4711_s2] sm:$0x3] }
  0xfd   : > { %2237 = vmatprep.subr.bf16.mxu0 %v3612_v63  ;;  %v2513_v17 = vshrl.u32 %v2512_v16, 7 }
  0xff   : > { %1172 = vmatpush1.bf16.msra.mxu1 %v3607_v23  ;;  %v2514_v20 = vsub.s32 0, %v2513_v17  ;;  %v2518_v63 = vsub.s32 1, %v2513_v17 }
 0x100   : > { %2238 = vmatpush1.bf16.msra.mxu0 %v3610_v60  ;;  %1173 = vmatprep.subr.bf16.mxu1 %v3615_v27 }
 0x101   : > { %2239 = vmatprep.subr.bf16.mxu0 %v3618_v28  ;;  %v2515_v22 = vrot.slane %v2510_v21, %v2514_v20  ;;  %v2519_v23 = vrot.slane %v2510_v21, %v2518_v63 }
 0x103   : > { %1174 = vmatpush1.bf16.msra.mxu1 %v3613_v30 }
 0x104   : > { %2240 = vmatpush1.bf16.msra.mxu0 %v3616_v31 }
 0x105   : > { %2463 = vmatprep.subr.bf16.mxu0 %v3625_v34 }
 0x106   : > { %1176 = vmatmul.mubr.bf16.vlgmr.msra.gmra.mrb[0].mxu1 %v2805_v37 }
 0x107   : > { %2242 = vmatmul.mubr.bf16.vlgmr.msra.gmra.mrb[0].mxu0 %v2034_v39 }
 0x108   : > { %2464 = vmatpush1.bf16.msra.mxu0 %v3623_v38  ;;  %2495 = vmatprep.mubr.bf16.mxu0 %v2300_v41 }
 0x109   : > { %2465 = vmatprep.subr.bf16.mxu0 %v3630_v40 }
 0x10c   : > { %2466 = vmatpush1.bf16.msra.mxu0 %v3628_v57 }
 0x10d   : > { %2467 = vmatprep.subr.bf16.mxu0 %v3633_v1 }
 0x110   : > { %2468 = vmatpush1.bf16.msra.mxu0 %v3631_v0 }
 0x111   : > { %2469 = vmatprep.subr.bf16.mxu0 %v3636_v42 }
 0x114   : > { %2470 = vmatpush1.bf16.msra.mxu0 %v3634_v43 }
 0x115   : > { %2471 = vmatprep.subr.bf16.mxu0 %v3639_v44 }
 0x118   : > { %2472 = vmatpush1.bf16.msra.mxu0 %v3637_v45 }
 0x119   : > { %2473 = vmatprep.subr.bf16.mxu0 %v3642_v46 }
 0x11c   : > { %2474 = vmatpush1.bf16.msra.mxu0 %v3640_v47 }
 0x11d   : > { %2475 = vmatprep.subr.bf16.mxu0 %v3645_v48 }
 0x120   : > { %2476 = vmatpush1.bf16.msra.mxu0 %v3643_v50 }
 0x121   : > { %2477 = vmatprep.subr.bf16.mxu0 %v3648_v51 }
 0x124   : > { %2478 = vmatpush1.bf16.msra.mxu0 %v3646_v52 }
 0x125   : > { %2479 = vmatprep.subr.bf16.mxu0 %v3651_v56 }
 0x128   : > { %2480 = vmatpush1.bf16.msra.mxu0 %v3649_v53 }
 0x129   : > { %2481 = vmatprep.subr.bf16.mxu0 %v3654_v58 }
 0x12c   : > { %2482 = vmatpush1.bf16.msra.mxu0 %v3652_v59 }
 0x12d   : > { %2483 = vmatprep.subr.bf16.mxu0 %v3657_v18 }
 0x130   : > { %2484 = vmatpush1.bf16.msra.mxu0 %v3655_v61 }
 0x131   : > { %2485 = vmatprep.subr.bf16.mxu0 %v3660_v62 }
 0x134   : > { %2486 = vmatpush1.bf16.msra.mxu0 %v3658_v2 }
 0x135   : > { %2487 = vmatprep.subr.bf16.mxu0 %v3663_v3 }
 0x138   : > { %2488 = vmatpush1.bf16.msra.mxu0 %v3661_v5 }
 0x139   : > { %2489 = vmatprep.subr.bf16.mxu0 %v3666_v6 }
 0x13c   : > { %2490 = vmatpush1.bf16.msra.mxu0 %v3664_v7 }
 0x13d   : > { %2491 = vmatprep.subr.bf16.mxu0 %v3669_v9 }
 0x140   : > { %2492 = vmatpush1.bf16.msra.mxu0 %v3667_v10 }
 0x141   : > { %2493 = vmatprep.subr.bf16.mxu0 %v3672_v49 }
 0x144   : > { %2494 = vmatpush1.bf16.msra.mxu0 %v3670_v54 }
 0x147   : > { %2496 = vmatmul.mubr.bf16.vlgmr.msra.gmra.mrb[0].mxu0 %v2297_v55 }
 0x1d9   : > { %v1177_v12 = vpop.f32.mrb[0].mxu1 }
 0x1da   : > { %v1179_v8 = vpop.f32.mrb[1].mxu1 }
 0x1db   : > { %v1181_v14 = vpop.f32.mrb[2].mxu1 }
 0x1dc   : > { %v1183_v15 = vpop.f32.mrb[3].mxu1 }
 0x21a   : > { %v2497_v19 = vpop.f32.mrb[0].mxu0 }
 0x21b   : > { %v3180_v60 = vadd.f32 %v2497_v19, %v1177_v12  ;;  %v2499_v24 = vpop.f32.mrb[1].mxu0 }
 0x21c   : > { %v3181_v25 = vadd.f32 %v2499_v24, %v1179_v8  ;;  %v2501_v26 = vpop.f32.mrb[2].mxu0 }
 0x21d   : > { %v2522_v27 = vadd.f32 %v3180_v60, %v2515_v22  ;;  %v3182_v28 = vadd.f32 %v2501_v26, %v1181_v14  ;;  %v2503_v29 = vpop.f32.mrb[3].mxu0 }
 0x21e   : > { %v2523_v30 = vadd.f32 %v3181_v25, %v2519_v23  ;;  %v3183_v31 = vadd.f32 %v2503_v29, %v1183_v15 }
 0x21f   : > { %v2526_v32 = vmax.f32 %v2522_v27, 0.0  ;;  %v2524_v33 = vadd.f32 %v3182_v28, %v2515_v22 }
 0x220   : > { %v2527_v34 = vmax.f32 %v2523_v30, 0.0  ;;  %v2525_v35 = vadd.f32 %v3183_v31, %v2519_v23 }
 0x221   : > { %v2528_v36 = vmax.f32 %v2524_v33, 0.0 }
 0x222   : > { %v3178_v37 = vpack.c.bf16 %v2527_v34, %v2526_v32  ;;  %v2529_v38 = vmax.f32 %v2525_v35, 0.0 }
 0x224   : > { %2542 = vst [vmem:[%s170_s30] sm:$0xff] %v3178_v37  ;;  %v3179_v39 = vpack.c.bf16 %v2529_v38, %v2528_v36 }
 0x226   : > { %2543 = vst [vmem:[%s170_s30 + $0x8] sm:$0xff] %v3179_v39 }
 0x227 PF: > { %s13_s12 = sadd.s32 1, %s3683_s12  }
 0x228   : > { %p10_p4 = scmp.ge.s32.totalorder %s13_s12, 4  }
 0x22a   :  { %12 = sbr.rel (!%p10_p4) target bundleno = 1 (0x1), region = 70 }

// kernel: _lambda_.21
= control target key start
LH: loop header
LB: loop body
LE: loop exit
PB: predicated region body
PF: predicated region fallthrough
CT: control target
= control target key end

     0   :  { %15 = vsyncpa [#allocation3], 0  ;;  %s4552_s0 = inlined_call_operand.vmem [shape: bf16[2,4,256], index: 0, kind: input, shape index: {}]   ;;  %s4553_s1 = inlined_call_operand.vmem [shape: bf16[2,4,1024], index: 1, kind: input, shape index: {}]   ;;  %s4554_s2 = inlined_call_operand.vmem [shape: bf16[256,1024], index: 2, kind: input, shape index: {}]   ;;  %s4555_s3 = inlined_call_operand.vmem [shape: f32[1,1024], index: 3, kind: input, shape index: {}]   ;;  %s4556_s4 = inlined_call_operand.vmem [shape: bf16[1024,64], index: 4, kind: input, shape index: {}]   ;;  %s4557_s5 = inlined_call_operand.vmem [shape: f32[1,64], index: 5, kind: input, shape index: {}]   ;;  %s4558_s6 = inlined_call_operand.vmem [shape: bf16[64,1024], index: 6, kind: input, shape index: {}]   ;;  %s4559_s7 = inlined_call_operand.vmem [shape: f32[1,1024], index: 7, kind: input, shape index: {}]   ;;  %s4560_s8 = inlined_call_operand.hbm [shape: bf16[2,4,1024], index: 8, kind: output, shape index: {0}]   ;;  %s4561_s9 = inlined_call_operand.hbm [shape: f32[2,1,1024], index: 9, kind: output, shape index: {1}]  }
   0x1   :  { %17 = vsyncpa [#allocation3 + $0x1], 0 }
   0x2   :  { %18 = vsyncpa [#allocation5], 0 }
   0x3   :  { %20 = vsyncpa [#allocation5 + $0x1], 0  ;;  %s3572_s30 = smov 0   ;;  %s3574_s10 = smov 0  }
   0x4   :  { %s3576_s11 = smov 0   ;;  %s3578_s12 = smov 0  }
   0x5 LB: > { %s3593_s13 = sadd.s32 4294967295, %s3515_s12   ;;  %s2927_s14 = sadd.s32 4294967294, %s3515_s12   ;;  %s3515_s12 = sphi %s3578_s12, %s4569_s12   ;;  %s3511_s11 = sphi %s3576_s11, %s4568_s11   ;;  %s3507_s10 = sphi %s3574_s10, %s4567_s10   ;;  %s3503_s30 = sphi %s3572_s30, %s4566_s30  }
   0x6   : > { %s3597_s15 = sadd.s32 1, %s3515_s12   ;;  %s211_s16 = sadd.s32 1, %s3511_s11 }
   0x7   : > { %s208_s17 = ssub.s32 %s3515_s12, %s3597_s15  ;;  %p221_p0 = scmp.ne.s32.totalorder %s3511_s11, %s3507_s10 }
   0x8   : > { %p209_p1 = scmp.eq.s32.totalorder %s208_s17, 0  ;;  %p222_p2 = scmp.eq.s32.totalorder %s3593_s13, 1 }
   0x9   : > { %p227_p3 = scmp.ne.s32.totalorder %s3507_s10, %s3503_s30  ;;  %p228_p4 = scmp.eq.s32.totalorder %s2927_s14, 1 }
   0xa   : > { %s3608_s18 = scalar_select %p209_p1, %s3511_s11, %s211_s16  }
   0xb   : > { %p3610_p5 = por %p222_p2, %p221_p0  ;;  %p3614_p6 = por %p228_p4, %p227_p3 }
   0xc   : > { %4562 = sst [smem:[#allocation8_spill]] %s3608_s18  ;;  %p2930_p7 = scmp.ge.s32.totalorder %s3515_s12, 1 }
   0xd   : > { %p306_p8 = scmp.lt.s32.totalorder %s3515_s12, 3 }
   0xf   : > { %p307_p9 = pnand %p2930_p7, %p306_p8 }
  0x10   : > { %v364_v0 = vld [vmem:[%s4554_s2] sm:$0xff] (!%p307_p9)  ;;  %v365_v2 = vld [vmem:[%s4554_s2 + $0x8] sm:$0xff] (!%p307_p9)  ;;  %p352_p10 = scmp.lt.s32.totalorder (!%p307_p9), %s3593_s13, 1  ;;  %vm1349_vm0 = vcmask (!%p307_p9), 1043456   ;;  %vm2331_vm1 = vcmask (!%p307_p9), 523264   ;;  %s4427_s27 = sand.u32 (!%p307_p9), 1, %s3507_s10  }
  0x11   : > { %310 = sbr.rel (%p307_p9) target bundleno = 922 (0x39a), region = 52  ;;  %v368_v1 = vld [vmem:[%s4554_s2 + $0x20] sm:$0xff] (!%p307_p9)  ;;  %v369_v4 = vld [vmem:[%s4554_s2 + $0x28] sm:$0xff] (!%p307_p9)  ;;  %s2931_s28 = sshll.u32 (!%p307_p9), %s4427_s27, 4 }
  0x12   : > { %v2939_v3 = vcombine.high (!%p307_p9), %v364_v0, %v368_v1  ;;  %v2938_v5 = vcombine.low (!%p307_p9), %v364_v0, %v368_v1  ;;  %v372_v6 = vld [vmem:[%s4554_s2 + $0x40] sm:$0xff] (!%p307_p9)  ;;  %v2941_v8 = vcombine.high (!%p307_p9), %v365_v2, %v369_v4  ;;  %v2940_v9 = vcombine.low (!%p307_p9), %v365_v2, %v369_v4  ;;  %v373_v11 = vld [vmem:[%s4554_s2 + $0x48] sm:$0xff] (!%p307_p9)  ;;  %s4441_s29 = scalar_lea.vmem (!%p307_p9), [#allocation2], %s2931_s28  ;;  %s3520_s26 = smov (!%p307_p9), [#allocation2]  }
  0x13   : > { %v376_v7 = vld [vmem:[%s4554_s2 + $0x60] sm:$0xff] (!%p307_p9)  ;;  %v377_v12 = vld [vmem:[%s4554_s2 + $0x68] sm:$0xff] (!%p307_p9)  ;;  %s2810_s16 = sshll.u32 (!%p307_p9), %s4441_s29, 4  ;;  %s3425_s18 = sshll.u32 (!%p307_p9), %s3520_s26, 4  ;;  %s4475_s16 = int_to_ptr.vmem [resolvable:$true] %s2810_s16  ;;  %s3426_s18 = int_to_ptr.vmem [resolvable:$false] %s3425_s18 }
  0x14   : > { %v2947_v10 = vcombine.high (!%p307_p9), %v372_v6, %v376_v7  ;;  %v380_v13 = vld [vmem:[%s4554_s2 + $0x80] sm:$0xff] (!%p307_p9)  ;;  %1185 = vmatprep.subr.bf16.mxu0 (!%p307_p9), %v2939_v3  ;;  %v2949_v14 = vcombine.high (!%p307_p9), %v373_v11, %v377_v12  ;;  %v381_v16 = vld [vmem:[%s4554_s2 + $0x88] sm:$0xff] (!%p307_p9)  ;;  %1226 = vmatprep.subr.bf16.mxu1 (!%p307_p9), %v2941_v8  ;;  %v2946_v18 = vcombine.low (!%p307_p9), %v372_v6, %v376_v7  ;;  %p3428_p0 = scmp.lt.s32.totalorder (!%p307_p9), %s4475_s16, %s3426_s18 }
  0x15   : > { %v384_v15 = vld [vmem:[%s4554_s2 + $0xa0] sm:$0xff] (!%p307_p9)  ;;  %v385_v17 = vld [vmem:[%s4554_s2 + $0xa8] sm:$0xff] (!%p307_p9)  ;;  %1186 = vmatpush1.bf16.msra.mxu0 (!%p307_p9), %v2938_v5  ;;  %1227 = vmatpush1.bf16.msra.mxu1 (!%p307_p9), %v2940_v9  ;;  %v2948_v19 = vcombine.low (!%p307_p9), %v373_v11, %v377_v12 }
  0x16   : > { %1187 = vmatprep.subr.bf16.mxu0 (!%p307_p9), %v2947_v10  ;;  %v2955_v20 = vcombine.high (!%p307_p9), %v380_v13, %v384_v15  ;;  %1228 = vmatprep.subr.bf16.mxu1 (!%p307_p9), %v2949_v14  ;;  %v2957_v21 = vcombine.high (!%p307_p9), %v381_v16, %v385_v17  ;;  %v388_v22 = vld [vmem:[%s4554_s2 + $0xc0] sm:$0xff] (!%p307_p9)  ;;  %v389_v24 = vld [vmem:[%s4554_s2 + $0xc8] sm:$0xff] (!%p307_p9)  ;;  %v2954_v26 = vcombine.low (!%p307_p9), %v380_v13, %v384_v15 }
  0x17   : > { %v392_v23 = vld [vmem:[%s4554_s2 + $0xe0] sm:$0xff] (!%p307_p9)  ;;  %v393_v25 = vld [vmem:[%s4554_s2 + $0xe8] sm:$0xff] (!%p307_p9)  ;;  %v2956_v27 = vcombine.low (!%p307_p9), %v381_v16, %v385_v17 }
  0x18   : > { %v2963_v28 = vcombine.high %v388_v22, %v392_v23  ;;  %v2965_v29 = vcombine.high %v389_v24, %v393_v25  ;;  %v396_v30 = vld [vmem:[%s4554_s2 + $0x100] sm:$0xff]  ;;  %v397_v32 = vld [vmem:[%s4554_s2 + $0x108] sm:$0xff]  ;;  %s3682_s25 = scalar_select %p352_p10, %s3593_s13, 1  ;;  %v2962_v34 = vcombine.low %v388_v22, %v392_v23  ;;  %v2964_v35 = vcombine.low %v389_v24, %v393_v25 }
  0x19   : > { %1188 = vmatpush1.bf16.msra.mxu0 %v2946_v18  ;;  %1229 = vmatpush1.bf16.msra.mxu1 %v2948_v19  ;;  %v400_v31 = vld [vmem:[%s4554_s2 + $0x120] sm:$0xff]  ;;  %v401_v33 = vld [vmem:[%s4554_s2 + $0x128] sm:$0xff] }
  0x1a   : > { %1189 = vmatprep.subr.bf16.mxu0 %v2955_v20  ;;  %1230 = vmatprep.subr.bf16.mxu1 %v2957_v21  ;;  %v2971_v36 = vcombine.high %v396_v30, %v400_v31  ;;  %v2973_v37 = vcombine.high %v397_v32, %v401_v33  ;;  %v404_v38 = vld [vmem:[%s4554_s2 + $0x140] sm:$0xff]  ;;  %v405_v40 = vld [vmem:[%s4554_s2 + $0x148] sm:$0xff]  ;;  %s3186_s22 = sshll.u32 %s3682_s25, 2  ;;  %v2970_v42 = vcombine.low %v396_v30, %v400_v31  ;;  %s3187_s24 = sshll.u32 %s3682_s25, 4 }
  0x1b   : > { %v408_v39 = vld [vmem:[%s4554_s2 + $0x160] sm:$0xff]  ;;  %v409_v41 = vld [vmem:[%s4554_s2 + $0x168] sm:$0xff]  ;;  %v2972_v43 = vcombine.low %v397_v32, %v401_v33  ;;  %s356_s14 = scalar_lea.vmem %s4552_s0, %s3186_s22  ;;  %s4415_s25 = scalar_lea.vmem %s4553_s1, %s3187_s24 }
  0x1c   : > { %v2979_v44 = vcombine.high %v404_v38, %v408_v39  ;;  %v2981_v45 = vcombine.high %v405_v40, %v409_v41  ;;  %v412_v46 = vld [vmem:[%s4554_s2 + $0x180] sm:$0xff]  ;;  %v413_v48 = vld [vmem:[%s4554_s2 + $0x188] sm:$0xff]  ;;  %v2978_v50 = vcombine.low %v404_v38, %v408_v39  ;;  %v2980_v51 = vcombine.low %v405_v40, %v409_v41  ;;  %s2791_s22 = scalar_lea.sflag [#allocation3], %s4427_s27  ;;  %s3421_s24 = scalar_lea.vmem %s4475_s16, 256 }
  0x1d   : > { %1190 = vmatpush1.bf16.msra.mxu0 %v2954_v26  ;;  %1231 = vmatpush1.bf16.msra.mxu1 %v2956_v27  ;;  %v416_v47 = vld [vmem:[%s4554_s2 + $0x1a0] sm:$0xff]  ;;  %v417_v49 = vld [vmem:[%s4554_s2 + $0x1a8] sm:$0xff]  ;;  %p3422_p11 = scmp.ne.s32.totalorder %s4475_s16, %s3421_s24 }
  0x1e   : > { %1191 = vmatprep.subr.bf16.mxu0 %v2963_v28  ;;  %1232 = vmatprep.subr.bf16.mxu1 %v2965_v29  ;;  %v2987_v52 = vcombine.high %v412_v46, %v416_v47  ;;  %v3712_v53 = vld.sshfl [vmem:[%s356_s14] sm:$0x33 pattern:$0x76325410]  ;;  %v2989_v54 = vcombine.high %v413_v48, %v417_v49  ;;  %v421_v58 = vld [vmem:[%s4554_s2 + $0x1c8] sm:$0xff]  ;;  %v2986_v60 = vcombine.low %v412_v46, %v416_v47  ;;  %s3188_s14 = sshll.u32 %s3593_s13, 8 }
  0x1f   : > { %v420_v55 = vld [vmem:[%s4554_s2 + $0x1c0] sm:$0xff]  ;;  %v3722_v57 = vcombine.high %v3712_v53, %v3712_v53  ;;  %v425_v59 = vld [vmem:[%s4554_s2 + $0x1e8] sm:$0xff]  ;;  %v2988_v61 = vcombine.low %v413_v48, %v417_v49  ;;  %s4473_s23 = scalar_lea.hbm %s4560_s8, %s3188_s14  ;;  %p3423_p12 = pnand %p3422_p11, %p3610_p5 }
  0x20   : > { %v424_v56 = vld [vmem:[%s4554_s2 + $0x1e0] sm:$0xff]  ;;  %v2997_v63 = vcombine.high %v421_v58, %v425_v59  ;;  %v429_v2 = vld [vmem:[%s4554_s2 + $0x208] sm:$0xff]  ;;  %v2996_v5 = vcombine.low %v421_v58, %v425_v59 }
  0x21   : > { %1192 = vmatpush1.bf16.msra.mxu0 %v2962_v34  ;;  %1233 = vmatpush1.bf16.msra.mxu1 %v2964_v35  ;;  %v2995_v62 = vcombine.high %v420_v55, %v424_v56  ;;  %v428_v0 = vld [vmem:[%s4554_s2 + $0x200] sm:$0xff]  ;;  %v433_v3 = vld [vmem:[%s4554_s2 + $0x228] sm:$0xff]  ;;  %v2994_v4 = vcombine.low %v420_v55, %v424_v56  ;;  %p3424_p13 = pneg %p3423_p12 }
  0x22   : > { %1193 = vmatprep.subr.bf16.mxu0 %v2971_v36  ;;  %1234 = vmatprep.subr.bf16.mxu1 %v2973_v37  ;;  %v432_v1 = vld [vmem:[%s4554_s2 + $0x220] sm:$0xff]  ;;  %v3005_v7 = vcombine.high %v429_v2, %v433_v3  ;;  %v437_v10 = vld [vmem:[%s4554_s2 + $0x248] sm:$0xff]  ;;  %v3004_v13 = vcombine.low %v429_v2, %v433_v3  ;;  %v367_v3 = vld [vmem:[%s4554_s2 + $0x18] sm:$0xff] }
  0x23   : > { %1217 = vmatprep.mubr.bf16.mxu0 %v3722_v57  ;;  %1258 = vmatprep.mubr.bf16.mxu1 %v3722_v57  ;;  %v3003_v6 = vcombine.high %v428_v0, %v432_v1  ;;  %v436_v8 = vld [vmem:[%s4554_s2 + $0x240] sm:$0xff]  ;;  %v441_v11 = vld [vmem:[%s4554_s2 + $0x268] sm:$0xff]  ;;  %v3002_v12 = vcombine.low %v428_v0, %v432_v1  ;;  %v370_v0 = vld [vmem:[%s4554_s2 + $0x30] sm:$0xff] }
  0x24   : > { %v440_v9 = vld [vmem:[%s4554_s2 + $0x260] sm:$0xff]  ;;  %v3013_v15 = vcombine.high %v437_v10, %v441_v11  ;;  %v445_v18 = vld [vmem:[%s4554_s2 + $0x288] sm:$0xff]  ;;  %v3012_v21 = vcombine.low %v437_v10, %v441_v11  ;;  %v375_v11 = vld [vmem:[%s4554_s2 + $0x58] sm:$0xff] }
  0x25   : > { %1194 = vmatpush1.bf16.msra.mxu0 %v2970_v42  ;;  %1235 = vmatpush1.bf16.msra.mxu1 %v2972_v43  ;;  %v3011_v14 = vcombine.high %v436_v8, %v440_v9  ;;  %v444_v16 = vld [vmem:[%s4554_s2 + $0x280] sm:$0xff]  ;;  %v449_v19 = vld [vmem:[%s4554_s2 + $0x2a8] sm:$0xff]  ;;  %v3010_v20 = vcombine.low %v436_v8, %v440_v9  ;;  %v378_v8 = vld [vmem:[%s4554_s2 + $0x70] sm:$0xff] }
  0x26   : > { %1195 = vmatprep.subr.bf16.mxu0 %v2979_v44  ;;  %1236 = vmatprep.subr.bf16.mxu1 %v2981_v45  ;;  %v448_v17 = vld [vmem:[%s4554_s2 + $0x2a0] sm:$0xff]  ;;  %v3021_v23 = vcombine.high %v445_v18, %v449_v19  ;;  %v453_v26 = vld [vmem:[%s4554_s2 + $0x2c8] sm:$0xff]  ;;  %v3020_v29 = vcombine.low %v445_v18, %v449_v19  ;;  %v383_v19 = vld [vmem:[%s4554_s2 + $0x98] sm:$0xff] }
  0x27   : > { %v3019_v22 = vcombine.high %v444_v16, %v448_v17  ;;  %v452_v24 = vld [vmem:[%s4554_s2 + $0x2c0] sm:$0xff]  ;;  %v457_v27 = vld [vmem:[%s4554_s2 + $0x2e8] sm:$0xff]  ;;  %v3018_v28 = vcombine.low %v444_v16, %v448_v17  ;;  %v386_v16 = vld [vmem:[%s4554_s2 + $0xb0] sm:$0xff] }
  0x28   : > { %v456_v25 = vld [vmem:[%s4554_s2 + $0x2e0] sm:$0xff]  ;;  %v3029_v31 = vcombine.high %v453_v26, %v457_v27  ;;  %v461_v34 = vld [vmem:[%s4554_s2 + $0x308] sm:$0xff]  ;;  %v3028_v38 = vcombine.low %v453_v26, %v457_v27  ;;  %v391_v27 = vld [vmem:[%s4554_s2 + $0xd8] sm:$0xff] }
  0x29   : > { %1196 = vmatpush1.bf16.msra.mxu0 %v2978_v50  ;;  %1237 = vmatpush1.bf16.msra.mxu1 %v2980_v51  ;;  %v3027_v30 = vcombine.high %v452_v24, %v456_v25  ;;  %v460_v32 = vld [vmem:[%s4554_s2 + $0x300] sm:$0xff]  ;;  %v465_v35 = vld [vmem:[%s4554_s2 + $0x328] sm:$0xff]  ;;  %v3026_v36 = vcombine.low %v452_v24, %v456_v25  ;;  %v394_v24 = vld [vmem:[%s4554_s2 + $0xf0] sm:$0xff] }
  0x2a   : > { %1197 = vmatprep.subr.bf16.mxu0 %v2987_v52  ;;  %1238 = vmatprep.subr.bf16.mxu1 %v2989_v54  ;;  %v464_v33 = vld [vmem:[%s4554_s2 + $0x320] sm:$0xff]  ;;  %v3037_v41 = vcombine.high %v461_v34, %v465_v35  ;;  %v469_v42 = vld [vmem:[%s4554_s2 + $0x348] sm:$0xff]  ;;  %v3036_v46 = vcombine.low %v461_v34, %v465_v35  ;;  %v399_v35 = vld [vmem:[%s4554_s2 + $0x118] sm:$0xff] }
  0x2b   : > { %v468_v37 = vld [vmem:[%s4554_s2 + $0x340] sm:$0xff]  ;;  %v3035_v39 = vcombine.high %v460_v32, %v464_v33  ;;  %v473_v43 = vld [vmem:[%s4554_s2 + $0x368] sm:$0xff]  ;;  %v3034_v44 = vcombine.low %v460_v32, %v464_v33  ;;  %v402_v32 = vld [vmem:[%s4554_s2 + $0x130] sm:$0xff] }
  0x2c   : > { %v472_v40 = vld [vmem:[%s4554_s2 + $0x360] sm:$0xff]  ;;  %v3045_v49 = vcombine.high %v469_v42, %v473_v43  ;;  %v477_v50 = vld [vmem:[%s4554_s2 + $0x388] sm:$0xff]  ;;  %v3044_v55 = vcombine.low %v469_v42, %v473_v43  ;;  %v407_v42 = vld [vmem:[%s4554_s2 + $0x158] sm:$0xff] }
  0x2d   : > { %1198 = vmatpush1.bf16.msra.mxu0 %v2986_v60  ;;  %1239 = vmatpush1.bf16.msra.mxu1 %v2988_v61  ;;  %v476_v45 = vld [vmem:[%s4554_s2 + $0x380] sm:$0xff]  ;;  %v3043_v47 = vcombine.high %v468_v37, %v472_v40  ;;  %v481_v51 = vld [vmem:[%s4554_s2 + $0x3a8] sm:$0xff]  ;;  %v3042_v52 = vcombine.low %v468_v37, %v472_v40  ;;  %v411_v43 = vld [vmem:[%s4554_s2 + $0x178] sm:$0xff] }
  0x2e   : > { %1199 = vmatprep.subr.bf16.mxu0 %v2995_v62  ;;  %1240 = vmatprep.subr.bf16.mxu1 %v2997_v63  ;;  %v480_v48 = vld [vmem:[%s4554_s2 + $0x3a0] sm:$0xff]  ;;  %v3053_v59 = vcombine.high %v477_v50, %v481_v51  ;;  %v485_v60 = vld [vmem:[%s4554_s2 + $0x3c8] sm:$0xff]  ;;  %v366_v63 = vld [vmem:[%s4554_s2 + $0x10] sm:$0xff]  ;;  %v3052_v1 = vcombine.low %v477_v50, %v481_v51 }
  0x2f   : > { %v484_v54 = vld [vmem:[%s4554_s2 + $0x3c0] sm:$0xff]  ;;  %v3051_v56 = vcombine.high %v476_v45, %v480_v48  ;;  %v489_v61 = vld [vmem:[%s4554_s2 + $0x3e8] sm:$0xff]  ;;  %v3050_v62 = vcombine.low %v476_v45, %v480_v48  ;;  %v2943_v10 = vcombine.high %v366_v63, %v370_v0  ;;  %v415_v50 = vld [vmem:[%s4554_s2 + $0x198] sm:$0xff] }
  0x30   : > { %v488_v58 = vld [vmem:[%s4554_s2 + $0x3e0] sm:$0xff]  ;;  %v3060_v9 = vcombine.low %v485_v60, %v489_v61  ;;  %v419_v51 = vld [vmem:[%s4554_s2 + $0x1b8] sm:$0xff] }
  0x31   : > { %1200 = vmatpush1.bf16.msra.mxu0 %v2994_v4  ;;  %1241 = vmatpush1.bf16.msra.mxu1 %v2996_v5  ;;  %v3059_v2 = vcombine.high %v484_v54, %v488_v58  ;;  %v371_v4 = vld [vmem:[%s4554_s2 + $0x38] sm:$0xff]  ;;  %v3061_v5 = vcombine.high %v485_v60, %v489_v61 }
  0x32   : > { %1201 = vmatprep.subr.bf16.mxu0 %v3003_v6  ;;  %1242 = vmatprep.subr.bf16.mxu1 %v3005_v7  ;;  %v3058_v6 = vcombine.low %v484_v54, %v488_v58  ;;  %v374_v7 = vld [vmem:[%s4554_s2 + $0x50] sm:$0xff]  ;;  %v2944_v17 = vcombine.low %v367_v3, %v371_v4  ;;  %v2984_v58 = vcombine.low %v407_v42, %v411_v43  ;;  %v423_v60 = vld [vmem:[%s4554_s2 + $0x1d8] sm:$0xff] }
  0x33   : > { %v2951_v18 = vcombine.high %v374_v7, %v378_v8  ;;  %v427_v61 = vld [vmem:[%s4554_s2 + $0x1f8] sm:$0xff] }
  0x35   : > { %1202 = vmatpush1.bf16.msra.mxu0 %v3002_v12  ;;  %1243 = vmatpush1.bf16.msra.mxu1 %v3004_v13  ;;  %v379_v12 = vld [vmem:[%s4554_s2 + $0x78] sm:$0xff]  ;;  %v2945_v13 = vcombine.high %v367_v3, %v371_v4  ;;  %v430_v3 = vld [vmem:[%s4554_s2 + $0x210] sm:$0xff] }
  0x36   : > { %1203 = vmatprep.subr.bf16.mxu0 %v3011_v14  ;;  %1244 = vmatprep.subr.bf16.mxu1 %v3013_v15  ;;  %v2942_v14 = vcombine.low %v366_v63, %v370_v0  ;;  %v382_v15 = vld [vmem:[%s4554_s2 + $0x90] sm:$0xff]  ;;  %v2952_v25 = vcombine.low %v375_v11, %v379_v12  ;;  %v2992_v0 = vcombine.low %v415_v50, %v419_v51 }
  0x37   : > { %v2959_v26 = vcombine.high %v382_v15, %v386_v16  ;;  %v434_v4 = vld [vmem:[%s4554_s2 + $0x230] sm:$0xff] }
  0x39   : > { %1204 = vmatpush1.bf16.msra.mxu0 %v3010_v20  ;;  %1245 = vmatpush1.bf16.msra.mxu1 %v3012_v21  ;;  %v387_v20 = vld [vmem:[%s4554_s2 + $0xb8] sm:$0xff]  ;;  %v2953_v21 = vcombine.high %v375_v11, %v379_v12  ;;  %v438_v11 = vld [vmem:[%s4554_s2 + $0x250] sm:$0xff] }
  0x3a   : > { %1205 = vmatprep.subr.bf16.mxu0 %v3019_v22  ;;  %1246 = vmatprep.subr.bf16.mxu1 %v3021_v23  ;;  %v2950_v22 = vcombine.low %v374_v7, %v378_v8  ;;  %v390_v23 = vld [vmem:[%s4554_s2 + $0xd0] sm:$0xff]  ;;  %v2960_v33 = vcombine.low %v383_v19, %v387_v20  ;;  %v3000_v8 = vcombine.low %v423_v60, %v427_v61 }
  0x3b   : > { %v2967_v34 = vcombine.high %v390_v23, %v394_v24  ;;  %v2966_v37 = vcombine.low %v390_v23, %v394_v24  ;;  %v442_v12 = vld [vmem:[%s4554_s2 + $0x270] sm:$0xff] }
  0x3c   : > { %v3014_v23 = vcombine.low %v438_v11, %v442_v12 }
  0x3d   : > { %1206 = vmatpush1.bf16.msra.mxu0 %v3018_v28  ;;  %1247 = vmatpush1.bf16.msra.mxu1 %v3020_v29  ;;  %v395_v28 = vld [vmem:[%s4554_s2 + $0xf8] sm:$0xff]  ;;  %v2961_v29 = vcombine.high %v383_v19, %v387_v20  ;;  %v446_v19 = vld [vmem:[%s4554_s2 + $0x290] sm:$0xff] }
  0x3e   : > { %1207 = vmatprep.subr.bf16.mxu0 %v3027_v30  ;;  %1248 = vmatprep.subr.bf16.mxu1 %v3029_v31  ;;  %v2958_v30 = vcombine.low %v382_v15, %v386_v16  ;;  %v398_v31 = vld [vmem:[%s4554_s2 + $0x110] sm:$0xff]  ;;  %v2968_v40 = vcombine.low %v391_v27, %v395_v28  ;;  %v3006_v15 = vcombine.low %v430_v3, %v434_v4 }
  0x3f   : > { %v2974_v45 = vcombine.low %v398_v31, %v402_v32  ;;  %v450_v20 = vld [vmem:[%s4554_s2 + $0x2b0] sm:$0xff] }
  0x41   : > { %1208 = vmatpush1.bf16.msra.mxu0 %v3026_v36  ;;  %1249 = vmatpush1.bf16.msra.mxu1 %v3028_v38  ;;  %v2969_v36 = vcombine.high %v391_v27, %v395_v28  ;;  %v406_v38 = vld [vmem:[%s4554_s2 + $0x150] sm:$0xff] }
  0x42   : > { %1209 = vmatprep.subr.bf16.mxu0 %v3035_v39  ;;  %1250 = vmatprep.subr.bf16.mxu1 %v3037_v41  ;;  %v410_v39 = vld [vmem:[%s4554_s2 + $0x170] sm:$0xff]  ;;  %v2975_v41 = vcombine.high %v398_v31, %v402_v32  ;;  %v3022_v31 = vcombine.low %v446_v19, %v450_v20 }
  0x43   : > { %v2982_v54 = vcombine.low %v406_v38, %v410_v39  ;;  %v454_v27 = vld [vmem:[%s4554_s2 + $0x2d0] sm:$0xff] }
  0x44   : > { %v458_v28 = vld [vmem:[%s4554_s2 + $0x2f0] sm:$0xff] }
  0x45   : > { %1210 = vmatpush1.bf16.msra.mxu0 %v3034_v44  ;;  %1251 = vmatpush1.bf16.msra.mxu1 %v3036_v46  ;;  %v414_v46 = vld [vmem:[%s4554_s2 + $0x190] sm:$0xff] }
  0x46   : > { %1211 = vmatprep.subr.bf16.mxu0 %v3043_v47  ;;  %1252 = vmatprep.subr.bf16.mxu1 %v3045_v49  ;;  %v418_v47 = vld [vmem:[%s4554_s2 + $0x1b0] sm:$0xff]  ;;  %v2983_v49 = vcombine.high %v406_v38, %v410_v39  ;;  %v3030_v38 = vcombine.low %v454_v27, %v458_v28 }
  0x47   : > { %v2990_v63 = vcombine.low %v414_v46, %v418_v47 }
  0x49   : > { %1212 = vmatpush1.bf16.msra.mxu0 %v3042_v52  ;;  %1253 = vmatpush1.bf16.msra.mxu1 %v3044_v55  ;;  %v2985_v52 = vcombine.high %v407_v42, %v411_v43  ;;  %v422_v55 = vld [vmem:[%s4554_s2 + $0x1d0] sm:$0xff] }
  0x4a   : > { %1213 = vmatprep.subr.bf16.mxu0 %v3051_v56  ;;  %1254 = vmatprep.subr.bf16.mxu1 %v3053_v59  ;;  %v426_v56 = vld [vmem:[%s4554_s2 + $0x1f0] sm:$0xff]  ;;  %v2991_v59 = vcombine.high %v414_v46, %v418_v47 }
  0x4b   : > { %v2998_v7 = vcombine.low %v422_v55, %v426_v56  ;;  %v470_v42 = vld [vmem:[%s4554_s2 + $0x350] sm:$0xff] }
  0x4c   : > { %v474_v43 = vld [vmem:[%s4554_s2 + $0x370] sm:$0xff] }
  0x4d   : > { %1214 = vmatpush1.bf16.msra.mxu0 %v3050_v62  ;;  %1255 = vmatpush1.bf16.msra.mxu1 %v3052_v1  ;;  %v2993_v62 = vcombine.high %v415_v50, %v419_v51  ;;  %v2999_v1 = vcombine.high %v422_v55, %v426_v56  ;;  %v478_v50 = vld [vmem:[%s4554_s2 + $0x390] sm:$0xff]  ;;  %v3046_v55 = vcombine.low %v470_v42, %v474_v43 }
  0x4e   : > { %1215 = vmatprep.subr.bf16.mxu0 %v3059_v2  ;;  %1256 = vmatprep.subr.bf16.mxu1 %v3061_v5  ;;  %v3001_v2 = vcombine.high %v423_v60, %v427_v61  ;;  %v431_v5 = vld [vmem:[%s4554_s2 + $0x218] sm:$0xff]  ;;  %v482_v51 = vld [vmem:[%s4554_s2 + $0x3b0] sm:$0xff] }
  0x4f   : > { %v486_v60 = vld [vmem:[%s4554_s2 + $0x3d0] sm:$0xff] }
  0x50   : > { %v490_v61 = vld [vmem:[%s4554_s2 + $0x3f0] sm:$0xff] }
  0x51   : > { %1216 = vmatpush1.bf16.msra.mxu0 %v3058_v6  ;;  %1257 = vmatpush1.bf16.msra.mxu1 %v3060_v9  ;;  %v435_v6 = vld [vmem:[%s4554_s2 + $0x238] sm:$0xff]  ;;  %v3007_v9 = vcombine.high %v430_v3, %v434_v4  ;;  %v3062_v4 = vcombine.low %v486_v60, %v490_v61 }
  0x52   : > { %1267 = vmatprep.subr.bf16.mxu0 %v2943_v10  ;;  %1308 = vmatprep.subr.bf16.mxu1 %v2945_v13  ;;  %v3009_v10 = vcombine.high %v431_v5, %v435_v6  ;;  %v439_v13 = vld [vmem:[%s4554_s2 + $0x258] sm:$0xff]  ;;  %v3008_v16 = vcombine.low %v431_v5, %v435_v6  ;;  %v3325_v6 = vld [vmem:[%s4556_s4 + $0x40] sm:$0xff]  }
  0x54   : > { %1218 = vmatmul.mubr.bf16.vlgmr.msra.gmra.mrb[0].mxu0 %v3712_v53  ;;  %1259 = vmatmul.mubr.bf16.vlgmr.msra.gmra.mrb[0].mxu1 %v3712_v53 }
  0x55   : > { %1268 = vmatpush1.bf16.msra.mxu0 %v2942_v14  ;;  %1309 = vmatpush1.bf16.msra.mxu1 %v2944_v17  ;;  %v443_v14 = vld [vmem:[%s4554_s2 + $0x278] sm:$0xff]  ;;  %v3015_v17 = vcombine.high %v438_v11, %v442_v12  ;;  %v3330_v11 = vld [vmem:[%s4556_s4 + $0xc8] sm:$0xff]  }
  0x56   : > { %1269 = vmatprep.subr.bf16.mxu0 %v2951_v18  ;;  %1310 = vmatprep.subr.bf16.mxu1 %v2953_v21  ;;  %v3017_v18 = vcombine.high %v439_v13, %v443_v14  ;;  %v447_v21 = vld [vmem:[%s4554_s2 + $0x298] sm:$0xff]  ;;  %v3016_v24 = vcombine.low %v439_v13, %v443_v14  ;;  %v3331_v12 = vld [vmem:[%s4556_s4 + $0x8] sm:$0xff]   ;;  %v3333_v14 = vld [vmem:[%s4556_s4 + $0x50] sm:$0xff]  }
  0x57   : > { %1299 = vmatprep.mubr.bf16.mxu0 %v3722_v57  ;;  %1340 = vmatprep.mubr.bf16.mxu1 %v3722_v57  ;;  %v403_v57 = vld [vmem:[%s4554_s2 + $0x138] sm:$0xff]  ;;  %v3332_v13 = vld [vmem:[%s4556_s4 + $0x88] sm:$0xff]  }
  0x58   : > { %v2977_v44 = vcombine.high %v399_v35, %v403_v57  ;;  %v2976_v48 = vcombine.low %v399_v35, %v403_v57  ;;  %v462_v35 = vld [vmem:[%s4554_s2 + $0x310] sm:$0xff] }
  0x59   : > { %1270 = vmatpush1.bf16.msra.mxu0 %v2950_v22  ;;  %1311 = vmatpush1.bf16.msra.mxu1 %v2952_v25  ;;  %v451_v22 = vld [vmem:[%s4554_s2 + $0x2b8] sm:$0xff]  ;;  %v3023_v25 = vcombine.high %v446_v19, %v450_v20  ;;  %v466_v57 = vld [vmem:[%s4554_s2 + $0x330] sm:$0xff] }
  0x5a   : > { %1271 = vmatprep.subr.bf16.mxu0 %v2959_v26  ;;  %1312 = vmatprep.subr.bf16.mxu1 %v2961_v29  ;;  %v3025_v26 = vcombine.high %v447_v21, %v451_v22  ;;  %v455_v29 = vld [vmem:[%s4554_s2 + $0x2d8] sm:$0xff]  ;;  %v3024_v32 = vcombine.low %v447_v21, %v451_v22  ;;  %v3038_v46 = vcombine.low %v462_v35, %v466_v57  ;;  %v3341_v21 = vld [vmem:[%s4556_s4 + $0x60] sm:$0xff]  }
  0x5b   : > { %v3339_v19 = vld [vmem:[%s4556_s4 + $0x18] sm:$0xff]   ;;  %v3342_v22 = vld [vmem:[%s4556_s4 + $0xe0] sm:$0xff]  }
  0x5c   : > { %v3340_v20 = vld [vmem:[%s4556_s4 + $0x98] sm:$0xff]  }
  0x5d   : > { %1272 = vmatpush1.bf16.msra.mxu0 %v2958_v30  ;;  %1313 = vmatpush1.bf16.msra.mxu1 %v2960_v33  ;;  %v459_v30 = vld [vmem:[%s4554_s2 + $0x2f8] sm:$0xff]  ;;  %v3031_v33 = vcombine.high %v454_v27, %v458_v28  ;;  %v3347_v27 = vld [vmem:[%s4556_s4 + $0x28] sm:$0xff]  }
  0x5e   : > { %1273 = vmatprep.subr.bf16.mxu0 %v2967_v34  ;;  %1314 = vmatprep.subr.bf16.mxu1 %v2969_v36  ;;  %v3033_v34 = vcombine.high %v455_v29, %v459_v30  ;;  %v463_v36 = vld [vmem:[%s4554_s2 + $0x318] sm:$0xff]  ;;  %v3032_v39 = vcombine.low %v455_v29, %v459_v30  ;;  %v3348_v28 = vld [vmem:[%s4556_s4 + $0xa8] sm:$0xff]   ;;  %v3349_v29 = vld [vmem:[%s4556_s4 + $0x70] sm:$0xff]  }
  0x5f   : > { %v3350_v30 = vld [vmem:[%s4556_s4 + $0xf0] sm:$0xff]  }
  0x61   : > { %1274 = vmatpush1.bf16.msra.mxu0 %v2966_v37  ;;  %1315 = vmatpush1.bf16.msra.mxu1 %v2968_v40  ;;  %v467_v37 = vld [vmem:[%s4554_s2 + $0x338] sm:$0xff]  ;;  %v3039_v40 = vcombine.high %v462_v35, %v466_v57 }
  0x62   : > { %1275 = vmatprep.subr.bf16.mxu0 %v2975_v41  ;;  %1316 = vmatprep.subr.bf16.mxu1 %v2977_v44  ;;  %v3041_v41 = vcombine.high %v463_v36, %v467_v37  ;;  %v471_v44 = vld [vmem:[%s4554_s2 + $0x358] sm:$0xff]  ;;  %v3040_v47 = vcombine.low %v463_v36, %v467_v37  ;;  %v3357_v36 = vld [vmem:[%s4556_s4 + $0x140] sm:$0xff]  }
  0x63   : > { %v3355_v35 = vld [vmem:[%s4556_s4 + $0x38] sm:$0xff]   ;;  %v3358_v37 = vld [vmem:[%s4556_s4 + $0x1c0] sm:$0xff]  }
  0x64   : > { %v3356_v57 = vld [vmem:[%s4556_s4 + $0xb8] sm:$0xff]  }
  0x65   : > { %1276 = vmatpush1.bf16.msra.mxu0 %v2974_v45  ;;  %1317 = vmatpush1.bf16.msra.mxu1 %v2976_v48  ;;  %v475_v45 = vld [vmem:[%s4554_s2 + $0x378] sm:$0xff]  ;;  %v3047_v48 = vcombine.high %v470_v42, %v474_v43 }
  0x66   : > { %1277 = vmatprep.subr.bf16.mxu0 %v2983_v49  ;;  %1318 = vmatprep.subr.bf16.mxu1 %v2985_v52  ;;  %v3049_v49 = vcombine.high %v471_v44, %v475_v45  ;;  %v479_v52 = vld [vmem:[%s4554_s2 + $0x398] sm:$0xff]  ;;  %v3048_v56 = vcombine.low %v471_v44, %v475_v45 }
  0x69   : > { %1278 = vmatpush1.bf16.msra.mxu0 %v2982_v54  ;;  %1319 = vmatpush1.bf16.msra.mxu1 %v2984_v58  ;;  %v483_v54 = vld [vmem:[%s4554_s2 + $0x3b8] sm:$0xff]  ;;  %v3055_v58 = vcombine.high %v478_v50, %v482_v51 }
  0x6a   : > { %1279 = vmatprep.subr.bf16.mxu0 %v2991_v59  ;;  %1320 = vmatprep.subr.bf16.mxu1 %v2993_v62  ;;  %v3057_v59 = vcombine.high %v479_v52, %v483_v54  ;;  %v487_v62 = vld [vmem:[%s4554_s2 + $0x3d8] sm:$0xff] }
  0x6d   : > { %1280 = vmatpush1.bf16.msra.mxu0 %v2990_v63  ;;  %1321 = vmatpush1.bf16.msra.mxu1 %v2992_v0  ;;  %v491_v63 = vld [vmem:[%s4554_s2 + $0x3f8] sm:$0xff]  ;;  %v3054_v0 = vcombine.low %v478_v50, %v482_v51 }
  0x6e   : > { %1281 = vmatprep.subr.bf16.mxu0 %v2999_v1  ;;  %1322 = vmatprep.subr.bf16.mxu1 %v3001_v2  ;;  %v3056_v1 = vcombine.low %v479_v52, %v483_v54  ;;  %v3063_v2 = vcombine.high %v486_v60, %v490_v61  ;;  %v3065_v3 = vcombine.high %v487_v62, %v491_v63 }
  0x6f   : > { %v3064_v5 = vcombine.low %v487_v62, %v491_v63 }
  0x71   : > { %1282 = vmatpush1.bf16.msra.mxu0 %v2998_v7  ;;  %1323 = vmatpush1.bf16.msra.mxu1 %v3000_v8  ;;  %v3326_v7 = vld [vmem:[%s4556_s4 + $0xc0] sm:$0xff]  }
  0x72   : > { %1283 = vmatprep.subr.bf16.mxu0 %v3007_v9  ;;  %1324 = vmatprep.subr.bf16.mxu1 %v3009_v10  ;;  %v3327_v8 = vld [vmem:[%s4556_s4] sm:$0xff]   ;;  %v3329_v10 = vld [vmem:[%s4556_s4 + $0x48] sm:$0xff]  }
  0x73   : > { %v3328_v9 = vld [vmem:[%s4556_s4 + $0x80] sm:$0xff]  }
  0x75   : > { %1284 = vmatpush1.bf16.msra.mxu0 %v3006_v15  ;;  %1325 = vmatpush1.bf16.msra.mxu1 %v3008_v16  ;;  %v3335_v15 = vld [vmem:[%s4556_s4 + $0x10] sm:$0xff]  }
  0x76   : > { %1285 = vmatprep.subr.bf16.mxu0 %v3015_v17  ;;  %1326 = vmatprep.subr.bf16.mxu1 %v3017_v18  ;;  %v3336_v16 = vld [vmem:[%s4556_s4 + $0x90] sm:$0xff]   ;;  %v3337_v17 = vld [vmem:[%s4556_s4 + $0x58] sm:$0xff]  }
  0x77   : > { %v3338_v18 = vld [vmem:[%s4556_s4 + $0xd8] sm:$0xff]  }
  0x79   : > { %1286 = vmatpush1.bf16.msra.mxu0 %v3014_v23  ;;  %1327 = vmatpush1.bf16.msra.mxu1 %v3016_v24  ;;  %v3343_v23 = vld [vmem:[%s4556_s4 + $0x20] sm:$0xff]  }
  0x7a   : > { %1287 = vmatprep.subr.bf16.mxu0 %v3023_v25  ;;  %1328 = vmatprep.subr.bf16.mxu1 %v3025_v26  ;;  %v3344_v24 = vld [vmem:[%s4556_s4 + $0xa0] sm:$0xff]   ;;  %v3345_v25 = vld [vmem:[%s4556_s4 + $0x68] sm:$0xff]  }
  0x7b   : > { %v3346_v26 = vld [vmem:[%s4556_s4 + $0xe8] sm:$0xff]  }
  0x7d   : > { %1288 = vmatpush1.bf16.msra.mxu0 %v3022_v31  ;;  %1329 = vmatpush1.bf16.msra.mxu1 %v3024_v32  ;;  %v3351_v31 = vld [vmem:[%s4556_s4 + $0x30] sm:$0xff]  }
  0x7e   : > { %1289 = vmatprep.subr.bf16.mxu0 %v3031_v33  ;;  %1330 = vmatprep.subr.bf16.mxu1 %v3033_v34  ;;  %v3352_v32 = vld [vmem:[%s4556_s4 + $0xb0] sm:$0xff]   ;;  %v3353_v33 = vld [vmem:[%s4556_s4 + $0x78] sm:$0xff]  }
  0x7f   : > { %v3354_v34 = vld [vmem:[%s4556_s4 + $0xf8] sm:$0xff]  }
  0x81   : > { %1290 = vmatpush1.bf16.msra.mxu0 %v3030_v38  ;;  %1331 = vmatpush1.bf16.msra.mxu1 %v3032_v39  ;;  %v494_v38 = vlaneseq }
  0x82   : > { %1291 = vmatprep.subr.bf16.mxu0 %v3039_v40  ;;  %1332 = vmatprep.subr.bf16.mxu1 %v3041_v41  ;;  %v4136_v41 = vld [vmem:[%s4555_s3] sm:$0xff] }
  0x83   : > { %v4128_v39 = vshrl.u32 %v494_v38, 7  ;;  %v3364_v38 = vld [vmem:[%s4556_s4 + $0x188] sm:$0xff]  }
  0x85   : > { %1292 = vmatpush1.bf16.msra.mxu0 %v3038_v46  ;;  %1333 = vmatpush1.bf16.msra.mxu1 %v3040_v47  ;;  %v4131_v40 = vsub.s32 0, %v4128_v39  ;;  %v504_v42 = vsub.s32 2, %v4128_v39  ;;  %v500_v43 = vsub.s32 1, %v4128_v39  ;;  %v508_v44 = vsub.s32 3, %v4128_v39 }
  0x86   : > { %1293 = vmatprep.subr.bf16.mxu0 %v3047_v48  ;;  %1334 = vmatprep.subr.bf16.mxu1 %v3049_v49 }
  0x87   : > { %v497_v45 = vrot.slane %v4136_v41, %v4131_v40  ;;  %v505_v46 = vrot.slane %v4136_v41, %v504_v42  ;;  %v501_v47 = vrot.slane %v4136_v41, %v500_v43  ;;  %v509_v48 = vrot.slane %v4136_v41, %v508_v44 }
  0x89   : > { %1294 = vmatpush1.bf16.msra.mxu0 %v3046_v55  ;;  %1335 = vmatpush1.bf16.msra.mxu1 %v3048_v56 }
  0x8a   : > { %1295 = vmatprep.subr.bf16.mxu0 %v3055_v58  ;;  %1336 = vmatprep.subr.bf16.mxu1 %v3057_v59 }
  0x8d   : > { %1296 = vmatpush1.bf16.msra.mxu0 %v3054_v0  ;;  %1337 = vmatpush1.bf16.msra.mxu1 %v3056_v1 }
  0x8e   : > { %1297 = vmatprep.subr.bf16.mxu0 %v3063_v2  ;;  %1338 = vmatprep.subr.bf16.mxu1 %v3065_v3 }
  0x91   : > { %1298 = vmatpush1.bf16.msra.mxu0 %v3062_v4  ;;  %1339 = vmatpush1.bf16.msra.mxu1 %v3064_v5 }
  0x92   : > { %3190 = vmatprep.subr.bf16.mxu0 %v3325_v6  ;;  %3212 = vmatprep.subr.bf16.mxu1 %v3326_v7 }
  0x94   : > { %1300 = vmatmul.mubr.bf16.vlgmr.msra.gmra.mrb[4].mxu0 %v3712_v53  ;;  %1341 = vmatmul.mubr.bf16.vlgmr.msra.gmra.mrb[4].mxu1 %v3712_v53  ;;  %v3334_v53 = vld [vmem:[%s4556_s4 + $0xd0] sm:$0xff]  }
  0x95   : > { %3191 = vmatpush3.bf16.msra.mxu0 %v3327_v8  ;;  %3213 = vmatpush3.bf16.msra.mxu1 %v3328_v9 }
  0x96   : > { %3192 = vmatprep.subr.bf16.mxu0 %v3329_v10  ;;  %3214 = vmatprep.subr.bf16.mxu1 %v3330_v11 }
  0x99   : > { %3193 = vmatpush3.bf16.msra.mxu0 %v3331_v12  ;;  %3215 = vmatpush3.bf16.msra.mxu1 %v3332_v13 }
  0x9a   : > { %3194 = vmatprep.subr.bf16.mxu0 %v3333_v14  ;;  %3216 = vmatprep.subr.bf16.mxu1 %v3334_v53 }
  0x9d   : > { %3195 = vmatpush3.bf16.msra.mxu0 %v3335_v15  ;;  %3217 = vmatpush3.bf16.msra.mxu1 %v3336_v16 }
  0x9e   : > { %3196 = vmatprep.subr.bf16.mxu0 %v3337_v17  ;;  %3218 = vmatprep.subr.bf16.mxu1 %v3338_v18 }
  0xa1   : > { %3197 = vmatpush3.bf16.msra.mxu0 %v3339_v19  ;;  %3219 = vmatpush3.bf16.msra.mxu1 %v3340_v20 }
  0xa2   : > { %3198 = vmatprep.subr.bf16.mxu0 %v3341_v21  ;;  %3220 = vmatprep.subr.bf16.mxu1 %v3342_v22 }
  0xa5   : > { %3199 = vmatpush3.bf16.msra.mxu0 %v3343_v23  ;;  %3221 = vmatpush3.bf16.msra.mxu1 %v3344_v24 }
  0xa6   : > { %3200 = vmatprep.subr.bf16.mxu0 %v3345_v25  ;;  %3222 = vmatprep.subr.bf16.mxu1 %v3346_v26 }
  0xa9   : > { %3201 = vmatpush3.bf16.msra.mxu0 %v3347_v27  ;;  %3223 = vmatpush3.bf16.msra.mxu1 %v3348_v28 }
  0xaa   : > { %3202 = vmatprep.subr.bf16.mxu0 %v3349_v29  ;;  %3224 = vmatprep.subr.bf16.mxu1 %v3350_v30 }
  0xad   : > { %3203 = vmatpush3.bf16.msra.mxu0 %v3351_v31  ;;  %3225 = vmatpush3.bf16.msra.mxu1 %v3352_v32  ;;  %v3359_v31 = vld [vmem:[%s4556_s4 + $0x100] sm:$0xff]  }
  0xae   : > { %3204 = vmatprep.subr.bf16.mxu0 %v3353_v33  ;;  %3226 = vmatprep.subr.bf16.mxu1 %v3354_v34  ;;  %v3360_v34 = vld [vmem:[%s4556_s4 + $0x180] sm:$0xff]  }
  0xb1   : > { %3205 = vmatpush3.bf16.msra.mxu0 %v3355_v35  ;;  %3227 = vmatpush3.bf16.msra.mxu1 %v3356_v57  ;;  %v3361_v35 = vld [vmem:[%s4556_s4 + $0x148] sm:$0xff]  }
  0xb2   : > { %3234 = vmatprep.subr.bf16.mxu0 %v3357_v36  ;;  %3256 = vmatprep.subr.bf16.mxu1 %v3358_v37  ;;  %v3362_v36 = vld [vmem:[%s4556_s4 + $0x1c8] sm:$0xff]  }
  0xb3   : > { %v3363_v37 = vld [vmem:[%s4556_s4 + $0x108] sm:$0xff]  }
 0x127   : > { %v1219_v49 = vpop.f32.mrb[0].mxu0  ;;  %v1260_v51 = vpop.f32.mrb[0].mxu1 }
 0x128   : > { %v4152_v50 = vadd.f32 %v1219_v49, %v497_v45  ;;  %v1221_v52 = vpop.f32.mrb[1].mxu0  ;;  %v4154_v54 = vadd.f32 %v1260_v51, %v505_v46  ;;  %v1262_v56 = vpop.f32.mrb[1].mxu1  ;;  %v3365_v45 = vld [vmem:[%s4556_s4 + $0x150] sm:$0xff]   ;;  %v3369_v49 = vld [vmem:[%s4556_s4 + $0x158] sm:$0xff]  }
 0x129   : > { %v4156_v55 = vadd.f32 %v1221_v52, %v501_v47  ;;  %v1223_v58 = vpop.f32.mrb[2].mxu0  ;;  %v4160_v60 = vadd.f32 %v1262_v56, %v509_v48  ;;  %v1264_v61 = vpop.f32.mrb[2].mxu1  ;;  %v3366_v46 = vld [vmem:[%s4556_s4 + $0x1d0] sm:$0xff]   ;;  %v3370_v51 = vld [vmem:[%s4556_s4 + $0x1d8] sm:$0xff]  }
 0x12a   : > { %v1350_v59 = vsel %vm1349_vm0, %v4152_v50, 0.0  ;;  %v1224_v62 = vpop.f32.mrb[3].mxu0  ;;  %v1364_v0 = vsel %vm1349_vm0, %v4154_v54, 0.0  ;;  %v1265_v2 = vpop.f32.mrb[3].mxu1  ;;  %v3367_v47 = vld [vmem:[%s4556_s4 + $0x110] sm:$0xff]   ;;  %v3371_v52 = vld [vmem:[%s4556_s4 + $0x118] sm:$0xff]  }
 0x12b   : > { %v1351_v63 = vrot.slane %v1350_v59, 4  ;;  %v1357_v1 = vsel %vm1349_vm0, %v4156_v55, 0.0  ;;  %v1365_v3 = vrot.slane %v1364_v0, 4  ;;  %v1371_v5 = vsel %vm1349_vm0, %v4160_v60, 0.0  ;;  %v3368_v48 = vld [vmem:[%s4556_s4 + $0x190] sm:$0xff]   ;;  %v3372_v56 = vld [vmem:[%s4556_s4 + $0x198] sm:$0xff]  }
 0x12c   : > { %v1358_v4 = vrot.slane %v1357_v1, 4  ;;  %v1372_v7 = vrot.slane %v1371_v5, 4  ;;  %v3373_v58 = vld [vmem:[%s4556_s4 + $0x160] sm:$0xff]   ;;  %v3380_v2 = vld [vmem:[%s4556_s4 + $0x1a8] sm:$0xff]  }
 0x12d   : > { %v1352_v6 = vadd.f32 %v1351_v63, %v1350_v59  ;;  %v1366_v8 = vadd.f32 %v1365_v3, %v1364_v0  ;;  %v3374_v59 = vld [vmem:[%s4556_s4 + $0x1e0] sm:$0xff]   ;;  %v3377_v63 = vld [vmem:[%s4556_s4 + $0x168] sm:$0xff]   ;;  %v3381_v3 = vld [vmem:[%s4556_s4 + $0x170] sm:$0xff]  }
 0x12e   : > { %v1359_v9 = vadd.f32 %v1358_v4, %v1357_v1  ;;  %v1373_v11 = vadd.f32 %v1372_v7, %v1371_v5  ;;  %v3375_v61 = vld [vmem:[%s4556_s4 + $0x120] sm:$0xff]   ;;  %v3378_v0 = vld [vmem:[%s4556_s4 + $0x1e8] sm:$0xff]   ;;  %v3382_v4 = vld [vmem:[%s4556_s4 + $0x1f0] sm:$0xff]  }
 0x12f   : > { %v1353_v10 = vrot.slane %v1352_v6, 2  ;;  %v1367_v12 = vrot.slane %v1366_v8, 2  ;;  %v3376_v62 = vld [vmem:[%s4556_s4 + $0x1a0] sm:$0xff]   ;;  %v3379_v1 = vld [vmem:[%s4556_s4 + $0x128] sm:$0xff]   ;;  %v3383_v5 = vld [vmem:[%s4556_s4 + $0x130] sm:$0xff]  }
 0x130   : > { %v1360_v13 = vrot.slane %v1359_v9, 2  ;;  %v1374_v53 = vrot.slane %v1373_v11, 2  ;;  %v3385_v7 = vld [vmem:[%s4556_s4 + $0x178] sm:$0xff]  }
 0x131   : > { %v1354_v14 = vadd.f32 %v1353_v10, %v1352_v6  ;;  %v1368_v15 = vadd.f32 %v1367_v12, %v1366_v8  ;;  %v3384_v6 = vld [vmem:[%s4556_s4 + $0x1b0] sm:$0xff]   ;;  %v3386_v8 = vld [vmem:[%s4556_s4 + $0x1f8] sm:$0xff]   ;;  %v520_v12 = vsub.s32 6, %v4128_v39 }
 0x132   : > { %v1361_v16 = vadd.f32 %v1360_v13, %v1359_v9  ;;  %v1375_v18 = vadd.f32 %v1374_v53, %v1373_v11  ;;  %v3387_v9 = vld [vmem:[%s4556_s4 + $0x138] sm:$0xff]   ;;  %v512_v11 = vsub.s32 4, %v4128_v39  ;;  %v516_v13 = vsub.s32 5, %v4128_v39 }
 0x133   : > { %v1355_v17 = vrot.slane %v1354_v14, 1  ;;  %v1369_v19 = vrot.slane %v1368_v15, 1  ;;  %v3388_v10 = vld [vmem:[%s4556_s4 + $0x1b8] sm:$0xff]  }
 0x134   : > { %v1362_v20 = vrot.slane %v1361_v16, 1  ;;  %v1376_v22 = vrot.slane %v1375_v18, 1  ;;  %v513_v53 = vrot.slane %v4136_v41, %v512_v11 }
 0x135   : > { %v1356_v21 = vadd.f32 %v1355_v17, %v1354_v14  ;;  %v1370_v23 = vadd.f32 %v1369_v19, %v1368_v15  ;;  %v524_v14 = vsub.s32 7, %v4128_v39  ;;  %v521_v15 = vrot.slane %v4136_v41, %v520_v12 }
 0x136   : > { %v1363_v24 = vadd.f32 %v1362_v20, %v1361_v16  ;;  %v1377_v25 = vadd.f32 %v1376_v22, %v1375_v18  ;;  %v517_v16 = vrot.slane %v4136_v41, %v516_v13 }
 0x137   : > { %v1406_v26 = vmul.f32 0.25, %v1356_v21  ;;  %v1408_v28 = vmul.f32 0.25, %v1370_v23  ;;  %v525_v17 = vrot.slane %v4136_v41, %v524_v14 }
 0x138   : > { %v1407_v27 = vmul.f32 0.25, %v1363_v24  ;;  %v1409_v29 = vmul.f32 0.25, %v1377_v25 }
 0x139   : > { %v1414_v33 = vpack.c.bf16 %v1406_v26, %v1406_v26  ;;  %v1416_v57 = vpack.c.bf16 %v1408_v28, %v1408_v28 }
 0x13a   : > { %v1415_v30 = vpack.c.bf16 %v1407_v27, %v1407_v27  ;;  %v1417_v32 = vpack.c.bf16 %v1409_v29, %v1409_v29 }
 0x13c   : > { %1967 = vmatprep.mubr.bf16.mxu0 %v1415_v30  ;;  %2007 = vmatprep.mubr.bf16.mxu1 %v1417_v32 }
 0x13d   : > { %1968 = vmatmul.mubr.bf16.vlgmr.msra.gmra.mrb[8].mxu0 %v1414_v33  ;;  %2008 = vmatmul.mubr.bf16.vlgmr.msra.gmra.mrb[8].mxu1 %v1416_v57 }
 0x13e   : > { %3235 = vmatpush3.bf16.msra.mxu0 %v3359_v31  ;;  %3257 = vmatpush3.bf16.msra.mxu1 %v3360_v34 }
 0x13f   : > { %3236 = vmatprep.subr.bf16.mxu0 %v3361_v35  ;;  %3258 = vmatprep.subr.bf16.mxu1 %v3362_v36 }
 0x142   : > { %3237 = vmatpush3.bf16.msra.mxu0 %v3363_v37  ;;  %3259 = vmatpush3.bf16.msra.mxu1 %v3364_v38 }
 0x143   : > { %3238 = vmatprep.subr.bf16.mxu0 %v3365_v45  ;;  %3260 = vmatprep.subr.bf16.mxu1 %v3366_v46 }
 0x146   : > { %3239 = vmatpush3.bf16.msra.mxu0 %v3367_v47  ;;  %3261 = vmatpush3.bf16.msra.mxu1 %v3368_v48 }
 0x147   : > { %3240 = vmatprep.subr.bf16.mxu0 %v3369_v49  ;;  %3262 = vmatprep.subr.bf16.mxu1 %v3370_v51 }
 0x14a   : > { %3241 = vmatpush3.bf16.msra.mxu0 %v3371_v52  ;;  %3263 = vmatpush3.bf16.msra.mxu1 %v3372_v56 }
 0x14b   : > { %3242 = vmatprep.subr.bf16.mxu0 %v3373_v58  ;;  %3264 = vmatprep.subr.bf16.mxu1 %v3374_v59 }
 0x14e   : > { %3243 = vmatpush3.bf16.msra.mxu0 %v3375_v61  ;;  %3265 = vmatpush3.bf16.msra.mxu1 %v3376_v62 }
 0x14f   : > { %3244 = vmatprep.subr.bf16.mxu0 %v3377_v63  ;;  %3266 = vmatprep.subr.bf16.mxu1 %v3378_v0 }
 0x152   : > { %3245 = vmatpush3.bf16.msra.mxu0 %v3379_v1  ;;  %3267 = vmatpush3.bf16.msra.mxu1 %v3380_v2 }
 0x153   : > { %3246 = vmatprep.subr.bf16.mxu0 %v3381_v3  ;;  %3268 = vmatprep.subr.bf16.mxu1 %v3382_v4 }
 0x156   : > { %3247 = vmatpush3.bf16.msra.mxu0 %v3383_v5  ;;  %3269 = vmatpush3.bf16.msra.mxu1 %v3384_v6 }
 0x157   : > { %3248 = vmatprep.subr.bf16.mxu0 %v3385_v7  ;;  %3270 = vmatprep.subr.bf16.mxu1 %v3386_v8 }
 0x15a   : > { %3249 = vmatpush3.bf16.msra.mxu0 %v3387_v9  ;;  %3271 = vmatpush3.bf16.msra.mxu1 %v3388_v10 }
 0x167   : > { %v1301_v18 = vpop.f32.mrb[4].mxu0  ;;  %v1342_v20 = vpop.f32.mrb[4].mxu1 }
 0x168   : > { %v4274_v19 = vadd.f32 %v1301_v18, %v513_v53  ;;  %v1303_v21 = vpop.f32.mrb[5].mxu0  ;;  %v4276_v22 = vadd.f32 %v1342_v20, %v521_v15  ;;  %v1344_v24 = vpop.f32.mrb[5].mxu1  ;;  %v2097_v15 = vld [vmem:[%s4558_s6] sm:$0xff] }
 0x169   : > { %v4278_v23 = vadd.f32 %v1303_v21, %v517_v16  ;;  %v1305_v25 = vpop.f32.mrb[6].mxu0  ;;  %v4282_v27 = vadd.f32 %v1344_v24, %v525_v17  ;;  %v1346_v28 = vpop.f32.mrb[6].mxu1  ;;  %v2101_v16 = vld [vmem:[%s4558_s6 + $0x20] sm:$0xff]  ;;  %v2098_v17 = vld [vmem:[%s4558_s6 + $0x8] sm:$0xff] }
 0x16a   : > { %v1378_v26 = vsel %vm1349_vm0, %v4274_v19, 0.0  ;;  %v1306_v29 = vpop.f32.mrb[7].mxu0  ;;  %v1392_v41 = vsel %vm1349_vm0, %v4276_v22, 0.0  ;;  %v1347_v32 = vpop.f32.mrb[7].mxu1  ;;  %v3130_v18 = vcombine.low %v2097_v15, %v2101_v16  ;;  %v3131_v20 = vcombine.high %v2097_v15, %v2101_v16  ;;  %v2102_v21 = vld [vmem:[%s4558_s6 + $0x28] sm:$0xff]  ;;  %v2105_v24 = vld [vmem:[%s4558_s6 + $0x40] sm:$0xff] }
 0x16b   : > { %v1379_v30 = vrot.slane %v1378_v26, 4  ;;  %v1385_v31 = vsel %vm1349_vm0, %v4278_v23, 0.0  ;;  %v1393_v33 = vrot.slane %v1392_v41, 4  ;;  %v1399_v35 = vsel %vm1349_vm0, %v4282_v27, 0.0  ;;  %v2109_v25 = vld [vmem:[%s4558_s6 + $0x60] sm:$0xff] }
 0x16c   : > { %v1386_v34 = vrot.slane %v1385_v31, 4  ;;  %v1400_v36 = vrot.slane %v1399_v35, 4  ;;  %v3133_v28 = vcombine.high %v2098_v17, %v2102_v21  ;;  %v3139_v29 = vcombine.high %v2105_v24, %v2109_v25  ;;  %2335 = vmatprep.subr.bf16.mxu0 %v3131_v20 }
 0x16d   : > { %v1380_v57 = vadd.f32 %v1379_v30, %v1378_v26  ;;  %v1394_v37 = vadd.f32 %v1393_v33, %v1392_v41  ;;  %v3132_v26 = vcombine.low %v2098_v17, %v2102_v21  ;;  %v2106_v30 = vld [vmem:[%s4558_s6 + $0x48] sm:$0xff]  ;;  %v3138_v32 = vcombine.low %v2105_v24, %v2109_v25 }
 0x16e   : > { %v1387_v38 = vadd.f32 %v1386_v34, %v1385_v31  ;;  %v1401_v46 = vadd.f32 %v1400_v36, %v1399_v35  ;;  %v2110_v41 = vld [vmem:[%s4558_s6 + $0x68] sm:$0xff]  ;;  %2376 = vmatprep.subr.bf16.mxu1 %v3133_v28  ;;  %v2113_v34 = vld [vmem:[%s4558_s6 + $0x80] sm:$0xff] }
 0x16f   : > { %v1381_v45 = vrot.slane %v1380_v57, 2  ;;  %v1395_v47 = vrot.slane %v1394_v37, 2  ;;  %v3141_v31 = vcombine.high %v2106_v30, %v2110_v41  ;;  %v3140_v33 = vcombine.low %v2106_v30, %v2110_v41  ;;  %v2117_v35 = vld [vmem:[%s4558_s6 + $0xa0] sm:$0xff] }
 0x170   : > { %v1388_v48 = vrot.slane %v1387_v38, 2  ;;  %v1402_v51 = vrot.slane %v1401_v46, 2  ;;  %v3147_v36 = vcombine.high %v2113_v34, %v2117_v35 }
 0x171   : > { %v1382_v49 = vadd.f32 %v1381_v45, %v1380_v57  ;;  %v1396_v52 = vadd.f32 %v1395_v47, %v1394_v37  ;;  %v2114_v57 = vld [vmem:[%s4558_s6 + $0x88] sm:$0xff]  ;;  %v2121_v47 = vld [vmem:[%s4558_s6 + $0xc0] sm:$0xff] }
 0x172   : > { %v1389_v56 = vadd.f32 %v1388_v48, %v1387_v38  ;;  %v1403_v59 = vadd.f32 %v1402_v51, %v1401_v46  ;;  %v2118_v37 = vld [vmem:[%s4558_s6 + $0xa8] sm:$0xff]  ;;  %v3146_v38 = vcombine.low %v2113_v34, %v2117_v35  ;;  %v2125_v48 = vld [vmem:[%s4558_s6 + $0xe0] sm:$0xff] }
 0x173   : > { %v1383_v58 = vrot.slane %v1382_v49, 1  ;;  %v1397_v61 = vrot.slane %v1396_v52, 1  ;;  %v3148_v45 = vcombine.low %v2114_v57, %v2118_v37  ;;  %v3149_v46 = vcombine.high %v2114_v57, %v2118_v37  ;;  %v2111_v37 = vld [vmem:[%s4558_s6 + $0x70] sm:$0xff] }
 0x174   : > { %v1390_v62 = vrot.slane %v1389_v56, 1  ;;  %v1404_v0 = vrot.slane %v1403_v59, 1  ;;  %v3155_v51 = vcombine.high %v2121_v47, %v2125_v48 }
 0x175   : > { %v1384_v63 = vadd.f32 %v1383_v58, %v1382_v49  ;;  %v1398_v1 = vadd.f32 %v1397_v61, %v1396_v52  ;;  %v2122_v49 = vld [vmem:[%s4558_s6 + $0xc8] sm:$0xff]  ;;  %v2099_v61 = vld [vmem:[%s4558_s6 + $0x10] sm:$0xff] }
 0x176   : > { %v1391_v2 = vadd.f32 %v1390_v62, %v1389_v56  ;;  %v1405_v3 = vadd.f32 %v1404_v0, %v1403_v59  ;;  %v2126_v52 = vld [vmem:[%s4558_s6 + $0xe8] sm:$0xff]  ;;  %v3154_v56 = vcombine.low %v2121_v47, %v2125_v48  ;;  %v2103_v62 = vld [vmem:[%s4558_s6 + $0x30] sm:$0xff] }
 0x177   : > { %v1410_v4 = vmul.f32 0.25, %v1384_v63  ;;  %v1412_v6 = vmul.f32 0.25, %v1398_v1  ;;  %v3156_v58 = vcombine.low %v2122_v49, %v2126_v52  ;;  %v3157_v59 = vcombine.high %v2122_v49, %v2126_v52  ;;  %v2100_v63 = vld [vmem:[%s4558_s6 + $0x18] sm:$0xff]  ;;  %v2119_v52 = vld [vmem:[%s4558_s6 + $0xb0] sm:$0xff] }
 0x178   : > { %v1411_v5 = vmul.f32 0.25, %v1391_v2  ;;  %v1413_v7 = vmul.f32 0.25, %v1405_v3  ;;  %v3134_v0 = vcombine.low %v2099_v61, %v2103_v62  ;;  %v3135_v1 = vcombine.high %v2099_v61, %v2103_v62  ;;  %v2104_v2 = vld [vmem:[%s4558_s6 + $0x38] sm:$0xff] }
 0x179   : > { %v1418_v10 = vpack.c.bf16 %v1410_v4, %v1410_v4  ;;  %v1420_v53 = vpack.c.bf16 %v1412_v6, %v1412_v6  ;;  %v3517_v3 = vmov 0   ;;  %v3136_v4 = vcombine.low %v2100_v63, %v2104_v2 }
 0x17a   : > { %v1419_v8 = vpack.c.bf16 %v1411_v5, %v1411_v5  ;;  %v1421_v9 = vpack.c.bf16 %v1413_v7, %v1413_v7  ;;  %v3137_v5 = vcombine.high %v2100_v63, %v2104_v2  ;;  %v2127_v2 = vld [vmem:[%s4558_s6 + $0xf0] sm:$0xff] }
 0x17c   : > { %2047 = vmatprep.mubr.bf16.mxu0 %v1419_v8  ;;  %2087 = vmatprep.mubr.bf16.mxu1 %v1421_v9  ;;  %v1550_v8 = vld [vmem:[%s4557_s5] sm:$0x1] }
 0x17d   : > { %2048 = vmatmul.mubr.bf16.vlgmr.msra.gmra.mrb[12].mxu0 %v1418_v10  ;;  %2088 = vmatmul.mubr.bf16.vlgmr.msra.gmra.mrb[12].mxu1 %v1420_v53 }
 0x17e   : > { %2336 = vmatpush1.bf16.msra.mxu0 %v3130_v18  ;;  %2377 = vmatpush1.bf16.msra.mxu1 %v3132_v26 }
 0x17f   : > { %2337 = vmatprep.subr.bf16.mxu0 %v3139_v29  ;;  %2378 = vmatprep.subr.bf16.mxu1 %v3141_v31 }
 0x180   : > { %2367 = vmatprep.mubr.bf16.mxu0 %v3517_v3  ;;  %2408 = vmatprep.mubr.bf16.mxu1 %v3517_v3 }
 0x182   : > { %2338 = vmatpush1.bf16.msra.mxu0 %v3138_v32  ;;  %2379 = vmatpush1.bf16.msra.mxu1 %v3140_v33 }
 0x183   : > { %2339 = vmatprep.subr.bf16.mxu0 %v3147_v36  ;;  %2380 = vmatprep.subr.bf16.mxu1 %v3149_v46  ;;  %v2107_v36 = vld [vmem:[%s4558_s6 + $0x50] sm:$0xff] }
 0x184   : > { %v3143_v48 = vcombine.high %v2107_v36, %v2111_v37 }
 0x186   : > { %2340 = vmatpush1.bf16.msra.mxu0 %v3146_v38  ;;  %2381 = vmatpush1.bf16.msra.mxu1 %v3148_v45  ;;  %v2108_v38 = vld [vmem:[%s4558_s6 + $0x58] sm:$0xff] }
 0x187   : > { %2341 = vmatprep.subr.bf16.mxu0 %v3155_v51  ;;  %2382 = vmatprep.subr.bf16.mxu1 %v3157_v59  ;;  %v2112_v45 = vld [vmem:[%s4558_s6 + $0x78] sm:$0xff]  ;;  %v2115_v51 = vld [vmem:[%s4558_s6 + $0x90] sm:$0xff]  ;;  %v3142_v59 = vcombine.low %v2107_v36, %v2111_v37 }
 0x188   : > { %v3145_v49 = vcombine.high %v2108_v38, %v2112_v45  ;;  %v3144_v61 = vcombine.low %v2108_v38, %v2112_v45  ;;  %v3151_v62 = vcombine.high %v2115_v51, %v2119_v52 }
 0x18a   : > { %2342 = vmatpush1.bf16.msra.mxu0 %v3154_v56  ;;  %2383 = vmatpush1.bf16.msra.mxu1 %v3156_v58  ;;  %v2116_v56 = vld [vmem:[%s4558_s6 + $0x98] sm:$0xff] }
 0x18b   : > { %2417 = vmatprep.subr.bf16.mxu0 %v3135_v1  ;;  %2458 = vmatprep.subr.bf16.mxu1 %v3137_v5  ;;  %v2120_v58 = vld [vmem:[%s4558_s6 + $0xb8] sm:$0xff]  ;;  %v2123_v1 = vld [vmem:[%s4558_s6 + $0xd0] sm:$0xff] }
 0x18c   : > { %v3153_v63 = vcombine.high %v2116_v56, %v2120_v58  ;;  %v2124_v5 = vld [vmem:[%s4558_s6 + $0xd8] sm:$0xff] }
 0x210   : > { %v3206_v6 = vpop.f32.mrb[8].mxu0  ;;  %v3228_v7 = vpop.f32.mrb[8].mxu1 }
 0x211   : > { %v3207_v9 = vpop.f32.mrb[9].mxu0  ;;  %v3229_v53 = vpop.f32.mrb[9].mxu1 }
 0x212   : > { %v3208_v10 = vadd.f32 %v3207_v9, %v3206_v6  ;;  %v3209_v15 = vpop.f32.mrb[10].mxu0  ;;  %v3230_v16 = vadd.f32 %v3229_v53, %v3228_v7  ;;  %v3231_v17 = vpop.f32.mrb[10].mxu1  ;;  %v3152_v6 = vcombine.low %v2116_v56, %v2120_v58  ;;  %v3159_v7 = vcombine.high %v2123_v1, %v2127_v2 }
 0x213   : > { %v3210_v18 = vpop.f32.mrb[11].mxu0  ;;  %v3232_v21 = vpop.f32.mrb[11].mxu1  ;;  %v3158_v9 = vcombine.low %v2123_v1, %v2127_v2 }
 0x214   : > { %v1970_v20 = vadd.f32 %v3208_v10, %v1550_v8 }
 0x216   : > { %v2010_v24 = vadd.f32 %v3230_v16, %v1970_v20 }
 0x250   : > { %v3250_v25 = vpop.f32.mrb[12].mxu0  ;;  %v3272_v26 = vpop.f32.mrb[12].mxu1 }
 0x251   : > { %v3251_v28 = vpop.f32.mrb[13].mxu0  ;;  %v3273_v30 = vpop.f32.mrb[13].mxu1 }
 0x252   : > { %v3252_v29 = vadd.f32 %v3251_v28, %v3250_v25  ;;  %v3253_v41 = vpop.f32.mrb[14].mxu0  ;;  %v3274_v31 = vadd.f32 %v3273_v30, %v3272_v26  ;;  %v3275_v32 = vpop.f32.mrb[14].mxu1 }
 0x253   : > { %v3254_v33 = vpop.f32.mrb[15].mxu0  ;;  %v3276_v35 = vpop.f32.mrb[15].mxu1 }
 0x254   : > { %v2050_v34 = vadd.f32 %v3252_v29, %v2010_v24 }
 0x256   : > { %v2090_v57 = vadd.f32 %v3274_v31, %v2050_v34 }
 0x258   : > { %v2095_v46 = vmax.f32 %v2090_v57, 0.0 }
 0x25a   : > { %v2096_v47 = vpack.c.bf16 %v2095_v46, %v2095_v46 }
 0x25c   : > { %3162 = vmatmul.mubr.msk.bf16.vlgmr.msra.gmra.mrb[16].mxu0 %vm2331_vm1, %v2096_v47  ;;  %3163 = vmatmul.mubr.msk.bf16.vlgmr.msra.gmra.mrb[16].mxu1 %vm2331_vm1, %v2096_v47 }
 0x25d   : > { %2418 = vmatpush1.bf16.msra.mxu0 %v3134_v0  ;;  %2459 = vmatpush1.bf16.msra.mxu1 %v3136_v4  ;;  %v2128_v0 = vld [vmem:[%s4558_s6 + $0xf8] sm:$0xff]  ;;  %v3150_v4 = vcombine.low %v2115_v51, %v2119_v52 }
 0x25e   : > { %2419 = vmatprep.subr.bf16.mxu0 %v3143_v48  ;;  %2460 = vmatprep.subr.bf16.mxu1 %v3145_v49  ;;  %v3161_v8 = vcombine.high %v2124_v5, %v2128_v0  ;;  %v3160_v10 = vcombine.low %v2124_v5, %v2128_v0 }
 0x25f   : > { %2449 = vmatprep.mubr.bf16.mxu0 %v3517_v3  ;;  %2490 = vmatprep.mubr.bf16.mxu1 %v3517_v3  ;;  %v2129_v3 = vld [vmem:[%s4559_s7] sm:$0xff] }
 0x260   : > { %v2294_v53 = vrot.slane %v2129_v3, %v4131_v40  ;;  %v2302_v15 = vrot.slane %v2129_v3, %v504_v42  ;;  %v2298_v16 = vrot.slane %v2129_v3, %v500_v43  ;;  %v2306_v17 = vrot.slane %v2129_v3, %v508_v44 }
 0x261   : > { %2420 = vmatpush1.bf16.msra.mxu0 %v3142_v59  ;;  %2461 = vmatpush1.bf16.msra.mxu1 %v3144_v61  ;;  %v2310_v43 = vrot.slane %v2129_v3, %v512_v11  ;;  %v2318_v44 = vrot.slane %v2129_v3, %v520_v12  ;;  %v2314_v57 = vrot.slane %v2129_v3, %v516_v13 }
 0x262   : > { %2421 = vmatprep.subr.bf16.mxu0 %v3151_v62  ;;  %2462 = vmatprep.subr.bf16.mxu1 %v3153_v63  ;;  %v2322_v36 = vrot.slane %v2129_v3, %v524_v14 }
 0x265   : > { %2422 = vmatpush1.bf16.msra.mxu0 %v3150_v4  ;;  %2463 = vmatpush1.bf16.msra.mxu1 %v3152_v6  ;;  %v2587_v6 = vld [vmem:[%s4415_s25] sm:$0xff] }
 0x266   : > { %2423 = vmatprep.subr.bf16.mxu0 %v3159_v7  ;;  %2464 = vmatprep.subr.bf16.mxu1 %v3161_v8  ;;  %v2589_v7 = vunpack.c.l.bf16 %v2587_v6 }
 0x269   : > { %2424 = vmatpush1.bf16.msra.mxu0 %v3158_v9  ;;  %2465 = vmatpush1.bf16.msra.mxu1 %v3160_v10  ;;  %v2590_v9 = vunpack.c.h.bf16 %v2587_v6 }
 0x26c   : > { %3164 = vmatmul.mubr.msk.bf16.vlgmr.msra.gmra.mrb[20].mxu0 %vm2331_vm1, %v2096_v47  ;;  %3165 = vmatmul.mubr.msk.bf16.vlgmr.msra.gmra.mrb[20].mxu1 %vm2331_vm1, %v2096_v47 }
 0x32f   : > { %v2369_v18 = vpop.f32.mrb[16].mxu0  ;;  %v2410_v20 = vpop.f32.mrb[16].mxu1 }
 0x330   : > { %v2370_v21 = vadd.f32 %v2369_v18, %v2294_v53  ;;  %v2411_v24 = vadd.f32 %v2410_v20, %v2302_v15  ;;  %v2371_v25 = vpop.f32.mrb[17].mxu0  ;;  %v2412_v26 = vpop.f32.mrb[17].mxu1  ;;  %v3518_v53 = vmov 1983009808  }
 0x331   : > { %v2372_v28 = vadd.f32 %v2371_v25, %v2298_v16  ;;  %v2413_v29 = vadd.f32 %v2412_v26, %v2306_v17  ;;  %v2373_v30 = vpop.f32.mrb[18].mxu0  ;;  %v2414_v41 = vpop.f32.mrb[18].mxu1  ;;  %v2640_v15 = vunpack.c.l.s4 %v3518_v53 }
 0x332   : > { %v3166_v31 = vmul.f32 -1.442695, %v2370_v21  ;;  %v3168_v32 = vmul.f32 -1.442695, %v2411_v24  ;;  %v2374_v33 = vpop.f32.mrb[19].mxu0  ;;  %v2415_v42 = vpop.f32.mrb[19].mxu1  ;;  %v2597_v24 = vcombine.high %v2589_v7, %v2589_v7 }
 0x333   : > { %v3167_v34 = vmul.f32 -1.442695, %v2372_v28  ;;  %v3169_v35 = vmul.f32 -1.442695, %v2413_v29  ;;  %v2598_v29 = vcombine.high %v2590_v9, %v2590_v9  ;;  %v2641_v33 = vunpack.c.0.s8 %v2640_v15 }
 0x334   : > { %3389 = vpow2.f32 %v3166_v31 }
 0x335   : > { %3391 = vpow2.f32 %v3168_v32 }
 0x336   : > { %3393 = vpow2.f32 %v3167_v34 }
 0x337   : > { %3395 = vpow2.f32 %v3169_v35 }
 0x33e   : > { %v3390_v37 = vpop.eup %3389 }
 0x33f   : > { %v3392_v38 = vpop.eup %3391  ;;  %v2523_v45 = vadd.f32 1.0, %v3390_v37  ;;  %v2451_v46 = vpop.f32.mrb[20].mxu0 }
 0x340   : > { %v2492_v47 = vpop.f32.mrb[20].mxu1  ;;  %v3394_v48 = vpop.eup %3393  ;;  %v2525_v49 = vadd.f32 1.0, %v3392_v38  ;;  %v2452_v51 = vadd.f32 %v2451_v46, %v2310_v43  ;;  %v2588_v46 = vld [vmem:[%s4415_s25 + $0x8] sm:$0xff]  ;;  %s3427_s25 = scalar_lea.vmem %s3426_s18, 512 }
 0x341   : > { %v2493_v52 = vadd.f32 %v2492_v47, %v2318_v44  ;;  %v2453_v11 = vpop.f32.mrb[21].mxu0  ;;  %v2494_v56 = vpop.f32.mrb[21].mxu1  ;;  %3397 = vrcp.f32 %v2523_v45  ;;  %v2524_v12 = vadd.f32 1.0, %v3394_v48  ;;  %v4430_v45 = vsub.s32 %v2641_v33, %v4128_v39  ;;  %p3429_p1 = scmp.lt.s32.totalorder %s3427_s25, %s3421_s24 }
 0x342   : > { %v3396_v58 = vpop.eup %3395  ;;  %v2454_v59 = vadd.f32 %v2453_v11, %v2314_v57  ;;  %v2495_v13 = vadd.f32 %v2494_v56, %v2322_v36  ;;  %v2455_v61 = vpop.f32.mrb[22].mxu0  ;;  %3399 = vrcp.f32 %v2525_v49  ;;  %v3170_v63 = vmul.f32 -1.442695, %v2452_v51 }
 0x343   : > { %v2496_v62 = vpop.f32.mrb[22].mxu1  ;;  %v2526_v14 = vadd.f32 1.0, %v3396_v58  ;;  %v3172_v1 = vmul.f32 -1.442695, %v2493_v52  ;;  %v2456_v2 = vpop.f32.mrb[23].mxu0  ;;  %3401 = vrcp.f32 %v2524_v12  ;;  %p3430_p2 = por %p3429_p1, %p3428_p0 }
 0x344   : > { %v3171_v5 = vmul.f32 -1.442695, %v2454_v59  ;;  %v2497_v0 = vpop.f32.mrb[23].mxu1  ;;  %v3173_v4 = vmul.f32 -1.442695, %v2495_v13  ;;  %v2591_v13 = vunpack.c.l.bf16 %v2588_v46 }
 0x345   : > { %3403 = vrcp.f32 %v2526_v14  ;;  %p3431_p3 = pnand %p3430_p2, %p3424_p13 }
 0x346   : > { %3405 = vpow2.f32 %v3170_v63  ;;  %v2599_v53 = vcombine.high %v2591_v13, %v2591_v13 }
 0x347   : > { %3407 = vpow2.f32 %v3172_v1 }
 0x348   : > { %3409 = vpow2.f32 %v3171_v5  ;;  %v3519_v5 = vmov 1966171168  }
 0x349   : > { %3411 = vpow2.f32 %v3173_v4  ;;  %v2744_v0 = vunpack.c.l.s4 %v3519_v5  ;;  %v2592_v4 = vunpack.c.h.bf16 %v2588_v46 }
 0x34b   : > { %v3398_v8 = vpop.eup %3397 }
 0x34c   : > { %v3400_v10 = vpop.eup %3399  ;;  %v2550_v3 = vrot.slane %v3398_v8, %v4131_v40 }
 0x34d   : > { %v3402_v16 = vpop.eup %3401  ;;  %v2558_v17 = vrot.slane %v3400_v10, %v4131_v40 }
 0x34e   : > { %v2554_v20 = vrot.slane %v3402_v16, %v4131_v40  ;;  %v2579_v21 = vmul.f32 %v2550_v3, %v4152_v50 }
 0x34f   : > { %v3404_v18 = vpop.eup %3403  ;;  %v2581_v28 = vmul.f32 %v2558_v17, %v4154_v54 }
 0x350   : > { %v3406_v25 = vpop.eup %3405  ;;  %v2562_v26 = vrot.slane %v3404_v18, %v4131_v40  ;;  %v2580_v31 = vmul.f32 %v2554_v20, %v4156_v55  ;;  %v2605_v32 = vadd.f32 %v2589_v7, %v2579_v21 }
 0x351   : > { %v3408_v30 = vpop.eup %3407  ;;  %v2527_v41 = vadd.f32 1.0, %v3406_v25  ;;  %v2607_v43 = vadd.f32 %v2590_v9, %v2581_v28  ;;  %v2600_v28 = vcombine.high %v2592_v4, %v2592_v4 }
 0x352   : > { %v3410_v42 = vpop.eup %3409  ;;  %v2529_v34 = vadd.f32 1.0, %v3408_v30  ;;  %v2582_v35 = vmul.f32 %v2562_v26, %v4160_v60  ;;  %v2606_v57 = vadd.f32 %v2597_v24, %v2580_v31  ;;  %v2613_v36 = vmax.f32 %v2605_v32, 0.0 }
 0x353   : > { %v3412_v50 = vpop.eup %3411  ;;  %3413 = vrcp.f32 %v2527_v41  ;;  %v2528_v44 = vadd.f32 1.0, %v3410_v42  ;;  %v2615_v38 = vmax.f32 %v2607_v43, 0.0  ;;  %v2745_v24 = vunpack.c.0.s8 %v2744_v0 }
 0x354   : > { %3415 = vrcp.f32 %v2529_v34  ;;  %v2530_v54 = vadd.f32 1.0, %v3412_v50  ;;  %v2608_v37 = vadd.f32 %v2598_v29, %v2582_v35  ;;  %v2614_v55 = vmax.f32 %v2606_v57, 0.0 }
 0x355   : > { %3417 = vrcp.f32 %v2528_v44  ;;  %v2675_v60 = vsel %vm1349_vm0, %v2613_v36, -inf  ;;  %v2689_v49 = vsel %vm1349_vm0, %v2615_v38, -inf }
 0x356   : > { %3419 = vrcp.f32 %v2530_v54  ;;  %v2616_v47 = vmax.f32 %v2608_v37, 0.0  ;;  %v2676_v48 = vrot.slane %v2675_v60, 4  ;;  %v3174_v51 = vpack.c.bf16 %v2614_v55, %v2613_v36 }
 0x357   : > { %v2682_v52 = vsel %vm1349_vm0, %v2614_v55, -inf  ;;  %v2690_v11 = vrot.slane %v2689_v49, 4  ;;  %v4451_v54 = vsub.s32 %v2745_v24, %v4128_v39 }
 0x358   : > { %v3175_v56 = vpack.c.bf16 %v2616_v47, %v2615_v38  ;;  %v2677_v58 = vmax.f32 %v2675_v60, %v2676_v48  ;;  %v2683_v12 = vrot.slane %v2682_v52, 4  ;;  %v2696_v59 = vsel %vm1349_vm0, %v2616_v47, -inf }
 0x359   : > { %v2645_v61 = vrot.slane %v3174_v51, %v4430_v45  ;;  %v2691_v62 = vmax.f32 %v2689_v49, %v2690_v11  ;;  %v2697_v14 = vrot.slane %v2696_v59, 4 }
 0x35a   : > { %v2652_v63 = vrot.slane %v3175_v56, %v4430_v45  ;;  %v2678_v1 = vrot.slane %v2677_v58, 2  ;;  %v2684_v2 = vmax.f32 %v2682_v52, %v2683_v12 }
 0x35b   : > { %v2692_v6 = vrot.slane %v2691_v62, 2  ;;  %v2698_v7 = vmax.f32 %v2696_v59, %v2697_v14 }
 0x35c   : > { %v2653_v8 = vcombine.low %v2645_v61, %v2652_v63  ;;  %v2685_v9 = vrot.slane %v2684_v2, 2  ;;  %v2679_v10 = vmax.f32 %v2677_v58, %v2678_v1 }
 0x35d   : > { %v3414_v3 = vpop.eup %3413  ;;  %v2699_v15 = vrot.slane %v2698_v7, 2  ;;  %v2693_v16 = vmax.f32 %v2691_v62, %v2692_v6 }
 0x35e   : > { %v3416_v17 = vpop.eup %3415  ;;  %v2566_v18 = vrot.slane %v3414_v3, %v4131_v40  ;;  %2673 = vst [vmem:[%s4441_s29] sm:$0xff] %v2653_v8  ;;  %v2680_v20 = vrot.slane %v2679_v10, 1  ;;  %v2686_v21 = vmax.f32 %v2684_v2, %v2685_v9 }
 0x35f   : > { %v3418_v25 = vpop.eup %3417  ;;  %v2574_v26 = vrot.slane %v3416_v17, %v4131_v40  ;;  %v2694_v29 = vrot.slane %v2693_v16, 1  ;;  %v2700_v30 = vmax.f32 %v2698_v7, %v2699_v15 }
 0x360   : > { %v3420_v41 = vpop.eup %3419  ;;  %v2570_v31 = vrot.slane %v3418_v25, %v4131_v40  ;;  %v2583_v32 = vmul.f32 %v2566_v18, %v4274_v19  ;;  %v2681_v33 = vmax.f32 %v2679_v10, %v2680_v20  ;;  %v2687_v42 = vrot.slane %v2686_v21, 1 }
 0x361   : > { %v2578_v34 = vrot.slane %v3420_v41, %v4131_v40  ;;  %v2585_v35 = vmul.f32 %v2574_v26, %v4276_v22  ;;  %v2695_v43 = vmax.f32 %v2693_v16, %v2694_v29  ;;  %v2701_v50 = vrot.slane %v2700_v30, 1 }
 0x362   : > { %v2584_v44 = vmul.f32 %v2570_v31, %v4278_v23  ;;  %v2609_v57 = vadd.f32 %v2591_v13, %v2583_v32  ;;  %v2688_v36 = vmax.f32 %v2686_v21, %v2687_v42 }
 0x363   : > { %v2586_v37 = vmul.f32 %v2578_v34, %v4282_v27  ;;  %v2611_v38 = vadd.f32 %v2592_v4, %v2585_v35  ;;  %v2702_v55 = vmax.f32 %v2700_v30, %v2701_v50 }
 0x364   : > { %v2610_v19 = vadd.f32 %v2599_v53, %v2584_v44  ;;  %v2617_v60 = vmax.f32 %v2609_v57, 0.0  ;;  %v2739_v46 = vcombine.low %v2681_v33, %v2688_v36 }
 0x365   : > { %v2612_v47 = vadd.f32 %v2600_v28, %v2586_v37  ;;  %v2619_v40 = vmax.f32 %v2611_v38, 0.0  ;;  %v2740_v48 = vcombine.low %v2695_v43, %v2702_v55 }
 0x366   : > { %v2618_v22 = vmax.f32 %v2610_v19, 0.0  ;;  %v2703_v49 = vsel %vm1349_vm0, %v2617_v60, -inf  ;;  %v4456_v23 = vrot.slane %v2739_v46, %v4451_v54 }
 0x367   : > { %v2620_v39 = vmax.f32 %v2612_v47, 0.0  ;;  %v2704_v51 = vrot.slane %v2703_v49, 4  ;;  %v2717_v27 = vsel %vm1349_vm0, %v2619_v40, -inf  ;;  %v4460_v52 = vrot.slane %v2740_v48, %v4451_v54 }
 0x368   : > { %v3176_v11 = vpack.c.bf16 %v2618_v22, %v2617_v60  ;;  %v2710_v56 = vsel %vm1349_vm0, %v2618_v22, -inf  ;;  %v2718_v58 = vrot.slane %v2717_v27, 4 }
 0x369   : > { %v3177_v12 = vpack.c.bf16 %v2620_v39, %v2619_v40  ;;  %v2705_v59 = vmax.f32 %v2703_v49, %v2704_v51  ;;  %v2711_v13 = vrot.slane %v2710_v56, 4  ;;  %v2724_v61 = vsel %vm1349_vm0, %v2620_v39, -inf }
 0x36a   : > { %v2662_v62 = vrot.slane %v3176_v11, %v4430_v45  ;;  %v2719_v14 = vmax.f32 %v2717_v27, %v2718_v58  ;;  %v2725_v63 = vrot.slane %v2724_v61, 4  ;;  %v2771_v1 = vcombine.low %v4456_v23, %v4460_v52 }
 0x36b   : > { %v2669_v2 = vrot.slane %v3177_v12, %v4430_v45  ;;  %v2706_v5 = vrot.slane %v2705_v59, 2  ;;  %v2712_v0 = vmax.f32 %v2710_v56, %v2711_v13 }
 0x36c   : > { %v2720_v4 = vrot.slane %v2719_v14, 2  ;;  %v2726_v6 = vmax.f32 %v2724_v61, %v2725_v63 }
 0x36d   : > { %v2670_v7 = vcombine.low %v2662_v62, %v2669_v2  ;;  %v2713_v8 = vrot.slane %v2712_v0, 2  ;;  %v2707_v9 = vmax.f32 %v2705_v59, %v2706_v5 }
 0x36e   : > { %v2727_v10 = vrot.slane %v2726_v6, 2  ;;  %v2721_v45 = vmax.f32 %v2719_v14, %v2720_v4 }
 0x36f   : > { %2674 = vst [vmem:[%s4441_s29 + $0x8] sm:$0xff] %v2670_v7  ;;  %v2708_v3 = vrot.slane %v2707_v9, 1  ;;  %v2714_v53 = vmax.f32 %v2712_v0, %v2713_v8 }
 0x370   : > { %3434 = shalt.err (!%p3431_p3)
}
 0x371   : > { %s3435_s28 = scalar_lea.hbm %s4473_s23, 256  ;;  %s3439_s17 = scalar_lea.hbm %s4560_s8, 512 }
 0x372   : > { %p3436_p4 = scmp.ne.s32.totalorder %s4473_s23, %s3435_s28  ;;  %p3440_p9 = scmp.lt.u32.totalorder %s4473_s23, %s4560_s8 }
 0x373   : > { %p3441_p10 = scmp.lt.u32.totalorder %s3439_s17, %s3435_s28  ;;  %p3443_p12 = scmp.lt.u32.totalorder %s3435_s28, %s4473_s23 }
 0x374   : > { %p3437_p7 = pnand %p3436_p4, %p3610_p5 }
 0x375   : > { %p3442_p11 = por %p3441_p10, %p3440_p9 }
 0x376   : > { %p3438_p8 = pneg %p3437_p7 }
 0x377   : > { %p3444_p13 = por %p3443_p12, %p3442_p11 }
 0x379   : > { %p3445_p0 = pnand %p3444_p13, %p3438_p8 }
 0x37b   : > { %3448 = shalt.err (!%p3445_p0)
}
 0x37c   : > { %3278 = dma.vmem_to_hbm [thread:$0]  (%p3610_p5), %s4475_s16, 256, %s4473_s23, %s2791_s22   ;;  %v2722_v15 = vrot.slane %v2721_v45, 1  ;;  %v2728_v16 = vmax.f32 %v2726_v6, %v2727_v10  ;;  %v2709_v17 = vmax.f32 %v2707_v9, %v2708_v3  ;;  %v2715_v18 = vrot.slane %v2714_v53, 1 }
 0x37d   : > { %s2932_s24 = sshll.u32 %s4427_s27, 3  ;;  %s3189_s18 = sshll.u32 %s3593_s13, 7  ;;  %v2779_v31 = vrot.slane %v2771_v1, %v4451_v54 }
 0x37e   : > { %v2723_v20 = vmax.f32 %v2721_v45, %v2722_v15  ;;  %v2729_v21 = vrot.slane %v2728_v16, 1  ;;  %v2716_v24 = vmax.f32 %v2714_v53, %v2715_v18  ;;  %s351_s16 = scalar_lea.vmem [#allocation4], %s2932_s24  ;;  %s4509_s28 = scalar_lea.hbm %s4561_s9, %s3189_s18 }
 0x37f   : > { %s2824_s23 = sshll.u32 %s351_s16, 4  ;;  %s2796_s29 = scalar_lea.sflag [#allocation5], %s4427_s27  ;;  %s4511_s23 = int_to_ptr.vmem [resolvable:$true] %s2824_s23 }
 0x380   : > { %v2730_v25 = vmax.f32 %v2728_v16, %v2729_v21  ;;  %v2741_v26 = vcombine.low %v2709_v17, %v2716_v24  ;;  %s3449_s13 = scalar_lea.vmem %s4511_s23, 128  ;;  %s3521_s14 = smov [#allocation4]  }
 0x381   : > { %p3450_p1 = scmp.ne.s32.totalorder %s4511_s23, %s3449_s13  ;;  %s3453_s17 = sshll.u32 %s3521_s14, 4  ;;  %s3454_s17 = int_to_ptr.vmem [resolvable:$false] %s3453_s17 }
 0x382   : > { %v2742_v28 = vcombine.low %v2723_v20, %v2730_v25  ;;  %v2763_v29 = vrot.slane %v2741_v26, %v4451_v54  ;;  %s3455_s21 = scalar_lea.vmem %s3454_s17, 256  ;;  %p3456_p4 = scmp.lt.s32.totalorder %s4511_s23, %s3454_s17 }
 0x383   : > { %p3451_p2 = pnand %p3450_p1, %p3610_p5  ;;  %p3457_p7 = scmp.lt.s32.totalorder %s3455_s21, %s3449_s13 }
 0x384   : > { %v2770_v30 = vrot.slane %v2742_v28, %v4451_v54 }
 0x385   : > { %p3452_p3 = pneg %p3451_p2  ;;  %p3458_p8 = por %p3457_p7, %p3456_p4 }
 0x386   : > { %v2772_v41 = vcombine.low %v2763_v29, %v2770_v30 }
 0x387   : > { %p3459_p9 = pnand %p3458_p8, %p3452_p3 }
 0x388   : > { %v2786_v32 = vrot.slane %v2772_v41, %v4451_v54 }
 0x38a   : > { %v2787_v33 = vcombine.low %v2779_v31, %v2786_v32 }
 0x38c   : > { %2789 = vst [vmem:[%s351_s16] sm:$0xff] %v2787_v33 }
 0x38d   : > { %3462 = shalt.err (!%p3459_p9)
}
 0x38e   : > { %s3463_s27 = scalar_lea.hbm %s4509_s28, 128  ;;  %s3467_s18 = scalar_lea.hbm %s4561_s9, 256 }
 0x38f   : > { %p3464_p10 = scmp.ne.s32.totalorder %s4509_s28, %s3463_s27  ;;  %p3468_p13 = scmp.lt.u32.totalorder %s4509_s28, %s4561_s9 }
 0x390   : > { %p3469_p0 = scmp.lt.u32.totalorder %s3467_s18, %s3463_s27  ;;  %p3471_p2 = scmp.lt.u32.totalorder %s3463_s27, %s4509_s28 }
 0x391   : > { %p3465_p11 = pnand %p3464_p10, %p3610_p5 }
 0x392   : > { %p3470_p1 = por %p3469_p0, %p3468_p13 }
 0x393   : > { %p3466_p12 = pneg %p3465_p11 }
 0x394   : > { %p3472_p3 = por %p3471_p2, %p3470_p1 }
 0x396   : > { %p3473_p4 = pnand %p3472_p3, %p3466_p12 }
 0x398   : > { %3476 = shalt.err (!%p3473_p4)
}
 0x399   : > { %3279 = dma.vmem_to_hbm [thread:$0]  (%p3610_p5), %s4511_s23, 128, %s4509_s28, %s2796_s29  }
 0x39a PF: > { %p3289_p7 = scmp.ge.s32.totalorder %s3515_s12, 2  ;;  %s2836_s25 = sand.u32 1, %s3503_s30  }
 0x39b   : > { %s2837_s13 = scalar_lea.sflag [#allocation3], %s2836_s25 }
 0x39c   : > { %p3283_p8 = pnand %p3289_p7, %p3614_p6 }
 0x39e   : > { %3494 = dma.done.wait (!%p3283_p8), %s2837_s13, 256  }
 0x39f   : > { %3496 = vsyncadd (!%p3283_p8), %s2837_s13, 4294967040  ;;  %s2846_s14 = scalar_lea.sflag [#allocation5], %s2836_s25 }
 0x3a0   : > { %3498 = dma.done.wait (!%p3283_p8), %s2846_s14, 128  }
 0x3a1   : > { %3500 = vsyncadd (!%p3283_p8), %s2846_s14, 4294967168  ;;  %s4565_s19 = sld [smem:[#allocation8_spill]]  ;;  %p23_p5 = scmp.ge.s32.totalorder %s3597_s15, 4  }
 0x3a2   : > { %s4566_s30 = smov %s3507_s10  ;;  %s4567_s10 = smov %s3511_s11 }
 0x3a3   : > { %s4569_s12 = smov %s3597_s15  ;;  %25 = sbr.rel (!%p23_p5) target bundleno = 5 (0x5), region = 107 }
 0x3a7   : > { %s4568_s11 = smov %s4565_s19 }
 0x3aa   :  { %2851 = vsyncpa [#allocation3], 1 }
 0x3ab   :  { %2853 = vsyncpa [#allocation3 + $0x1], 1 }
 0x3ac   :  { %2854 = vsyncpa [#allocation5], 1 }
 0x3ad   :  { %2856 = vsyncpa [#allocation5 + $0x1], 1 }

</bundles_post_ra>
